<compile_context>
chip_gen: v6e
topology: v6e:2x2x1
jax: 0.10.0
libtpu: 0.0.40
codegen_flags: <defaults>
</compile_context>

<pallas_src>
import jax
import jax.numpy as jnp
from jax.experimental import pallas as pl
from jax.experimental.pallas import tpu as pltpu

# ----------------------------- model sizes (small, deterministic) -----------------------------
SRC_VOCAB = 20
TRG_VOCAB = 18
VOCAB_PAD = 128            # lane-dense width for fc_out / one-hot (TRG_VOCAB padded to 128)
EMB_DIM = 16
ENC_HID = 32
DEC_HID = 32
SRC_PAD_IDX = 0


# ----------------------------------------- kernels --------------------------------------------
def _encoder_gru_kernel(valid_ref, emb_ref, wi_ref, wh_ref, bi_ref, bh_ref,
                        out_ref, hfin_ref):
    """One direction of the bidirectional encoder GRU. grid = (2,) ('parallel').

    The whole time axis is an in-kernel unrolled fori_loop; the hidden state lives in vregs,
    per-step outputs are stored into the VMEM-resident output block (one HBM writeback per
    direction). Gate order in the fused 3H weights is [r | z | n] (PyTorch GRU semantics).
    """
    H = ENC_HID
    d = pl.program_id(0)                 # 0 = forward, 1 = backward
    S, B, _ = emb_ref.shape

    wi = wi_ref[...]                     # (EMB, 3H)
    wh = wh_ref[...]                     # (H, 3H)
    bi = bi_ref[...]                     # (1, 3H)
    bh = bh_ref[...]                     # (1, 3H)

    def step(t, h):
        tt = t + d * (S - 1 - 2 * t)     # fwd walks t, bwd walks S-1-t
        x = emb_ref[tt]                  # (B, EMB)
        valid = valid_ref[tt]            # (B, 1): 1.0 = real token, 0.0 = pad
        gi = jnp.dot(x, wi, preferred_element_type=jnp.float32) + bi
        gh = jnp.dot(h, wh, preferred_element_type=jnp.float32) + bh
        r = jax.nn.sigmoid(gi[:, 0:H] + gh[:, 0:H])
        z = jax.nn.sigmoid(gi[:, H:2 * H] + gh[:, H:2 * H])
        n = jnp.tanh(gi[:, 2 * H:3 * H] + r * gh[:, 2 * H:3 * H])
        h_new = (1.0 - z) * n + z * h
        h_keep = valid * h_new + (1.0 - valid) * h   # pack_padded: pads don't update the state
        out_ref[tt] = h_keep * valid                 # pad_packed: pads emit zeros
        return h_keep

    h_fin = jax.lax.fori_loop(0, S, step, jnp.zeros((B, H), jnp.float32), unroll=True)
    hfin_ref[...] = h_fin


def _decoder_kernel(tf_ref,                                        # scalar-prefetch (SMEM)
                    trg_oh_ref, enc_ref, hfin_ref, mask_ref,
                    wfc_ref, bfc_ref, wah_ref, wae_ref, ba_ref, v_ref,
                    demb_ref, wi_ref, wh_ref, bi_ref, bh_ref,
                    wout_ref, bout_ref,
                    pred_ref):
    """All T-1 decoder steps in a single invocation (grid=(1,)).

    Per step: teacher-forcing/greedy input select + additive attention (masked softmax) +
    GRU cell + fc_out + in-kernel argmax feedback. Hidden and one-hot feedback are fori_loop
    carries (vreg-resident); everything else is VMEM-resident for the whole call.
    """
    H = DEC_HID
    He = ENC_HID
    Tm1, B, _ = trg_oh_ref.shape
    S = enc_ref.shape[1]

    enc_f = enc_ref[0]                            # (S, B, He) forward encoder outputs
    enc_b = enc_ref[1]                            # (S, B, He) backward encoder outputs
    maskf = mask_ref[...]                         # (S, B): 1.0 = attendable, 0.0 = pad

    # encoder fc: hidden0 = tanh([h_fwd ; h_bwd] @ W_fc + b_fc) -- split matmul, no concat
    h0 = jnp.tanh(
        jnp.dot(hfin_ref[0], wfc_ref[0], preferred_element_type=jnp.float32)
        + jnp.dot(hfin_ref[1], wfc_ref[1], preferred_element_type=jnp.float32)
        + bfc_ref[...])

    # hoisted encoder attention projection (+ attention bias), independent of decoder state
    eproj = (jnp.dot(enc_f.reshape(S * B, He), wae_ref[0], preferred_element_type=jnp.float32)
             + jnp.dot(enc_b.reshape(S * B, He), wae_ref[1], preferred_element_type=jnp.float32)
             ).reshape(S, B, H) + ba_ref[...][None]

    demb = demb_ref[...]                          # (VOCAB_PAD, EMB)
    wah = wah_ref[...]                            # (H, H)
    v = v_ref[...]                                # (1, H)
    wh = wh_ref[...]
    bi = bi_ref[...]
    bh = bh_ref[...]
    bout = bout_ref[...]

    # row-split weight views (hoisted; offsets are sublane-aligned multiples of 8)
    wi_e = wi_ref[0:EMB_DIM, :]                   # GRU input weights: embedding rows
    wi_f = wi_ref[EMB_DIM:EMB_DIM + He, :]        #                    weighted-fwd rows
    wi_b = wi_ref[EMB_DIM + He:, :]               #                    weighted-bwd rows
    wo_h = wout_ref[0:H, :]                       # fc_out: hidden rows
    wo_f = wout_ref[H:H + He, :]                  #         weighted-fwd rows
    wo_b = wout_ref[H + He:H + 2 * He, :]         #         weighted-bwd rows
    wo_e = wout_ref[H + 2 * He:, :]               #         embedding rows

    def step(i, carry):
        h, oh = carry
        # ------------- input token: teacher forcing vs greedy feedback -------------
        tf = (tf_ref[i] > 0).astype(jnp.float32)
        inp_oh = tf * trg_oh_ref[i] + (1.0 - tf) * oh          # (B, VOCAB_PAD) one-hot
        emb = jnp.dot(inp_oh, demb, preferred_element_type=jnp.float32)   # (B, EMB)

        # ------------- additive attention (masked softmax over source positions) -------------
        h_proj = jnp.dot(h, wah, preferred_element_type=jnp.float32)      # (B, H)
        energy = jnp.tanh(eproj + h_proj[None])                           # (S, B, H)
        scores = jnp.sum(energy * v[None], axis=-1)                       # (S, B)
        scores = jnp.where(maskf > 0.5, scores, -1.0e10)                  # masked_fill
        m = jnp.max(scores, axis=0, keepdims=True)
        p = jnp.exp(scores - m)
        a = p * pl.reciprocal(jnp.sum(p, axis=0, keepdims=True), approx=True)
        w_f = jnp.sum(a[:, :, None] * enc_f, axis=0)                      # (B, He)
        w_b = jnp.sum(a[:, :, None] * enc_b, axis=0)                      # (B, He)

        # ------------- GRU cell (fused [r|z|n] gates, split input matmuls) -------------
        gi = (jnp.dot(emb, wi_e, preferred_element_type=jnp.float32)
              + jnp.dot(w_f, wi_f, preferred_element_type=jnp.float32)
              + jnp.dot(w_b, wi_b, preferred_element_type=jnp.float32) + bi)
        gh = jnp.dot(h, wh, preferred_element_type=jnp.float32) + bh
        r = jax.nn.sigmoid(gi[:, 0:H] + gh[:, 0:H])
        z = jax.nn.sigmoid(gi[:, H:2 * H] + gh[:, H:2 * H])
        n = jnp.tanh(gi[:, 2 * H:3 * H] + r * gh[:, 2 * H:3 * H])
        h_new = (1.0 - z) * n + z * h

        # ------------- fc_out (lane-dense, padded to VOCAB_PAD) -------------
        pred = (jnp.dot(h_new, wo_h, preferred_element_type=jnp.float32)
                + jnp.dot(w_f, wo_f, preferred_element_type=jnp.float32)
                + jnp.dot(w_b, wo_b, preferred_element_type=jnp.float32)
                + jnp.dot(emb, wo_e, preferred_element_type=jnp.float32)
                + bout)                                                   # (B, VOCAB_PAD)
        pred_ref[i] = pred

        # ------------- greedy top-1 one-hot for next step (first max, real vocab only) -------
        col = jax.lax.broadcasted_iota(jnp.int32, pred.shape, 1)
        validc = col < TRG_VOCAB
        masked = jnp.where(validc, pred, -3.0e38)
        pmax = jnp.max(masked, axis=-1, keepdims=True)
        first = jnp.min(jnp.where((masked == pmax) & validc, col, VOCAB_PAD),
                        axis=-1, keepdims=True)
        oh_new = (col == first).astype(jnp.float32)
        return (h_new, oh_new)

    jax.lax.fori_loop(0, Tm1, step,
                      (h0, jnp.zeros((B, VOCAB_PAD), jnp.float32)),
                      unroll=True)


# ---------------------------------------- wrappers --------------------------------------------
def encoder_call(emb_src, validf, params):
    """emb_src: (S,B,EMB), validf: (S,B,1) -> (enc_out (2,S,B,H), hfin (2,B,H))."""
    S, B, _ = emb_src.shape
    H = ENC_HID

    grid_spec = pltpu.PrefetchScalarGridSpec(
        num_scalar_prefetch=0,
        grid=(2,),                                                   # direction axis only
        in_specs=[
            pl.BlockSpec((S, B, 1), lambda d: (0, 0, 0)),            # valid mask (whole seq)
            pl.BlockSpec((S, B, EMB_DIM), lambda d: (0, 0, 0)),      # embeddings (whole seq)
            pl.BlockSpec((None, EMB_DIM, 3 * H), lambda d: (d, 0, 0)),   # W_i per direction
            pl.BlockSpec((None, H, 3 * H), lambda d: (d, 0, 0)),         # W_h per direction
            pl.BlockSpec((None, 1, 3 * H), lambda d: (d, 0, 0)),         # b_i per direction
            pl.BlockSpec((None, 1, 3 * H), lambda d: (d, 0, 0)),         # b_h per direction
        ],
        out_specs=(
            pl.BlockSpec((None, S, B, H), lambda d: (d, 0, 0, 0)),   # per-direction outputs
            pl.BlockSpec((None, B, H), lambda d: (d, 0, 0)),         # per-direction final hidden
        ),
    )
    return pl.pallas_call(
        _encoder_gru_kernel,
        grid_spec=grid_spec,
        out_shape=(jax.ShapeDtypeStruct((2, S, B, H), jnp.float32),
                   jax.ShapeDtypeStruct((2, B, H), jnp.float32)),
        compiler_params=pltpu.CompilerParams(dimension_semantics=("parallel",)),
    )(validf, emb_src, params["enc_wi"], params["enc_wh"],
      params["enc_bi"], params["enc_bh"])


def decoder_call(tf_flags, trg_oh, enc_out, hfin, maskf, params):
    """Single-invocation decoder over all T-1 steps. Returns preds (T-1, B, VOCAB_PAD)."""
    Tm1, B, _ = trg_oh.shape
    _, S, _, He = enc_out.shape
    H = DEC_HID

    def cspec(shape):                                    # VMEM-resident constant block
        return pl.BlockSpec(shape, lambda i, tf, _n=len(shape): (0,) * _n)

    grid_spec = pltpu.PrefetchScalarGridSpec(
        num_scalar_prefetch=1,                           # teacher-forcing flags -> SMEM
        grid=(1,),
        in_specs=[
            cspec((Tm1, B, VOCAB_PAD)),                  # trg one-hots (all steps)
            cspec((2, S, B, He)),                        # encoder outputs (as produced)
            cspec((2, B, He)),                           # encoder final hiddens (as produced)
            cspec((S, B)),                               # attention mask
            cspec((2, He, H)),                           # W_fc (split fwd/bwd)
            cspec((1, H)),                               # b_fc
            cspec((H, H)),                               # Wa_h
            cspec((2, He, H)),                           # Wa_e (split fwd/bwd)
            cspec((1, H)),                               # ba
            cspec((1, H)),                               # v
            cspec((VOCAB_PAD, EMB_DIM)),                 # decoder embedding (row-padded)
            cspec((EMB_DIM + 2 * He, 3 * H)),            # dec GRU W_i (fused gates)
            cspec((H, 3 * H)),                           # dec GRU W_h
            cspec((1, 3 * H)),                           # dec GRU b_i
            cspec((1, 3 * H)),                           # dec GRU b_h
            cspec((H + 2 * He + EMB_DIM, VOCAB_PAD)),    # W_out (lane-padded)
            cspec((1, VOCAB_PAD)),                       # b_out (lane-padded)
        ],
        out_specs=cspec((Tm1, B, VOCAB_PAD)),
    )
    return pl.pallas_call(
        _decoder_kernel,
        grid_spec=grid_spec,
        out_shape=jax.ShapeDtypeStruct((Tm1, B, VOCAB_PAD), jnp.float32),
        compiler_params=pltpu.CompilerParams(dimension_semantics=("arbitrary",)),
    )(tf_flags, trg_oh, enc_out, hfin, maskf,
      params["W_fc"], params["b_fc"], params["Wa_h"], params["Wa_e"],
      params["ba"], params["v"], params["dec_emb_pad"],
      params["dec_wi"], params["dec_wh"], params["dec_bi"], params["dec_bh"],
      params["W_out_pad"], params["b_out_pad"])


# ------------------------------------- model forward ------------------------------------------
@jax.jit
def seq2seq_forward(params, src, src_len, trg, tf_flags):
    """src/trg: (S,B)/(T,B) int32; tf_flags: (T-1,) int32 Bernoulli teacher-forcing decisions
    (flag[0] is forced on: step 1 always consumes trg[0], like the PyTorch code)."""
    S, B = src.shape
    T = trg.shape[0]

    emb_src = params["enc_emb"][src]                                        # (S,B,EMB) gather
    validf = (jnp.arange(S)[:, None] < src_len[None, :]).astype(jnp.float32)[:, :, None]

    enc_out, hfin = encoder_call(emb_src, validf, params)                   # (2,S,B,H), (2,B,H)
    maskf = (src != SRC_PAD_IDX).astype(jnp.float32)                        # create_mask: (S,B)

    trg_oh = jax.nn.one_hot(trg[:T - 1], VOCAB_PAD, dtype=jnp.float32)      # (T-1,B,VOCAB_PAD)
    preds = decoder_call(tf_flags, trg_oh, enc_out, hfin, maskf, params)    # (T-1,B,VOCAB_PAD)

    out0 = jnp.zeros((1, B, TRG_VOCAB), jnp.float32)                        # outputs[0] stays zero
    return jnp.concatenate([out0, preds[:, :, :TRG_VOCAB]], axis=0)         # (T,B,TRG_VOCAB)


# --------------------------------------- param init -------------------------------------------
def _uniform(key, shape, scale=0.1):
    return jax.random.uniform(key, shape, jnp.float32, -scale, scale)


def _fused_gru(key, in_dim, hid):
    k = jax.random.split(key, 4)
    return (_uniform(k[0], (in_dim, 3 * hid)), _uniform(k[1], (hid, 3 * hid)),
            _uniform(k[2], (1, 3 * hid)), _uniform(k[3], (1, 3 * hid)))


def init_params(key):
    ks = jax.random.split(key, 13)
    wi_f, wh_f, bi_f, bh_f = _fused_gru(ks[2], EMB_DIM, ENC_HID)
    wi_b, wh_b, bi_b, bh_b = _fused_gru(ks[3], EMB_DIM, ENC_HID)
    wi_d, wh_d, bi_d, bh_d = _fused_gru(ks[10], EMB_DIM + 2 * ENC_HID, DEC_HID)
    dec_emb = _uniform(ks[1], (TRG_VOCAB, EMB_DIM))
    w_out = _uniform(ks[11], (DEC_HID + 2 * ENC_HID + EMB_DIM, TRG_VOCAB))
    b_out = _uniform(ks[12], (1, TRG_VOCAB))
    return {
        "enc_emb": _uniform(ks[0], (SRC_VOCAB, EMB_DIM)),
        "dec_emb_pad": jnp.zeros((VOCAB_PAD, EMB_DIM), jnp.float32).at[:TRG_VOCAB].set(dec_emb),
        # encoder GRU, forward/backward directions stacked on a leading axis
        "enc_wi": jnp.stack([wi_f, wi_b]),                 # (2, EMB, 3H)
        "enc_wh": jnp.stack([wh_f, wh_b]),                 # (2, H, 3H)
        "enc_bi": jnp.stack([bi_f, bi_b]),                 # (2, 1, 3H)
        "enc_bh": jnp.stack([bh_f, bh_b]),                 # (2, 1, 3H)
        # fwd/bwd row-split linear layers (equivalent to (2H, H) applied to [h_fwd; h_bwd])
        "W_fc": _uniform(ks[4], (2, ENC_HID, DEC_HID)),
        "b_fc": _uniform(ks[5], (1, DEC_HID)),
        "Wa_h": _uniform(ks[6], (DEC_HID, DEC_HID)),
        "Wa_e": _uniform(ks[7], (2, ENC_HID, DEC_HID)),
        "ba": _uniform(ks[8], (1, DEC_HID)),
        "v": _uniform(ks[9], (1, DEC_HID)),
        "dec_wi": wi_d, "dec_wh": wh_d, "dec_bi": bi_d, "dec_bh": bh_d,
        "W_out_pad": jnp.zeros((DEC_HID + 2 * ENC_HID + EMB_DIM, VOCAB_PAD),
                               jnp.float32).at[:, :TRG_VOCAB].set(w_out),
        "b_out_pad": jnp.zeros((1, VOCAB_PAD), jnp.float32).at[:, :TRG_VOCAB].set(b_out),
    }


# ------------------------------------------- main ---------------------------------------------
if __name__ == "__main__":
    key = jax.random.PRNGKey(0)
    k_par, k_src, k_trg, k_tf = jax.random.split(key, 4)

    S, B, T = 8, 2, 6
    params = init_params(k_par)

    src_tokens = jax.random.randint(k_src, (S, B), 1, SRC_VOCAB)            # non-pad ids
    src_len = jnp.array([8, 5], dtype=jnp.int32)
    src = jnp.where(jnp.arange(S)[:, None] < src_len[None, :], src_tokens, SRC_PAD_IDX)
    trg = jax.random.randint(k_trg, (T, B), 1, TRG_VOCAB)

    # traced Bernoulli teacher-forcing decisions (replaces host-side random.random(); keeps the
    # whole forward jittable). Flag 0 is forced on: step 1 always consumes trg[0].
    tf_flags = jax.random.bernoulli(k_tf, 0.5, (T - 1,)).astype(jnp.int32)
    tf_flags = tf_flags.at[0].set(1)

    out = seq2seq_forward(params, src, src_len, trg, tf_flags)
    out = jax.block_until_ready(out)
    assert out.shape == (T, B, TRG_VOCAB) and out.dtype == jnp.float32
    assert bool(jnp.all(jnp.isfinite(out)))
    print("KERNEL_OK")
</pallas_src>

<mosaic_0001>
module attributes {stable_mosaic.version = 11 : i64} {
  func.func @_encoder_gru_kernel(%arg0: i32, %arg1: memref<8x2x1xf32, #tpu.memory_space<vmem>>, %arg2: memref<8x2x16xf32, #tpu.memory_space<vmem>>, %arg3: memref<1x16x96xf32, #tpu.memory_space<vmem>>, %arg4: memref<1x32x96xf32, #tpu.memory_space<vmem>>, %arg5: memref<1x1x96xf32, #tpu.memory_space<vmem>>, %arg6: memref<1x1x96xf32, #tpu.memory_space<vmem>>, %arg7: memref<1x8x2x32xf32, #tpu.memory_space<vmem>>, %arg8: memref<1x2x32xf32, #tpu.memory_space<vmem>>) attributes {dimension_semantics = [#tpu.dimension_semantics<parallel>], iteration_bounds = array<i64: 2>, scalar_prefetch = 0 : i64, scratch_operands = 0 : i64, tpu.core_type = #tpu.core_type<tc>, window_params = [{pipeline_mode = #tpu.pipeline_mode<synchronous>, transform_indices = @transform_0, window_bounds = array<i64: 8, 2, 1>}, {pipeline_mode = #tpu.pipeline_mode<synchronous>, transform_indices = @transform_1, window_bounds = array<i64: 8, 2, 16>}, {transform_indices = @transform_2, window_bounds = array<i64: 1, 16, 96>}, {transform_indices = @transform_3, window_bounds = array<i64: 1, 32, 96>}, {transform_indices = @transform_4, window_bounds = array<i64: 1, 1, 96>}, {transform_indices = @transform_5, window_bounds = array<i64: 1, 1, 96>}, {transform_indices = @transform_6, window_bounds = array<i64: 1, 8, 2, 32>}, {transform_indices = @transform_7, window_bounds = array<i64: 1, 2, 32>}]} {
    %c0 = arith.constant 0 : index
    %c0_0 = arith.constant 0 : index
    %c0_1 = arith.constant 0 : index
    %0 = vector.load %arg3[%c0, %c0_0, %c0_1] : memref<1x16x96xf32, #tpu.memory_space<vmem>>, vector<1x16x96xf32>
    %1 = vector.shape_cast %0 : vector<1x16x96xf32> to vector<16x96xf32>
    %c0_2 = arith.constant 0 : index
    %c0_3 = arith.constant 0 : index
    %c0_4 = arith.constant 0 : index
    %2 = vector.load %arg4[%c0_2, %c0_3, %c0_4] : memref<1x32x96xf32, #tpu.memory_space<vmem>>, vector<1x32x96xf32>
    %3 = vector.shape_cast %2 : vector<1x32x96xf32> to vector<32x96xf32>
    %c0_5 = arith.constant 0 : index
    %c0_6 = arith.constant 0 : index
    %c0_7 = arith.constant 0 : index
    %4 = vector.load %arg5[%c0_5, %c0_6, %c0_7] : memref<1x1x96xf32, #tpu.memory_space<vmem>>, vector<1x1x96xf32>
    %5 = vector.shape_cast %4 : vector<1x1x96xf32> to vector<1x96xf32>
    %c0_8 = arith.constant 0 : index
    %c0_9 = arith.constant 0 : index
    %c0_10 = arith.constant 0 : index
    %6 = vector.load %arg6[%c0_8, %c0_9, %c0_10] : memref<1x1x96xf32, #tpu.memory_space<vmem>>, vector<1x1x96xf32>
    %7 = vector.shape_cast %6 : vector<1x1x96xf32> to vector<1x96xf32>
    %cst = arith.constant 0.000000e+00 : f32
    %8 = vector.broadcast %cst : f32 to vector<2x32xf32>
    %c0_i32 = arith.constant 0 : i32
    %c2_i32 = arith.constant 2 : i32
    %9 = arith.muli %c2_i32, %c0_i32 : i32
    %c7_i32 = arith.constant 7 : i32
    %10 = arith.subi %c7_i32, %9 : i32
    %11 = arith.muli %arg0, %10 : i32
    %12 = arith.addi %c0_i32, %11 : i32
    %13 = arith.index_cast %12 : i32 to index
    %c0_11 = arith.constant 0 : index
    %c0_12 = arith.constant 0 : index
    %14 = vector.load %arg2[%13, %c0_11, %c0_12] : memref<8x2x16xf32, #tpu.memory_space<vmem>>, vector<1x2x16xf32>
    %15 = vector.shape_cast %14 : vector<1x2x16xf32> to vector<2x16xf32>
    %16 = arith.index_cast %12 : i32 to index
    %c0_13 = arith.constant 0 : index
    %c0_14 = arith.constant 0 : index
    %17 = vector.load %arg1[%16, %c0_13, %c0_14] : memref<8x2x1xf32, #tpu.memory_space<vmem>>, vector<1x2x1xf32>
    %18 = vector.shape_cast %17 : vector<1x2x1xf32> to vector<2x1xf32>
    %cst_15 = arith.constant dense<0.000000e+00> : vector<2x96xf32>
    %19 = tpu.matmul %15, %1, %cst_15 {dimension_numbers = #tpu.dot_dimension_numbers<[1], [0], [0], [1], [0, 0, 1, 1], [], []>} : vector<2x16xf32>, vector<16x96xf32>, vector<2x96xf32> -> vector<2x96xf32>
    %20 = vector.broadcast %5 : vector<1x96xf32> to vector<2x96xf32>
    %21 = arith.addf %19, %20 : vector<2x96xf32>
    %cst_16 = arith.constant dense<0.000000e+00> : vector<2x96xf32>
    %22 = tpu.matmul %8, %3, %cst_16 {dimension_numbers = #tpu.dot_dimension_numbers<[1], [0], [0], [1], [0, 0, 1, 1], [], []>} : vector<2x32xf32>, vector<32x96xf32>, vector<2x96xf32> -> vector<2x96xf32>
    %23 = vector.broadcast %7 : vector<1x96xf32> to vector<2x96xf32>
    %24 = arith.addf %22, %23 : vector<2x96xf32>
    %25 = vector.extract_strided_slice %21 {offsets = [0, 0], sizes = [2, 32], strides = [1, 1]} : vector<2x96xf32> to vector<2x32xf32>
    %26 = vector.extract_strided_slice %24 {offsets = [0, 0], sizes = [2, 32], strides = [1, 1]} : vector<2x96xf32> to vector<2x32xf32>
    %27 = arith.addf %25, %26 : vector<2x32xf32>
    %28 = arith.negf %27 : vector<2x32xf32>
    %29 = math.exp %28 : vector<2x32xf32>
    %cst_17 = arith.constant 1.000000e+00 : f32
    %30 = vector.broadcast %cst_17 : f32 to vector<2x32xf32>
    %31 = arith.addf %30, %29 : vector<2x32xf32>
    %32 = arith.divf %30, %31 : vector<2x32xf32>
    %33 = vector.extract_strided_slice %21 {offsets = [0, 32], sizes = [2, 32], strides = [1, 1]} : vector<2x96xf32> to vector<2x32xf32>
    %34 = vector.extract_strided_slice %24 {offsets = [0, 32], sizes = [2, 32], strides = [1, 1]} : vector<2x96xf32> to vector<2x32xf32>
    %35 = arith.addf %33, %34 : vector<2x32xf32>
    %36 = arith.negf %35 : vector<2x32xf32>
    %37 = math.exp %36 : vector<2x32xf32>
    %cst_18 = arith.constant 1.000000e+00 : f32
    %38 = vector.broadcast %cst_18 : f32 to vector<2x32xf32>
    %39 = arith.addf %38, %37 : vector<2x32xf32>
    %40 = arith.divf %38, %39 : vector<2x32xf32>
    %41 = vector.extract_strided_slice %21 {offsets = [0, 64], sizes = [2, 32], strides = [1, 1]} : vector<2x96xf32> to vector<2x32xf32>
    %42 = vector.extract_strided_slice %24 {offsets = [0, 64], sizes = [2, 32], strides = [1, 1]} : vector<2x96xf32> to vector<2x32xf32>
    %43 = arith.mulf %32, %42 : vector<2x32xf32>
    %44 = arith.addf %41, %43 : vector<2x32xf32>
    %45 = math.tanh %44 : vector<2x32xf32>
    %cst_19 = arith.constant 1.000000e+00 : f32
    %46 = vector.broadcast %cst_19 : f32 to vector<2x32xf32>
    %47 = arith.subf %46, %40 : vector<2x32xf32>
    %48 = arith.mulf %47, %45 : vector<2x32xf32>
    %49 = arith.mulf %40, %8 : vector<2x32xf32>
    %50 = arith.addf %48, %49 : vector<2x32xf32>
    %51 = vector.broadcast %18 : vector<2x1xf32> to vector<2x32xf32>
    %52 = arith.mulf %51, %50 : vector<2x32xf32>
    %cst_20 = arith.constant 1.000000e+00 : f32
    %53 = vector.broadcast %cst_20 : f32 to vector<2x1xf32>
    %54 = arith.subf %53, %18 : vector<2x1xf32>
    %55 = vector.broadcast %54 : vector<2x1xf32> to vector<2x32xf32>
    %56 = arith.mulf %55, %8 : vector<2x32xf32>
    %57 = arith.addf %52, %56 : vector<2x32xf32>
    %58 = vector.broadcast %18 : vector<2x1xf32> to vector<2x32xf32>
    %59 = arith.mulf %57, %58 : vector<2x32xf32>
    %c0_21 = arith.constant 0 : index
    %60 = arith.index_cast %12 : i32 to index
    %c0_22 = arith.constant 0 : index
    %c0_23 = arith.constant 0 : index
    %61 = vector.load %arg7[%c0_21, %60, %c0_22, %c0_23] : memref<1x8x2x32xf32, #tpu.memory_space<vmem>>, vector<1x1x2x32xf32>
    %62 = vector.shape_cast %61 : vector<1x1x2x32xf32> to vector<2x32xf32>
    %63 = vector.shape_cast %59 : vector<2x32xf32> to vector<1x1x2x32xf32>
    tpu.vector_store %arg7[%c0_21, %60, %c0_22, %c0_23], %63 {strides = array<i32>} : memref<1x8x2x32xf32, #tpu.memory_space<vmem>>, vector<1x1x2x32xf32>,
    %c1_i32 = arith.constant 1 : i32
    %c2_i32_24 = arith.constant 2 : i32
    %64 = arith.muli %c2_i32_24, %c1_i32 : i32
    %c7_i32_25 = arith.constant 7 : i32
    %65 = arith.subi %c7_i32_25, %64 : i32
    %66 = arith.muli %arg0, %65 : i32
    %67 = arith.addi %c1_i32, %66 : i32
    %68 = arith.index_cast %67 : i32 to index
    %c0_26 = arith.constant 0 : index
    %c0_27 = arith.constant 0 : index
    %69 = vector.load %arg2[%68, %c0_26, %c0_27] : memref<8x2x16xf32, #tpu.memory_space<vmem>>, vector<1x2x16xf32>
    %70 = vector.shape_cast %69 : vector<1x2x16xf32> to vector<2x16xf32>
    %71 = arith.index_cast %67 : i32 to index
    %c0_28 = arith.constant 0 : index
    %c0_29 = arith.constant 0 : index
    %72 = vector.load %arg1[%71, %c0_28, %c0_29] : memref<8x2x1xf32, #tpu.memory_space<vmem>>, vector<1x2x1xf32>
    %73 = vector.shape_cast %72 : vector<1x2x1xf32> to vector<2x1xf32>
    %cst_30 = arith.constant dense<0.000000e+00> : vector<2x96xf32>
    %74 = tpu.matmul %70, %1, %cst_30 {dimension_numbers = #tpu.dot_dimension_numbers<[1], [0], [0], [1], [0, 0, 1, 1], [], []>} : vector<2x16xf32>, vector<16x96xf32>, vector<2x96xf32> -> vector<2x96xf32>
    %75 = vector.broadcast %5 : vector<1x96xf32> to vector<2x96xf32>
    %76 = arith.addf %74, %75 : vector<2x96xf32>
    %cst_31 = arith.constant dense<0.000000e+00> : vector<2x96xf32>
    %77 = tpu.matmul %57, %3, %cst_31 {dimension_numbers = #tpu.dot_dimension_numbers<[1], [0], [0], [1], [0, 0, 1, 1], [], []>} : vector<2x32xf32>, vector<32x96xf32>, vector<2x96xf32> -> vector<2x96xf32>
    %78 = vector.broadcast %7 : vector<1x96xf32> to vector<2x96xf32>
    %79 = arith.addf %77, %78 : vector<2x96xf32>
    %80 = vector.extract_strided_slice %76 {offsets = [0, 0], sizes = [2, 32], strides = [1, 1]} : vector<2x96xf32> to vector<2x32xf32>
    %81 = vector.extract_strided_slice %79 {offsets = [0, 0], sizes = [2, 32], strides = [1, 1]} : vector<2x96xf32> to vector<2x32xf32>
    %82 = arith.addf %80, %81 : vector<2x32xf32>
    %83 = arith.negf %82 : vector<2x32xf32>
    %84 = math.exp %83 : vector<2x32xf32>
    %cst_32 = arith.constant 1.000000e+00 : f32
    %85 = vector.broadcast %cst_32 : f32 to vector<2x32xf32>
    %86 = arith.addf %85, %84 : vector<2x32xf32>
    %87 = arith.divf %85, %86 : vector<2x32xf32>
    %88 = vector.extract_strided_slice %76 {offsets = [0, 32], sizes = [2, 32], strides = [1, 1]} : vector<2x96xf32> to vector<2x32xf32>
    %89 = vector.extract_strided_slice %79 {offsets = [0, 32], sizes = [2, 32], strides = [1, 1]} : vector<2x96xf32> to vector<2x32xf32>
    %90 = arith.addf %88, %89 : vector<2x32xf32>
    %91 = arith.negf %90 : vector<2x32xf32>
    %92 = math.exp %91 : vector<2x32xf32>
    %cst_33 = arith.constant 1.000000e+00 : f32
    %93 = vector.broadcast %cst_33 : f32 to vector<2x32xf32>
    %94 = arith.addf %93, %92 : vector<2x32xf32>
    %95 = arith.divf %93, %94 : vector<2x32xf32>
    %96 = vector.extract_strided_slice %76 {offsets = [0, 64], sizes = [2, 32], strides = [1, 1]} : vector<2x96xf32> to vector<2x32xf32>
    %97 = vector.extract_strided_slice %79 {offsets = [0, 64], sizes = [2, 32], strides = [1, 1]} : vector<2x96xf32> to vector<2x32xf32>
    %98 = arith.mulf %87, %97 : vector<2x32xf32>
    %99 = arith.addf %96, %98 : vector<2x32xf32>
    %100 = math.tanh %99 : vector<2x32xf32>
    %cst_34 = arith.constant 1.000000e+00 : f32
    %101 = vector.broadcast %cst_34 : f32 to vector<2x32xf32>
    %102 = arith.subf %101, %95 : vector<2x32xf32>
    %103 = arith.mulf %102, %100 : vector<2x32xf32>
    %104 = arith.mulf %95, %57 : vector<2x32xf32>
    %105 = arith.addf %103, %104 : vector<2x32xf32>
    %106 = vector.broadcast %73 : vector<2x1xf32> to vector<2x32xf32>
    %107 = arith.mulf %106, %105 : vector<2x32xf32>
    %cst_35 = arith.constant 1.000000e+00 : f32
    %108 = vector.broadcast %cst_35 : f32 to vector<2x1xf32>
    %109 = arith.subf %108, %73 : vector<2x1xf32>
    %110 = vector.broadcast %109 : vector<2x1xf32> to vector<2x32xf32>
    %111 = arith.mulf %110, %57 : vector<2x32xf32>
    %112 = arith.addf %107, %111 : vector<2x32xf32>
    %113 = vector.broadcast %73 : vector<2x1xf32> to vector<2x32xf32>
    %114 = arith.mulf %112, %113 : vector<2x32xf32>
    %c0_36 = arith.constant 0 : index
    %115 = arith.index_cast %67 : i32 to index
    %c0_37 = arith.constant 0 : index
    %c0_38 = arith.constant 0 : index
    %116 = vector.load %arg7[%c0_36, %115, %c0_37, %c0_38] : memref<1x8x2x32xf32, #tpu.memory_space<vmem>>, vector<1x1x2x32xf32>
    %117 = vector.shape_cast %116 : vector<1x1x2x32xf32> to vector<2x32xf32>
    %118 = vector.shape_cast %114 : vector<2x32xf32> to vector<1x1x2x32xf32>
    tpu.vector_store %arg7[%c0_36, %115, %c0_37, %c0_38], %118 {strides = array<i32>} : memref<1x8x2x32xf32, #tpu.memory_space<vmem>>, vector<1x1x2x32xf32>,
    %c2_i32_39 = arith.constant 2 : i32
    %c2_i32_40 = arith.constant 2 : i32
    %119 = arith.muli %c2_i32_40, %c2_i32_39 : i32
    %c7_i32_41 = arith.constant 7 : i32
    %120 = arith.subi %c7_i32_41, %119 : i32
    %121 = arith.muli %arg0, %120 : i32
    %122 = arith.addi %c2_i32_39, %121 : i32
    %123 = arith.index_cast %122 : i32 to index
    %c0_42 = arith.constant 0 : index
    %c0_43 = arith.constant 0 : index
    %124 = vector.load %arg2[%123, %c0_42, %c0_43] : memref<8x2x16xf32, #tpu.memory_space<vmem>>, vector<1x2x16xf32>
    %125 = vector.shape_cast %124 : vector<1x2x16xf32> to vector<2x16xf32>
    %126 = arith.index_cast %122 : i32 to index
    %c0_44 = arith.constant 0 : index
    %c0_45 = arith.constant 0 : index
    %127 = vector.load %arg1[%126, %c0_44, %c0_45] : memref<8x2x1xf32, #tpu.memory_space<vmem>>, vector<1x2x1xf32>
    %128 = vector.shape_cast %127 : vector<1x2x1xf32> to vector<2x1xf32>
    %cst_46 = arith.constant dense<0.000000e+00> : vector<2x96xf32>
    %129 = tpu.matmul %125, %1, %cst_46 {dimension_numbers = #tpu.dot_dimension_numbers<[1], [0], [0], [1], [0, 0, 1, 1], [], []>} : vector<2x16xf32>, vector<16x96xf32>, vector<2x96xf32> -> vector<2x96xf32>
    %130 = vector.broadcast %5 : vector<1x96xf32> to vector<2x96xf32>
    %131 = arith.addf %129, %130 : vector<2x96xf32>
    %cst_47 = arith.constant dense<0.000000e+00> : vector<2x96xf32>
    %132 = tpu.matmul %112, %3, %cst_47 {dimension_numbers = #tpu.dot_dimension_numbers<[1], [0], [0], [1], [0, 0, 1, 1], [], []>} : vector<2x32xf32>, vector<32x96xf32>, vector<2x96xf32> -> vector<2x96xf32>
    %133 = vector.broadcast %7 : vector<1x96xf32> to vector<2x96xf32>
    %134 = arith.addf %132, %133 : vector<2x96xf32>
    %135 = vector.extract_strided_slice %131 {offsets = [0, 0], sizes = [2, 32], strides = [1, 1]} : vector<2x96xf32> to vector<2x32xf32>
    %136 = vector.extract_strided_slice %134 {offsets = [0, 0], sizes = [2, 32], strides = [1, 1]} : vector<2x96xf32> to vector<2x32xf32>
    %137 = arith.addf %135, %136 : vector<2x32xf32>
    %138 = arith.negf %137 : vector<2x32xf32>
    %139 = math.exp %138 : vector<2x32xf32>
    %cst_48 = arith.constant 1.000000e+00 : f32
    %140 = vector.broadcast %cst_48 : f32 to vector<2x32xf32>
    %141 = arith.addf %140, %139 : vector<2x32xf32>
    %142 = arith.divf %140, %141 : vector<2x32xf32>
    %143 = vector.extract_strided_slice %131 {offsets = [0, 32], sizes = [2, 32], strides = [1, 1]} : vector<2x96xf32> to vector<2x32xf32>
    %144 = vector.extract_strided_slice %134 {offsets = [0, 32], sizes = [2, 32], strides = [1, 1]} : vector<2x96xf32> to vector<2x32xf32>
    %145 = arith.addf %143, %144 : vector<2x32xf32>
    %146 = arith.negf %145 : vector<2x32xf32>
    %147 = math.exp %146 : vector<2x32xf32>
    %cst_49 = arith.constant 1.000000e+00 : f32
    %148 = vector.broadcast %cst_49 : f32 to vector<2x32xf32>
    %149 = arith.addf %148, %147 : vector<2x32xf32>
    %150 = arith.divf %148, %149 : vector<2x32xf32>
    %151 = vector.extract_strided_slice %131 {offsets = [0, 64], sizes = [2, 32], strides = [1, 1]} : vector<2x96xf32> to vector<2x32xf32>
    %152 = vector.extract_strided_slice %134 {offsets = [0, 64], sizes = [2, 32], strides = [1, 1]} : vector<2x96xf32> to vector<2x32xf32>
    %153 = arith.mulf %142, %152 : vector<2x32xf32>
    %154 = arith.addf %151, %153 : vector<2x32xf32>
    %155 = math.tanh %154 : vector<2x32xf32>
    %cst_50 = arith.constant 1.000000e+00 : f32
    %156 = vector.broadcast %cst_50 : f32 to vector<2x32xf32>
    %157 = arith.subf %156, %150 : vector<2x32xf32>
    %158 = arith.mulf %157, %155 : vector<2x32xf32>
    %159 = arith.mulf %150, %112 : vector<2x32xf32>
    %160 = arith.addf %158, %159 : vector<2x32xf32>
    %161 = vector.broadcast %128 : vector<2x1xf32> to vector<2x32xf32>
    %162 = arith.mulf %161, %160 : vector<2x32xf32>
    %cst_51 = arith.constant 1.000000e+00 : f32
    %163 = vector.broadcast %cst_51 : f32 to vector<2x1xf32>
    %164 = arith.subf %163, %128 : vector<2x1xf32>
    %165 = vector.broadcast %164 : vector<2x1xf32> to vector<2x32xf32>
    %166 = arith.mulf %165, %112 : vector<2x32xf32>
    %167 = arith.addf %162, %166 : vector<2x32xf32>
    %168 = vector.broadcast %128 : vector<2x1xf32> to vector<2x32xf32>
    %169 = arith.mulf %167, %168 : vector<2x32xf32>
    %c0_52 = arith.constant 0 : index
    %170 = arith.index_cast %122 : i32 to index
    %c0_53 = arith.constant 0 : index
    %c0_54 = arith.constant 0 : index
    %171 = vector.load %arg7[%c0_52, %170, %c0_53, %c0_54] : memref<1x8x2x32xf32, #tpu.memory_space<vmem>>, vector<1x1x2x32xf32>
    %172 = vector.shape_cast %171 : vector<1x1x2x32xf32> to vector<2x32xf32>
    %173 = vector.shape_cast %169 : vector<2x32xf32> to vector<1x1x2x32xf32>
    tpu.vector_store %arg7[%c0_52, %170, %c0_53, %c0_54], %173 {strides = array<i32>} : memref<1x8x2x32xf32, #tpu.memory_space<vmem>>, vector<1x1x2x32xf32>,
    %c3_i32 = arith.constant 3 : i32
    %c2_i32_55 = arith.constant 2 : i32
    %174 = arith.muli %c2_i32_55, %c3_i32 : i32
    %c7_i32_56 = arith.constant 7 : i32
    %175 = arith.subi %c7_i32_56, %174 : i32
    %176 = arith.muli %arg0, %175 : i32
    %177 = arith.addi %c3_i32, %176 : i32
    %178 = arith.index_cast %177 : i32 to index
    %c0_57 = arith.constant 0 : index
    %c0_58 = arith.constant 0 : index
    %179 = vector.load %arg2[%178, %c0_57, %c0_58] : memref<8x2x16xf32, #tpu.memory_space<vmem>>, vector<1x2x16xf32>
    %180 = vector.shape_cast %179 : vector<1x2x16xf32> to vector<2x16xf32>
    %181 = arith.index_cast %177 : i32 to index
    %c0_59 = arith.constant 0 : index
    %c0_60 = arith.constant 0 : index
    %182 = vector.load %arg1[%181, %c0_59, %c0_60] : memref<8x2x1xf32, #tpu.memory_space<vmem>>, vector<1x2x1xf32>
    %183 = vector.shape_cast %182 : vector<1x2x1xf32> to vector<2x1xf32>
    %cst_61 = arith.constant dense<0.000000e+00> : vector<2x96xf32>
    %184 = tpu.matmul %180, %1, %cst_61 {dimension_numbers = #tpu.dot_dimension_numbers<[1], [0], [0], [1], [0, 0, 1, 1], [], []>} : vector<2x16xf32>, vector<16x96xf32>, vector<2x96xf32> -> vector<2x96xf32>
    %185 = vector.broadcast %5 : vector<1x96xf32> to vector<2x96xf32>
    %186 = arith.addf %184, %185 : vector<2x96xf32>
    %cst_62 = arith.constant dense<0.000000e+00> : vector<2x96xf32>
    %187 = tpu.matmul %167, %3, %cst_62 {dimension_numbers = #tpu.dot_dimension_numbers<[1], [0], [0], [1], [0, 0, 1, 1], [], []>} : vector<2x32xf32>, vector<32x96xf32>, vector<2x96xf32> -> vector<2x96xf32>
    %188 = vector.broadcast %7 : vector<1x96xf32> to vector<2x96xf32>
    %189 = arith.addf %187, %188 : vector<2x96xf32>
    %190 = vector.extract_strided_slice %186 {offsets = [0, 0], sizes = [2, 32], strides = [1, 1]} : vector<2x96xf32> to vector<2x32xf32>
    %191 = vector.extract_strided_slice %189 {offsets = [0, 0], sizes = [2, 32], strides = [1, 1]} : vector<2x96xf32> to vector<2x32xf32>
    %192 = arith.addf %190, %191 : vector<2x32xf32>
    %193 = arith.negf %192 : vector<2x32xf32>
    %194 = math.exp %193 : vector<2x32xf32>
    %cst_63 = arith.constant 1.000000e+00 : f32
    %195 = vector.broadcast %cst_63 : f32 to vector<2x32xf32>
    %196 = arith.addf %195, %194 : vector<2x32xf32>
    %197 = arith.divf %195, %196 : vector<2x32xf32>
    %198 = vector.extract_strided_slice %186 {offsets = [0, 32], sizes = [2, 32], strides = [1, 1]} : vector<2x96xf32> to vector<2x32xf32>
    %199 = vector.extract_strided_slice %189 {offsets = [0, 32], sizes = [2, 32], strides = [1, 1]} : vector<2x96xf32> to vector<2x32xf32>
    %200 = arith.addf %198, %199 : vector<2x32xf32>
    %201 = arith.negf %200 : vector<2x32xf32>
    %202 = math.exp %201 : vector<2x32xf32>
    %cst_64 = arith.constant 1.000000e+00 : f32
    %203 = vector.broadcast %cst_64 : f32 to vector<2x32xf32>
    %204 = arith.addf %203, %202 : vector<2x32xf32>
    %205 = arith.divf %203, %204 : vector<2x32xf32>
    %206 = vector.extract_strided_slice %186 {offsets = [0, 64], sizes = [2, 32], strides = [1, 1]} : vector<2x96xf32> to vector<2x32xf32>
    %207 = vector.extract_strided_slice %189 {offsets = [0, 64], sizes = [2, 32], strides = [1, 1]} : vector<2x96xf32> to vector<2x32xf32>
    %208 = arith.mulf %197, %207 : vector<2x32xf32>
    %209 = arith.addf %206, %208 : vector<2x32xf32>
    %210 = math.tanh %209 : vector<2x32xf32>
    %cst_65 = arith.constant 1.000000e+00 : f32
    %211 = vector.broadcast %cst_65 : f32 to vector<2x32xf32>
    %212 = arith.subf %211, %205 : vector<2x32xf32>
    %213 = arith.mulf %212, %210 : vector<2x32xf32>
    %214 = arith.mulf %205, %167 : vector<2x32xf32>
    %215 = arith.addf %213, %214 : vector<2x32xf32>
    %216 = vector.broadcast %183 : vector<2x1xf32> to vector<2x32xf32>
    %217 = arith.mulf %216, %215 : vector<2x32xf32>
    %cst_66 = arith.constant 1.000000e+00 : f32
    %218 = vector.broadcast %cst_66 : f32 to vector<2x1xf32>
    %219 = arith.subf %218, %183 : vector<2x1xf32>
    %220 = vector.broadcast %219 : vector<2x1xf32> to vector<2x32xf32>
    %221 = arith.mulf %220, %167 : vector<2x32xf32>
    %222 = arith.addf %217, %221 : vector<2x32xf32>
    %223 = vector.broadcast %183 : vector<2x1xf32> to vector<2x32xf32>
    %224 = arith.mulf %222, %223 : vector<2x32xf32>
    %c0_67 = arith.constant 0 : index
    %225 = arith.index_cast %177 : i32 to index
    %c0_68 = arith.constant 0 : index
    %c0_69 = arith.constant 0 : index
    %226 = vector.load %arg7[%c0_67, %225, %c0_68, %c0_69] : memref<1x8x2x32xf32, #tpu.memory_space<vmem>>, vector<1x1x2x32xf32>
    %227 = vector.shape_cast %226 : vector<1x1x2x32xf32> to vector<2x32xf32>
    %228 = vector.shape_cast %224 : vector<2x32xf32> to vector<1x1x2x32xf32>
    tpu.vector_store %arg7[%c0_67, %225, %c0_68, %c0_69], %228 {strides = array<i32>} : memref<1x8x2x32xf32, #tpu.memory_space<vmem>>, vector<1x1x2x32xf32>,
    %c4_i32 = arith.constant 4 : i32
    %c2_i32_70 = arith.constant 2 : i32
    %229 = arith.muli %c2_i32_70, %c4_i32 : i32
    %c7_i32_71 = arith.constant 7 : i32
    %230 = arith.subi %c7_i32_71, %229 : i32
    %231 = arith.muli %arg0, %230 : i32
    %232 = arith.addi %c4_i32, %231 : i32
    %233 = arith.index_cast %232 : i32 to index
    %c0_72 = arith.constant 0 : index
    %c0_73 = arith.constant 0 : index
    %234 = vector.load %arg2[%233, %c0_72, %c0_73] : memref<8x2x16xf32, #tpu.memory_space<vmem>>, vector<1x2x16xf32>
    %235 = vector.shape_cast %234 : vector<1x2x16xf32> to vector<2x16xf32>
    %236 = arith.index_cast %232 : i32 to index
    %c0_74 = arith.constant 0 : index
    %c0_75 = arith.constant 0 : index
    %237 = vector.load %arg1[%236, %c0_74, %c0_75] : memref<8x2x1xf32, #tpu.memory_space<vmem>>, vector<1x2x1xf32>
    %238 = vector.shape_cast %237 : vector<1x2x1xf32> to vector<2x1xf32>
    %cst_76 = arith.constant dense<0.000000e+00> : vector<2x96xf32>
    %239 = tpu.matmul %235, %1, %cst_76 {dimension_numbers = #tpu.dot_dimension_numbers<[1], [0], [0], [1], [0, 0, 1, 1], [], []>} : vector<2x16xf32>, vector<16x96xf32>, vector<2x96xf32> -> vector<2x96xf32>
    %240 = vector.broadcast %5 : vector<1x96xf32> to vector<2x96xf32>
    %241 = arith.addf %239, %240 : vector<2x96xf32>
    %cst_77 = arith.constant dense<0.000000e+00> : vector<2x96xf32>
    %242 = tpu.matmul %222, %3, %cst_77 {dimension_numbers = #tpu.dot_dimension_numbers<[1], [0], [0], [1], [0, 0, 1, 1], [], []>} : vector<2x32xf32>, vector<32x96xf32>, vector<2x96xf32> -> vector<2x96xf32>
    %243 = vector.broadcast %7 : vector<1x96xf32> to vector<2x96xf32>
    %244 = arith.addf %242, %243 : vector<2x96xf32>
    %245 = vector.extract_strided_slice %241 {offsets = [0, 0], sizes = [2, 32], strides = [1, 1]} : vector<2x96xf32> to vector<2x32xf32>
    %246 = vector.extract_strided_slice %244 {offsets = [0, 0], sizes = [2, 32], strides = [1, 1]} : vector<2x96xf32> to vector<2x32xf32>
    %247 = arith.addf %245, %246 : vector<2x32xf32>
    %248 = arith.negf %247 : vector<2x32xf32>
    %249 = math.exp %248 : vector<2x32xf32>
    %cst_78 = arith.constant 1.000000e+00 : f32
    %250 = vector.broadcast %cst_78 : f32 to vector<2x32xf32>
    %251 = arith.addf %250, %249 : vector<2x32xf32>
    %252 = arith.divf %250, %251 : vector<2x32xf32>
    %253 = vector.extract_strided_slice %241 {offsets = [0, 32], sizes = [2, 32], strides = [1, 1]} : vector<2x96xf32> to vector<2x32xf32>
    %254 = vector.extract_strided_slice %244 {offsets = [0, 32], sizes = [2, 32], strides = [1, 1]} : vector<2x96xf32> to vector<2x32xf32>
    %255 = arith.addf %253, %254 : vector<2x32xf32>
    %256 = arith.negf %255 : vector<2x32xf32>
    %257 = math.exp %256 : vector<2x32xf32>
    %cst_79 = arith.constant 1.000000e+00 : f32
    %258 = vector.broadcast %cst_79 : f32 to vector<2x32xf32>
    %259 = arith.addf %258, %257 : vector<2x32xf32>
    %260 = arith.divf %258, %259 : vector<2x32xf32>
    %261 = vector.extract_strided_slice %241 {offsets = [0, 64], sizes = [2, 32], strides = [1, 1]} : vector<2x96xf32> to vector<2x32xf32>
    %262 = vector.extract_strided_slice %244 {offsets = [0, 64], sizes = [2, 32], strides = [1, 1]} : vector<2x96xf32> to vector<2x32xf32>
    %263 = arith.mulf %252, %262 : vector<2x32xf32>
    %264 = arith.addf %261, %263 : vector<2x32xf32>
    %265 = math.tanh %264 : vector<2x32xf32>
    %cst_80 = arith.constant 1.000000e+00 : f32
    %266 = vector.broadcast %cst_80 : f32 to vector<2x32xf32>
    %267 = arith.subf %266, %260 : vector<2x32xf32>
    %268 = arith.mulf %267, %265 : vector<2x32xf32>
    %269 = arith.mulf %260, %222 : vector<2x32xf32>
    %270 = arith.addf %268, %269 : vector<2x32xf32>
    %271 = vector.broadcast %238 : vector<2x1xf32> to vector<2x32xf32>
    %272 = arith.mulf %271, %270 : vector<2x32xf32>
    %cst_81 = arith.constant 1.000000e+00 : f32
    %273 = vector.broadcast %cst_81 : f32 to vector<2x1xf32>
    %274 = arith.subf %273, %238 : vector<2x1xf32>
    %275 = vector.broadcast %274 : vector<2x1xf32> to vector<2x32xf32>
    %276 = arith.mulf %275, %222 : vector<2x32xf32>
    %277 = arith.addf %272, %276 : vector<2x32xf32>
    %278 = vector.broadcast %238 : vector<2x1xf32> to vector<2x32xf32>
    %279 = arith.mulf %277, %278 : vector<2x32xf32>
    %c0_82 = arith.constant 0 : index
    %280 = arith.index_cast %232 : i32 to index
    %c0_83 = arith.constant 0 : index
    %c0_84 = arith.constant 0 : index
    %281 = vector.load %arg7[%c0_82, %280, %c0_83, %c0_84] : memref<1x8x2x32xf32, #tpu.memory_space<vmem>>, vector<1x1x2x32xf32>
    %282 = vector.shape_cast %281 : vector<1x1x2x32xf32> to vector<2x32xf32>
    %283 = vector.shape_cast %279 : vector<2x32xf32> to vector<1x1x2x32xf32>
    tpu.vector_store %arg7[%c0_82, %280, %c0_83, %c0_84], %283 {strides = array<i32>} : memref<1x8x2x32xf32, #tpu.memory_space<vmem>>, vector<1x1x2x32xf32>,
    %c5_i32 = arith.constant 5 : i32
    %c2_i32_85 = arith.constant 2 : i32
    %284 = arith.muli %c2_i32_85, %c5_i32 : i32
    %c7_i32_86 = arith.constant 7 : i32
    %285 = arith.subi %c7_i32_86, %284 : i32
    %286 = arith.muli %arg0, %285 : i32
    %287 = arith.addi %c5_i32, %286 : i32
    %288 = arith.index_cast %287 : i32 to index
    %c0_87 = arith.constant 0 : index
    %c0_88 = arith.constant 0 : index
    %289 = vector.load %arg2[%288, %c0_87, %c0_88] : memref<8x2x16xf32, #tpu.memory_space<vmem>>, vector<1x2x16xf32>
    %290 = vector.shape_cast %289 : vector<1x2x16xf32> to vector<2x16xf32>
    %291 = arith.index_cast %287 : i32 to index
    %c0_89 = arith.constant 0 : index
    %c0_90 = arith.constant 0 : index
    %292 = vector.load %arg1[%291, %c0_89, %c0_90] : memref<8x2x1xf32, #tpu.memory_space<vmem>>, vector<1x2x1xf32>
    %293 = vector.shape_cast %292 : vector<1x2x1xf32> to vector<2x1xf32>
    %cst_91 = arith.constant dense<0.000000e+00> : vector<2x96xf32>
    %294 = tpu.matmul %290, %1, %cst_91 {dimension_numbers = #tpu.dot_dimension_numbers<[1], [0], [0], [1], [0, 0, 1, 1], [], []>} : vector<2x16xf32>, vector<16x96xf32>, vector<2x96xf32> -> vector<2x96xf32>
    %295 = vector.broadcast %5 : vector<1x96xf32> to vector<2x96xf32>
    %296 = arith.addf %294, %295 : vector<2x96xf32>
    %cst_92 = arith.constant dense<0.000000e+00> : vector<2x96xf32>
    %297 = tpu.matmul %277, %3, %cst_92 {dimension_numbers = #tpu.dot_dimension_numbers<[1], [0], [0], [1], [0, 0, 1, 1], [], []>} : vector<2x32xf32>, vector<32x96xf32>, vector<2x96xf32> -> vector<2x96xf32>
    %298 = vector.broadcast %7 : vector<1x96xf32> to vector<2x96xf32>
    %299 = arith.addf %297, %298 : vector<2x96xf32>
    %300 = vector.extract_strided_slice %296 {offsets = [0, 0], sizes = [2, 32], strides = [1, 1]} : vector<2x96xf32> to vector<2x32xf32>
    %301 = vector.extract_strided_slice %299 {offsets = [0, 0], sizes = [2, 32], strides = [1, 1]} : vector<2x96xf32> to vector<2x32xf32>
    %302 = arith.addf %300, %301 : vector<2x32xf32>
    %303 = arith.negf %302 : vector<2x32xf32>
    %304 = math.exp %303 : vector<2x32xf32>
    %cst_93 = arith.constant 1.000000e+00 : f32
    %305 = vector.broadcast %cst_93 : f32 to vector<2x32xf32>
    %306 = arith.addf %305, %304 : vector<2x32xf32>
    %307 = arith.divf %305, %306 : vector<2x32xf32>
    %308 = vector.extract_strided_slice %296 {offsets = [0, 32], sizes = [2, 32], strides = [1, 1]} : vector<2x96xf32> to vector<2x32xf32>
    %309 = vector.extract_strided_slice %299 {offsets = [0, 32], sizes = [2, 32], strides = [1, 1]} : vector<2x96xf32> to vector<2x32xf32>
    %310 = arith.addf %308, %309 : vector<2x32xf32>
    %311 = arith.negf %310 : vector<2x32xf32>
    %312 = math.exp %311 : vector<2x32xf32>
    %cst_94 = arith.constant 1.000000e+00 : f32
    %313 = vector.broadcast %cst_94 : f32 to vector<2x32xf32>
    %314 = arith.addf %313, %312 : vector<2x32xf32>
    %315 = arith.divf %313, %314 : vector<2x32xf32>
    %316 = vector.extract_strided_slice %296 {offsets = [0, 64], sizes = [2, 32], strides = [1, 1]} : vector<2x96xf32> to vector<2x32xf32>
    %317 = vector.extract_strided_slice %299 {offsets = [0, 64], sizes = [2, 32], strides = [1, 1]} : vector<2x96xf32> to vector<2x32xf32>
    %318 = arith.mulf %307, %317 : vector<2x32xf32>
    %319 = arith.addf %316, %318 : vector<2x32xf32>
    %320 = math.tanh %319 : vector<2x32xf32>
    %cst_95 = arith.constant 1.000000e+00 : f32
    %321 = vector.broadcast %cst_95 : f32 to vector<2x32xf32>
    %322 = arith.subf %321, %315 : vector<2x32xf32>
    %323 = arith.mulf %322, %320 : vector<2x32xf32>
    %324 = arith.mulf %315, %277 : vector<2x32xf32>
    %325 = arith.addf %323, %324 : vector<2x32xf32>
    %326 = vector.broadcast %293 : vector<2x1xf32> to vector<2x32xf32>
    %327 = arith.mulf %326, %325 : vector<2x32xf32>
    %cst_96 = arith.constant 1.000000e+00 : f32
    %328 = vector.broadcast %cst_96 : f32 to vector<2x1xf32>
    %329 = arith.subf %328, %293 : vector<2x1xf32>
    %330 = vector.broadcast %329 : vector<2x1xf32> to vector<2x32xf32>
    %331 = arith.mulf %330, %277 : vector<2x32xf32>
    %332 = arith.addf %327, %331 : vector<2x32xf32>
    %333 = vector.broadcast %293 : vector<2x1xf32> to vector<2x32xf32>
    %334 = arith.mulf %332, %333 : vector<2x32xf32>
    %c0_97 = arith.constant 0 : index
    %335 = arith.index_cast %287 : i32 to index
    %c0_98 = arith.constant 0 : index
    %c0_99 = arith.constant 0 : index
    %336 = vector.load %arg7[%c0_97, %335, %c0_98, %c0_99] : memref<1x8x2x32xf32, #tpu.memory_space<vmem>>, vector<1x1x2x32xf32>
    %337 = vector.shape_cast %336 : vector<1x1x2x32xf32> to vector<2x32xf32>
    %338 = vector.shape_cast %334 : vector<2x32xf32> to vector<1x1x2x32xf32>
    tpu.vector_store %arg7[%c0_97, %335, %c0_98, %c0_99], %338 {strides = array<i32>} : memref<1x8x2x32xf32, #tpu.memory_space<vmem>>, vector<1x1x2x32xf32>,
    %c6_i32 = arith.constant 6 : i32
    %c2_i32_100 = arith.constant 2 : i32
    %339 = arith.muli %c2_i32_100, %c6_i32 : i32
    %c7_i32_101 = arith.constant 7 : i32
    %340 = arith.subi %c7_i32_101, %339 : i32
    %341 = arith.muli %arg0, %340 : i32
    %342 = arith.addi %c6_i32, %341 : i32
    %343 = arith.index_cast %342 : i32 to index
    %c0_102 = arith.constant 0 : index
    %c0_103 = arith.constant 0 : index
    %344 = vector.load %arg2[%343, %c0_102, %c0_103] : memref<8x2x16xf32, #tpu.memory_space<vmem>>, vector<1x2x16xf32>
    %345 = vector.shape_cast %344 : vector<1x2x16xf32> to vector<2x16xf32>
    %346 = arith.index_cast %342 : i32 to index
    %c0_104 = arith.constant 0 : index
    %c0_105 = arith.constant 0 : index
    %347 = vector.load %arg1[%346, %c0_104, %c0_105] : memref<8x2x1xf32, #tpu.memory_space<vmem>>, vector<1x2x1xf32>
    %348 = vector.shape_cast %347 : vector<1x2x1xf32> to vector<2x1xf32>
    %cst_106 = arith.constant dense<0.000000e+00> : vector<2x96xf32>
    %349 = tpu.matmul %345, %1, %cst_106 {dimension_numbers = #tpu.dot_dimension_numbers<[1], [0], [0], [1], [0, 0, 1, 1], [], []>} : vector<2x16xf32>, vector<16x96xf32>, vector<2x96xf32> -> vector<2x96xf32>
    %350 = vector.broadcast %5 : vector<1x96xf32> to vector<2x96xf32>
    %351 = arith.addf %349, %350 : vector<2x96xf32>
    %cst_107 = arith.constant dense<0.000000e+00> : vector<2x96xf32>
    %352 = tpu.matmul %332, %3, %cst_107 {dimension_numbers = #tpu.dot_dimension_numbers<[1], [0], [0], [1], [0, 0, 1, 1], [], []>} : vector<2x32xf32>, vector<32x96xf32>, vector<2x96xf32> -> vector<2x96xf32>
    %353 = vector.broadcast %7 : vector<1x96xf32> to vector<2x96xf32>
    %354 = arith.addf %352, %353 : vector<2x96xf32>
    %355 = vector.extract_strided_slice %351 {offsets = [0, 0], sizes = [2, 32], strides = [1, 1]} : vector<2x96xf32> to vector<2x32xf32>
    %356 = vector.extract_strided_slice %354 {offsets = [0, 0], sizes = [2, 32], strides = [1, 1]} : vector<2x96xf32> to vector<2x32xf32>
    %357 = arith.addf %355, %356 : vector<2x32xf32>
    %358 = arith.negf %357 : vector<2x32xf32>
    %359 = math.exp %358 : vector<2x32xf32>
    %cst_108 = arith.constant 1.000000e+00 : f32
    %360 = vector.broadcast %cst_108 : f32 to vector<2x32xf32>
    %361 = arith.addf %360, %359 : vector<2x32xf32>
    %362 = arith.divf %360, %361 : vector<2x32xf32>
    %363 = vector.extract_strided_slice %351 {offsets = [0, 32], sizes = [2, 32], strides = [1, 1]} : vector<2x96xf32> to vector<2x32xf32>
    %364 = vector.extract_strided_slice %354 {offsets = [0, 32], sizes = [2, 32], strides = [1, 1]} : vector<2x96xf32> to vector<2x32xf32>
    %365 = arith.addf %363, %364 : vector<2x32xf32>
    %366 = arith.negf %365 : vector<2x32xf32>
    %367 = math.exp %366 : vector<2x32xf32>
    %cst_109 = arith.constant 1.000000e+00 : f32
    %368 = vector.broadcast %cst_109 : f32 to vector<2x32xf32>
    %369 = arith.addf %368, %367 : vector<2x32xf32>
    %370 = arith.divf %368, %369 : vector<2x32xf32>
    %371 = vector.extract_strided_slice %351 {offsets = [0, 64], sizes = [2, 32], strides = [1, 1]} : vector<2x96xf32> to vector<2x32xf32>
    %372 = vector.extract_strided_slice %354 {offsets = [0, 64], sizes = [2, 32], strides = [1, 1]} : vector<2x96xf32> to vector<2x32xf32>
    %373 = arith.mulf %362, %372 : vector<2x32xf32>
    %374 = arith.addf %371, %373 : vector<2x32xf32>
    %375 = math.tanh %374 : vector<2x32xf32>
    %cst_110 = arith.constant 1.000000e+00 : f32
    %376 = vector.broadcast %cst_110 : f32 to vector<2x32xf32>
    %377 = arith.subf %376, %370 : vector<2x32xf32>
    %378 = arith.mulf %377, %375 : vector<2x32xf32>
    %379 = arith.mulf %370, %332 : vector<2x32xf32>
    %380 = arith.addf %378, %379 : vector<2x32xf32>
    %381 = vector.broadcast %348 : vector<2x1xf32> to vector<2x32xf32>
    %382 = arith.mulf %381, %380 : vector<2x32xf32>
    %cst_111 = arith.constant 1.000000e+00 : f32
    %383 = vector.broadcast %cst_111 : f32 to vector<2x1xf32>
    %384 = arith.subf %383, %348 : vector<2x1xf32>
    %385 = vector.broadcast %384 : vector<2x1xf32> to vector<2x32xf32>
    %386 = arith.mulf %385, %332 : vector<2x32xf32>
    %387 = arith.addf %382, %386 : vector<2x32xf32>
    %388 = vector.broadcast %348 : vector<2x1xf32> to vector<2x32xf32>
    %389 = arith.mulf %387, %388 : vector<2x32xf32>
    %c0_112 = arith.constant 0 : index
    %390 = arith.index_cast %342 : i32 to index
    %c0_113 = arith.constant 0 : index
    %c0_114 = arith.constant 0 : index
    %391 = vector.load %arg7[%c0_112, %390, %c0_113, %c0_114] : memref<1x8x2x32xf32, #tpu.memory_space<vmem>>, vector<1x1x2x32xf32>
    %392 = vector.shape_cast %391 : vector<1x1x2x32xf32> to vector<2x32xf32>
    %393 = vector.shape_cast %389 : vector<2x32xf32> to vector<1x1x2x32xf32>
    tpu.vector_store %arg7[%c0_112, %390, %c0_113, %c0_114], %393 {strides = array<i32>} : memref<1x8x2x32xf32, #tpu.memory_space<vmem>>, vector<1x1x2x32xf32>,
    %c7_i32_115 = arith.constant 7 : i32
    %c2_i32_116 = arith.constant 2 : i32
    %394 = arith.muli %c2_i32_116, %c7_i32_115 : i32
    %c7_i32_117 = arith.constant 7 : i32
    %395 = arith.subi %c7_i32_117, %394 : i32
    %396 = arith.muli %arg0, %395 : i32
    %397 = arith.addi %c7_i32_115, %396 : i32
    %398 = arith.index_cast %397 : i32 to index
    %c0_118 = arith.constant 0 : index
    %c0_119 = arith.constant 0 : index
    %399 = vector.load %arg2[%398, %c0_118, %c0_119] : memref<8x2x16xf32, #tpu.memory_space<vmem>>, vector<1x2x16xf32>
    %400 = vector.shape_cast %399 : vector<1x2x16xf32> to vector<2x16xf32>
    %401 = arith.index_cast %397 : i32 to index
    %c0_120 = arith.constant 0 : index
    %c0_121 = arith.constant 0 : index
    %402 = vector.load %arg1[%401, %c0_120, %c0_121] : memref<8x2x1xf32, #tpu.memory_space<vmem>>, vector<1x2x1xf32>
    %403 = vector.shape_cast %402 : vector<1x2x1xf32> to vector<2x1xf32>
    %cst_122 = arith.constant dense<0.000000e+00> : vector<2x96xf32>
    %404 = tpu.matmul %400, %1, %cst_122 {dimension_numbers = #tpu.dot_dimension_numbers<[1], [0], [0], [1], [0, 0, 1, 1], [], []>} : vector<2x16xf32>, vector<16x96xf32>, vector<2x96xf32> -> vector<2x96xf32>
    %405 = vector.broadcast %5 : vector<1x96xf32> to vector<2x96xf32>
    %406 = arith.addf %404, %405 : vector<2x96xf32>
    %cst_123 = arith.constant dense<0.000000e+00> : vector<2x96xf32>
    %407 = tpu.matmul %387, %3, %cst_123 {dimension_numbers = #tpu.dot_dimension_numbers<[1], [0], [0], [1], [0, 0, 1, 1], [], []>} : vector<2x32xf32>, vector<32x96xf32>, vector<2x96xf32> -> vector<2x96xf32>
    %408 = vector.broadcast %7 : vector<1x96xf32> to vector<2x96xf32>
    %409 = arith.addf %407, %408 : vector<2x96xf32>
    %410 = vector.extract_strided_slice %406 {offsets = [0, 0], sizes = [2, 32], strides = [1, 1]} : vector<2x96xf32> to vector<2x32xf32>
    %411 = vector.extract_strided_slice %409 {offsets = [0, 0], sizes = [2, 32], strides = [1, 1]} : vector<2x96xf32> to vector<2x32xf32>
    %412 = arith.addf %410, %411 : vector<2x32xf32>
    %413 = arith.negf %412 : vector<2x32xf32>
    %414 = math.exp %413 : vector<2x32xf32>
    %cst_124 = arith.constant 1.000000e+00 : f32
    %415 = vector.broadcast %cst_124 : f32 to vector<2x32xf32>
    %416 = arith.addf %415, %414 : vector<2x32xf32>
    %417 = arith.divf %415, %416 : vector<2x32xf32>
    %418 = vector.extract_strided_slice %406 {offsets = [0, 32], sizes = [2, 32], strides = [1, 1]} : vector<2x96xf32> to vector<2x32xf32>
    %419 = vector.extract_strided_slice %409 {offsets = [0, 32], sizes = [2, 32], strides = [1, 1]} : vector<2x96xf32> to vector<2x32xf32>
    %420 = arith.addf %418, %419 : vector<2x32xf32>
    %421 = arith.negf %420 : vector<2x32xf32>
    %422 = math.exp %421 : vector<2x32xf32>
    %cst_125 = arith.constant 1.000000e+00 : f32
    %423 = vector.broadcast %cst_125 : f32 to vector<2x32xf32>
    %424 = arith.addf %423, %422 : vector<2x32xf32>
    %425 = arith.divf %423, %424 : vector<2x32xf32>
    %426 = vector.extract_strided_slice %406 {offsets = [0, 64], sizes = [2, 32], strides = [1, 1]} : vector<2x96xf32> to vector<2x32xf32>
    %427 = vector.extract_strided_slice %409 {offsets = [0, 64], sizes = [2, 32], strides = [1, 1]} : vector<2x96xf32> to vector<2x32xf32>
    %428 = arith.mulf %417, %427 : vector<2x32xf32>
    %429 = arith.addf %426, %428 : vector<2x32xf32>
    %430 = math.tanh %429 : vector<2x32xf32>
    %cst_126 = arith.constant 1.000000e+00 : f32
    %431 = vector.broadcast %cst_126 : f32 to vector<2x32xf32>
    %432 = arith.subf %431, %425 : vector<2x32xf32>
    %433 = arith.mulf %432, %430 : vector<2x32xf32>
    %434 = arith.mulf %425, %387 : vector<2x32xf32>
    %435 = arith.addf %433, %434 : vector<2x32xf32>
    %436 = vector.broadcast %403 : vector<2x1xf32> to vector<2x32xf32>
    %437 = arith.mulf %436, %435 : vector<2x32xf32>
    %cst_127 = arith.constant 1.000000e+00 : f32
    %438 = vector.broadcast %cst_127 : f32 to vector<2x1xf32>
    %439 = arith.subf %438, %403 : vector<2x1xf32>
    %440 = vector.broadcast %439 : vector<2x1xf32> to vector<2x32xf32>
    %441 = arith.mulf %440, %387 : vector<2x32xf32>
    %442 = arith.addf %437, %441 : vector<2x32xf32>
    %443 = vector.broadcast %403 : vector<2x1xf32> to vector<2x32xf32>
    %444 = arith.mulf %442, %443 : vector<2x32xf32>
    %c0_128 = arith.constant 0 : index
    %445 = arith.index_cast %397 : i32 to index
    %c0_129 = arith.constant 0 : index
    %c0_130 = arith.constant 0 : index
    %446 = vector.load %arg7[%c0_128, %445, %c0_129, %c0_130] : memref<1x8x2x32xf32, #tpu.memory_space<vmem>>, vector<1x1x2x32xf32>
    %447 = vector.shape_cast %446 : vector<1x1x2x32xf32> to vector<2x32xf32>
    %448 = vector.shape_cast %444 : vector<2x32xf32> to vector<1x1x2x32xf32>
    tpu.vector_store %arg7[%c0_128, %445, %c0_129, %c0_130], %448 {strides = array<i32>} : memref<1x8x2x32xf32, #tpu.memory_space<vmem>>, vector<1x1x2x32xf32>,
    %c8_i32 = arith.constant 8 : i32
    %c0_131 = arith.constant 0 : index
    %c0_132 = arith.constant 0 : index
    %c0_133 = arith.constant 0 : index
    %449 = vector.load %arg8[%c0_131, %c0_132, %c0_133] : memref<1x2x32xf32, #tpu.memory_space<vmem>>, vector<1x2x32xf32>
    %450 = vector.shape_cast %449 : vector<1x2x32xf32> to vector<2x32xf32>
    %451 = vector.shape_cast %442 : vector<2x32xf32> to vector<1x2x32xf32>
    tpu.vector_store %arg8[%c0_131, %c0_132, %c0_133], %451 {strides = array<i32>} : memref<1x2x32xf32, #tpu.memory_space<vmem>>, vector<1x2x32xf32>,
    return
  }
  func.func @transform_0(%arg0: i32) -> (i32, i32, i32) {
    %c0_i32 = arith.constant 0 : i32
    %c0_i32_0 = arith.constant 0 : i32
    %c0_i32_1 = arith.constant 0 : i32
    %c0_i32_2 = arith.constant 0 : i32
    return %c0_i32, %c0_i32_0, %c0_i32_1 : i32, i32, i32
  }
  func.func @transform_1(%arg0: i32) -> (i32, i32, i32) {
    %c0_i32 = arith.constant 0 : i32
    %c0_i32_0 = arith.constant 0 : i32
    %c0_i32_1 = arith.constant 0 : i32
    %c0_i32_2 = arith.constant 0 : i32
    return %c0_i32, %c0_i32_0, %c0_i32_1 : i32, i32, i32
  }
  func.func @transform_2(%arg0: i32) -> (i32, i32, i32) {
    %c0_i32 = arith.constant 0 : i32
    %c0_i32_0 = arith.constant 0 : i32
    %c0_i32_1 = arith.constant 0 : i32
    return %arg0, %c0_i32, %c0_i32_0 : i32, i32, i32
  }
  func.func @transform_3(%arg0: i32) -> (i32, i32, i32) {
    %c0_i32 = arith.constant 0 : i32
    %c0_i32_0 = arith.constant 0 : i32
    %c0_i32_1 = arith.constant 0 : i32
    return %arg0, %c0_i32, %c0_i32_0 : i32, i32, i32
  }
  func.func @transform_4(%arg0: i32) -> (i32, i32, i32) {
    %c0_i32 = arith.constant 0 : i32
    %c0_i32_0 = arith.constant 0 : i32
    %c0_i32_1 = arith.constant 0 : i32
    return %arg0, %c0_i32, %c0_i32_0 : i32, i32, i32
  }
  func.func @transform_5(%arg0: i32) -> (i32, i32, i32) {
    %c0_i32 = arith.constant 0 : i32
    %c0_i32_0 = arith.constant 0 : i32
    %c0_i32_1 = arith.constant 0 : i32
    return %arg0, %c0_i32, %c0_i32_0 : i32, i32, i32
  }
  func.func @transform_6(%arg0: i32) -> (i32, i32, i32, i32) {
    %c0_i32 = arith.constant 0 : i32
    %c0_i32_0 = arith.constant 0 : i32
    %c0_i32_1 = arith.constant 0 : i32
    %c0_i32_2 = arith.constant 0 : i32
    return %arg0, %c0_i32, %c0_i32_0, %c0_i32_1 : i32, i32, i32, i32
  }
  func.func @transform_7(%arg0: i32) -> (i32, i32, i32) {
    %c0_i32 = arith.constant 0 : i32
    %c0_i32_0 = arith.constant 0 : i32
    %c0_i32_1 = arith.constant 0 : i32
    return %arg0, %c0_i32, %c0_i32_0 : i32, i32, i32
  }
}

module attributes {stable_mosaic.version = 11 : i64} {
  func.func @_decoder_kernel(%arg0: i32, %arg1: memref<5xi32, #tpu.memory_space<smem>>, %arg2: memref<5x2x128xf32, #tpu.memory_space<vmem>>, %arg3: memref<2x8x2x32xf32, #tpu.memory_space<vmem>>, %arg4: memref<2x2x32xf32, #tpu.memory_space<vmem>>, %arg5: memref<8x2xf32, #tpu.memory_space<vmem>>, %arg6: memref<2x32x32xf32, #tpu.memory_space<vmem>>, %arg7: memref<1x32xf32, #tpu.memory_space<vmem>>, %arg8: memref<32x32xf32, #tpu.memory_space<vmem>>, %arg9: memref<2x32x32xf32, #tpu.memory_space<vmem>>, %arg10: memref<1x32xf32, #tpu.memory_space<vmem>>, %arg11: memref<1x32xf32, #tpu.memory_space<vmem>>, %arg12: memref<128x16xf32, #tpu.memory_space<vmem>>, %arg13: memref<80x96xf32, #tpu.memory_space<vmem>>, %arg14: memref<32x96xf32, #tpu.memory_space<vmem>>, %arg15: memref<1x96xf32, #tpu.memory_space<vmem>>, %arg16: memref<1x96xf32, #tpu.memory_space<vmem>>, %arg17: memref<112x128xf32, #tpu.memory_space<vmem>>, %arg18: memref<1x128xf32, #tpu.memory_space<vmem>>, %arg19: memref<5x2x128xf32, #tpu.memory_space<vmem>>) attributes {dimension_semantics = [#tpu.dimension_semantics<arbitrary>], iteration_bounds = array<i64: 1>, scalar_prefetch = 1 : i64, scratch_operands = 0 : i64, tpu.core_type = #tpu.core_type<tc>, window_params = [{pipeline_mode = #tpu.pipeline_mode<synchronous>, transform_indices = @transform_0, window_bounds = array<i64: 5, 2, 128>}, {pipeline_mode = #tpu.pipeline_mode<synchronous>, transform_indices = @transform_1, window_bounds = array<i64: 2, 8, 2, 32>}, {pipeline_mode = #tpu.pipeline_mode<synchronous>, transform_indices = @transform_2, window_bounds = array<i64: 2, 2, 32>}, {pipeline_mode = #tpu.pipeline_mode<synchronous>, transform_indices = @transform_3, window_bounds = array<i64: 8, 2>}, {pipeline_mode = #tpu.pipeline_mode<synchronous>, transform_indices = @transform_4, window_bounds = array<i64: 2, 32, 32>}, {pipeline_mode = #tpu.pipeline_mode<synchronous>, transform_indices = @transform_5, window_bounds = array<i64: 1, 32>}, {pipeline_mode = #tpu.pipeline_mode<synchronous>, transform_indices = @transform_6, window_bounds = array<i64: 32, 32>}, {pipeline_mode = #tpu.pipeline_mode<synchronous>, transform_indices = @transform_7, window_bounds = array<i64: 2, 32, 32>}, {pipeline_mode = #tpu.pipeline_mode<synchronous>, transform_indices = @transform_8, window_bounds = array<i64: 1, 32>}, {pipeline_mode = #tpu.pipeline_mode<synchronous>, transform_indices = @transform_9, window_bounds = array<i64: 1, 32>}, {pipeline_mode = #tpu.pipeline_mode<synchronous>, transform_indices = @transform_10, window_bounds = array<i64: 128, 16>}, {pipeline_mode = #tpu.pipeline_mode<synchronous>, transform_indices = @transform_11, window_bounds = array<i64: 80, 96>}, {pipeline_mode = #tpu.pipeline_mode<synchronous>, transform_indices = @transform_12, window_bounds = array<i64: 32, 96>}, {pipeline_mode = #tpu.pipeline_mode<synchronous>, transform_indices = @transform_13, window_bounds = array<i64: 1, 96>}, {pipeline_mode = #tpu.pipeline_mode<synchronous>, transform_indices = @transform_14, window_bounds = array<i64: 1, 96>}, {pipeline_mode = #tpu.pipeline_mode<synchronous>, transform_indices = @transform_15, window_bounds = array<i64: 112, 128>}, {pipeline_mode = #tpu.pipeline_mode<synchronous>, transform_indices = @transform_16, window_bounds = array<i64: 1, 128>}, {pipeline_mode = #tpu.pipeline_mode<synchronous>, transform_indices = @transform_17, window_bounds = array<i64: 5, 2, 128>}]} {
    %c0 = arith.constant 0 : index
    %c0_0 = arith.constant 0 : index
    %c0_1 = arith.constant 0 : index
    %c0_2 = arith.constant 0 : index
    %0 = vector.load %arg3[%c0, %c0_0, %c0_1, %c0_2] : memref<2x8x2x32xf32, #tpu.memory_space<vmem>>, vector<1x8x2x32xf32>
    %1 = vector.shape_cast %0 : vector<1x8x2x32xf32> to vector<8x2x32xf32>
    %c1 = arith.constant 1 : index
    %c0_3 = arith.constant 0 : index
    %c0_4 = arith.constant 0 : index
    %c0_5 = arith.constant 0 : index
    %2 = vector.load %arg3[%c1, %c0_3, %c0_4, %c0_5] : memref<2x8x2x32xf32, #tpu.memory_space<vmem>>, vector<1x8x2x32xf32>
    %3 = vector.shape_cast %2 : vector<1x8x2x32xf32> to vector<8x2x32xf32>
    %c0_6 = arith.constant 0 : index
    %c0_7 = arith.constant 0 : index
    %4 = vector.load %arg5[%c0_6, %c0_7] : memref<8x2xf32, #tpu.memory_space<vmem>>, vector<8x2xf32>
    %c0_8 = arith.constant 0 : index
    %c0_9 = arith.constant 0 : index
    %c0_10 = arith.constant 0 : index
    %5 = vector.load %arg4[%c0_8, %c0_9, %c0_10] : memref<2x2x32xf32, #tpu.memory_space<vmem>>, vector<1x2x32xf32>
    %6 = vector.shape_cast %5 : vector<1x2x32xf32> to vector<2x32xf32>
    %c0_11 = arith.constant 0 : index
    %c0_12 = arith.constant 0 : index
    %c0_13 = arith.constant 0 : index
    %7 = vector.load %arg6[%c0_11, %c0_12, %c0_13] : memref<2x32x32xf32, #tpu.memory_space<vmem>>, vector<1x32x32xf32>
    %8 = vector.shape_cast %7 : vector<1x32x32xf32> to vector<32x32xf32>
    %cst = arith.constant dense<0.000000e+00> : vector<2x32xf32>
    %9 = tpu.matmul %6, %8, %cst {dimension_numbers = #tpu.dot_dimension_numbers<[1], [0], [0], [1], [0, 0, 1, 1], [], []>} : vector<2x32xf32>, vector<32x32xf32>, vector<2x32xf32> -> vector<2x32xf32>
    %c1_14 = arith.constant 1 : index
    %c0_15 = arith.constant 0 : index
    %c0_16 = arith.constant 0 : index
    %10 = vector.load %arg4[%c1_14, %c0_15, %c0_16] : memref<2x2x32xf32, #tpu.memory_space<vmem>>, vector<1x2x32xf32>
    %11 = vector.shape_cast %10 : vector<1x2x32xf32> to vector<2x32xf32>
    %c1_17 = arith.constant 1 : index
    %c0_18 = arith.constant 0 : index
    %c0_19 = arith.constant 0 : index
    %12 = vector.load %arg6[%c1_17, %c0_18, %c0_19] : memref<2x32x32xf32, #tpu.memory_space<vmem>>, vector<1x32x32xf32>
    %13 = vector.shape_cast %12 : vector<1x32x32xf32> to vector<32x32xf32>
    %cst_20 = arith.constant dense<0.000000e+00> : vector<2x32xf32>
    %14 = tpu.matmul %11, %13, %cst_20 {dimension_numbers = #tpu.dot_dimension_numbers<[1], [0], [0], [1], [0, 0, 1, 1], [], []>} : vector<2x32xf32>, vector<32x32xf32>, vector<2x32xf32> -> vector<2x32xf32>
    %15 = arith.addf %9, %14 : vector<2x32xf32>
    %c0_21 = arith.constant 0 : index
    %c0_22 = arith.constant 0 : index
    %16 = vector.load %arg7[%c0_21, %c0_22] : memref<1x32xf32, #tpu.memory_space<vmem>>, vector<1x32xf32>
    %17 = vector.broadcast %16 : vector<1x32xf32> to vector<2x32xf32>
    %18 = arith.addf %15, %17 : vector<2x32xf32>
    %19 = math.tanh %18 : vector<2x32xf32>
    %20 = vector.shape_cast %1 : vector<8x2x32xf32> to vector<16x32xf32>
    %c0_23 = arith.constant 0 : index
    %c0_24 = arith.constant 0 : index
    %c0_25 = arith.constant 0 : index
    %21 = vector.load %arg9[%c0_23, %c0_24, %c0_25] : memref<2x32x32xf32, #tpu.memory_space<vmem>>, vector<1x32x32xf32>
    %22 = vector.shape_cast %21 : vector<1x32x32xf32> to vector<32x32xf32>
    %cst_26 = arith.constant dense<0.000000e+00> : vector<16x32xf32>
    %23 = tpu.matmul %20, %22, %cst_26 {dimension_numbers = #tpu.dot_dimension_numbers<[1], [0], [0], [1], [0, 0, 1, 1], [], []>} : vector<16x32xf32>, vector<32x32xf32>, vector<16x32xf32> -> vector<16x32xf32>
    %24 = vector.shape_cast %3 : vector<8x2x32xf32> to vector<16x32xf32>
    %c1_27 = arith.constant 1 : index
    %c0_28 = arith.constant 0 : index
    %c0_29 = arith.constant 0 : index
    %25 = vector.load %arg9[%c1_27, %c0_28, %c0_29] : memref<2x32x32xf32, #tpu.memory_space<vmem>>, vector<1x32x32xf32>
    %26 = vector.shape_cast %25 : vector<1x32x32xf32> to vector<32x32xf32>
    %cst_30 = arith.constant dense<0.000000e+00> : vector<16x32xf32>
    %27 = tpu.matmul %24, %26, %cst_30 {dimension_numbers = #tpu.dot_dimension_numbers<[1], [0], [0], [1], [0, 0, 1, 1], [], []>} : vector<16x32xf32>, vector<32x32xf32>, vector<16x32xf32> -> vector<16x32xf32>
    %28 = arith.addf %23, %27 : vector<16x32xf32>
    %29 = vector.shape_cast %28 : vector<16x32xf32> to vector<8x2x32xf32>
    %c0_31 = arith.constant 0 : index
    %c0_32 = arith.constant 0 : index
    %30 = vector.load %arg10[%c0_31, %c0_32] : memref<1x32xf32, #tpu.memory_space<vmem>>, vector<1x32xf32>
    %31 = vector.shape_cast %30 : vector<1x32xf32> to vector<1x1x32xf32>
    %32 = vector.broadcast %31 : vector<1x1x32xf32> to vector<8x2x32xf32>
    %33 = arith.addf %29, %32 : vector<8x2x32xf32>
    %c0_33 = arith.constant 0 : index
    %c0_34 = arith.constant 0 : index
    %34 = vector.load %arg12[%c0_33, %c0_34] : memref<128x16xf32, #tpu.memory_space<vmem>>, vector<128x16xf32>
    %c0_35 = arith.constant 0 : index
    %c0_36 = arith.constant 0 : index
    %35 = vector.load %arg8[%c0_35, %c0_36] : memref<32x32xf32, #tpu.memory_space<vmem>>, vector<32x32xf32>
    %c0_37 = arith.constant 0 : index
    %c0_38 = arith.constant 0 : index
    %36 = vector.load %arg11[%c0_37, %c0_38] : memref<1x32xf32, #tpu.memory_space<vmem>>, vector<1x32xf32>
    %c0_39 = arith.constant 0 : index
    %c0_40 = arith.constant 0 : index
    %37 = vector.load %arg14[%c0_39, %c0_40] : memref<32x96xf32, #tpu.memory_space<vmem>>, vector<32x96xf32>
    %c0_41 = arith.constant 0 : index
    %c0_42 = arith.constant 0 : index
    %38 = vector.load %arg15[%c0_41, %c0_42] : memref<1x96xf32, #tpu.memory_space<vmem>>, vector<1x96xf32>
    %c0_43 = arith.constant 0 : index
    %c0_44 = arith.constant 0 : index
    %39 = vector.load %arg16[%c0_43, %c0_44] : memref<1x96xf32, #tpu.memory_space<vmem>>, vector<1x96xf32>
    %c0_45 = arith.constant 0 : index
    %c0_46 = arith.constant 0 : index
    %40 = vector.load %arg18[%c0_45, %c0_46] : memref<1x128xf32, #tpu.memory_space<vmem>>, vector<1x128xf32>
    %c0_47 = arith.constant 0 : index
    %c0_48 = arith.constant 0 : index
    %41 = vector.load %arg13[%c0_47, %c0_48] : memref<80x96xf32, #tpu.memory_space<vmem>>, vector<16x96xf32>
    %c16 = arith.constant 16 : index
    %c0_49 = arith.constant 0 : index
    %42 = vector.load %arg13[%c16, %c0_49] : memref<80x96xf32, #tpu.memory_space<vmem>>, vector<32x96xf32>
    %c48 = arith.constant 48 : index
    %c0_50 = arith.constant 0 : index
    %43 = vector.load %arg13[%c48, %c0_50] : memref<80x96xf32, #tpu.memory_space<vmem>>, vector<32x96xf32>
    %c0_51 = arith.constant 0 : index
    %c0_52 = arith.constant 0 : index
    %44 = vector.load %arg17[%c0_51, %c0_52] : memref<112x128xf32, #tpu.memory_space<vmem>>, vector<32x128xf32>
    %c32 = arith.constant 32 : index
    %c0_53 = arith.constant 0 : index
    %45 = vector.load %arg17[%c32, %c0_53] : memref<112x128xf32, #tpu.memory_space<vmem>>, vector<32x128xf32>
    %c64 = arith.constant 64 : index
    %c0_54 = arith.constant 0 : index
    %46 = vector.load %arg17[%c64, %c0_54] : memref<112x128xf32, #tpu.memory_space<vmem>>, vector<32x128xf32>
    %c96 = arith.constant 96 : index
    %c0_55 = arith.constant 0 : index
    %47 = vector.load %arg17[%c96, %c0_55] : memref<112x128xf32, #tpu.memory_space<vmem>>, vector<16x128xf32>
    %cst_56 = arith.constant 0.000000e+00 : f32
    %48 = vector.broadcast %cst_56 : f32 to vector<2x128xf32>
    %c0_i32 = arith.constant 0 : i32
    %49 = arith.index_cast %c0_i32 : i32 to index
    %50 = memref.load %arg1[%49] : memref<5xi32, #tpu.memory_space<smem>>
    %c0_i32_57 = arith.constant 0 : i32
    %51 = arith.cmpi sgt, %50, %c0_i32_57 : i32
    %52 = arith.extui %51 : i1 to i32
    %53 = arith.sitofp %52 : i32 to f32
    %54 = arith.index_cast %c0_i32 : i32 to index
    %c0_58 = arith.constant 0 : index
    %c0_59 = arith.constant 0 : index
    %55 = vector.load %arg2[%54, %c0_58, %c0_59] : memref<5x2x128xf32, #tpu.memory_space<vmem>>, vector<1x2x128xf32>
    %56 = vector.shape_cast %55 : vector<1x2x128xf32> to vector<2x128xf32>
    %57 = vector.broadcast %53 : f32 to vector<2x128xf32>
    %58 = arith.mulf %57, %56 : vector<2x128xf32>
    %cst_60 = arith.constant 1.000000e+00 : f32
    %59 = arith.subf %cst_60, %53 : f32
    %60 = vector.broadcast %59 : f32 to vector<2x128xf32>
    %61 = arith.mulf %60, %48 : vector<2x128xf32>
    %62 = arith.addf %58, %61 : vector<2x128xf32>
    %cst_61 = arith.constant dense<0.000000e+00> : vector<2x16xf32>
    %63 = tpu.matmul %62, %34, %cst_61 {dimension_numbers = #tpu.dot_dimension_numbers<[1], [0], [0], [1], [0, 0, 1, 1], [], []>} : vector<2x128xf32>, vector<128x16xf32>, vector<2x16xf32> -> vector<2x16xf32>
    %cst_62 = arith.constant dense<0.000000e+00> : vector<2x32xf32>
    %64 = tpu.matmul %19, %35, %cst_62 {dimension_numbers = #tpu.dot_dimension_numbers<[1], [0], [0], [1], [0, 0, 1, 1], [], []>} : vector<2x32xf32>, vector<32x32xf32>, vector<2x32xf32> -> vector<2x32xf32>
    %65 = vector.shape_cast %64 : vector<2x32xf32> to vector<1x2x32xf32>
    %66 = vector.broadcast %65 : vector<1x2x32xf32> to vector<8x2x32xf32>
    %67 = arith.addf %33, %66 : vector<8x2x32xf32>
    %68 = math.tanh %67 : vector<8x2x32xf32>
    %69 = vector.shape_cast %36 : vector<1x32xf32> to vector<1x1x32xf32>
    %70 = vector.broadcast %69 : vector<1x1x32xf32> to vector<8x2x32xf32>
    %71 = arith.mulf %68, %70 : vector<8x2x32xf32>
    %cst_63 = arith.constant dense<0.000000e+00> : vector<8x2xf32>
    %72 = vector.multi_reduction <add>, %71, %cst_63 [2] : vector<8x2x32xf32> to vector<8x2xf32>
    %cst_64 = arith.constant 5.000000e-01 : f32
    %73 = vector.broadcast %cst_64 : f32 to vector<8x2xf32>
    %74 = arith.cmpf ogt, %4, %73 : vector<8x2xf32>
    %cst_65 = arith.constant -1.000000e+10 : f32
    %75 = vector.broadcast %cst_65 : f32 to vector<8x2xf32>
    %76 = arith.select %74, %72, %75 : vector<8x2xi1>, vector<8x2xf32>
    %cst_66 = arith.constant dense<0xFF800000> : vector<2xf32>
    %77 = vector.multi_reduction <maximumf>, %76, %cst_66 [0] : vector<8x2xf32> to vector<2xf32>
    %78 = vector.shape_cast %77 : vector<2xf32> to vector<1x2xf32>
    %79 = vector.broadcast %78 : vector<1x2xf32> to vector<8x2xf32>
    %80 = arith.subf %76, %79 : vector<8x2xf32>
    %81 = math.exp %80 : vector<8x2xf32>
    %cst_67 = arith.constant dense<0.000000e+00> : vector<2xf32>
    %82 = vector.multi_reduction <add>, %81, %cst_67 [0] : vector<8x2xf32> to vector<2xf32>
    %83 = vector.shape_cast %82 : vector<2xf32> to vector<1x2xf32>
    %84 = tpu.reciprocal %83 {approx = true} : vector<1x2xf32> -> vector<1x2xf32>
    %85 = vector.broadcast %84 : vector<1x2xf32> to vector<8x2xf32>
    %86 = arith.mulf %81, %85 : vector<8x2xf32>
    %87 = vector.shape_cast %86 : vector<8x2xf32> to vector<8x2x1xf32>
    %88 = vector.broadcast %87 : vector<8x2x1xf32> to vector<8x2x32xf32>
    %89 = arith.mulf %88, %1 : vector<8x2x32xf32>
    %cst_68 = arith.constant dense<0.000000e+00> : vector<2x32xf32>
    %90 = vector.multi_reduction <add>, %89, %cst_68 [0] : vector<8x2x32xf32> to vector<2x32xf32>
    %91 = vector.shape_cast %86 : vector<8x2xf32> to vector<8x2x1xf32>
    %92 = vector.broadcast %91 : vector<8x2x1xf32> to vector<8x2x32xf32>
    %93 = arith.mulf %92, %3 : vector<8x2x32xf32>
    %cst_69 = arith.constant dense<0.000000e+00> : vector<2x32xf32>
    %94 = vector.multi_reduction <add>, %93, %cst_69 [0] : vector<8x2x32xf32> to vector<2x32xf32>
    %cst_70 = arith.constant dense<0.000000e+00> : vector<2x96xf32>
    %95 = tpu.matmul %63, %41, %cst_70 {dimension_numbers = #tpu.dot_dimension_numbers<[1], [0], [0], [1], [0, 0, 1, 1], [], []>} : vector<2x16xf32>, vector<16x96xf32>, vector<2x96xf32> -> vector<2x96xf32>
    %cst_71 = arith.constant dense<0.000000e+00> : vector<2x96xf32>
    %96 = tpu.matmul %90, %42, %cst_71 {dimension_numbers = #tpu.dot_dimension_numbers<[1], [0], [0], [1], [0, 0, 1, 1], [], []>} : vector<2x32xf32>, vector<32x96xf32>, vector<2x96xf32> -> vector<2x96xf32>
    %97 = arith.addf %95, %96 : vector<2x96xf32>
    %cst_72 = arith.constant dense<0.000000e+00> : vector<2x96xf32>
    %98 = tpu.matmul %94, %43, %cst_72 {dimension_numbers = #tpu.dot_dimension_numbers<[1], [0], [0], [1], [0, 0, 1, 1], [], []>} : vector<2x32xf32>, vector<32x96xf32>, vector<2x96xf32> -> vector<2x96xf32>
    %99 = arith.addf %97, %98 : vector<2x96xf32>
    %100 = vector.broadcast %38 : vector<1x96xf32> to vector<2x96xf32>
    %101 = arith.addf %99, %100 : vector<2x96xf32>
    %cst_73 = arith.constant dense<0.000000e+00> : vector<2x96xf32>
    %102 = tpu.matmul %19, %37, %cst_73 {dimension_numbers = #tpu.dot_dimension_numbers<[1], [0], [0], [1], [0, 0, 1, 1], [], []>} : vector<2x32xf32>, vector<32x96xf32>, vector<2x96xf32> -> vector<2x96xf32>
    %103 = vector.broadcast %39 : vector<1x96xf32> to vector<2x96xf32>
    %104 = arith.addf %102, %103 : vector<2x96xf32>
    %105 = vector.extract_strided_slice %101 {offsets = [0, 0], sizes = [2, 32], strides = [1, 1]} : vector<2x96xf32> to vector<2x32xf32>
    %106 = vector.extract_strided_slice %104 {offsets = [0, 0], sizes = [2, 32], strides = [1, 1]} : vector<2x96xf32> to vector<2x32xf32>
    %107 = arith.addf %105, %106 : vector<2x32xf32>
    %108 = arith.negf %107 : vector<2x32xf32>
    %109 = math.exp %108 : vector<2x32xf32>
    %cst_74 = arith.constant 1.000000e+00 : f32
    %110 = vector.broadcast %cst_74 : f32 to vector<2x32xf32>
    %111 = arith.addf %110, %109 : vector<2x32xf32>
    %112 = arith.divf %110, %111 : vector<2x32xf32>
    %113 = vector.extract_strided_slice %101 {offsets = [0, 32], sizes = [2, 32], strides = [1, 1]} : vector<2x96xf32> to vector<2x32xf32>
    %114 = vector.extract_strided_slice %104 {offsets = [0, 32], sizes = [2, 32], strides = [1, 1]} : vector<2x96xf32> to vector<2x32xf32>
    %115 = arith.addf %113, %114 : vector<2x32xf32>
    %116 = arith.negf %115 : vector<2x32xf32>
    %117 = math.exp %116 : vector<2x32xf32>
    %cst_75 = arith.constant 1.000000e+00 : f32
    %118 = vector.broadcast %cst_75 : f32 to vector<2x32xf32>
    %119 = arith.addf %118, %117 : vector<2x32xf32>
    %120 = arith.divf %118, %119 : vector<2x32xf32>
    %121 = vector.extract_strided_slice %101 {offsets = [0, 64], sizes = [2, 32], strides = [1, 1]} : vector<2x96xf32> to vector<2x32xf32>
    %122 = vector.extract_strided_slice %104 {offsets = [0, 64], sizes = [2, 32], strides = [1, 1]} : vector<2x96xf32> to vector<2x32xf32>
    %123 = arith.mulf %112, %122 : vector<2x32xf32>
    %124 = arith.addf %121, %123 : vector<2x32xf32>
    %125 = math.tanh %124 : vector<2x32xf32>
    %cst_76 = arith.constant 1.000000e+00 : f32
    %126 = vector.broadcast %cst_76 : f32 to vector<2x32xf32>
    %127 = arith.subf %126, %120 : vector<2x32xf32>
    %128 = arith.mulf %127, %125 : vector<2x32xf32>
    %129 = arith.mulf %120, %19 : vector<2x32xf32>
    %130 = arith.addf %128, %129 : vector<2x32xf32>
    %cst_77 = arith.constant dense<0.000000e+00> : vector<2x128xf32>
    %131 = tpu.matmul %130, %44, %cst_77 {dimension_numbers = #tpu.dot_dimension_numbers<[1], [0], [0], [1], [0, 0, 1, 1], [], []>} : vector<2x32xf32>, vector<32x128xf32>, vector<2x128xf32> -> vector<2x128xf32>
    %cst_78 = arith.constant dense<0.000000e+00> : vector<2x128xf32>
    %132 = tpu.matmul %90, %45, %cst_78 {dimension_numbers = #tpu.dot_dimension_numbers<[1], [0], [0], [1], [0, 0, 1, 1], [], []>} : vector<2x32xf32>, vector<32x128xf32>, vector<2x128xf32> -> vector<2x128xf32>
    %133 = arith.addf %131, %132 : vector<2x128xf32>
    %cst_79 = arith.constant dense<0.000000e+00> : vector<2x128xf32>
    %134 = tpu.matmul %94, %46, %cst_79 {dimension_numbers = #tpu.dot_dimension_numbers<[1], [0], [0], [1], [0, 0, 1, 1], [], []>} : vector<2x32xf32>, vector<32x128xf32>, vector<2x128xf32> -> vector<2x128xf32>
    %135 = arith.addf %133, %134 : vector<2x128xf32>
    %cst_80 = arith.constant dense<0.000000e+00> : vector<2x128xf32>
    %136 = tpu.matmul %63, %47, %cst_80 {dimension_numbers = #tpu.dot_dimension_numbers<[1], [0], [0], [1], [0, 0, 1, 1], [], []>} : vector<2x16xf32>, vector<16x128xf32>, vector<2x128xf32> -> vector<2x128xf32>
    %137 = arith.addf %135, %136 : vector<2x128xf32>
    %138 = vector.broadcast %40 : vector<1x128xf32> to vector<2x128xf32>
    %139 = arith.addf %137, %138 : vector<2x128xf32>
    %140 = arith.index_cast %c0_i32 : i32 to index
    %c0_81 = arith.constant 0 : index
    %c0_82 = arith.constant 0 : index
    %141 = vector.load %arg19[%140, %c0_81, %c0_82] : memref<5x2x128xf32, #tpu.memory_space<vmem>>, vector<1x2x128xf32>
    %142 = vector.shape_cast %141 : vector<1x2x128xf32> to vector<2x128xf32>
    %143 = vector.shape_cast %139 : vector<2x128xf32> to vector<1x2x128xf32>
    tpu.vector_store %arg19[%140, %c0_81, %c0_82], %143 {strides = array<i32>} : memref<5x2x128xf32, #tpu.memory_space<vmem>>, vector<1x2x128xf32>,
    %144 = tpu.iota {dimensions = array<i32: 1>} : vector<2x128xi32>
    %c18_i32 = arith.constant 18 : i32
    %145 = vector.broadcast %c18_i32 : i32 to vector<2x128xi32>
    %146 = arith.cmpi slt, %144, %145 : vector<2x128xi32>
    %cst_83 = arith.constant -3.000000e+38 : f32
    %147 = vector.broadcast %cst_83 : f32 to vector<2x128xf32>
    %148 = arith.select %146, %139, %147 : vector<2x128xi1>, vector<2x128xf32>
    %cst_84 = arith.constant dense<0xFF800000> : vector<2xf32>
    %149 = vector.multi_reduction <maximumf>, %148, %cst_84 [1] : vector<2x128xf32> to vector<2xf32>
    %150 = vector.shape_cast %149 : vector<2xf32> to vector<2x1xf32>
    %151 = vector.broadcast %150 : vector<2x1xf32> to vector<2x128xf32>
    %152 = arith.cmpf oeq, %148, %151 : vector<2x128xf32>
    %153 = arith.andi %152, %146 : vector<2x128xi1>
    %c128_i32 = arith.constant 128 : i32
    %154 = vector.broadcast %c128_i32 : i32 to vector<2x128xi32>
    %155 = arith.select %153, %144, %154 : vector<2x128xi1>, vector<2x128xi32>
    %cst_85 = arith.constant dense<2147483647> : vector<2xi32>
    %156 = vector.multi_reduction <minsi>, %155, %cst_85 [1] : vector<2x128xi32> to vector<2xi32>
    %157 = vector.shape_cast %156 : vector<2xi32> to vector<2x1xi32>
    %158 = vector.broadcast %157 : vector<2x1xi32> to vector<2x128xi32>
    %159 = arith.cmpi eq, %144, %158 : vector<2x128xi32>
    %160 = arith.extui %159 : vector<2x128xi1> to vector<2x128xi32>
    %161 = arith.sitofp %160 : vector<2x128xi32> to vector<2x128xf32>
    %c1_i32 = arith.constant 1 : i32
    %162 = arith.index_cast %c1_i32 : i32 to index
    %163 = memref.load %arg1[%162] : memref<5xi32, #tpu.memory_space<smem>>
    %c0_i32_86 = arith.constant 0 : i32
    %164 = arith.cmpi sgt, %163, %c0_i32_86 : i32
    %165 = arith.extui %164 : i1 to i32
    %166 = arith.sitofp %165 : i32 to f32
    %167 = arith.index_cast %c1_i32 : i32 to index
    %c0_87 = arith.constant 0 : index
    %c0_88 = arith.constant 0 : index
    %168 = vector.load %arg2[%167, %c0_87, %c0_88] : memref<5x2x128xf32, #tpu.memory_space<vmem>>, vector<1x2x128xf32>
    %169 = vector.shape_cast %168 : vector<1x2x128xf32> to vector<2x128xf32>
    %170 = vector.broadcast %166 : f32 to vector<2x128xf32>
    %171 = arith.mulf %170, %169 : vector<2x128xf32>
    %cst_89 = arith.constant 1.000000e+00 : f32
    %172 = arith.subf %cst_89, %166 : f32
    %173 = vector.broadcast %172 : f32 to vector<2x128xf32>
    %174 = arith.mulf %173, %161 : vector<2x128xf32>
    %175 = arith.addf %171, %174 : vector<2x128xf32>
    %cst_90 = arith.constant dense<0.000000e+00> : vector<2x16xf32>
    %176 = tpu.matmul %175, %34, %cst_90 {dimension_numbers = #tpu.dot_dimension_numbers<[1], [0], [0], [1], [0, 0, 1, 1], [], []>} : vector<2x128xf32>, vector<128x16xf32>, vector<2x16xf32> -> vector<2x16xf32>
    %cst_91 = arith.constant dense<0.000000e+00> : vector<2x32xf32>
    %177 = tpu.matmul %130, %35, %cst_91 {dimension_numbers = #tpu.dot_dimension_numbers<[1], [0], [0], [1], [0, 0, 1, 1], [], []>} : vector<2x32xf32>, vector<32x32xf32>, vector<2x32xf32> -> vector<2x32xf32>
    %178 = vector.shape_cast %177 : vector<2x32xf32> to vector<1x2x32xf32>
    %179 = vector.broadcast %178 : vector<1x2x32xf32> to vector<8x2x32xf32>
    %180 = arith.addf %33, %179 : vector<8x2x32xf32>
    %181 = math.tanh %180 : vector<8x2x32xf32>
    %182 = vector.shape_cast %36 : vector<1x32xf32> to vector<1x1x32xf32>
    %183 = vector.broadcast %182 : vector<1x1x32xf32> to vector<8x2x32xf32>
    %184 = arith.mulf %181, %183 : vector<8x2x32xf32>
    %cst_92 = arith.constant dense<0.000000e+00> : vector<8x2xf32>
    %185 = vector.multi_reduction <add>, %184, %cst_92 [2] : vector<8x2x32xf32> to vector<8x2xf32>
    %cst_93 = arith.constant 5.000000e-01 : f32
    %186 = vector.broadcast %cst_93 : f32 to vector<8x2xf32>
    %187 = arith.cmpf ogt, %4, %186 : vector<8x2xf32>
    %cst_94 = arith.constant -1.000000e+10 : f32
    %188 = vector.broadcast %cst_94 : f32 to vector<8x2xf32>
    %189 = arith.select %187, %185, %188 : vector<8x2xi1>, vector<8x2xf32>
    %cst_95 = arith.constant dense<0xFF800000> : vector<2xf32>
    %190 = vector.multi_reduction <maximumf>, %189, %cst_95 [0] : vector<8x2xf32> to vector<2xf32>
    %191 = vector.shape_cast %190 : vector<2xf32> to vector<1x2xf32>
    %192 = vector.broadcast %191 : vector<1x2xf32> to vector<8x2xf32>
    %193 = arith.subf %189, %192 : vector<8x2xf32>
    %194 = math.exp %193 : vector<8x2xf32>
    %cst_96 = arith.constant dense<0.000000e+00> : vector<2xf32>
    %195 = vector.multi_reduction <add>, %194, %cst_96 [0] : vector<8x2xf32> to vector<2xf32>
    %196 = vector.shape_cast %195 : vector<2xf32> to vector<1x2xf32>
    %197 = tpu.reciprocal %196 {approx = true} : vector<1x2xf32> -> vector<1x2xf32>
    %198 = vector.broadcast %197 : vector<1x2xf32> to vector<8x2xf32>
    %199 = arith.mulf %194, %198 : vector<8x2xf32>
    %200 = vector.shape_cast %199 : vector<8x2xf32> to vector<8x2x1xf32>
    %201 = vector.broadcast %200 : vector<8x2x1xf32> to vector<8x2x32xf32>
    %202 = arith.mulf %201, %1 : vector<8x2x32xf32>
    %cst_97 = arith.constant dense<0.000000e+00> : vector<2x32xf32>
    %203 = vector.multi_reduction <add>, %202, %cst_97 [0] : vector<8x2x32xf32> to vector<2x32xf32>
    %204 = vector.shape_cast %199 : vector<8x2xf32> to vector<8x2x1xf32>
    %205 = vector.broadcast %204 : vector<8x2x1xf32> to vector<8x2x32xf32>
    %206 = arith.mulf %205, %3 : vector<8x2x32xf32>
    %cst_98 = arith.constant dense<0.000000e+00> : vector<2x32xf32>
    %207 = vector.multi_reduction <add>, %206, %cst_98 [0] : vector<8x2x32xf32> to vector<2x32xf32>
    %cst_99 = arith.constant dense<0.000000e+00> : vector<2x96xf32>
    %208 = tpu.matmul %176, %41, %cst_99 {dimension_numbers = #tpu.dot_dimension_numbers<[1], [0], [0], [1], [0, 0, 1, 1], [], []>} : vector<2x16xf32>, vector<16x96xf32>, vector<2x96xf32> -> vector<2x96xf32>
    %cst_100 = arith.constant dense<0.000000e+00> : vector<2x96xf32>
    %209 = tpu.matmul %203, %42, %cst_100 {dimension_numbers = #tpu.dot_dimension_numbers<[1], [0], [0], [1], [0, 0, 1, 1], [], []>} : vector<2x32xf32>, vector<32x96xf32>, vector<2x96xf32> -> vector<2x96xf32>
    %210 = arith.addf %208, %209 : vector<2x96xf32>
    %cst_101 = arith.constant dense<0.000000e+00> : vector<2x96xf32>
    %211 = tpu.matmul %207, %43, %cst_101 {dimension_numbers = #tpu.dot_dimension_numbers<[1], [0], [0], [1], [0, 0, 1, 1], [], []>} : vector<2x32xf32>, vector<32x96xf32>, vector<2x96xf32> -> vector<2x96xf32>
    %212 = arith.addf %210, %211 : vector<2x96xf32>
    %213 = vector.broadcast %38 : vector<1x96xf32> to vector<2x96xf32>
    %214 = arith.addf %212, %213 : vector<2x96xf32>
    %cst_102 = arith.constant dense<0.000000e+00> : vector<2x96xf32>
    %215 = tpu.matmul %130, %37, %cst_102 {dimension_numbers = #tpu.dot_dimension_numbers<[1], [0], [0], [1], [0, 0, 1, 1], [], []>} : vector<2x32xf32>, vector<32x96xf32>, vector<2x96xf32> -> vector<2x96xf32>
    %216 = vector.broadcast %39 : vector<1x96xf32> to vector<2x96xf32>
    %217 = arith.addf %215, %216 : vector<2x96xf32>
    %218 = vector.extract_strided_slice %214 {offsets = [0, 0], sizes = [2, 32], strides = [1, 1]} : vector<2x96xf32> to vector<2x32xf32>
    %219 = vector.extract_strided_slice %217 {offsets = [0, 0], sizes = [2, 32], strides = [1, 1]} : vector<2x96xf32> to vector<2x32xf32>
    %220 = arith.addf %218, %219 : vector<2x32xf32>
    %221 = arith.negf %220 : vector<2x32xf32>
    %222 = math.exp %221 : vector<2x32xf32>
    %cst_103 = arith.constant 1.000000e+00 : f32
    %223 = vector.broadcast %cst_103 : f32 to vector<2x32xf32>
    %224 = arith.addf %223, %222 : vector<2x32xf32>
    %225 = arith.divf %223, %224 : vector<2x32xf32>
    %226 = vector.extract_strided_slice %214 {offsets = [0, 32], sizes = [2, 32], strides = [1, 1]} : vector<2x96xf32> to vector<2x32xf32>
    %227 = vector.extract_strided_slice %217 {offsets = [0, 32], sizes = [2, 32], strides = [1, 1]} : vector<2x96xf32> to vector<2x32xf32>
    %228 = arith.addf %226, %227 : vector<2x32xf32>
    %229 = arith.negf %228 : vector<2x32xf32>
    %230 = math.exp %229 : vector<2x32xf32>
    %cst_104 = arith.constant 1.000000e+00 : f32
    %231 = vector.broadcast %cst_104 : f32 to vector<2x32xf32>
    %232 = arith.addf %231, %230 : vector<2x32xf32>
    %233 = arith.divf %231, %232 : vector<2x32xf32>
    %234 = vector.extract_strided_slice %214 {offsets = [0, 64], sizes = [2, 32], strides = [1, 1]} : vector<2x96xf32> to vector<2x32xf32>
    %235 = vector.extract_strided_slice %217 {offsets = [0, 64], sizes = [2, 32], strides = [1, 1]} : vector<2x96xf32> to vector<2x32xf32>
    %236 = arith.mulf %225, %235 : vector<2x32xf32>
    %237 = arith.addf %234, %236 : vector<2x32xf32>
    %238 = math.tanh %237 : vector<2x32xf32>
    %cst_105 = arith.constant 1.000000e+00 : f32
    %239 = vector.broadcast %cst_105 : f32 to vector<2x32xf32>
    %240 = arith.subf %239, %233 : vector<2x32xf32>
    %241 = arith.mulf %240, %238 : vector<2x32xf32>
    %242 = arith.mulf %233, %130 : vector<2x32xf32>
    %243 = arith.addf %241, %242 : vector<2x32xf32>
    %cst_106 = arith.constant dense<0.000000e+00> : vector<2x128xf32>
    %244 = tpu.matmul %243, %44, %cst_106 {dimension_numbers = #tpu.dot_dimension_numbers<[1], [0], [0], [1], [0, 0, 1, 1], [], []>} : vector<2x32xf32>, vector<32x128xf32>, vector<2x128xf32> -> vector<2x128xf32>
    %cst_107 = arith.constant dense<0.000000e+00> : vector<2x128xf32>
    %245 = tpu.matmul %203, %45, %cst_107 {dimension_numbers = #tpu.dot_dimension_numbers<[1], [0], [0], [1], [0, 0, 1, 1], [], []>} : vector<2x32xf32>, vector<32x128xf32>, vector<2x128xf32> -> vector<2x128xf32>
    %246 = arith.addf %244, %245 : vector<2x128xf32>
    %cst_108 = arith.constant dense<0.000000e+00> : vector<2x128xf32>
    %247 = tpu.matmul %207, %46, %cst_108 {dimension_numbers = #tpu.dot_dimension_numbers<[1], [0], [0], [1], [0, 0, 1, 1], [], []>} : vector<2x32xf32>, vector<32x128xf32>, vector<2x128xf32> -> vector<2x128xf32>
    %248 = arith.addf %246, %247 : vector<2x128xf32>
    %cst_109 = arith.constant dense<0.000000e+00> : vector<2x128xf32>
    %249 = tpu.matmul %176, %47, %cst_109 {dimension_numbers = #tpu.dot_dimension_numbers<[1], [0], [0], [1], [0, 0, 1, 1], [], []>} : vector<2x16xf32>, vector<16x128xf32>, vector<2x128xf32> -> vector<2x128xf32>
    %250 = arith.addf %248, %249 : vector<2x128xf32>
    %251 = vector.broadcast %40 : vector<1x128xf32> to vector<2x128xf32>
    %252 = arith.addf %250, %251 : vector<2x128xf32>
    %253 = arith.index_cast %c1_i32 : i32 to index
    %c0_110 = arith.constant 0 : index
    %c0_111 = arith.constant 0 : index
    %254 = vector.load %arg19[%253, %c0_110, %c0_111] : memref<5x2x128xf32, #tpu.memory_space<vmem>>, vector<1x2x128xf32>
    %255 = vector.shape_cast %254 : vector<1x2x128xf32> to vector<2x128xf32>
    %256 = vector.shape_cast %252 : vector<2x128xf32> to vector<1x2x128xf32>
    tpu.vector_store %arg19[%253, %c0_110, %c0_111], %256 {strides = array<i32>} : memref<5x2x128xf32, #tpu.memory_space<vmem>>, vector<1x2x128xf32>,
    %257 = tpu.iota {dimensions = array<i32: 1>} : vector<2x128xi32>
    %c18_i32_112 = arith.constant 18 : i32
    %258 = vector.broadcast %c18_i32_112 : i32 to vector<2x128xi32>
    %259 = arith.cmpi slt, %257, %258 : vector<2x128xi32>
    %cst_113 = arith.constant -3.000000e+38 : f32
    %260 = vector.broadcast %cst_113 : f32 to vector<2x128xf32>
    %261 = arith.select %259, %252, %260 : vector<2x128xi1>, vector<2x128xf32>
    %cst_114 = arith.constant dense<0xFF800000> : vector<2xf32>
    %262 = vector.multi_reduction <maximumf>, %261, %cst_114 [1] : vector<2x128xf32> to vector<2xf32>
    %263 = vector.shape_cast %262 : vector<2xf32> to vector<2x1xf32>
    %264 = vector.broadcast %263 : vector<2x1xf32> to vector<2x128xf32>
    %265 = arith.cmpf oeq, %261, %264 : vector<2x128xf32>
    %266 = arith.andi %265, %259 : vector<2x128xi1>
    %c128_i32_115 = arith.constant 128 : i32
    %267 = vector.broadcast %c128_i32_115 : i32 to vector<2x128xi32>
    %268 = arith.select %266, %257, %267 : vector<2x128xi1>, vector<2x128xi32>
    %cst_116 = arith.constant dense<2147483647> : vector<2xi32>
    %269 = vector.multi_reduction <minsi>, %268, %cst_116 [1] : vector<2x128xi32> to vector<2xi32>
    %270 = vector.shape_cast %269 : vector<2xi32> to vector<2x1xi32>
    %271 = vector.broadcast %270 : vector<2x1xi32> to vector<2x128xi32>
    %272 = arith.cmpi eq, %257, %271 : vector<2x128xi32>
    %273 = arith.extui %272 : vector<2x128xi1> to vector<2x128xi32>
    %274 = arith.sitofp %273 : vector<2x128xi32> to vector<2x128xf32>
    %c2_i32 = arith.constant 2 : i32
    %275 = arith.index_cast %c2_i32 : i32 to index
    %276 = memref.load %arg1[%275] : memref<5xi32, #tpu.memory_space<smem>>
    %c0_i32_117 = arith.constant 0 : i32
    %277 = arith.cmpi sgt, %276, %c0_i32_117 : i32
    %278 = arith.extui %277 : i1 to i32
    %279 = arith.sitofp %278 : i32 to f32
    %280 = arith.index_cast %c2_i32 : i32 to index
    %c0_118 = arith.constant 0 : index
    %c0_119 = arith.constant 0 : index
    %281 = vector.load %arg2[%280, %c0_118, %c0_119] : memref<5x2x128xf32, #tpu.memory_space<vmem>>, vector<1x2x128xf32>
    %282 = vector.shape_cast %281 : vector<1x2x128xf32> to vector<2x128xf32>
    %283 = vector.broadcast %279 : f32 to vector<2x128xf32>
    %284 = arith.mulf %283, %282 : vector<2x128xf32>
    %cst_120 = arith.constant 1.000000e+00 : f32
    %285 = arith.subf %cst_120, %279 : f32
    %286 = vector.broadcast %285 : f32 to vector<2x128xf32>
    %287 = arith.mulf %286, %274 : vector<2x128xf32>
    %288 = arith.addf %284, %287 : vector<2x128xf32>
    %cst_121 = arith.constant dense<0.000000e+00> : vector<2x16xf32>
    %289 = tpu.matmul %288, %34, %cst_121 {dimension_numbers = #tpu.dot_dimension_numbers<[1], [0], [0], [1], [0, 0, 1, 1], [], []>} : vector<2x128xf32>, vector<128x16xf32>, vector<2x16xf32> -> vector<2x16xf32>
    %cst_122 = arith.constant dense<0.000000e+00> : vector<2x32xf32>
    %290 = tpu.matmul %243, %35, %cst_122 {dimension_numbers = #tpu.dot_dimension_numbers<[1], [0], [0], [1], [0, 0, 1, 1], [], []>} : vector<2x32xf32>, vector<32x32xf32>, vector<2x32xf32> -> vector<2x32xf32>
    %291 = vector.shape_cast %290 : vector<2x32xf32> to vector<1x2x32xf32>
    %292 = vector.broadcast %291 : vector<1x2x32xf32> to vector<8x2x32xf32>
    %293 = arith.addf %33, %292 : vector<8x2x32xf32>
    %294 = math.tanh %293 : vector<8x2x32xf32>
    %295 = vector.shape_cast %36 : vector<1x32xf32> to vector<1x1x32xf32>
    %296 = vector.broadcast %295 : vector<1x1x32xf32> to vector<8x2x32xf32>
    %297 = arith.mulf %294, %296 : vector<8x2x32xf32>
    %cst_123 = arith.constant dense<0.000000e+00> : vector<8x2xf32>
    %298 = vector.multi_reduction <add>, %297, %cst_123 [2] : vector<8x2x32xf32> to vector<8x2xf32>
    %cst_124 = arith.constant 5.000000e-01 : f32
    %299 = vector.broadcast %cst_124 : f32 to vector<8x2xf32>
    %300 = arith.cmpf ogt, %4, %299 : vector<8x2xf32>
    %cst_125 = arith.constant -1.000000e+10 : f32
    %301 = vector.broadcast %cst_125 : f32 to vector<8x2xf32>
    %302 = arith.select %300, %298, %301 : vector<8x2xi1>, vector<8x2xf32>
    %cst_126 = arith.constant dense<0xFF800000> : vector<2xf32>
    %303 = vector.multi_reduction <maximumf>, %302, %cst_126 [0] : vector<8x2xf32> to vector<2xf32>
    %304 = vector.shape_cast %303 : vector<2xf32> to vector<1x2xf32>
    %305 = vector.broadcast %304 : vector<1x2xf32> to vector<8x2xf32>
    %306 = arith.subf %302, %305 : vector<8x2xf32>
    %307 = math.exp %306 : vector<8x2xf32>
    %cst_127 = arith.constant dense<0.000000e+00> : vector<2xf32>
    %308 = vector.multi_reduction <add>, %307, %cst_127 [0] : vector<8x2xf32> to vector<2xf32>
    %309 = vector.shape_cast %308 : vector<2xf32> to vector<1x2xf32>
    %310 = tpu.reciprocal %309 {approx = true} : vector<1x2xf32> -> vector<1x2xf32>
    %311 = vector.broadcast %310 : vector<1x2xf32> to vector<8x2xf32>
    %312 = arith.mulf %307, %311 : vector<8x2xf32>
    %313 = vector.shape_cast %312 : vector<8x2xf32> to vector<8x2x1xf32>
    %314 = vector.broadcast %313 : vector<8x2x1xf32> to vector<8x2x32xf32>
    %315 = arith.mulf %314, %1 : vector<8x2x32xf32>
    %cst_128 = arith.constant dense<0.000000e+00> : vector<2x32xf32>
    %316 = vector.multi_reduction <add>, %315, %cst_128 [0] : vector<8x2x32xf32> to vector<2x32xf32>
    %317 = vector.shape_cast %312 : vector<8x2xf32> to vector<8x2x1xf32>
    %318 = vector.broadcast %317 : vector<8x2x1xf32> to vector<8x2x32xf32>
    %319 = arith.mulf %318, %3 : vector<8x2x32xf32>
    %cst_129 = arith.constant dense<0.000000e+00> : vector<2x32xf32>
    %320 = vector.multi_reduction <add>, %319, %cst_129 [0] : vector<8x2x32xf32> to vector<2x32xf32>
    %cst_130 = arith.constant dense<0.000000e+00> : vector<2x96xf32>
    %321 = tpu.matmul %289, %41, %cst_130 {dimension_numbers = #tpu.dot_dimension_numbers<[1], [0], [0], [1], [0, 0, 1, 1], [], []>} : vector<2x16xf32>, vector<16x96xf32>, vector<2x96xf32> -> vector<2x96xf32>
    %cst_131 = arith.constant dense<0.000000e+00> : vector<2x96xf32>
    %322 = tpu.matmul %316, %42, %cst_131 {dimension_numbers = #tpu.dot_dimension_numbers<[1], [0], [0], [1], [0, 0, 1, 1], [], []>} : vector<2x32xf32>, vector<32x96xf32>, vector<2x96xf32> -> vector<2x96xf32>
    %323 = arith.addf %321, %322 : vector<2x96xf32>
    %cst_132 = arith.constant dense<0.000000e+00> : vector<2x96xf32>
    %324 = tpu.matmul %320, %43, %cst_132 {dimension_numbers = #tpu.dot_dimension_numbers<[1], [0], [0], [1], [0, 0, 1, 1], [], []>} : vector<2x32xf32>, vector<32x96xf32>, vector<2x96xf32> -> vector<2x96xf32>
    %325 = arith.addf %323, %324 : vector<2x96xf32>
    %326 = vector.broadcast %38 : vector<1x96xf32> to vector<2x96xf32>
    %327 = arith.addf %325, %326 : vector<2x96xf32>
    %cst_133 = arith.constant dense<0.000000e+00> : vector<2x96xf32>
    %328 = tpu.matmul %243, %37, %cst_133 {dimension_numbers = #tpu.dot_dimension_numbers<[1], [0], [0], [1], [0, 0, 1, 1], [], []>} : vector<2x32xf32>, vector<32x96xf32>, vector<2x96xf32> -> vector<2x96xf32>
    %329 = vector.broadcast %39 : vector<1x96xf32> to vector<2x96xf32>
    %330 = arith.addf %328, %329 : vector<2x96xf32>
    %331 = vector.extract_strided_slice %327 {offsets = [0, 0], sizes = [2, 32], strides = [1, 1]} : vector<2x96xf32> to vector<2x32xf32>
    %332 = vector.extract_strided_slice %330 {offsets = [0, 0], sizes = [2, 32], strides = [1, 1]} : vector<2x96xf32> to vector<2x32xf32>
    %333 = arith.addf %331, %332 : vector<2x32xf32>
    %334 = arith.negf %333 : vector<2x32xf32>
    %335 = math.exp %334 : vector<2x32xf32>
    %cst_134 = arith.constant 1.000000e+00 : f32
    %336 = vector.broadcast %cst_134 : f32 to vector<2x32xf32>
    %337 = arith.addf %336, %335 : vector<2x32xf32>
    %338 = arith.divf %336, %337 : vector<2x32xf32>
    %339 = vector.extract_strided_slice %327 {offsets = [0, 32], sizes = [2, 32], strides = [1, 1]} : vector<2x96xf32> to vector<2x32xf32>
    %340 = vector.extract_strided_slice %330 {offsets = [0, 32], sizes = [2, 32], strides = [1, 1]} : vector<2x96xf32> to vector<2x32xf32>
    %341 = arith.addf %339, %340 : vector<2x32xf32>
    %342 = arith.negf %341 : vector<2x32xf32>
    %343 = math.exp %342 : vector<2x32xf32>
    %cst_135 = arith.constant 1.000000e+00 : f32
    %344 = vector.broadcast %cst_135 : f32 to vector<2x32xf32>
    %345 = arith.addf %344, %343 : vector<2x32xf32>
    %346 = arith.divf %344, %345 : vector<2x32xf32>
    %347 = vector.extract_strided_slice %327 {offsets = [0, 64], sizes = [2, 32], strides = [1, 1]} : vector<2x96xf32> to vector<2x32xf32>
    %348 = vector.extract_strided_slice %330 {offsets = [0, 64], sizes = [2, 32], strides = [1, 1]} : vector<2x96xf32> to vector<2x32xf32>
    %349 = arith.mulf %338, %348 : vector<2x32xf32>
    %350 = arith.addf %347, %349 : vector<2x32xf32>
    %351 = math.tanh %350 : vector<2x32xf32>
    %cst_136 = arith.constant 1.000000e+00 : f32
    %352 = vector.broadcast %cst_136 : f32 to vector<2x32xf32>
    %353 = arith.subf %352, %346 : vector<2x32xf32>
    %354 = arith.mulf %353, %351 : vector<2x32xf32>
    %355 = arith.mulf %346, %243 : vector<2x32xf32>
    %356 = arith.addf %354, %355 : vector<2x32xf32>
    %cst_137 = arith.constant dense<0.000000e+00> : vector<2x128xf32>
    %357 = tpu.matmul %356, %44, %cst_137 {dimension_numbers = #tpu.dot_dimension_numbers<[1], [0], [0], [1], [0, 0, 1, 1], [], []>} : vector<2x32xf32>, vector<32x128xf32>, vector<2x128xf32> -> vector<2x128xf32>
    %cst_138 = arith.constant dense<0.000000e+00> : vector<2x128xf32>
    %358 = tpu.matmul %316, %45, %cst_138 {dimension_numbers = #tpu.dot_dimension_numbers<[1], [0], [0], [1], [0, 0, 1, 1], [], []>} : vector<2x32xf32>, vector<32x128xf32>, vector<2x128xf32> -> vector<2x128xf32>
    %359 = arith.addf %357, %358 : vector<2x128xf32>
    %cst_139 = arith.constant dense<0.000000e+00> : vector<2x128xf32>
    %360 = tpu.matmul %320, %46, %cst_139 {dimension_numbers = #tpu.dot_dimension_numbers<[1], [0], [0], [1], [0, 0, 1, 1], [], []>} : vector<2x32xf32>, vector<32x128xf32>, vector<2x128xf32> -> vector<2x128xf32>
    %361 = arith.addf %359, %360 : vector<2x128xf32>
    %cst_140 = arith.constant dense<0.000000e+00> : vector<2x128xf32>
    %362 = tpu.matmul %289, %47, %cst_140 {dimension_numbers = #tpu.dot_dimension_numbers<[1], [0], [0], [1], [0, 0, 1, 1], [], []>} : vector<2x16xf32>, vector<16x128xf32>, vector<2x128xf32> -> vector<2x128xf32>
    %363 = arith.addf %361, %362 : vector<2x128xf32>
    %364 = vector.broadcast %40 : vector<1x128xf32> to vector<2x128xf32>
    %365 = arith.addf %363, %364 : vector<2x128xf32>
    %366 = arith.index_cast %c2_i32 : i32 to index
    %c0_141 = arith.constant 0 : index
    %c0_142 = arith.constant 0 : index
    %367 = vector.load %arg19[%366, %c0_141, %c0_142] : memref<5x2x128xf32, #tpu.memory_space<vmem>>, vector<1x2x128xf32>
    %368 = vector.shape_cast %367 : vector<1x2x128xf32> to vector<2x128xf32>
    %369 = vector.shape_cast %365 : vector<2x128xf32> to vector<1x2x128xf32>
    tpu.vector_store %arg19[%366, %c0_141, %c0_142], %369 {strides = array<i32>} : memref<5x2x128xf32, #tpu.memory_space<vmem>>, vector<1x2x128xf32>,
    %370 = tpu.iota {dimensions = array<i32: 1>} : vector<2x128xi32>
    %c18_i32_143 = arith.constant 18 : i32
    %371 = vector.broadcast %c18_i32_143 : i32 to vector<2x128xi32>
    %372 = arith.cmpi slt, %370, %371 : vector<2x128xi32>
    %cst_144 = arith.constant -3.000000e+38 : f32
    %373 = vector.broadcast %cst_144 : f32 to vector<2x128xf32>
    %374 = arith.select %372, %365, %373 : vector<2x128xi1>, vector<2x128xf32>
    %cst_145 = arith.constant dense<0xFF800000> : vector<2xf32>
    %375 = vector.multi_reduction <maximumf>, %374, %cst_145 [1] : vector<2x128xf32> to vector<2xf32>
    %376 = vector.shape_cast %375 : vector<2xf32> to vector<2x1xf32>
    %377 = vector.broadcast %376 : vector<2x1xf32> to vector<2x128xf32>
    %378 = arith.cmpf oeq, %374, %377 : vector<2x128xf32>
    %379 = arith.andi %378, %372 : vector<2x128xi1>
    %c128_i32_146 = arith.constant 128 : i32
    %380 = vector.broadcast %c128_i32_146 : i32 to vector<2x128xi32>
    %381 = arith.select %379, %370, %380 : vector<2x128xi1>, vector<2x128xi32>
    %cst_147 = arith.constant dense<2147483647> : vector<2xi32>
    %382 = vector.multi_reduction <minsi>, %381, %cst_147 [1] : vector<2x128xi32> to vector<2xi32>
    %383 = vector.shape_cast %382 : vector<2xi32> to vector<2x1xi32>
    %384 = vector.broadcast %383 : vector<2x1xi32> to vector<2x128xi32>
    %385 = arith.cmpi eq, %370, %384 : vector<2x128xi32>
    %386 = arith.extui %385 : vector<2x128xi1> to vector<2x128xi32>
    %387 = arith.sitofp %386 : vector<2x128xi32> to vector<2x128xf32>
    %c3_i32 = arith.constant 3 : i32
    %388 = arith.index_cast %c3_i32 : i32 to index
    %389 = memref.load %arg1[%388] : memref<5xi32, #tpu.memory_space<smem>>
    %c0_i32_148 = arith.constant 0 : i32
    %390 = arith.cmpi sgt, %389, %c0_i32_148 : i32
    %391 = arith.extui %390 : i1 to i32
    %392 = arith.sitofp %391 : i32 to f32
    %393 = arith.index_cast %c3_i32 : i32 to index
    %c0_149 = arith.constant 0 : index
    %c0_150 = arith.constant 0 : index
    %394 = vector.load %arg2[%393, %c0_149, %c0_150] : memref<5x2x128xf32, #tpu.memory_space<vmem>>, vector<1x2x128xf32>
    %395 = vector.shape_cast %394 : vector<1x2x128xf32> to vector<2x128xf32>
    %396 = vector.broadcast %392 : f32 to vector<2x128xf32>
    %397 = arith.mulf %396, %395 : vector<2x128xf32>
    %cst_151 = arith.constant 1.000000e+00 : f32
    %398 = arith.subf %cst_151, %392 : f32
    %399 = vector.broadcast %398 : f32 to vector<2x128xf32>
    %400 = arith.mulf %399, %387 : vector<2x128xf32>
    %401 = arith.addf %397, %400 : vector<2x128xf32>
    %cst_152 = arith.constant dense<0.000000e+00> : vector<2x16xf32>
    %402 = tpu.matmul %401, %34, %cst_152 {dimension_numbers = #tpu.dot_dimension_numbers<[1], [0], [0], [1], [0, 0, 1, 1], [], []>} : vector<2x128xf32>, vector<128x16xf32>, vector<2x16xf32> -> vector<2x16xf32>
    %cst_153 = arith.constant dense<0.000000e+00> : vector<2x32xf32>
    %403 = tpu.matmul %356, %35, %cst_153 {dimension_numbers = #tpu.dot_dimension_numbers<[1], [0], [0], [1], [0, 0, 1, 1], [], []>} : vector<2x32xf32>, vector<32x32xf32>, vector<2x32xf32> -> vector<2x32xf32>
    %404 = vector.shape_cast %403 : vector<2x32xf32> to vector<1x2x32xf32>
    %405 = vector.broadcast %404 : vector<1x2x32xf32> to vector<8x2x32xf32>
    %406 = arith.addf %33, %405 : vector<8x2x32xf32>
    %407 = math.tanh %406 : vector<8x2x32xf32>
    %408 = vector.shape_cast %36 : vector<1x32xf32> to vector<1x1x32xf32>
    %409 = vector.broadcast %408 : vector<1x1x32xf32> to vector<8x2x32xf32>
    %410 = arith.mulf %407, %409 : vector<8x2x32xf32>
    %cst_154 = arith.constant dense<0.000000e+00> : vector<8x2xf32>
    %411 = vector.multi_reduction <add>, %410, %cst_154 [2] : vector<8x2x32xf32> to vector<8x2xf32>
    %cst_155 = arith.constant 5.000000e-01 : f32
    %412 = vector.broadcast %cst_155 : f32 to vector<8x2xf32>
    %413 = arith.cmpf ogt, %4, %412 : vector<8x2xf32>
    %cst_156 = arith.constant -1.000000e+10 : f32
    %414 = vector.broadcast %cst_156 : f32 to vector<8x2xf32>
    %415 = arith.select %413, %411, %414 : vector<8x2xi1>, vector<8x2xf32>
    %cst_157 = arith.constant dense<0xFF800000> : vector<2xf32>
    %416 = vector.multi_reduction <maximumf>, %415, %cst_157 [0] : vector<8x2xf32> to vector<2xf32>
    %417 = vector.shape_cast %416 : vector<2xf32> to vector<1x2xf32>
    %418 = vector.broadcast %417 : vector<1x2xf32> to vector<8x2xf32>
    %419 = arith.subf %415, %418 : vector<8x2xf32>
    %420 = math.exp %419 : vector<8x2xf32>
    %cst_158 = arith.constant dense<0.000000e+00> : vector<2xf32>
    %421 = vector.multi_reduction <add>, %420, %cst_158 [0] : vector<8x2xf32> to vector<2xf32>
    %422 = vector.shape_cast %421 : vector<2xf32> to vector<1x2xf32>
    %423 = tpu.reciprocal %422 {approx = true} : vector<1x2xf32> -> vector<1x2xf32>
    %424 = vector.broadcast %423 : vector<1x2xf32> to vector<8x2xf32>
    %425 = arith.mulf %420, %424 : vector<8x2xf32>
    %426 = vector.shape_cast %425 : vector<8x2xf32> to vector<8x2x1xf32>
    %427 = vector.broadcast %426 : vector<8x2x1xf32> to vector<8x2x32xf32>
    %428 = arith.mulf %427, %1 : vector<8x2x32xf32>
    %cst_159 = arith.constant dense<0.000000e+00> : vector<2x32xf32>
    %429 = vector.multi_reduction <add>, %428, %cst_159 [0] : vector<8x2x32xf32> to vector<2x32xf32>
    %430 = vector.shape_cast %425 : vector<8x2xf32> to vector<8x2x1xf32>
    %431 = vector.broadcast %430 : vector<8x2x1xf32> to vector<8x2x32xf32>
    %432 = arith.mulf %431, %3 : vector<8x2x32xf32>
    %cst_160 = arith.constant dense<0.000000e+00> : vector<2x32xf32>
    %433 = vector.multi_reduction <add>, %432, %cst_160 [0] : vector<8x2x32xf32> to vector<2x32xf32>
    %cst_161 = arith.constant dense<0.000000e+00> : vector<2x96xf32>
    %434 = tpu.matmul %402, %41, %cst_161 {dimension_numbers = #tpu.dot_dimension_numbers<[1], [0], [0], [1], [0, 0, 1, 1], [], []>} : vector<2x16xf32>, vector<16x96xf32>, vector<2x96xf32> -> vector<2x96xf32>
    %cst_162 = arith.constant dense<0.000000e+00> : vector<2x96xf32>
    %435 = tpu.matmul %429, %42, %cst_162 {dimension_numbers = #tpu.dot_dimension_numbers<[1], [0], [0], [1], [0, 0, 1, 1], [], []>} : vector<2x32xf32>, vector<32x96xf32>, vector<2x96xf32> -> vector<2x96xf32>
    %436 = arith.addf %434, %435 : vector<2x96xf32>
    %cst_163 = arith.constant dense<0.000000e+00> : vector<2x96xf32>
    %437 = tpu.matmul %433, %43, %cst_163 {dimension_numbers = #tpu.dot_dimension_numbers<[1], [0], [0], [1], [0, 0, 1, 1], [], []>} : vector<2x32xf32>, vector<32x96xf32>, vector<2x96xf32> -> vector<2x96xf32>
    %438 = arith.addf %436, %437 : vector<2x96xf32>
    %439 = vector.broadcast %38 : vector<1x96xf32> to vector<2x96xf32>
    %440 = arith.addf %438, %439 : vector<2x96xf32>
    %cst_164 = arith.constant dense<0.000000e+00> : vector<2x96xf32>
    %441 = tpu.matmul %356, %37, %cst_164 {dimension_numbers = #tpu.dot_dimension_numbers<[1], [0], [0], [1], [0, 0, 1, 1], [], []>} : vector<2x32xf32>, vector<32x96xf32>, vector<2x96xf32> -> vector<2x96xf32>
    %442 = vector.broadcast %39 : vector<1x96xf32> to vector<2x96xf32>
    %443 = arith.addf %441, %442 : vector<2x96xf32>
    %444 = vector.extract_strided_slice %440 {offsets = [0, 0], sizes = [2, 32], strides = [1, 1]} : vector<2x96xf32> to vector<2x32xf32>
    %445 = vector.extract_strided_slice %443 {offsets = [0, 0], sizes = [2, 32], strides = [1, 1]} : vector<2x96xf32> to vector<2x32xf32>
    %446 = arith.addf %444, %445 : vector<2x32xf32>
    %447 = arith.negf %446 : vector<2x32xf32>
    %448 = math.exp %447 : vector<2x32xf32>
    %cst_165 = arith.constant 1.000000e+00 : f32
    %449 = vector.broadcast %cst_165 : f32 to vector<2x32xf32>
    %450 = arith.addf %449, %448 : vector<2x32xf32>
    %451 = arith.divf %449, %450 : vector<2x32xf32>
    %452 = vector.extract_strided_slice %440 {offsets = [0, 32], sizes = [2, 32], strides = [1, 1]} : vector<2x96xf32> to vector<2x32xf32>
    %453 = vector.extract_strided_slice %443 {offsets = [0, 32], sizes = [2, 32], strides = [1, 1]} : vector<2x96xf32> to vector<2x32xf32>
    %454 = arith.addf %452, %453 : vector<2x32xf32>
    %455 = arith.negf %454 : vector<2x32xf32>
    %456 = math.exp %455 : vector<2x32xf32>
    %cst_166 = arith.constant 1.000000e+00 : f32
    %457 = vector.broadcast %cst_166 : f32 to vector<2x32xf32>
    %458 = arith.addf %457, %456 : vector<2x32xf32>
    %459 = arith.divf %457, %458 : vector<2x32xf32>
    %460 = vector.extract_strided_slice %440 {offsets = [0, 64], sizes = [2, 32], strides = [1, 1]} : vector<2x96xf32> to vector<2x32xf32>
    %461 = vector.extract_strided_slice %443 {offsets = [0, 64], sizes = [2, 32], strides = [1, 1]} : vector<2x96xf32> to vector<2x32xf32>
    %462 = arith.mulf %451, %461 : vector<2x32xf32>
    %463 = arith.addf %460, %462 : vector<2x32xf32>
    %464 = math.tanh %463 : vector<2x32xf32>
    %cst_167 = arith.constant 1.000000e+00 : f32
    %465 = vector.broadcast %cst_167 : f32 to vector<2x32xf32>
    %466 = arith.subf %465, %459 : vector<2x32xf32>
    %467 = arith.mulf %466, %464 : vector<2x32xf32>
    %468 = arith.mulf %459, %356 : vector<2x32xf32>
    %469 = arith.addf %467, %468 : vector<2x32xf32>
    %cst_168 = arith.constant dense<0.000000e+00> : vector<2x128xf32>
    %470 = tpu.matmul %469, %44, %cst_168 {dimension_numbers = #tpu.dot_dimension_numbers<[1], [0], [0], [1], [0, 0, 1, 1], [], []>} : vector<2x32xf32>, vector<32x128xf32>, vector<2x128xf32> -> vector<2x128xf32>
    %cst_169 = arith.constant dense<0.000000e+00> : vector<2x128xf32>
    %471 = tpu.matmul %429, %45, %cst_169 {dimension_numbers = #tpu.dot_dimension_numbers<[1], [0], [0], [1], [0, 0, 1, 1], [], []>} : vector<2x32xf32>, vector<32x128xf32>, vector<2x128xf32> -> vector<2x128xf32>
    %472 = arith.addf %470, %471 : vector<2x128xf32>
    %cst_170 = arith.constant dense<0.000000e+00> : vector<2x128xf32>
    %473 = tpu.matmul %433, %46, %cst_170 {dimension_numbers = #tpu.dot_dimension_numbers<[1], [0], [0], [1], [0, 0, 1, 1], [], []>} : vector<2x32xf32>, vector<32x128xf32>, vector<2x128xf32> -> vector<2x128xf32>
    %474 = arith.addf %472, %473 : vector<2x128xf32>
    %cst_171 = arith.constant dense<0.000000e+00> : vector<2x128xf32>
    %475 = tpu.matmul %402, %47, %cst_171 {dimension_numbers = #tpu.dot_dimension_numbers<[1], [0], [0], [1], [0, 0, 1, 1], [], []>} : vector<2x16xf32>, vector<16x128xf32>, vector<2x128xf32> -> vector<2x128xf32>
    %476 = arith.addf %474, %475 : vector<2x128xf32>
    %477 = vector.broadcast %40 : vector<1x128xf32> to vector<2x128xf32>
    %478 = arith.addf %476, %477 : vector<2x128xf32>
    %479 = arith.index_cast %c3_i32 : i32 to index
    %c0_172 = arith.constant 0 : index
    %c0_173 = arith.constant 0 : index
    %480 = vector.load %arg19[%479, %c0_172, %c0_173] : memref<5x2x128xf32, #tpu.memory_space<vmem>>, vector<1x2x128xf32>
    %481 = vector.shape_cast %480 : vector<1x2x128xf32> to vector<2x128xf32>
    %482 = vector.shape_cast %478 : vector<2x128xf32> to vector<1x2x128xf32>
    tpu.vector_store %arg19[%479, %c0_172, %c0_173], %482 {strides = array<i32>} : memref<5x2x128xf32, #tpu.memory_space<vmem>>, vector<1x2x128xf32>,
    %483 = tpu.iota {dimensions = array<i32: 1>} : vector<2x128xi32>
    %c18_i32_174 = arith.constant 18 : i32
    %484 = vector.broadcast %c18_i32_174 : i32 to vector<2x128xi32>
    %485 = arith.cmpi slt, %483, %484 : vector<2x128xi32>
    %cst_175 = arith.constant -3.000000e+38 : f32
    %486 = vector.broadcast %cst_175 : f32 to vector<2x128xf32>
    %487 = arith.select %485, %478, %486 : vector<2x128xi1>, vector<2x128xf32>
    %cst_176 = arith.constant dense<0xFF800000> : vector<2xf32>
    %488 = vector.multi_reduction <maximumf>, %487, %cst_176 [1] : vector<2x128xf32> to vector<2xf32>
    %489 = vector.shape_cast %488 : vector<2xf32> to vector<2x1xf32>
    %490 = vector.broadcast %489 : vector<2x1xf32> to vector<2x128xf32>
    %491 = arith.cmpf oeq, %487, %490 : vector<2x128xf32>
    %492 = arith.andi %491, %485 : vector<2x128xi1>
    %c128_i32_177 = arith.constant 128 : i32
    %493 = vector.broadcast %c128_i32_177 : i32 to vector<2x128xi32>
    %494 = arith.select %492, %483, %493 : vector<2x128xi1>, vector<2x128xi32>
    %cst_178 = arith.constant dense<2147483647> : vector<2xi32>
    %495 = vector.multi_reduction <minsi>, %494, %cst_178 [1] : vector<2x128xi32> to vector<2xi32>
    %496 = vector.shape_cast %495 : vector<2xi32> to vector<2x1xi32>
    %497 = vector.broadcast %496 : vector<2x1xi32> to vector<2x128xi32>
    %498 = arith.cmpi eq, %483, %497 : vector<2x128xi32>
    %499 = arith.extui %498 : vector<2x128xi1> to vector<2x128xi32>
    %500 = arith.sitofp %499 : vector<2x128xi32> to vector<2x128xf32>
    %c4_i32 = arith.constant 4 : i32
    %501 = arith.index_cast %c4_i32 : i32 to index
    %502 = memref.load %arg1[%501] : memref<5xi32, #tpu.memory_space<smem>>
    %c0_i32_179 = arith.constant 0 : i32
    %503 = arith.cmpi sgt, %502, %c0_i32_179 : i32
    %504 = arith.extui %503 : i1 to i32
    %505 = arith.sitofp %504 : i32 to f32
    %506 = arith.index_cast %c4_i32 : i32 to index
    %c0_180 = arith.constant 0 : index
    %c0_181 = arith.constant 0 : index
    %507 = vector.load %arg2[%506, %c0_180, %c0_181] : memref<5x2x128xf32, #tpu.memory_space<vmem>>, vector<1x2x128xf32>
    %508 = vector.shape_cast %507 : vector<1x2x128xf32> to vector<2x128xf32>
    %509 = vector.broadcast %505 : f32 to vector<2x128xf32>
    %510 = arith.mulf %509, %508 : vector<2x128xf32>
    %cst_182 = arith.constant 1.000000e+00 : f32
    %511 = arith.subf %cst_182, %505 : f32
    %512 = vector.broadcast %511 : f32 to vector<2x128xf32>
    %513 = arith.mulf %512, %500 : vector<2x128xf32>
    %514 = arith.addf %510, %513 : vector<2x128xf32>
    %cst_183 = arith.constant dense<0.000000e+00> : vector<2x16xf32>
    %515 = tpu.matmul %514, %34, %cst_183 {dimension_numbers = #tpu.dot_dimension_numbers<[1], [0], [0], [1], [0, 0, 1, 1], [], []>} : vector<2x128xf32>, vector<128x16xf32>, vector<2x16xf32> -> vector<2x16xf32>
    %cst_184 = arith.constant dense<0.000000e+00> : vector<2x32xf32>
    %516 = tpu.matmul %469, %35, %cst_184 {dimension_numbers = #tpu.dot_dimension_numbers<[1], [0], [0], [1], [0, 0, 1, 1], [], []>} : vector<2x32xf32>, vector<32x32xf32>, vector<2x32xf32> -> vector<2x32xf32>
    %517 = vector.shape_cast %516 : vector<2x32xf32> to vector<1x2x32xf32>
    %518 = vector.broadcast %517 : vector<1x2x32xf32> to vector<8x2x32xf32>
    %519 = arith.addf %33, %518 : vector<8x2x32xf32>
    %520 = math.tanh %519 : vector<8x2x32xf32>
    %521 = vector.shape_cast %36 : vector<1x32xf32> to vector<1x1x32xf32>
    %522 = vector.broadcast %521 : vector<1x1x32xf32> to vector<8x2x32xf32>
    %523 = arith.mulf %520, %522 : vector<8x2x32xf32>
    %cst_185 = arith.constant dense<0.000000e+00> : vector<8x2xf32>
    %524 = vector.multi_reduction <add>, %523, %cst_185 [2] : vector<8x2x32xf32> to vector<8x2xf32>
    %cst_186 = arith.constant 5.000000e-01 : f32
    %525 = vector.broadcast %cst_186 : f32 to vector<8x2xf32>
    %526 = arith.cmpf ogt, %4, %525 : vector<8x2xf32>
    %cst_187 = arith.constant -1.000000e+10 : f32
    %527 = vector.broadcast %cst_187 : f32 to vector<8x2xf32>
    %528 = arith.select %526, %524, %527 : vector<8x2xi1>, vector<8x2xf32>
    %cst_188 = arith.constant dense<0xFF800000> : vector<2xf32>
    %529 = vector.multi_reduction <maximumf>, %528, %cst_188 [0] : vector<8x2xf32> to vector<2xf32>
    %530 = vector.shape_cast %529 : vector<2xf32> to vector<1x2xf32>
    %531 = vector.broadcast %530 : vector<1x2xf32> to vector<8x2xf32>
    %532 = arith.subf %528, %531 : vector<8x2xf32>
    %533 = math.exp %532 : vector<8x2xf32>
    %cst_189 = arith.constant dense<0.000000e+00> : vector<2xf32>
    %534 = vector.multi_reduction <add>, %533, %cst_189 [0] : vector<8x2xf32> to vector<2xf32>
    %535 = vector.shape_cast %534 : vector<2xf32> to vector<1x2xf32>
    %536 = tpu.reciprocal %535 {approx = true} : vector<1x2xf32> -> vector<1x2xf32>
    %537 = vector.broadcast %536 : vector<1x2xf32> to vector<8x2xf32>
    %538 = arith.mulf %533, %537 : vector<8x2xf32>
    %539 = vector.shape_cast %538 : vector<8x2xf32> to vector<8x2x1xf32>
    %540 = vector.broadcast %539 : vector<8x2x1xf32> to vector<8x2x32xf32>
    %541 = arith.mulf %540, %1 : vector<8x2x32xf32>
    %cst_190 = arith.constant dense<0.000000e+00> : vector<2x32xf32>
    %542 = vector.multi_reduction <add>, %541, %cst_190 [0] : vector<8x2x32xf32> to vector<2x32xf32>
    %543 = vector.shape_cast %538 : vector<8x2xf32> to vector<8x2x1xf32>
    %544 = vector.broadcast %543 : vector<8x2x1xf32> to vector<8x2x32xf32>
    %545 = arith.mulf %544, %3 : vector<8x2x32xf32>
    %cst_191 = arith.constant dense<0.000000e+00> : vector<2x32xf32>
    %546 = vector.multi_reduction <add>, %545, %cst_191 [0] : vector<8x2x32xf32> to vector<2x32xf32>
    %cst_192 = arith.constant dense<0.000000e+00> : vector<2x96xf32>
    %547 = tpu.matmul %515, %41, %cst_192 {dimension_numbers = #tpu.dot_dimension_numbers<[1], [0], [0], [1], [0, 0, 1, 1], [], []>} : vector<2x16xf32>, vector<16x96xf32>, vector<2x96xf32> -> vector<2x96xf32>
    %cst_193 = arith.constant dense<0.000000e+00> : vector<2x96xf32>
    %548 = tpu.matmul %542, %42, %cst_193 {dimension_numbers = #tpu.dot_dimension_numbers<[1], [0], [0], [1], [0, 0, 1, 1], [], []>} : vector<2x32xf32>, vector<32x96xf32>, vector<2x96xf32> -> vector<2x96xf32>
    %549 = arith.addf %547, %548 : vector<2x96xf32>
    %cst_194 = arith.constant dense<0.000000e+00> : vector<2x96xf32>
    %550 = tpu.matmul %546, %43, %cst_194 {dimension_numbers = #tpu.dot_dimension_numbers<[1], [0], [0], [1], [0, 0, 1, 1], [], []>} : vector<2x32xf32>, vector<32x96xf32>, vector<2x96xf32> -> vector<2x96xf32>
    %551 = arith.addf %549, %550 : vector<2x96xf32>
    %552 = vector.broadcast %38 : vector<1x96xf32> to vector<2x96xf32>
    %553 = arith.addf %551, %552 : vector<2x96xf32>
    %cst_195 = arith.constant dense<0.000000e+00> : vector<2x96xf32>
    %554 = tpu.matmul %469, %37, %cst_195 {dimension_numbers = #tpu.dot_dimension_numbers<[1], [0], [0], [1], [0, 0, 1, 1], [], []>} : vector<2x32xf32>, vector<32x96xf32>, vector<2x96xf32> -> vector<2x96xf32>
    %555 = vector.broadcast %39 : vector<1x96xf32> to vector<2x96xf32>
    %556 = arith.addf %554, %555 : vector<2x96xf32>
    %557 = vector.extract_strided_slice %553 {offsets = [0, 0], sizes = [2, 32], strides = [1, 1]} : vector<2x96xf32> to vector<2x32xf32>
    %558 = vector.extract_strided_slice %556 {offsets = [0, 0], sizes = [2, 32], strides = [1, 1]} : vector<2x96xf32> to vector<2x32xf32>
    %559 = arith.addf %557, %558 : vector<2x32xf32>
    %560 = arith.negf %559 : vector<2x32xf32>
    %561 = math.exp %560 : vector<2x32xf32>
    %cst_196 = arith.constant 1.000000e+00 : f32
    %562 = vector.broadcast %cst_196 : f32 to vector<2x32xf32>
    %563 = arith.addf %562, %561 : vector<2x32xf32>
    %564 = arith.divf %562, %563 : vector<2x32xf32>
    %565 = vector.extract_strided_slice %553 {offsets = [0, 32], sizes = [2, 32], strides = [1, 1]} : vector<2x96xf32> to vector<2x32xf32>
    %566 = vector.extract_strided_slice %556 {offsets = [0, 32], sizes = [2, 32], strides = [1, 1]} : vector<2x96xf32> to vector<2x32xf32>
    %567 = arith.addf %565, %566 : vector<2x32xf32>
    %568 = arith.negf %567 : vector<2x32xf32>
    %569 = math.exp %568 : vector<2x32xf32>
    %cst_197 = arith.constant 1.000000e+00 : f32
    %570 = vector.broadcast %cst_197 : f32 to vector<2x32xf32>
    %571 = arith.addf %570, %569 : vector<2x32xf32>
    %572 = arith.divf %570, %571 : vector<2x32xf32>
    %573 = vector.extract_strided_slice %553 {offsets = [0, 64], sizes = [2, 32], strides = [1, 1]} : vector<2x96xf32> to vector<2x32xf32>
    %574 = vector.extract_strided_slice %556 {offsets = [0, 64], sizes = [2, 32], strides = [1, 1]} : vector<2x96xf32> to vector<2x32xf32>
    %575 = arith.mulf %564, %574 : vector<2x32xf32>
    %576 = arith.addf %573, %575 : vector<2x32xf32>
    %577 = math.tanh %576 : vector<2x32xf32>
    %cst_198 = arith.constant 1.000000e+00 : f32
    %578 = vector.broadcast %cst_198 : f32 to vector<2x32xf32>
    %579 = arith.subf %578, %572 : vector<2x32xf32>
    %580 = arith.mulf %579, %577 : vector<2x32xf32>
    %581 = arith.mulf %572, %469 : vector<2x32xf32>
    %582 = arith.addf %580, %581 : vector<2x32xf32>
    %cst_199 = arith.constant dense<0.000000e+00> : vector<2x128xf32>
    %583 = tpu.matmul %582, %44, %cst_199 {dimension_numbers = #tpu.dot_dimension_numbers<[1], [0], [0], [1], [0, 0, 1, 1], [], []>} : vector<2x32xf32>, vector<32x128xf32>, vector<2x128xf32> -> vector<2x128xf32>
    %cst_200 = arith.constant dense<0.000000e+00> : vector<2x128xf32>
    %584 = tpu.matmul %542, %45, %cst_200 {dimension_numbers = #tpu.dot_dimension_numbers<[1], [0], [0], [1], [0, 0, 1, 1], [], []>} : vector<2x32xf32>, vector<32x128xf32>, vector<2x128xf32> -> vector<2x128xf32>
    %585 = arith.addf %583, %584 : vector<2x128xf32>
    %cst_201 = arith.constant dense<0.000000e+00> : vector<2x128xf32>
    %586 = tpu.matmul %546, %46, %cst_201 {dimension_numbers = #tpu.dot_dimension_numbers<[1], [0], [0], [1], [0, 0, 1, 1], [], []>} : vector<2x32xf32>, vector<32x128xf32>, vector<2x128xf32> -> vector<2x128xf32>
    %587 = arith.addf %585, %586 : vector<2x128xf32>
    %cst_202 = arith.constant dense<0.000000e+00> : vector<2x128xf32>
    %588 = tpu.matmul %515, %47, %cst_202 {dimension_numbers = #tpu.dot_dimension_numbers<[1], [0], [0], [1], [0, 0, 1, 1], [], []>} : vector<2x16xf32>, vector<16x128xf32>, vector<2x128xf32> -> vector<2x128xf32>
    %589 = arith.addf %587, %588 : vector<2x128xf32>
    %590 = vector.broadcast %40 : vector<1x128xf32> to vector<2x128xf32>
    %591 = arith.addf %589, %590 : vector<2x128xf32>
    %592 = arith.index_cast %c4_i32 : i32 to index
    %c0_203 = arith.constant 0 : index
    %c0_204 = arith.constant 0 : index
    %593 = vector.load %arg19[%592, %c0_203, %c0_204] : memref<5x2x128xf32, #tpu.memory_space<vmem>>, vector<1x2x128xf32>
    %594 = vector.shape_cast %593 : vector<1x2x128xf32> to vector<2x128xf32>
    %595 = vector.shape_cast %591 : vector<2x128xf32> to vector<1x2x128xf32>
    tpu.vector_store %arg19[%592, %c0_203, %c0_204], %595 {strides = array<i32>} : memref<5x2x128xf32, #tpu.memory_space<vmem>>, vector<1x2x128xf32>,
    %596 = tpu.iota {dimensions = array<i32: 1>} : vector<2x128xi32>
    %c18_i32_205 = arith.constant 18 : i32
    %597 = vector.broadcast %c18_i32_205 : i32 to vector<2x128xi32>
    %598 = arith.cmpi slt, %596, %597 : vector<2x128xi32>
    %cst_206 = arith.constant -3.000000e+38 : f32
    %599 = vector.broadcast %cst_206 : f32 to vector<2x128xf32>
    %600 = arith.select %598, %591, %599 : vector<2x128xi1>, vector<2x128xf32>
    %cst_207 = arith.constant dense<0xFF800000> : vector<2xf32>
    %601 = vector.multi_reduction <maximumf>, %600, %cst_207 [1] : vector<2x128xf32> to vector<2xf32>
    %602 = vector.shape_cast %601 : vector<2xf32> to vector<2x1xf32>
    %603 = vector.broadcast %602 : vector<2x1xf32> to vector<2x128xf32>
    %604 = arith.cmpf oeq, %600, %603 : vector<2x128xf32>
    %605 = arith.andi %604, %598 : vector<2x128xi1>
    %c128_i32_208 = arith.constant 128 : i32
    %606 = vector.broadcast %c128_i32_208 : i32 to vector<2x128xi32>
    %607 = arith.select %605, %596, %606 : vector<2x128xi1>, vector<2x128xi32>
    %cst_209 = arith.constant dense<2147483647> : vector<2xi32>
    %608 = vector.multi_reduction <minsi>, %607, %cst_209 [1] : vector<2x128xi32> to vector<2xi32>
    %609 = vector.shape_cast %608 : vector<2xi32> to vector<2x1xi32>
    %610 = vector.broadcast %609 : vector<2x1xi32> to vector<2x128xi32>
    %611 = arith.cmpi eq, %596, %610 : vector<2x128xi32>
    %612 = arith.extui %611 : vector<2x128xi1> to vector<2x128xi32>
    %613 = arith.sitofp %612 : vector<2x128xi32> to vector<2x128xf32>
    %c5_i32 = arith.constant 5 : i32
    return
  }
  func.func @transform_0(%arg0: i32, %arg1: memref<5xi32, #tpu.memory_space<smem>>) -> (i32, i32, i32) {
    %c0_i32 = arith.constant 0 : i32
    %c0_i32_0 = arith.constant 0 : i32
    %c0_i32_1 = arith.constant 0 : i32
    %c0_i32_2 = arith.constant 0 : i32
    return %c0_i32, %c0_i32_0, %c0_i32_1 : i32, i32, i32
  }
  func.func @transform_1(%arg0: i32, %arg1: memref<5xi32, #tpu.memory_space<smem>>) -> (i32, i32, i32, i32) {
    %c0_i32 = arith.constant 0 : i32
    %c0_i32_0 = arith.constant 0 : i32
    %c0_i32_1 = arith.constant 0 : i32
    %c0_i32_2 = arith.constant 0 : i32
    %c0_i32_3 = arith.constant 0 : i32
    return %c0_i32, %c0_i32_0, %c0_i32_1, %c0_i32_2 : i32, i32, i32, i32
  }
  func.func @transform_2(%arg0: i32, %arg1: memref<5xi32, #tpu.memory_space<smem>>) -> (i32, i32, i32) {
    %c0_i32 = arith.constant 0 : i32
    %c0_i32_0 = arith.constant 0 : i32
    %c0_i32_1 = arith.constant 0 : i32
    %c0_i32_2 = arith.constant 0 : i32
    return %c0_i32, %c0_i32_0, %c0_i32_1 : i32, i32, i32
  }
  func.func @transform_3(%arg0: i32, %arg1: memref<5xi32, #tpu.memory_space<smem>>) -> (i32, i32) {
    %c0_i32 = arith.constant 0 : i32
    %c0_i32_0 = arith.constant 0 : i32
    %c0_i32_1 = arith.constant 0 : i32
    return %c0_i32, %c0_i32_0 : i32, i32
  }
  func.func @transform_4(%arg0: i32, %arg1: memref<5xi32, #tpu.memory_space<smem>>) -> (i32, i32, i32) {
    %c0_i32 = arith.constant 0 : i32
    %c0_i32_0 = arith.constant 0 : i32
    %c0_i32_1 = arith.constant 0 : i32
    %c0_i32_2 = arith.constant 0 : i32
    return %c0_i32, %c0_i32_0, %c0_i32_1 : i32, i32, i32
  }
  func.func @transform_5(%arg0: i32, %arg1: memref<5xi32, #tpu.memory_space<smem>>) -> (i32, i32) {
    %c0_i32 = arith.constant 0 : i32
    %c0_i32_0 = arith.constant 0 : i32
    %c0_i32_1 = arith.constant 0 : i32
    return %c0_i32, %c0_i32_0 : i32, i32
  }
  func.func @transform_6(%arg0: i32, %arg1: memref<5xi32, #tpu.memory_space<smem>>) -> (i32, i32) {
    %c0_i32 = arith.constant 0 : i32
    %c0_i32_0 = arith.constant 0 : i32
    %c0_i32_1 = arith.constant 0 : i32
    return %c0_i32, %c0_i32_0 : i32, i32
  }
  func.func @transform_7(%arg0: i32, %arg1: memref<5xi32, #tpu.memory_space<smem>>) -> (i32, i32, i32) {
    %c0_i32 = arith.constant 0 : i32
    %c0_i32_0 = arith.constant 0 : i32
    %c0_i32_1 = arith.constant 0 : i32
    %c0_i32_2 = arith.constant 0 : i32
    return %c0_i32, %c0_i32_0, %c0_i32_1 : i32, i32, i32
  }
  func.func @transform_8(%arg0: i32, %arg1: memref<5xi32, #tpu.memory_space<smem>>) -> (i32, i32) {
    %c0_i32 = arith.constant 0 : i32
    %c0_i32_0 = arith.constant 0 : i32
    %c0_i32_1 = arith.constant 0 : i32
    return %c0_i32, %c0_i32_0 : i32, i32
  }
  func.func @transform_9(%arg0: i32, %arg1: memref<5xi32, #tpu.memory_space<smem>>) -> (i32, i32) {
    %c0_i32 = arith.constant 0 : i32
    %c0_i32_0 = arith.constant 0 : i32
    %c0_i32_1 = arith.constant 0 : i32
    return %c0_i32, %c0_i32_0 : i32, i32
  }
  func.func @transform_10(%arg0: i32, %arg1: memref<5xi32, #tpu.memory_space<smem>>) -> (i32, i32) {
    %c0_i32 = arith.constant 0 : i32
    %c0_i32_0 = arith.constant 0 : i32
    %c0_i32_1 = arith.constant 0 : i32
    return %c0_i32, %c0_i32_0 : i32, i32
  }
  func.func @transform_11(%arg0: i32, %arg1: memref<5xi32, #tpu.memory_space<smem>>) -> (i32, i32) {
    %c0_i32 = arith.constant 0 : i32
    %c0_i32_0 = arith.constant 0 : i32
    %c0_i32_1 = arith.constant 0 : i32
    return %c0_i32, %c0_i32_0 : i32, i32
  }
  func.func @transform_12(%arg0: i32, %arg1: memref<5xi32, #tpu.memory_space<smem>>) -> (i32, i32) {
    %c0_i32 = arith.constant 0 : i32
    %c0_i32_0 = arith.constant 0 : i32
    %c0_i32_1 = arith.constant 0 : i32
    return %c0_i32, %c0_i32_0 : i32, i32
  }
  func.func @transform_13(%arg0: i32, %arg1: memref<5xi32, #tpu.memory_space<smem>>) -> (i32, i32) {
    %c0_i32 = arith.constant 0 : i32
    %c0_i32_0 = arith.constant 0 : i32
    %c0_i32_1 = arith.constant 0 : i32
    return %c0_i32, %c0_i32_0 : i32, i32
  }
  func.func @transform_14(%arg0: i32, %arg1: memref<5xi32, #tpu.memory_space<smem>>) -> (i32, i32) {
    %c0_i32 = arith.constant 0 : i32
    %c0_i32_0 = arith.constant 0 : i32
    %c0_i32_1 = arith.constant 0 : i32
    return %c0_i32, %c0_i32_0 : i32, i32
  }
  func.func @transform_15(%arg0: i32, %arg1: memref<5xi32, #tpu.memory_space<smem>>) -> (i32, i32) {
    %c0_i32 = arith.constant 0 : i32
    %c0_i32_0 = arith.constant 0 : i32
    %c0_i32_1 = arith.constant 0 : i32
    return %c0_i32, %c0_i32_0 : i32, i32
  }
  func.func @transform_16(%arg0: i32, %arg1: memref<5xi32, #tpu.memory_space<smem>>) -> (i32, i32) {
    %c0_i32 = arith.constant 0 : i32
    %c0_i32_0 = arith.constant 0 : i32
    %c0_i32_1 = arith.constant 0 : i32
    return %c0_i32, %c0_i32_0 : i32, i32
  }
  func.func @transform_17(%arg0: i32, %arg1: memref<5xi32, #tpu.memory_space<smem>>) -> (i32, i32, i32) {
    %c0_i32 = arith.constant 0 : i32
    %c0_i32_0 = arith.constant 0 : i32
    %c0_i32_1 = arith.constant 0 : i32
    %c0_i32_2 = arith.constant 0 : i32
    return %c0_i32, %c0_i32_0, %c0_i32_1 : i32, i32, i32
  }
}

</mosaic_0001>

<bundles_post_ra>
// kernel: seq2seq_forward.2
= control target key start
LH: loop header
LB: loop body
LE: loop exit
PB: predicated region body
PF: predicated region fallthrough
CT: control target
= control target key end

     0   :  { %s2578_s24 = smov 0   ;;  %s3013_s0 = inlined_call_operand.vmem [shape: f32[8,2,1], index: 0, kind: input, shape index: {}]   ;;  %s3014_s1 = inlined_call_operand.vmem [shape: f32[8,2,16], index: 1, kind: input, shape index: {}]   ;;  %s3015_s2 = inlined_call_operand.vmem [shape: f32[2,16,96], index: 2, kind: input, shape index: {}]   ;;  %s3016_s3 = inlined_call_operand.vmem [shape: f32[2,32,96], index: 3, kind: input, shape index: {}]   ;;  %s3017_s4 = inlined_call_operand.vmem [shape: f32[2,1,96], index: 4, kind: input, shape index: {}]   ;;  %s3018_s5 = inlined_call_operand.vmem [shape: f32[2,1,96], index: 5, kind: input, shape index: {}]   ;;  %s3019_s6 = inlined_call_operand.vmem [shape: f32[2,8,2,32], index: 6, kind: output, shape index: {0}]   ;;  %s3020_s7 = inlined_call_operand.vmem [shape: f32[2,2,32], index: 7, kind: output, shape index: {1}]  }
   0x1 LB: > { %s2584_s25 = sadd.s32 4294967295, %s2531_s24   ;;  %p2178_p0 = scmp.ge.s32.totalorder %s2531_s24, 1  ;;  %s2531_s24 = sphi %s2578_s24, %s18_s24  }
   0x2   : > { %p266_p1 = scmp.lt.s32.totalorder %s2531_s24, 3 }
   0x4   : > { %p267_p2 = pnand %p2178_p0, %p266_p1 }
   0x5   : > { %p313_p3 = scmp.lt.s32.totalorder (!%p267_p2), %s2584_s25, 1  ;;  %s2590_s26 = smul.u32 (!%p267_p2), 14, %s2584_s25 }
   0x6   : > { %270 = sbr.rel (%p267_p2) target bundleno = 5478 (0x1566), region = 44  ;;  %s2535_s19 = smov (!%p267_p2), 64  }
   0x7   : > { %s348_s30 = scalar_lea.vmem (!%p267_p2), %s3014_s1, %s2590_s26  ;;  %s350_s29 = scalar_lea.vmem (!%p267_p2), %s3013_s0, %s2590_s26 }
   0x8   : > { %s2715_s16 = smul.u32 (!%p267_p2), 6, %s2584_s25  ;;  %s2758_s28 = sshll.u32 (!%p267_p2), %s2584_s25, 1 }
   0x9   : > { %s2069_s10 = scalar_lea.vmem (!%p267_p2), %s3014_s1, %s2758_s28  ;;  %s2072_s14 = scalar_lea.vmem (!%p267_p2), %s3013_s0, %s2758_s28 }
   0xa   : > { %s2058_s20 = scalar_lea.vmem (!%p267_p2), %s3014_s1, %s2715_s16  ;;  %s2062_s23 = scalar_lea.vmem (!%p267_p2), %s3013_s0, %s2715_s16 }
   0xb   : > { %v2533_v0 = vmov 0.0   ;;  %vm2534_vm0 = vmmov 0   ;;  %s2596_s27 = scalar_select %p313_p3, %s2584_s25, 1  ;;  %v349_v3 = vld [vmem:[%s348_s30] sm:$0x3]  ;;  %vm358_vm1 = vcmask 130048  }
   0xc   : > { %2318 = vmatprep.subr.mxu1 %v2533_v0  ;;  %2322 = vmatprep.mubr.msk.f32.mxu1 %vm2534_vm0, %v2533_v0  ;;  %v2536_v20 = vmov 0   ;;  %v351_v21 = vld [vmem:[%s350_s29] sm:$0x3]  ;;  %s2674_s30 = smul.u32 10, %s2584_s25  ;;  %vm438_vm2 = vcmask 261120   ;;  %vm558_vm3 = vcmask 254976  }
   0xd   : > { %2336 = vmatprep.subr.mxu0 %v2533_v0  ;;  %2340 = vmatprep.mubr.msk.f32.mxu0 %vm2534_vm0, %v2533_v0  ;;  %s2251_s8 = sshll.u32 %s2596_s27, 4  ;;  %s2252_s9 = sshll.u32 %s2596_s27, 5  ;;  %v544_v22 = vsub.f32 1.0, %v351_v21  ;;  %v2201_v58 = vld [vmem:[%s2058_s20 + $0x4] sm:$0x3] }
   0xe   : > { %s317_s12 = scalar_lea.vmem %s3015_s2, %s2251_s8  ;;  %s322_s15 = scalar_lea.vmem %s3016_s3, %s2252_s9  ;;  %2475 = vset.pattern.permute.xlu1 %v2536_v20  ;;  %2476 = vset.pattern.permute.xlu0 %v2536_v20 }
   0xf   : > { %v2612_v1 = vld [vmem:[%s317_s12 + $0x8] sm:$0xff]  ;;  %v2614_v2 = vld [vmem:[%s317_s12] sm:$0xff]  ;;  %v2622_v4 = vld [vmem:[%s322_s15 + $0x18] sm:$0xff]  ;;  %s328_s18 = scalar_lea.vmem %s3018_s5, %s2596_s27  ;;  %s325_s22 = scalar_lea.vmem %s3017_s4, %s2596_s27  ;;  %540 = vperm.xlu1 %2475, %v351_v21  }
  0x10   : > { %2319 = vmatpush3.msra.mxu1 %v2612_v1  ;;  %2337 = vmatpush3.msra.mxu0 %v2612_v1  ;;  %v2629_v5 = vld [vmem:[%s322_s15 + $0x10] sm:$0xff]  ;;  %v2635_v6 = vld [vmem:[%s322_s15 + $0x8] sm:$0xff]  ;;  %v2640_v7 = vld [vmem:[%s322_s15] sm:$0xff]  ;;  %s2046_s11 = scalar_lea.vmem %s3014_s1, %s2674_s30  ;;  %s2537_s12 = smov 96  }
  0x11   : > { %2320 = vmatprep.subr.mxu1 %v2533_v0  ;;  %2338 = vmatprep.subr.mxu0 %v2533_v0  ;;  %v2657_v10 = vld [vmem:[%s328_s18] ss:$0 sm:$0xff]  ;;  %v2192_v28 = vld [vmem:[%s2046_s11 + $0x2] sm:$0x3]  ;;  %s2050_s15 = scalar_lea.vmem %s3013_s0, %s2674_s30  ;;  %v2203_v21 = vld [vmem:[%s2062_s23 + $0x4] sm:$0x3] }
  0x12   : > { %2321 = vmatpush3.msra.mxu1 %v2614_v2  ;;  %2339 = vmatpush3.msra.mxu0 %v2614_v2  ;;  %v2665_v14 = vld [vmem:[%s325_s22] ss:$0 sm:$0xff]  ;;  %v2194_v46 = vld [vmem:[%s2050_s15 + $0x2] sm:$0x3]  ;;  %s1165_s15 = ssub.s32 4, %s2584_s25  ;;  %s2844_s9 = smul.u32 4294967290, %s2584_s25 }
  0x13   : > { %2323 = vmatmul.mubr.msk.f32.vlgmr.msra.gmra.mxu1 %vm358_vm1, %v349_v3  ;;  %2325 = vmatprep.subr.mxu1 %v2533_v0  ;;  %v747_v55 = vsub.f32 1.0, %v2194_v46  ;;  %s2801_s17 = sshll.u32 %s1165_s15, 1  ;;  %s2887_s20 = smul.u32 4294967286, %s2584_s25 }
  0x14   : > { %2326 = vmatpush3.msra.mxu1 %v2622_v4  ;;  %2333 = vmatprep.mubr.msk.f32.mxu1 %vm2534_vm0, %v2533_v0  ;;  %s1167_s21 = scalar_lea.vmem %s3014_s1, %s2801_s17  ;;  %s1169_s29 = scalar_lea.vmem %s3013_s0, %s2801_s17 }
  0x15   : > { %2327 = vmatprep.subr.mxu1 %v2533_v0  ;;  %2343 = vmatprep.subr.mxu0 %v2533_v0  ;;  %s2085_s13 = scalar_lea.vmem %s3014_s1, %s2844_s9  ;;  %s2089_s18 = scalar_lea.vmem %s3013_s0, %s2844_s9 }
  0x16   : > { %2328 = vmatpush3.msra.mxu1 %v2629_v5  ;;  %547 = vperm.xlu1 %2475, %v544_v22   ;;  %s2097_s23 = scalar_lea.vmem %s3014_s1, %s2887_s20  ;;  %s2101_s11 = scalar_lea.vmem %s3013_s0, %s2887_s20 }
  0x17   : > { %2329 = vmatprep.subr.mxu1 %v2533_v0  ;;  %2341 = vmatmul.mubr.msk.f32.vlgmr.msra.gmra.mxu0 %vm358_vm1, %v2192_v28 }
  0x18   : > { %2330 = vmatpush3.msra.mxu1 %v2635_v6  ;;  %2344 = vmatpush3.msra.mxu0 %v2622_v4 }
  0x19   : > { %2331 = vmatprep.subr.mxu1 %v2533_v0  ;;  %2345 = vmatprep.subr.mxu0 %v2533_v0 }
  0x1a   : > { %2332 = vmatpush3.msra.mxu1 %v2640_v7  ;;  %2351 = vmatprep.mubr.msk.f32.mxu0 %vm2534_vm0, %v2533_v0 }
  0x1b   : > { %2334 = vmatmul.mubr.f32.vlgmr.msra.gmra.mxu1 %v2533_v0  ;;  %2354 = vmatprep.subr.mxu1 %v2533_v0 }
  0x1c   : > { %2355 = vmatpush3.msra.mxu1 %v2612_v1  ;;  %2358 = vmatprep.mubr.msk.f32.mxu1 %vm2534_vm0, %v2533_v0 }
  0x1d   : > { %2356 = vmatprep.subr.mxu1 %v2533_v0  ;;  %2346 = vmatpush3.msra.mxu0 %v2629_v5 }
  0x1e   : > { %2357 = vmatpush3.msra.mxu1 %v2614_v2  ;;  %2347 = vmatprep.subr.mxu0 %v2533_v0 }
  0x1f   : > { %2361 = vmatprep.subr.mxu1 %v2533_v0  ;;  %2348 = vmatpush3.msra.mxu0 %v2635_v6 }
  0x20   : > { %2349 = vmatprep.subr.mxu0 %v2533_v0  ;;  %2359 = vmatmul.mubr.msk.f32.vlgmr.msra.gmra.mxu1 %vm358_vm1, %v2201_v58 }
  0x21   : > { %2350 = vmatpush3.msra.mxu0 %v2640_v7  ;;  %2362 = vmatpush3.msra.mxu1 %v2622_v4 }
  0x22   : > { %2372 = vmatprep.subr.mxu0 %v2533_v0  ;;  %2363 = vmatprep.subr.mxu1 %v2533_v0 }
  0x23   : > { %2369 = vmatprep.mubr.msk.f32.mxu1 %vm2534_vm0, %v2533_v0  ;;  %2364 = vmatpush3.msra.mxu1 %v2629_v5 }
  0x24   : > { %2365 = vmatprep.subr.mxu1 %v2533_v0 }
  0x25   : > { %2366 = vmatpush3.msra.mxu1 %v2635_v6 }
  0x26   : > { %2367 = vmatprep.subr.mxu1 %v2533_v0 }
  0x27   : > { %2368 = vmatpush3.msra.mxu1 %v2640_v7 }
  0x28   : > { %2390 = vmatprep.subr.mxu1 %v2533_v0 }
  0x8a   : > { %v2692_v30 = vpop.permute.xlu1 %540 }
  0x91   : > { %v548_v35 = vpop.permute.xlu1 %547 }
  0x92   : > { %v550_v37 = vmul.f32 0.0, %v548_v35 }
  0xd3   : > { %v428_v8 = vpop.f32.mrf.mxu1 }
  0xd4   : > { %v429_v15 = vadd.f32 %v2665_v14, %v428_v8 }
  0xd5   : > { %v2324_v9 = vpop.f32.mrf.mxu1 }
  0xd7   : > { %v636_v40 = vpop.f32.mrf.mxu0 }
  0xd8   : > { %v637_v47 = vadd.f32 %v2665_v14, %v636_v40 }
  0xd9   : > { %v2342_v41 = vpop.f32.mrf.mxu0 }
  0xdb   : > { %v508_v11 = vpop.f32.mrf.mxu1 }
  0xdc   : > { %v509_v12 = vadd.f32 %v2657_v10, %v508_v11 }
  0xdd   : > { %v2335_v13 = vpop.f32.mrf.mxu1 }
  0xde   : > { %520 = vrot.lane.b32.xlu0 %v509_v12, %s2535_s19  ;;  %v512_v16 = vadd.f32 %v509_v12, %v429_v15 }
  0xe0   : > { %v2190_v17 = vmul.f32 -1.442695, %v512_v16 }
  0xe2   : > { %2477 = vpow2.f32 %v2190_v17 }
  0xef   : > { %v2478_v18 = vpop.eup %2477 }
  0xf0   : > { %v516_v19 = vadd.f32 1.0, %v2478_v18 }
  0xf2   : > { %2479 = vrcp.f32 %v516_v19 }
  0xff   : > { %v2480_v23 = vpop.eup %2479 }
 0x100   : > { %v530_v31 = vsub.f32 1.0, %v2480_v23  ;;  %v536_v33 = vmul.f32 0.0, %v2480_v23 }
 0x150   : > { %v521_v24 = vpop.permute.xlu0 %520 }
 0x151   : > { %v523_v25 = vmul.f32 %v2480_v23, %v521_v24 }
 0x153   : > { %525 = vrot.lane.b32.xlu0 %v523_v25, %s2535_s19 }
 0x1c5   : > { %v526_v26 = vpop.permute.xlu0 %525 }
 0x1c6   : > { %v528_v27 = vadd.f32 %v526_v26, %v429_v15  ;;  %v838_v15 = vpop.f32.mrf.mxu1 }
 0x1c7   : > { %v839_v22 = vadd.f32 %v2665_v14, %v838_v15 }
 0x1c8   : > { %2481 = vtanh.f32 %v528_v27  ;;  %v2360_v16 = vpop.f32.mrf.mxu1 }
 0x1d5   : > { %v2482_v29 = vpop.eup %2481 }
 0x1d6   : > { %532 = vrot.lane.b32.xlu0 %v2482_v29, %s2537_s12 }
 0x248   : > { %v533_v32 = vpop.permute.xlu0 %532 }
 0x249   : > { %v535_v34 = vmul.f32 %v533_v32, %v530_v31  ;;  %v949_v31 = vsub.f32 1.0, %v2203_v21 }
 0x24b   : > { %v537_v36 = vadd.f32 %v536_v33, %v535_v34  ;;  %v2210_v34 = vld [vmem:[%s2069_s10 + $0x6] sm:$0x3] }
 0x24d   : > { %v543_v38 = vmul.f32 %v2692_v30, %v537_v36 }
 0x24f   : > { %v2695_v39 = vadd.f32 %v550_v37, %v543_v38 }
 0x251   : > { %641 = vrot.lane.b32.xlu1 %v2695_v39, %s2537_s12 }
 0x2c3   : > { %v642_v42 = vpop.permute.xlu1 %641 }
 0x2c4   : > { %2352 = vmatmul.mubr.msk.f32.vlgmr.msra.gmra.mxu0 %vm438_vm2, %v642_v42 }
 0x2c5   : > { %2373 = vmatpush3.msra.mxu0 %v2612_v1  ;;  %2376 = vmatprep.mubr.msk.f32.mxu0 %vm2534_vm0, %v2533_v0 }
 0x2c6   : > { %2374 = vmatprep.subr.mxu0 %v2533_v0 }
 0x2c7   : > { %2375 = vmatpush3.msra.mxu0 %v2614_v2 }
 0x2c8   : > { %2379 = vmatprep.subr.mxu0 %v2533_v0  ;;  %2377 = vmatmul.mubr.msk.f32.vlgmr.msra.gmra.mxu0 %vm358_vm1, %v2210_v34 }
 0x2c9   : > { %2380 = vmatpush3.msra.mxu0 %v2622_v4  ;;  %2387 = vmatprep.mubr.msk.f32.mxu0 %vm2534_vm0, %v2533_v0 }
 0x2ca   : > { %2381 = vmatprep.subr.mxu0 %v2533_v0 }
 0x2cb   : > { %2382 = vmatpush3.msra.mxu0 %v2629_v5 }
 0x2cc   : > { %2383 = vmatprep.subr.mxu0 %v2533_v0 }
 0x2cd   : > { %2384 = vmatpush3.msra.mxu0 %v2635_v6 }
 0x2ce   : > { %2385 = vmatprep.subr.mxu0 %v2533_v0 }
 0x2cf   : > { %2386 = vmatpush3.msra.mxu0 %v2640_v7 }
 0x2d0   : > { %2408 = vmatprep.subr.mxu0 %v2533_v0 }
 0x384   : > { %v711_v43 = vpop.f32.mrf.mxu0 }
 0x385   : > { %v712_v44 = vadd.f32 %v2657_v10, %v711_v43 }
 0x386   : > { %v2353_v45 = vpop.f32.mrf.mxu0 }
 0x387   : > { %723 = vrot.lane.b32.xlu0 %v712_v44, %s2535_s19  ;;  %v715_v48 = vadd.f32 %v712_v44, %v637_v47 }
 0x389   : > { %v2197_v49 = vmul.f32 -1.442695, %v715_v48 }
 0x38b   : > { %743 = vperm.xlu0 %2476, %v2194_v46   ;;  %2483 = vpow2.f32 %v2197_v49 }
 0x398   : > { %v2484_v50 = vpop.eup %2483 }
 0x399   : > { %v719_v51 = vadd.f32 1.0, %v2484_v50 }
 0x39b   : > { %2485 = vrcp.f32 %v719_v51 }
 0x3a8   : > { %v2486_v52 = vpop.eup %2485 }
 0x3a9   : > { %v733_v61 = vsub.f32 1.0, %v2486_v52  ;;  %v739_v63 = vmul.f32 %v2486_v52, %v2695_v39 }
 0x3f9   : > { %v724_v53 = vpop.permute.xlu0 %723 }
 0x3fa   : > { %v726_v54 = vmul.f32 %v2486_v52, %v724_v53  ;;  %v2212_v53 = vld [vmem:[%s2072_s14 + $0x6] sm:$0x3] }
 0x3fc   : > { %728 = vrot.lane.b32.xlu1 %v726_v54, %s2535_s19 }
 0x400   : > { %750 = vperm.xlu1 %2475, %v747_v55  }
 0x406   : > { %v2734_v8 = vpop.permute.xlu0 %743 }
 0x46e   : > { %v729_v56 = vpop.permute.xlu1 %728 }
 0x46f   : > { %v731_v57 = vadd.f32 %v729_v56, %v637_v47  ;;  %v1039_v47 = vpop.f32.mrf.mxu0 }
 0x470   : > { %v1040_v54 = vadd.f32 %v2665_v14, %v1039_v47 }
 0x471   : > { %2487 = vtanh.f32 %v731_v57  ;;  %v2378_v48 = vpop.f32.mrf.mxu0 }
 0x47b   : > { %v751_v60 = vpop.permute.xlu1 %750 }
 0x47c   : > { %v753_v11 = vmul.f32 %v751_v60, %v2695_v39 }
 0x47e   : > { %v2488_v59 = vpop.eup %2487 }
 0x47f   : > { %735 = vrot.lane.b32.xlu1 %v2488_v59, %s2537_s12 }
 0x4f1   : > { %v736_v62 = vpop.permute.xlu1 %735 }
 0x4f2   : > { %v738_v3 = vmul.f32 %v736_v62, %v733_v61  ;;  %v1150_v62 = vsub.f32 1.0, %v2212_v53 }
 0x4f4   : > { %v740_v9 = vadd.f32 %v739_v63, %v738_v3 }
 0x4f6   : > { %v746_v12 = vmul.f32 %v2734_v8, %v740_v9  ;;  %v1168_v9 = vld [vmem:[%s1167_s21] sm:$0x3] }
 0x4f8   : > { %v2738_v13 = vadd.f32 %v753_v11, %v746_v12 }
 0x4fa   : > { %843 = vrot.lane.b32.xlu0 %v2738_v13, %s2537_s12 }
 0x56c   : > { %v844_v17 = vpop.permute.xlu0 %843 }
 0x56d   : > { %2370 = vmatmul.mubr.msk.f32.vlgmr.msra.gmra.mxu1 %vm438_vm2, %v844_v17 }
 0x56e   : > { %2391 = vmatpush3.msra.mxu1 %v2612_v1  ;;  %2394 = vmatprep.mubr.msk.f32.mxu1 %vm2534_vm0, %v2533_v0 }
 0x56f   : > { %2392 = vmatprep.subr.mxu1 %v2533_v0 }
 0x570   : > { %2393 = vmatpush3.msra.mxu1 %v2614_v2 }
 0x571   : > { %2397 = vmatprep.subr.mxu1 %v2533_v0  ;;  %2395 = vmatmul.mubr.msk.f32.vlgmr.msra.gmra.mxu1 %vm358_vm1, %v1168_v9 }
 0x572   : > { %2398 = vmatpush3.msra.mxu1 %v2622_v4  ;;  %2405 = vmatprep.mubr.msk.f32.mxu1 %vm2534_vm0, %v2533_v0 }
 0x573   : > { %2399 = vmatprep.subr.mxu1 %v2533_v0 }
 0x574   : > { %2400 = vmatpush3.msra.mxu1 %v2629_v5 }
 0x575   : > { %2401 = vmatprep.subr.mxu1 %v2533_v0 }
 0x576   : > { %2402 = vmatpush3.msra.mxu1 %v2635_v6 }
 0x577   : > { %2403 = vmatprep.subr.mxu1 %v2533_v0 }
 0x578   : > { %2404 = vmatpush3.msra.mxu1 %v2640_v7 }
 0x579   : > { %2426 = vmatprep.subr.mxu1 %v2533_v0 }
 0x62d   : > { %v913_v18 = vpop.f32.mrf.mxu1 }
 0x62e   : > { %v914_v19 = vadd.f32 %v2657_v10, %v913_v18 }
 0x62f   : > { %v2371_v20 = vpop.f32.mrf.mxu1 }
 0x630   : > { %925 = vrot.lane.b32.xlu1 %v914_v19, %s2535_s19  ;;  %v917_v23 = vadd.f32 %v914_v19, %v839_v22 }
 0x632   : > { %v2206_v24 = vmul.f32 -1.442695, %v917_v23 }
 0x634   : > { %945 = vperm.xlu1 %2475, %v2203_v21   ;;  %2489 = vpow2.f32 %v2206_v24  ;;  %v1240_v24 = vpop.f32.mrf.mxu1 }
 0x641   : > { %v2490_v25 = vpop.eup %2489 }
 0x642   : > { %v921_v26 = vadd.f32 1.0, %v2490_v25  ;;  %v2396_v25 = vpop.f32.mrf.mxu1 }
 0x644   : > { %2491 = vrcp.f32 %v921_v26 }
 0x651   : > { %v2492_v27 = vpop.eup %2491 }
 0x652   : > { %v935_v37 = vsub.f32 1.0, %v2492_v27  ;;  %v941_v40 = vmul.f32 %v2492_v27, %v2738_v13 }
 0x6a2   : > { %v926_v28 = vpop.permute.xlu1 %925 }
 0x6a3   : > { %v928_v29 = vmul.f32 %v2492_v27, %v926_v28 }
 0x6a5   : > { %930 = vrot.lane.b32.xlu0 %v928_v29, %s2535_s19 }
 0x6a9   : > { %952 = vperm.xlu0 %2476, %v949_v31   ;;  %v1170_v31 = vld [vmem:[%s1169_s29] sm:$0x3]  ;;  %s2967_s29 = scalar_lea.vmem %s3019_s6, %s2251_s8 }
 0x6aa   : > { %s557_s10 = scalar_lea.vmem %s2967_s29, %s2590_s26  ;;  %s2054_s26 = scalar_lea.vmem %s2967_s29, %s2674_s30 }
 0x6ab   : > { %s2066_s8 = scalar_lea.vmem %s2967_s29, %s2715_s16  ;;  %s1364_s14 = scalar_lea.vmem %s2967_s29, %s2801_s17 }
 0x6ac   : > { %s2093_s30 = scalar_lea.vmem %s2967_s29, %s2844_s9  ;;  %s2105_s16 = scalar_lea.vmem %s2967_s29, %s2887_s20 }
 0x6af   : > { %v2776_v36 = vpop.permute.xlu1 %945 }
 0x717   : > { %v931_v32 = vpop.permute.xlu0 %930 }
 0x718   : > { %v933_v33 = vadd.f32 %v931_v32, %v839_v22  ;;  %v1241_v32 = vadd.f32 %v2665_v14, %v1240_v24 }
 0x71a   : > { %2493 = vtanh.f32 %v933_v33 }
 0x724   : > { %v953_v42 = vpop.permute.xlu0 %952 }
 0x725   : > { %v955_v44 = vmul.f32 %v953_v42, %v2738_v13  ;;  %v1351_v42 = vsub.f32 1.0, %v1170_v31 }
 0x727   : > { %v2494_v35 = vpop.eup %2493 }
 0x728   : > { %937 = vrot.lane.b32.xlu1 %v2494_v35, %s2537_s12 }
 0x79a   : > { %v938_v38 = vpop.permute.xlu1 %937 }
 0x79b   : > { %v940_v41 = vmul.f32 %v938_v38, %v935_v37 }
 0x79d   : > { %v942_v43 = vadd.f32 %v941_v40, %v940_v41 }
 0x79f   : > { %v948_v45 = vmul.f32 %v2776_v36, %v942_v43 }
 0x7a1   : > { %v2781_v46 = vadd.f32 %v955_v44, %v948_v45  ;;  %v2223_v45 = vld [vmem:[%s2085_s13 + $0xa] sm:$0x3]  ;;  %s2923_s13 = smul.u32 4294967282, %s2584_s25 }
 0x7a3   : > { %1044 = vrot.lane.b32.xlu0 %v2781_v46, %s2537_s12  ;;  %s2113_s22 = scalar_lea.vmem %s3013_s0, %s2923_s13  ;;  %s2117_s25 = scalar_lea.vmem %s2967_s29, %s2923_s13 }
 0x815   : > { %v1045_v49 = vpop.permute.xlu0 %1044 }
 0x816   : > { %2388 = vmatmul.mubr.msk.f32.vlgmr.msra.gmra.mxu0 %vm438_vm2, %v1045_v49 }
 0x817   : > { %2409 = vmatpush3.msra.mxu0 %v2612_v1  ;;  %2412 = vmatprep.mubr.msk.f32.mxu0 %vm2534_vm0, %v2533_v0 }
 0x818   : > { %2410 = vmatprep.subr.mxu0 %v2533_v0 }
 0x819   : > { %2411 = vmatpush3.msra.mxu0 %v2614_v2 }
 0x81a   : > { %2415 = vmatprep.subr.mxu0 %v2533_v0  ;;  %2413 = vmatmul.mubr.msk.f32.vlgmr.msra.gmra.mxu0 %vm358_vm1, %v2223_v45 }
 0x81b   : > { %2416 = vmatpush3.msra.mxu0 %v2622_v4  ;;  %2423 = vmatprep.mubr.msk.f32.mxu0 %vm2534_vm0, %v2533_v0 }
 0x81c   : > { %2417 = vmatprep.subr.mxu0 %v2533_v0 }
 0x81d   : > { %2418 = vmatpush3.msra.mxu0 %v2629_v5 }
 0x81e   : > { %2419 = vmatprep.subr.mxu0 %v2533_v0 }
 0x81f   : > { %2420 = vmatpush3.msra.mxu0 %v2635_v6 }
 0x820   : > { %2421 = vmatprep.subr.mxu0 %v2533_v0 }
 0x821   : > { %2422 = vmatpush3.msra.mxu0 %v2640_v7 }
 0x822   : > { %2444 = vmatprep.subr.mxu0 %v2533_v0 }
 0x8d6   : > { %v1114_v50 = vpop.f32.mrf.mxu0 }
 0x8d7   : > { %v1115_v51 = vadd.f32 %v2657_v10, %v1114_v50 }
 0x8d8   : > { %v2389_v52 = vpop.f32.mrf.mxu0 }
 0x8d9   : > { %1126 = vrot.lane.b32.xlu1 %v1115_v51, %s2535_s19  ;;  %v1118_v55 = vadd.f32 %v1115_v51, %v1040_v54 }
 0x8db   : > { %v2215_v56 = vmul.f32 -1.442695, %v1118_v55 }
 0x8dd   : > { %1146 = vperm.xlu1 %2475, %v2212_v53   ;;  %2495 = vpow2.f32 %v2215_v56 }
 0x8ea   : > { %v2496_v57 = vpop.eup %2495 }
 0x8eb   : > { %v1122_v58 = vadd.f32 1.0, %v2496_v57 }
 0x8ed   : > { %2497 = vrcp.f32 %v1122_v58  ;;  %v1442_v58 = vpop.f32.mrf.mxu0 }
 0x8fa   : > { %v2498_v59 = vpop.eup %2497 }
 0x8fb   : > { %v1136_v15 = vsub.f32 1.0, %v2498_v59  ;;  %v1142_v17 = vmul.f32 %v2498_v59, %v2781_v46 }
 0x94b   : > { %v1127_v60 = vpop.permute.xlu1 %1126 }
 0x94c   : > { %v1129_v61 = vmul.f32 %v2498_v59, %v1127_v60  ;;  %v2414_v59 = vpop.f32.mrf.mxu0 }
 0x94e   : > { %1131 = vrot.lane.b32.xlu0 %v1129_v61, %s2535_s19 }
 0x952   : > { %1153 = vperm.xlu0 %2476, %v1150_v62  }
 0x958   : > { %v2819_v12 = vpop.permute.xlu1 %1146 }
 0x9c0   : > { %v1132_v63 = vpop.permute.xlu0 %1131 }
 0x9c1   : > { %v1134_v3 = vadd.f32 %v1132_v63, %v1040_v54 }
 0x9c3   : > { %2499 = vtanh.f32 %v1134_v3  ;;  %v1443_v3 = vadd.f32 %v2665_v14, %v1442_v58 }
 0x9cd   : > { %v1154_v19 = vpop.permute.xlu0 %1153 }
 0x9ce   : > { %v1156_v21 = vmul.f32 %v1154_v19, %v2781_v46 }
 0x9d0   : > { %v2500_v11 = vpop.eup %2499 }
 0x9d1   : > { %1138 = vrot.lane.b32.xlu1 %v2500_v11, %s2537_s12 }
 0xa43   : > { %v1139_v16 = vpop.permute.xlu1 %1138 }
 0xa44   : > { %v1141_v18 = vmul.f32 %v1139_v16, %v1136_v15 }
 0xa46   : > { %v1143_v20 = vadd.f32 %v1142_v17, %v1141_v18 }
 0xa48   : > { %v1149_v22 = vmul.f32 %v2819_v12, %v1143_v20 }
 0xa4a   : > { %v2824_v23 = vadd.f32 %v1156_v21, %v1149_v22  ;;  %v2232_v22 = vld [vmem:[%s2097_s23 + $0xc] sm:$0x3] }
 0xa4c   : > { %1245 = vrot.lane.b32.xlu0 %v2824_v23, %s2537_s12 }
 0xabe   : > { %v1246_v26 = vpop.permute.xlu0 %1245 }
 0xabf   : > { %2406 = vmatmul.mubr.msk.f32.vlgmr.msra.gmra.mxu1 %vm438_vm2, %v1246_v26 }
 0xac0   : > { %2427 = vmatpush3.msra.mxu1 %v2612_v1  ;;  %2430 = vmatprep.mubr.msk.f32.mxu1 %vm2534_vm0, %v2533_v0 }
 0xac1   : > { %2428 = vmatprep.subr.mxu1 %v2533_v0 }
 0xac2   : > { %2429 = vmatpush3.msra.mxu1 %v2614_v2 }
 0xac3   : > { %2433 = vmatprep.subr.mxu1 %v2533_v0  ;;  %2431 = vmatmul.mubr.msk.f32.vlgmr.msra.gmra.mxu1 %vm358_vm1, %v2232_v22 }
 0xac4   : > { %2434 = vmatpush3.msra.mxu1 %v2622_v4  ;;  %2441 = vmatprep.mubr.msk.f32.mxu1 %vm2534_vm0, %v2533_v0 }
 0xac5   : > { %2435 = vmatprep.subr.mxu1 %v2533_v0 }
 0xac6   : > { %2436 = vmatpush3.msra.mxu1 %v2629_v5 }
 0xac7   : > { %2437 = vmatprep.subr.mxu1 %v2533_v0 }
 0xac8   : > { %2438 = vmatpush3.msra.mxu1 %v2635_v6 }
 0xac9   : > { %2439 = vmatprep.subr.mxu1 %v2533_v0 }
 0xaca   : > { %2440 = vmatpush3.msra.mxu1 %v2640_v7 }
 0xb7f   : > { %v1315_v27 = vpop.f32.mrf.mxu1 }
 0xb80   : > { %v1316_v28 = vadd.f32 %v2657_v10, %v1315_v27 }
 0xb81   : > { %v2407_v29 = vpop.f32.mrf.mxu1 }
 0xb82   : > { %1327 = vrot.lane.b32.xlu1 %v1316_v28, %s2535_s19  ;;  %v1319_v33 = vadd.f32 %v1316_v28, %v1241_v32 }
 0xb84   : > { %v2221_v34 = vmul.f32 -1.442695, %v1319_v33 }
 0xb86   : > { %1347 = vperm.xlu1 %2475, %v1170_v31   ;;  %2501 = vpow2.f32 %v2221_v34 }
 0xb93   : > { %v2502_v35 = vpop.eup %2501 }
 0xb94   : > { %v1323_v37 = vadd.f32 1.0, %v2502_v35 }
 0xb96   : > { %2503 = vrcp.f32 %v1323_v37  ;;  %v1644_v37 = vpop.f32.mrf.mxu1 }
 0xb97   : > { %v1645_v45 = vadd.f32 %v2665_v14, %v1644_v37 }
 0xba3   : > { %v2504_v38 = vpop.eup %2503 }
 0xba4   : > { %v1337_v49 = vsub.f32 1.0, %v2504_v38  ;;  %v1343_v51 = vmul.f32 %v2504_v38, %v2824_v23 }
 0xbf4   : > { %v1328_v40 = vpop.permute.xlu1 %1327 }
 0xbf5   : > { %v1330_v41 = vmul.f32 %v2504_v38, %v1328_v40  ;;  %v2432_v38 = vpop.f32.mrf.mxu1 }
 0xbf7   : > { %1332 = vrot.lane.b32.xlu0 %v1330_v41, %s2535_s19 }
 0xbfb   : > { %1354 = vperm.xlu0 %2476, %v1351_v42  }
 0xc01   : > { %v2862_v48 = vpop.permute.xlu1 %1347 }
 0xc69   : > { %v1333_v43 = vpop.permute.xlu0 %1332 }
 0xc6a   : > { %v1335_v44 = vadd.f32 %v1333_v43, %v1241_v32 }
 0xc6c   : > { %2505 = vtanh.f32 %v1335_v44  ;;  %v2234_v44 = vld [vmem:[%s2101_s11 + $0xc] sm:$0x3]  ;;  %s2075_s11 = scalar_lea.vmem %s2967_s29, %s2758_s28  ;;  %s2185_s28 = sshll.u32 %s2596_s27, 1 }
 0xc76   : > { %v1355_v53 = vpop.permute.xlu0 %1354 }
 0xc77   : > { %v1357_v55 = vmul.f32 %v1355_v53, %v2824_v23 }
 0xc79   : > { %v2506_v47 = vpop.eup %2505 }
 0xc7a   : > { %1339 = vrot.lane.b32.xlu1 %v2506_v47, %s2537_s12 }
 0xcec   : > { %v1340_v50 = vpop.permute.xlu1 %1339 }
 0xced   : > { %v1342_v52 = vmul.f32 %v1340_v50, %v1337_v49 }
 0xcef   : > { %v1344_v54 = vadd.f32 %v1343_v51, %v1342_v52 }
 0xcf1   : > { %v1350_v56 = vmul.f32 %v2862_v48, %v1344_v54 }
 0xcf3   : > { %v2867_v57 = vadd.f32 %v1357_v55, %v1350_v56  ;;  %v1755_v55 = vsub.f32 1.0, %v2234_v44 }
 0xcf5   : > { %1447 = vrot.lane.b32.xlu0 %v2867_v57, %s2537_s12 }
 0xd67   : > { %v1448_v60 = vpop.permute.xlu0 %1447 }
 0xd68   : > { %2424 = vmatmul.mubr.msk.f32.vlgmr.msra.gmra.mxu0 %vm438_vm2, %v1448_v60 }
 0xd69   : > { %2445 = vmatpush3.msra.mxu0 %v2612_v1  ;;  %2448 = vmatprep.mubr.msk.f32.mxu0 %vm2534_vm0, %v2533_v0  ;;  %v2225_v1 = vld [vmem:[%s2089_s18 + $0xa] sm:$0x3]  ;;  %s2109_s18 = scalar_lea.vmem %s3014_s1, %s2923_s13 }
 0xd6a   : > { %2446 = vmatprep.subr.mxu0 %v2533_v0  ;;  %v1553_v19 = vsub.f32 1.0, %v2225_v1  ;;  %v2241_v59 = vld [vmem:[%s2109_s18 + $0xe] sm:$0x3]  ;;  %s337_s18 = scalar_lea.vmem %s3020_s7, %s2185_s28 }
 0xd6b   : > { %2447 = vmatpush3.msra.mxu0 %v2614_v2 }
 0xd6c   : > { %2451 = vmatprep.subr.mxu0 %v2533_v0  ;;  %2449 = vmatmul.mubr.msk.f32.vlgmr.msra.gmra.mxu0 %vm358_vm1, %v2241_v59 }
 0xd6d   : > { %2452 = vmatpush3.msra.mxu0 %v2622_v4  ;;  %2459 = vmatprep.mubr.msk.f32.mxu0 %vm2534_vm0, %v2533_v0 }
 0xd6e   : > { %2453 = vmatprep.subr.mxu0 %v2533_v0 }
 0xd6f   : > { %2454 = vmatpush3.msra.mxu0 %v2629_v5 }
 0xd70   : > { %2455 = vmatprep.subr.mxu0 %v2533_v0 }
 0xd71   : > { %2456 = vmatpush3.msra.mxu0 %v2635_v6 }
 0xd72   : > { %2457 = vmatprep.subr.mxu0 %v2533_v0 }
 0xd73   : > { %2458 = vmatpush3.msra.mxu0 %v2640_v7 }
 0xe28   : > { %v1517_v61 = vpop.f32.mrf.mxu0 }
 0xe29   : > { %v1518_v62 = vadd.f32 %v2657_v10, %v1517_v61 }
 0xe2a   : > { %v2425_v63 = vpop.f32.mrf.mxu0 }
 0xe2b   : > { %1529 = vrot.lane.b32.xlu1 %v1518_v62, %s2535_s19  ;;  %v1521_v9 = vadd.f32 %v1518_v62, %v1443_v3 }
 0xe2c   : > { %v1846_v6 = vpop.f32.mrf.mxu0 }
 0xe2d   : > { %v2228_v11 = vmul.f32 -1.442695, %v1521_v9 }
 0xe2f   : > { %1549 = vperm.xlu1 %2475, %v2225_v1   ;;  %2507 = vpow2.f32 %v2228_v11 }
 0xe3c   : > { %v2508_v2 = vpop.eup %2507 }
 0xe3d   : > { %v1525_v15 = vadd.f32 1.0, %v2508_v2 }
 0xe3f   : > { %2509 = vrcp.f32 %v1525_v15  ;;  %v2450_v15 = vpop.f32.mrf.mxu0 }
 0xe4c   : > { %v2510_v16 = vpop.eup %2509 }
 0xe4d   : > { %v1539_v26 = vsub.f32 1.0, %v2510_v16  ;;  %v1545_v28 = vmul.f32 %v2510_v16, %v2867_v57 }
 0xe9d   : > { %v1530_v17 = vpop.permute.xlu1 %1529 }
 0xe9e   : > { %v1532_v18 = vmul.f32 %v2510_v16, %v1530_v17 }
 0xea0   : > { %1534 = vrot.lane.b32.xlu0 %v1532_v18, %s2535_s19  ;;  %v2243_v18 = vld [vmem:[%s2113_s22 + $0xe] sm:$0x3] }
 0xea4   : > { %1556 = vperm.xlu0 %2476, %v1553_v19   ;;  %v1847_v19 = vadd.f32 %v2665_v14, %v1846_v6  ;;  %v957_v14 = vmul.f32 %v2781_v46, %v2776_v36  ;;  %v755_v46 = vmul.f32 %v2738_v13, %v2734_v8 }
 0xeaa   : > { %v2904_v25 = vpop.permute.xlu1 %1549 }
 0xf12   : > { %v1535_v20 = vpop.permute.xlu0 %1534 }
 0xf13   : > { %v1537_v21 = vadd.f32 %v1535_v20, %v1443_v3 }
 0xf15   : > { %2511 = vtanh.f32 %v1537_v21 }
 0xf1f   : > { %v1557_v31 = vpop.permute.xlu0 %1556 }
 0xf20   : > { %v1559_v33 = vmul.f32 %v1557_v31, %v2867_v57  ;;  %v1359_v31 = vmul.f32 %v2867_v57, %v2862_v48  ;;  %v1158_v48 = vmul.f32 %v2824_v23, %v2819_v12 }
 0xf22   : > { %v2512_v24 = vpop.eup %2511 }
 0xf23   : > { %1541 = vrot.lane.b32.xlu1 %v2512_v24, %s2537_s12 }
 0xf95   : > { %v1542_v27 = vpop.permute.xlu1 %1541 }
 0xf96   : > { %v1544_v29 = vmul.f32 %v1542_v27, %v1539_v26 }
 0xf98   : > { %v1546_v32 = vadd.f32 %v1545_v28, %v1544_v29  ;;  %v1957_v28 = vsub.f32 1.0, %v2243_v18  ;;  %v552_v29 = vmul.f32 %v2695_v39, %v2692_v30 }
 0xf9a   : > { %v1552_v34 = vmul.f32 %v2904_v25, %v1546_v32 }
 0xf9c   : > { %v2909_v35 = vadd.f32 %v1559_v33, %v1552_v34 }
 0xf9e   : > { %1649 = vrot.lane.b32.xlu0 %v2909_v35, %s2537_s12  ;;  %v1561_v57 = vmul.f32 %v2909_v35, %v2904_v25 }
0x1010   : > { %v1650_v40 = vpop.permute.xlu0 %1649 }
0x1011   : > { %2442 = vmatmul.mubr.msk.f32.vlgmr.msra.gmra.mxu1 %vm438_vm2, %v1650_v40 }
0x10d1   : > { %v1719_v41 = vpop.f32.mrf.mxu1 }
0x10d2   : > { %v1720_v42 = vadd.f32 %v2657_v10, %v1719_v41 }
0x10d3   : > { %v2443_v43 = vpop.f32.mrf.mxu1 }
0x10d4   : > { %1731 = vrot.lane.b32.xlu1 %v1720_v42, %s2535_s19  ;;  %v1723_v47 = vadd.f32 %v1720_v42, %v1645_v45 }
0x10d6   : > { %v2237_v49 = vmul.f32 -1.442695, %v1723_v47 }
0x10d8   : > { %1751 = vperm.xlu1 %2475, %v2234_v44   ;;  %2513 = vpow2.f32 %v2237_v49 }
0x10e5   : > { %v2514_v50 = vpop.eup %2513 }
0x10e6   : > { %v1727_v51 = vadd.f32 1.0, %v2514_v50 }
0x10e8   : > { %2515 = vrcp.f32 %v1727_v51 }
0x10f5   : > { %v2516_v52 = vpop.eup %2515 }
0x10f6   : > { %v1741_v62 = vsub.f32 1.0, %v2516_v52  ;;  %v1747_v4 = vmul.f32 %v2516_v52, %v2909_v35 }
0x1146   : > { %v1732_v53 = vpop.permute.xlu1 %1731 }
0x1147   : > { %v1734_v54 = vmul.f32 %v2516_v52, %v1732_v53 }
0x1149   : > { %1736 = vrot.lane.b32.xlu0 %v1734_v54, %s2535_s19 }
0x114d   : > { %1758 = vperm.xlu0 %2476, %v1755_v55  }
0x1153   : > { %v1752_v61 = vpop.permute.xlu1 %1751 }
0x11bb   : > { %v1737_v56 = vpop.permute.xlu0 %1736 }
0x11bc   : > { %v1739_v58 = vadd.f32 %v1737_v56, %v1645_v45 }
0x11be   : > { %2517 = vtanh.f32 %v1739_v58 }
0x11c8   : > { %v1759_v3 = vpop.permute.xlu0 %1758 }
0x11c9   : > { %v1761_v11 = vmul.f32 %v1759_v3, %v2909_v35 }
0x11cb   : > { %v2518_v60 = vpop.eup %2517 }
0x11cc   : > { %1743 = vrot.lane.b32.xlu1 %v2518_v60, %s2537_s12 }
0x123e   : > { %v1744_v63 = vpop.permute.xlu1 %1743 }
0x123f   : > { %v1746_v1 = vmul.f32 %v1744_v63, %v1741_v62 }
0x1241   : > { %v1748_v9 = vadd.f32 %v1747_v4, %v1746_v1 }
0x1243   : > { %v1754_v5 = vmul.f32 %v1752_v61, %v1748_v9 }
0x1245   : > { %v1762_v2 = vadd.f32 %v1761_v11, %v1754_v5 }
0x1247   : > { %1851 = vrot.lane.b32.xlu0 %v1762_v2, %s2537_s12  ;;  %v1763_v32 = vmul.f32 %v1762_v2, %v1752_v61 }
0x12b9   : > { %v1852_v0 = vpop.permute.xlu0 %1851 }
0x12ba   : > { %2460 = vmatmul.mubr.msk.f32.vlgmr.msra.gmra.mxu0 %vm438_vm2, %v1852_v0 }
0x137a   : > { %v1921_v7 = vpop.f32.mrf.mxu0 }
0x137b   : > { %v1922_v16 = vadd.f32 %v2657_v10, %v1921_v7 }
0x137c   : > { %v2461_v17 = vpop.f32.mrf.mxu0 }
0x137d   : > { %1933 = vrot.lane.b32.xlu1 %v1922_v16, %s2535_s19  ;;  %v1925_v20 = vadd.f32 %v1922_v16, %v1847_v19 }
0x137f   : > { %v2246_v21 = vmul.f32 -1.442695, %v1925_v20 }
0x1381   : > { %1953 = vperm.xlu1 %2475, %v2243_v18   ;;  %2519 = vpow2.f32 %v2246_v21 }
0x138e   : > { %v2520_v22 = vpop.eup %2519 }
0x138f   : > { %v1929_v24 = vadd.f32 1.0, %v2520_v22 }
0x1391   : > { %2521 = vrcp.f32 %v1929_v24 }
0x139e   : > { %v2522_v26 = vpop.eup %2521 }
0x139f   : > { %v1943_v38 = vsub.f32 1.0, %v2522_v26  ;;  %v1949_v13 = vmul.f32 %v2522_v26, %v1762_v2 }
0x13ef   : > { %v1934_v27 = vpop.permute.xlu1 %1933 }
0x13f0   : > { %v1936_v10 = vmul.f32 %v2522_v26, %v1934_v27 }
0x13f2   : > { %1938 = vrot.lane.b32.xlu0 %v1936_v10, %s2535_s19 }
0x13f6   : > { %1960 = vperm.xlu0 %2476, %v1957_v28  }
0x13fa   : > { %554 = vrot.lane.b32.xlu0 %v552_v29, %s2537_s12 }
0x13fc   : > { %v1954_v37 = vpop.permute.xlu1 %1953 }
0x13fe   : > { %959 = vrot.lane.b32.xlu0 %v957_v14, %s2537_s12 }
0x1402   : > { %1361 = vrot.lane.b32.xlu0 %v1359_v31, %s2537_s12 }
0x1406   : > { %1765 = vrot.lane.b32.xlu0 %v1763_v32, %s2537_s12 }
0x1464   : > { %v1939_v33 = vpop.permute.xlu0 %1938 }
0x1465   : > { %v1941_v34 = vadd.f32 %v1939_v33, %v1847_v19 }
0x1467   : > { %2523 = vtanh.f32 %v1941_v34 }
0x1471   : > { %v1961_v30 = vpop.permute.xlu0 %1960 }
0x1472   : > { %v1963_v42 = vmul.f32 %v1961_v30, %v1762_v2 }
0x1474   : > { %v2524_v39 = vpop.eup %2523 }
0x1475   : > { %1945 = vrot.lane.b32.xlu1 %v2524_v39, %s2537_s12  ;;  %v555_v36 = vpop.permute.xlu0 %554 }
0x1476   : > { %559 = vst.msk [vmem:[%s557_s10] sm:$0x3] %vm558_vm3, %v555_v36 }
0x1479   : > { %757 = vrot.lane.b32.xlu1 %v755_v46, %s2537_s12  ;;  %v960_v8 = vpop.permute.xlu0 %959 }
0x147d   : > { %1160 = vrot.lane.b32.xlu1 %v1158_v48, %s2537_s12  ;;  %v1362_v35 = vpop.permute.xlu0 %1361 }
0x1481   : > { %1563 = vrot.lane.b32.xlu1 %v1561_v57, %s2537_s12  ;;  %v1766_v49 = vpop.permute.xlu0 %1765 }
0x14e7   : > { %v1946_v40 = vpop.permute.xlu1 %1945 }
0x14e8   : > { %v1948_v41 = vmul.f32 %v1946_v40, %v1943_v38 }
0x14ea   : > { %v1950_v12 = vadd.f32 %v1949_v13, %v1948_v41 }
0x14eb   : > { %v758_v23 = vpop.permute.xlu1 %757 }
0x14ec   : > { %v1956_v25 = vmul.f32 %v1954_v37, %v1950_v12  ;;  %2199 = vst.msk [vmem:[%s2054_s26 + $0x2] sm:$0x3] %vm558_vm3, %v758_v23 }
0x14ed   : > { %2208 = vst.msk [vmem:[%s2066_s8 + $0x4] sm:$0x3] %vm558_vm3, %v960_v8 }
0x14ee   : > { %v1964_v43 = vadd.f32 %v1963_v42, %v1956_v25 }
0x14ef   : > { %v1161_v44 = vpop.permute.xlu1 %1160 }
0x14f0   : > { %2217 = vst.msk [vmem:[%s2075_s11 + $0x6] sm:$0x3] %vm558_vm3, %v1161_v44  ;;  %1973 = vrot.lane.b32.xlu0 %v1964_v43, %s2537_s12  ;;  %v1965_v45 = vmul.f32 %v1964_v43, %v1954_v37 }
0x14f1   : > { %1365 = vst.msk [vmem:[%s1364_s14] sm:$0x3] %vm558_vm3, %v1362_v35 }
0x14f2   : > { %1967 = vrot.lane.b32.xlu1 %v1965_v45, %s2537_s12 }
0x14f3   : > { %v1564_v47 = vpop.permute.xlu1 %1563 }
0x14f4   : > { %2230 = vst.msk [vmem:[%s2093_s30 + $0xa] sm:$0x3] %vm558_vm3, %v1564_v47 }
0x14f5   : > { %2239 = vst.msk [vmem:[%s2105_s16 + $0xc] sm:$0x3] %vm558_vm3, %v1766_v49 }
0x1562   : > { %v1974_v50 = vpop.permute.xlu0 %1973 }
0x1563   : > { %1976 = vst.msk [vmem:[%s337_s18] sm:$0x3] %vm558_vm3, %v1974_v50 }
0x1564   : > { %v1968_v51 = vpop.permute.xlu1 %1967 }
0x1565   : > { %2248 = vst.msk [vmem:[%s2117_s25 + $0xe] sm:$0x3] %vm558_vm3, %v1968_v51 }
0x1566 PF: > { %s18_s24 = sadd.s32 1, %s2531_s24  }
0x1567   : > { %p15_p4 = scmp.ge.s32.totalorder %s18_s24, 4  }
0x1569   :  { %17 = sbr.rel (!%p15_p4) target bundleno = 1 (0x1), region = 119 }

// kernel: seq2seq_forward.3
= control target key start
LH: loop header
LB: loop body
LE: loop exit
PB: predicated region body
PF: predicated region fallthrough
CT: control target
= control target key end

     0   :  { %s9367_s0 = inlined_call_operand.vmem [shape: s32[5], index: 0, kind: input, shape index: {}]   ;;  %s9368_s1 = inlined_call_operand.vmem [shape: f32[5,2,128], index: 1, kind: input, shape index: {}]   ;;  %s9369_s2 = inlined_call_operand.vmem [shape: f32[2,8,2,32], index: 2, kind: input, shape index: {}]   ;;  %s9370_s3 = inlined_call_operand.vmem [shape: f32[2,2,32], index: 3, kind: input, shape index: {}]   ;;  %s9371_s4 = inlined_call_operand.vmem [shape: f32[8,2], index: 4, kind: input, shape index: {}]   ;;  %s9372_s5 = inlined_call_operand.vmem [shape: f32[2,32,32], index: 5, kind: input, shape index: {}]   ;;  %s9373_s6 = inlined_call_operand.vmem [shape: f32[1,32], index: 6, kind: input, shape index: {}]   ;;  %s9374_s7 = inlined_call_operand.vmem [shape: f32[32,32], index: 7, kind: input, shape index: {}]   ;;  %s9375_s8 = inlined_call_operand.vmem [shape: f32[2,32,32], index: 8, kind: input, shape index: {}]   ;;  %s9376_s9 = inlined_call_operand.vmem [shape: f32[1,32], index: 9, kind: input, shape index: {}]   ;;  %s9377_s10 = inlined_call_operand.vmem [shape: f32[1,32], index: 10, kind: input, shape index: {}]   ;;  %s9378_s11 = inlined_call_operand.vmem [shape: f32[128,16], index: 11, kind: input, shape index: {}]   ;;  %s9379_s12 = inlined_call_operand.vmem [shape: f32[80,96], index: 12, kind: input, shape index: {}]   ;;  %s9380_s13 = inlined_call_operand.vmem [shape: f32[32,96], index: 13, kind: input, shape index: {}]   ;;  %s9381_s14 = inlined_call_operand.vmem [shape: f32[1,96], index: 14, kind: input, shape index: {}]   ;;  %s9382_s15 = inlined_call_operand.vmem [shape: f32[1,96], index: 15, kind: input, shape index: {}]   ;;  %s9383_s16 = inlined_call_operand.vmem [shape: f32[112,128], index: 16, kind: input, shape index: {}]   ;;  %s9384_s17 = inlined_call_operand.vmem [shape: f32[1,128], index: 17, kind: input, shape index: {}]   ;;  %s9385_s18 = inlined_call_operand.vmem [shape: f32[5,2,128], index: 18, kind: output, shape index: {}]  }
   0x1   :  { %9456 = sst [smem:[#allocation32_spill]] %s9367_s0 }
   0x2   :  { %9457 = sst [smem:[#allocation33_spill]] %s9368_s1 }
   0x3   :  { %9458 = sst [smem:[#allocation34_spill]] %s9369_s2 }
   0x4   :  { %9459 = sst [smem:[#allocation35_spill]] %s9379_s12 }
   0x5   :  { %s9460_s29 = sld [smem:[#allocation32_spill]] }
   0xb   :  { %s23_s12 = sshll.u32 %s9460_s29, 4  ;;  %s24_s12 = int_to_ptr.vmem [resolvable:$true] %s23_s12 }
   0xc   :  { %s6999_s30 = scalar_lea.vmem %s24_s12, 16  ;;  %p7004_p1 = scmp.lt.s32.totalorder %s24_s12, %s24_s12 }
   0xd   :  { %p7000_p0 = scmp.ne.s32.totalorder %s24_s12, %s6999_s30  ;;  %p7005_p2 = scmp.lt.s32.totalorder %s6999_s30, %s6999_s30 }
   0xf   :  { %p7006_p3 = por %p7005_p2, %p7004_p1 }
  0x11   :  { %p7007_p4 = pnand %p7006_p3, %p7000_p0 }
  0x13   :  { %7010 = shalt.err (!%p7007_p4)  }
  0x14   :  { %s7013_s0 = smov [#allocation3]  }
  0x15   :  { %26 = dma.vmem_to_smem %s24_s12, 16, %s7013_s0, [#allocation2] }
  0x16   :  { %7011 = dma.done.wait [#allocation2], 16 }
  0x17   :  { %7012 = vsyncadd [#allocation2], 4294967280 }
  0x18   :  { %28 = sfence }
  0x19   :  { %v5655_v0 = vld [vmem:[%s9372_s5 + $0x38] sm:$0xff]  ;;  %v9389_v2 = vmov 0.0   ;;  %v5654_v3 = vld [vmem:[%s9372_s5 + $0x30] sm:$0xff]  ;;  %v5653_v5 = vld [vmem:[%s9372_s5 + $0x28] sm:$0xff]  ;;  %vm93_vm0 = vcmask 261120   ;;  %vm7015_vm1 = vmmov 0   ;;  %v271_v15 = vlaneseq }
  0x1a   :  { %v85_v1 = vld [vmem:[%s9372_s5 + $0x18] sm:$0xff]  ;;  %6050 = vmatprep.subr.mxu0 %v9389_v2  ;;  %6061 = vmatprep.subr.mxu1 %v9389_v2  ;;  %v84_v4 = vld [vmem:[%s9372_s5 + $0x10] sm:$0xff]  ;;  %v83_v6 = vld [vmem:[%s9372_s5 + $0x8] sm:$0xff]  ;;  %v7016_v13 = vmov 1983009808   ;;  %s9461_s24 = sld [smem:[#allocation34_spill]] }
  0x1b   :  { %6051 = vmatpush3.msra.mxu0 %v5655_v0  ;;  %6062 = vmatpush3.msra.mxu1 %v85_v1  ;;  %v5652_v7 = vld [vmem:[%s9372_s5 + $0x20] sm:$0xff]  ;;  %v5662_v11 = vld [vmem:[%s9375_s8 + $0x38] sm:$0xff]  ;;  %v269_v14 = vunpack.c.l.s4 %v7016_v13  ;;  %v7169_v17 = vshrl.u32 %v271_v15, 7  ;;  %v5661_v21 = vld [vmem:[%s9375_s8 + $0x30] sm:$0xff]  ;;  %vm795_vm2 = vcmask 254976   ;;  %s611_s27 = sld [smem:[#allocation3]] }
  0x1c   :  { %6052 = vmatprep.subr.mxu0 %v9389_v2  ;;  %6063 = vmatprep.subr.mxu1 %v9389_v2  ;;  %v82_v8 = vld [vmem:[%s9372_s5] sm:$0xff]  ;;  %v252_v12 = vld [vmem:[%s9375_s8 + $0x18] sm:$0xff]  ;;  %v251_v22 = vld [vmem:[%s9375_s8 + $0x10] sm:$0xff]  ;;  %vm863_vm3 = vcmask 1041409   ;;  %vm865_vm4 = vcmask 1042434   ;;  %vm867_vm5 = vcmask 1043459  }
  0x1d   :  { %6053 = vmatpush3.msra.mxu0 %v5654_v3  ;;  %6064 = vmatpush3.msra.mxu1 %v84_v4  ;;  %v5651_v9 = vld [vmem:[%s9370_s3 + $0x2] sm:$0x3]  ;;  %v81_v10 = vld [vmem:[%s9370_s3] sm:$0x3]  ;;  %v270_v16 = vunpack.c.0.s8 %v269_v14  ;;  %v5660_v29 = vld [vmem:[%s9375_s8 + $0x28] sm:$0xff]  ;;  %s9466_s3 = sld [smem:[#allocation33_spill]] }
  0x1e   :  { %6054 = vmatprep.subr.mxu0 %v9389_v2  ;;  %6065 = vmatprep.subr.mxu1 %v9389_v2  ;;  %v250_v30 = vld [vmem:[%s9375_s8 + $0x8] sm:$0xff]  ;;  %v5659_v38 = vld [vmem:[%s9375_s8 + $0x20] sm:$0xff]  ;;  %v7303_v61 = vld [vmem:[%s9374_s7 + $0x18] sm:$0xff]  ;;  %vm869_vm6 = vcmask 1044484   ;;  %vm871_vm7 = vcmask 1045509   ;;  %vm873_vm8 = vcmask 1046534  }
  0x1f   :  { %6055 = vmatpush3.msra.mxu0 %v5653_v5  ;;  %6066 = vmatpush3.msra.mxu1 %v83_v6  ;;  %v7200_v25 = vsub.s32 %v270_v16, %v7169_v17  ;;  %v249_v39 = vld [vmem:[%s9375_s8] sm:$0xff]  ;;  %v7310_v62 = vld [vmem:[%s9374_s7 + $0x10] sm:$0xff]  ;;  %v7321_v63 = vld [vmem:[%s9374_s7 + $0x8] sm:$0xff]  ;;  %vm875_vm9 = vcmask 1047559   ;;  %vm879_vm11 = vcmask 15360   ;;  %s9475_s29 = sld [smem:[#allocation35_spill]] }
  0x20   :  { %6056 = vmatprep.subr.mxu0 %v9389_v2  ;;  %6067 = vmatprep.subr.mxu1 %v9389_v2  ;;  %v7174_v18 = vld [vmem:[%s9461_s24 + $0x10] sm:$0x3]  ;;  %v7179_v19 = vld [vmem:[%s9461_s24 + $0x12] sm:$0x3]  ;;  %v7184_v20 = vld [vmem:[%s9461_s24 + $0x14] sm:$0x3] }
  0x21   :  { %6057 = vmatpush3.msra.mxu0 %v5652_v7  ;;  %6058 = vmatprep.mubr.msk.f32.mxu0 %vm7015_vm1, %v9389_v2  ;;  %v7195_v23 = vld [vmem:[%s9461_s24 + $0x16] sm:$0x3]  ;;  %v266_v24 = vcombine.low %v7174_v18, %v7179_v19  ;;  %v7207_v27 = vld [vmem:[%s9461_s24] sm:$0x3]  ;;  %v7212_v28 = vld [vmem:[%s9461_s24 + $0x2] sm:$0x3] }
  0x22   :  { %6068 = vmatpush3.msra.mxu1 %v82_v8  ;;  %6069 = vmatprep.mubr.msk.f32.mxu1 %vm7015_vm1, %v9389_v2  ;;  %v267_v26 = vcombine.low %v7184_v20, %v7195_v23  ;;  %v7224_v32 = vld [vmem:[%s9461_s24 + $0x4] sm:$0x3]  ;;  %v387_v33 = vcombine.low %v7207_v27, %v7212_v28  ;;  %v7232_v35 = vld [vmem:[%s9461_s24 + $0x6] sm:$0x3]  ;;  %v7237_v36 = vld [vmem:[%s9461_s24 + $0x18] sm:$0x3] }
  0x23   :  { %6059 = vmatmul.mubr.msk.f32.vlgmr.msra.gmra.mxu0 %vm93_vm0, %v5651_v9  ;;  %6070 = vmatmul.mubr.msk.f32.vlgmr.msra.gmra.mxu1 %vm93_vm0, %v81_v10  ;;  %v274_v31 = vrot.slane %v266_v24, %v7200_v25  ;;  %v7242_v37 = vld [vmem:[%s9461_s24 + $0x1a] sm:$0x3]  ;;  %v388_v40 = vcombine.low %v7224_v32, %v7232_v35  ;;  %v7256_v42 = vld [vmem:[%s9461_s24 + $0x1c] sm:$0x3]  ;;  %v7263_v45 = vld [vmem:[%s9461_s24 + $0x1e] sm:$0x3] }
  0x24   :  { %6072 = vmatprep.subr.mxu0 %v5662_v11  ;;  %6083 = vmatprep.subr.mxu1 %v252_v12  ;;  %v281_v34 = vrot.slane %v267_v26, %v7200_v25  ;;  %v395_v41 = vrot.slane %v387_v33, %v7200_v25  ;;  %v283_v43 = vcombine.low %v7237_v36, %v7242_v37  ;;  %v7268_v46 = vld [vmem:[%s9461_s24 + $0x8] sm:$0x3]  ;;  %v7277_v50 = vld [vmem:[%s9461_s24 + $0xa] sm:$0x3]  ;;  %v7282_v51 = vld [vmem:[%s9461_s24 + $0xc] sm:$0x3] }
  0x25   :  { %6073 = vmatpush3.msra.mxu0 %v5662_v11  ;;  %6084 = vmatpush3.msra.mxu1 %v252_v12  ;;  %v402_v47 = vrot.slane %v388_v40, %v7200_v25  ;;  %v284_v48 = vcombine.low %v7256_v42, %v7263_v45  ;;  %v7287_v52 = vld [vmem:[%s9461_s24 + $0xe] sm:$0x3]  ;;  %v404_v53 = vcombine.low %v7268_v46, %v7277_v50  ;;  %v7328_v0 = vld [vmem:[%s9374_s7] sm:$0xff]  ;;  %v7346_v10 = vld [vmem:[%s9378_s11 + $0x78] sm:$0xff]  ;;  %p612_p5 = scmp.gt.s32.totalorder %s611_s27, 0  ;;  %vm9423_vm12 = vcmask 130048  }
  0x26   :  { %6074 = vmatprep.subr.mxu0 %v5661_v21  ;;  %6085 = vmatprep.subr.mxu1 %v251_v22  ;;  %v282_v44 = vcombine.low %v274_v31, %v281_v34  ;;  %v291_v49 = vrot.slane %v283_v43, %v7200_v25  ;;  %v405_v54 = vcombine.low %v7282_v51, %v7287_v52  ;;  %v5658_v4 = vld [vmem:[%s9373_s6] ss:$0 sm:$0xff]  ;;  %v7351_v11 = vld [vmem:[%s9378_s11 + $0x70] sm:$0xff]  ;;  %v7358_v12 = vld [vmem:[%s9378_s11 + $0x68] sm:$0xff]  ;;  %s7018_s2 = smov 32   ;;  %s7019_s28 = smov 96  }
  0x27   :  { %6075 = vmatpush3.msra.mxu0 %v5661_v21  ;;  %6086 = vmatpush3.msra.mxu1 %v251_v22  ;;  %v403_v55 = vcombine.low %v395_v41, %v402_v47  ;;  %v298_v56 = vrot.slane %v284_v48, %v7200_v25  ;;  %v412_v57 = vrot.slane %v404_v53, %v7200_v25  ;;  %v7365_v13 = vld [vmem:[%s9378_s11 + $0x60] sm:$0xff]  ;;  %s613_s30 = scalar_select %p612_p5, 1, 0  ;;  %vm1631_vm14 = vcmask 1041408  }
  0x28   :  { %6076 = vmatprep.subr.mxu0 %v5660_v29  ;;  %6087 = vmatprep.subr.mxu1 %v250_v30  ;;  %v419_v58 = vrot.slane %v405_v54, %v7200_v25  ;;  %v5667_v43 = vld [vmem:[%s9376_s9] ss:$0 sm:$0xff]  ;;  %s5697_s26 = sld [smem:[#allocation3 + $0x2]] }
  0x29   :  { %6077 = vmatpush3.msra.mxu0 %v5660_v29  ;;  %6088 = vmatpush3.msra.mxu1 %v250_v30  ;;  %v299_v59 = vcombine.low %v291_v49, %v298_v56  ;;  %s614_s9 = scvt.s32.f32 %s613_s30  ;;  %s5711_s5 = sld [smem:[#allocation3 + $0x3]] }
  0x2a   :  { %6078 = vmatprep.subr.mxu0 %v5659_v38  ;;  %6089 = vmatprep.subr.mxu1 %v249_v39  ;;  %v420_v60 = vcombine.low %v412_v57, %v419_v58 }
  0x2b   :  { %6079 = vmatpush3.msra.mxu0 %v5659_v38  ;;  %6090 = vmatpush3.msra.mxu1 %v249_v39  ;;  %s618_s21 = ssub.f32 1.0, %s614_s9 }
  0x2c   :  { %6080 = vmatprep.mubr.msk.f32.mxu0 %vm93_vm0, %v282_v44  ;;  %6129 = vmatprep.subr.mxu1 %v9389_v2 }
  0x2d   :  { %6094 = vmatprep.subr.mxu0 %v9389_v2  ;;  %6091 = vmatprep.mubr.msk.f32.mxu1 %vm93_vm0, %v403_v55 }
  0x2e   :  { %6081 = vmatmul.mubr.msk.f32.vlgmr.msra.gmra.mxu0 %vm93_vm0, %v299_v59  ;;  %6092 = vmatmul.mubr.msk.f32.vlgmr.msra.gmra.mxu1 %vm93_vm0, %v420_v60  ;;  %p2659_p7 = scmp.gt.s32.totalorder %s5697_s26, 0 }
  0x2f   :  { %6126 = vmatprep.mubr.msk.f32.mxu0 %vm7015_vm1, %v9389_v2  ;;  %6130 = vmatpush3.msra.mxu1 %v7303_v61  ;;  %p3661_p8 = scmp.gt.s32.totalorder %s5711_s5, 0 }
  0x30   :  { %6137 = vmatprep.mubr.msk.f32.mxu1 %vm7015_vm1, %v9389_v2  ;;  %6131 = vmatprep.subr.mxu1 %v9389_v2  ;;  %s2660_s6 = scalar_select %p2659_p7, 1, 0 }
  0x31   :  { %6132 = vmatpush3.msra.mxu1 %v7310_v62  ;;  %6095 = vmatpush3.msra.mxu0 %v7346_v10 }
  0x32   :  { %6133 = vmatprep.subr.mxu1 %v9389_v2  ;;  %6096 = vmatprep.subr.mxu0 %v9389_v2  ;;  %s2661_s27 = scvt.s32.f32 %s2660_s6 }
  0x33   :  { %6134 = vmatpush3.msra.mxu1 %v7321_v63  ;;  %6097 = vmatpush3.msra.mxu0 %v7351_v11 }
  0x34   :  { %6135 = vmatprep.subr.mxu1 %v9389_v2  ;;  %6098 = vmatprep.subr.mxu0 %v9389_v2 }
  0x35   :  { %6136 = vmatpush3.msra.mxu1 %v7328_v0  ;;  %6099 = vmatpush3.msra.mxu0 %v7358_v12 }
  0x36   :  { %6140 = vmatprep.subr.mxu1 %v9389_v2  ;;  %6100 = vmatprep.subr.mxu0 %v9389_v2 }
  0x37   :  { %6101 = vmatpush3.msra.mxu0 %v7365_v13 }
  0x38   :  { %6102 = vmatprep.subr.mxu0 %v9389_v2 }
  0xe3   :  { %v163_v1 = vpop.f32.mrf.mxu0  ;;  %v236_v3 = vpop.f32.mrf.mxu1 }
  0xe4   :  { %v237_v5 = vadd.f32 %v236_v3, %v163_v1 }
  0xe5   :  { %v6060_v6 = vpop.f32.mrf.mxu0  ;;  %v6071_v7 = vpop.f32.mrf.mxu1 }
  0xe6   :  { %v247_v8 = vadd.f32 %v5658_v4, %v237_v5 }
  0xe8   :  { %6731 = vtanh.f32 %v247_v8  ;;  %v7405_v8 = vld [vmem:[%s9377_s10] ss:$0 sm:$0xff] }
  0xee   :  { %v6082_v14 = vpop.f32.mrf.mxu0  ;;  %v6093_v16 = vpop.f32.mrf.mxu1 }
  0xef   :  { %v497_v29 = vadd.f32 %v6093_v16, %v6082_v14 }
  0xf0   :  { %v370_v21 = vpop.f32.mrf.mxu0  ;;  %v491_v22 = vpop.f32.mrf.mxu1 }
  0xf1   :  { %v492_v24 = vadd.f32 %v491_v22, %v370_v21  ;;  %v519_v33 = vcombine.high %v497_v29, %v497_v29  ;;  %v526_v34 = vrot.slane %v497_v29, %v7200_v25 }
  0xf3   :  { %v502_v26 = vcombine.high %v492_v24, %v492_v24  ;;  %v509_v30 = vrot.slane %v492_v24, %v7200_v25  ;;  %v533_v40 = vrot.slane %v519_v33, %v7200_v25  ;;  %v534_v41 = vcombine.high %v526_v34, %v526_v34 }
  0xf4   :  { %v7388_v56 = vadd.f32 %v5667_v43, %v526_v34 }
  0xf5   :  { %v7337_v9 = vpop.eup %6731  ;;  %v516_v31 = vrot.slane %v502_v26, %v7200_v25  ;;  %v517_v38 = vcombine.high %v509_v30, %v509_v30  ;;  %v7384_v49 = vadd.f32 %v5667_v43, %v509_v30  ;;  %v535_v53 = vcombine.high %v533_v40, %v533_v40 }
  0xf6   :  { %6138 = vmatmul.mubr.msk.f32.vlgmr.msra.gmra.mxu1 %vm93_vm0, %v7337_v9  ;;  %v7386_v54 = vadd.f32 %v5667_v43, %v534_v41  ;;  %9464 = vst [vmem:[#allocation7_spill] sm:$0xff] %v7388_v56  ;;  %v7394_v1 = vadd.f32 %v5667_v43, %v533_v40 }
  0xf7   :  { %6148 = vmatprep.mubr.msk.f32.mxu1 %vm7015_vm1, %v9389_v2  ;;  %v518_v39 = vcombine.high %v516_v31, %v516_v31  ;;  %v7378_v44 = vadd.f32 %v5667_v43, %v517_v38  ;;  %v7380_v47 = vadd.f32 %v5667_v43, %v516_v31  ;;  %9463 = vst [vmem:[#allocation6_spill] sm:$0xff] %v7384_v49 }
  0xf8   :  { %9465 = vst [vmem:[#allocation8_spill] sm:$0xff] %v7394_v1  ;;  %v7397_v4 = vadd.f32 %v5667_v43, %v535_v53 }
  0xf9   :  { %9462 = vst [vmem:[#allocation5_spill] sm:$0xff] %v7380_v47  ;;  %v7382_v48 = vadd.f32 %v5667_v43, %v518_v39 }
 0x1b6   :  { %v761_v55 = vpop.f32.mrf.mxu1 }
 0x1b7   :  { %v765_v25 = vadd.f32 %v761_v55, %v7384_v49  ;;  %v767_v57 = vadd.f32 %v761_v55, %v7380_v47  ;;  %v766_v58 = vadd.f32 %v761_v55, %v7378_v44  ;;  %v768_v60 = vadd.f32 %v761_v55, %v7382_v48 }
 0x1b8   :  { %v6139_v59 = vpop.f32.mrf.mxu1  ;;  %v769_v3 = vadd.f32 %v761_v55, %v7388_v56  ;;  %v770_v5 = vadd.f32 %v761_v55, %v7386_v54  ;;  %v771_v6 = vadd.f32 %v761_v55, %v7394_v1  ;;  %v772_v7 = vadd.f32 %v761_v55, %v7397_v4 }
 0x1b9   :  { %6733 = vtanh.f32 %v765_v25  ;;  %v7545_v47 = vsub.s32 1, %v7169_v17 }
 0x1ba   :  { %6735 = vtanh.f32 %v767_v57 }
 0x1bb   :  { %6737 = vtanh.f32 %v766_v58  ;;  %9469 = vst [vmem:[#allocation11_spill] sm:$0xff] %v7545_v47 }
 0x1bc   :  { %6739 = vtanh.f32 %v768_v60 }
 0x1bd   :  { %6741 = vtanh.f32 %v769_v3  ;;  %v7425_v3 = vld [vmem:[%s9378_s11 + $0x58] sm:$0xff] }
 0x1be   :  { %6743 = vtanh.f32 %v770_v5  ;;  %v7430_v5 = vld [vmem:[%s9378_s11 + $0x50] sm:$0xff]  ;;  %6103 = vmatpush3.msra.mxu0 %v7425_v3 }
 0x1bf   :  { %6745 = vtanh.f32 %v771_v6  ;;  %6104 = vmatprep.subr.mxu0 %v9389_v2 }
 0x1c0   :  { %6747 = vtanh.f32 %v772_v7  ;;  %6105 = vmatpush3.msra.mxu0 %v7430_v5  ;;  %v7440_v7 = vld [vmem:[%s9378_s11 + $0x48] sm:$0xff] }
 0x1c1   :  { %6106 = vmatprep.subr.mxu0 %v9389_v2 }
 0x1c2   :  { %6107 = vmatpush3.msra.mxu0 %v7440_v7 }
 0x1c3   :  { %6108 = vmatprep.subr.mxu0 %v9389_v2 }
 0x1c6   :  { %v6734_v14 = vpop.eup %6733 }
 0x1c7   :  { %v6736_v16 = vpop.eup %6735  ;;  %v787_v21 = vmul.f32 %v6734_v14, %v7405_v8  ;;  %v7445_v14 = vld [vmem:[%s9378_s11 + $0x40] sm:$0xff] }
 0x1c8   :  { %v6738_v22 = vpop.eup %6737  ;;  %v789_v24 = vmul.f32 %v6736_v16, %v7405_v8  ;;  %6109 = vmatpush3.msra.mxu0 %v7445_v14  ;;  %v7453_v16 = vld [vmem:[%s9378_s11 + $0x38] sm:$0xff] }
 0x1c9   :  { %v6740_v26 = vpop.eup %6739  ;;  %v796_v29 = vsel %vm795_vm2, %v787_v21, 0.0  ;;  %v788_v30 = vmul.f32 %v6738_v22, %v7405_v8  ;;  %6110 = vmatprep.subr.mxu0 %v9389_v2  ;;  %v7459_v21 = vld [vmem:[%s9378_s11 + $0x30] sm:$0xff]  ;;  %v7468_v22 = vld [vmem:[%s9378_s11 + $0x28] sm:$0xff] }
 0x1ca   :  { %v6742_v31 = vpop.eup %6741  ;;  %797 = vadd.xlane.f32.xlu0 %v796_v29  ;;  %v802_v33 = vsel %vm795_vm2, %v789_v24, 0.0  ;;  %v790_v34 = vmul.f32 %v6740_v26, %v7405_v8  ;;  %6111 = vmatpush3.msra.mxu0 %v7453_v16  ;;  %v7475_v24 = vld [vmem:[%s9378_s11 + $0x20] sm:$0xff]  ;;  %v7482_v26 = vld [vmem:[%s9378_s11 + $0x18] sm:$0xff]  ;;  %v7489_v29 = vld [vmem:[%s9378_s11 + $0x10] sm:$0xff] }
 0x1cb   :  { %v6744_v38 = vpop.eup %6743  ;;  %803 = vadd.xlane.f32.xlu1 %v802_v33  ;;  %v799_v39 = vsel %vm795_vm2, %v788_v30, 0.0  ;;  %v791_v40 = vmul.f32 %v6742_v31, %v7405_v8  ;;  %6112 = vmatprep.subr.mxu0 %v9389_v2  ;;  %v615_v30 = vld [vmem:[%s9466_s3] sm:$0x3]  ;;  %v616_v31 = vstv %s614_s9  ;;  %v619_v33 = vstv %s618_s21  ;;  %s7017_s21 = smov 64  }
 0x1cc   :  { %v6746_v41 = vpop.eup %6745  ;;  %v805_v43 = vsel %vm795_vm2, %v790_v34, 0.0  ;;  %v792_v53 = vmul.f32 %v6744_v38, %v7405_v8  ;;  %6113 = vmatpush3.msra.mxu0 %v7459_v21  ;;  %v7499_v34 = vld [vmem:[%s9378_s11 + $0x8] sm:$0xff]  ;;  %v617_v38 = vmul.f32 %v616_v31, %v615_v30 }
 0x1cd   :  { %v6748_v55 = vpop.eup %6747  ;;  %v808_v25 = vsel %vm795_vm2, %v791_v40, 0.0  ;;  %v793_v57 = vmul.f32 %v6746_v41, %v7405_v8  ;;  %6114 = vmatprep.subr.mxu0 %v9389_v2  ;;  %v7506_v40 = vld [vmem:[%s9378_s11] sm:$0xff] }
 0x1ce   :  { %800 = vadd.xlane.f32.xlu0 %v799_v39  ;;  %v811_v58 = vsel %vm795_vm2, %v792_v53, 0.0  ;;  %v794_v59 = vmul.f32 %v6748_v55, %v7405_v8  ;;  %6115 = vmatpush3.msra.mxu0 %v7468_v22  ;;  %v620_v39 = vmul.f32 0.0, %v619_v33 }
 0x1cf   :  { %806 = vadd.xlane.f32.xlu1 %v805_v43  ;;  %v814_v60 = vsel %vm795_vm2, %v793_v57, 0.0  ;;  %6116 = vmatprep.subr.mxu0 %v9389_v2  ;;  %v7513_v43 = vand.u32 127, %v271_v15 }
 0x1d0   :  { %v817_v6 = vsel %vm795_vm2, %v794_v59, 0.0  ;;  %6117 = vmatpush3.msra.mxu0 %v7475_v24  ;;  %v621_v41 = vadd.f32 %v620_v39, %v617_v38 }
 0x1d1   :  { %6118 = vmatprep.subr.mxu0 %v9389_v2  ;;  %v7517_v55 = vsub.s32 %v7513_v43, %v7169_v17  ;;  %vm1629_vm13 = vcmp.lt.s32.totalorder %v7513_v43, 18 }
 0x1d2   :  { %809 = vadd.xlane.f32.xlu0 %v808_v25  ;;  %6119 = vmatpush3.msra.mxu0 %v7482_v26 }
 0x1d3   :  { %812 = vadd.xlane.f32.xlu1 %v811_v58  ;;  %6120 = vmatprep.subr.mxu0 %v9389_v2  ;;  %9467 = vst [vmem:[#allocation9_spill] sm:$0xff] %v7517_v55 }
 0x1d4   :  { %6121 = vmatpush3.msra.mxu0 %v7489_v29 }
 0x1d5   :  { %6122 = vmatprep.subr.mxu0 %v9389_v2 }
 0x1d6   :  { %815 = vadd.xlane.f32.xlu0 %v814_v60  ;;  %6123 = vmatpush3.msra.mxu0 %v7499_v34 }
 0x1d7   :  { %818 = vadd.xlane.f32.xlu1 %v817_v6  ;;  %6124 = vmatprep.subr.mxu0 %v9389_v2 }
 0x1d8   :  { %6125 = vmatpush3.msra.mxu0 %v7506_v40 }
 0x1d9   :  { %6127 = vmatmul.mubr.f32.vlgmr.msra.gmra.mxu0 %v621_v41  ;;  %6180 = vmatprep.subr.mxu0 %v9389_v2 }
 0x1da   :  { %6188 = vmatprep.mubr.msk.f32.mxu0 %vm7015_vm1, %v9389_v2 }
 0x253   :  { %v798_v53 = vpop.xlane.xlu0 %797 }
 0x254   :  { %v804_v25 = vpop.xlane.xlu1 %803  ;;  %v834_v58 = vrot.slane %v798_v53, %v7517_v55 }
 0x255   :  { %v842_v6 = vrot.slane %v804_v25, %v7517_v55  ;;  %v7532_v25 = vld [vmem:[%s9371_s4] sm:$0xff]  ;;  %s2666_s4 = ssub.f32 1.0, %s2661_s27 }
 0x256   :  { %9468 = vst [vmem:[#allocation10_spill] sm:$0xff] %v7532_v25  ;;  %vm820_vm10 = vcmp.gt.f32.partialorder %v7532_v25, 0.5 }
 0x257   :  { %v801_v57 = vpop.xlane.xlu0 %800 }
 0x258   :  { %v838_v59 = vrot.slane %v801_v57, %v7517_v55  ;;  %v807_v60 = vpop.xlane.xlu1 %806 }
 0x259   :  { %v846_v30 = vrot.slane %v807_v60, %v7517_v55 }
 0x25a   :  { %v864_v15 = vsel %vm863_vm3, %v838_v59, %v834_v58 }
 0x25b   :  { %v866_v31 = vsel %vm865_vm4, %v842_v6, %v864_v15  ;;  %v810_v33 = vpop.xlane.xlu0 %809 }
 0x25c   :  { %v868_v38 = vsel %vm867_vm5, %v846_v30, %v866_v31  ;;  %v850_v39 = vrot.slane %v810_v33, %v7517_v55  ;;  %v813_v41 = vpop.xlane.xlu1 %812 }
 0x25d   :  { %v854_v53 = vrot.slane %v813_v41, %v7517_v55 }
 0x25e   :  { %v870_v57 = vsel %vm869_vm6, %v850_v39, %v868_v38 }
 0x25f   :  { %v816_v58 = vpop.xlane.xlu0 %815  ;;  %v872_v6 = vsel %vm871_vm7, %v854_v53, %v870_v57 }
 0x260   :  { %v858_v59 = vrot.slane %v816_v58, %v7517_v55  ;;  %v819_v60 = vpop.xlane.xlu1 %818 }
 0x261   :  { %v862_v15 = vrot.slane %v819_v60, %v7517_v55 }
 0x262   :  { %v874_v30 = vsel %vm873_vm8, %v858_v59, %v872_v6 }
 0x263   :  { %v876_v31 = vsel %vm875_vm9, %v862_v15, %v874_v30 }
 0x264   :  { %v878_v33 = vsel %vm820_vm10, %v876_v31, -1e+10 }
 0x265   :  { %v880_v38 = vsel %vm879_vm11, %v878_v33, -inf }
 0x266   :  { %v881_v39 = vrot.slane %v880_v38, 4 }
 0x268   :  { %v882_v41 = vmax.f32 %v880_v38, %v881_v39  ;;  %v7548_v38 = vsub.s32 0, %v7169_v17  ;;  %v7553_v39 = vsub.s32 2, %v7169_v17 }
 0x26a   :  { %v883_v58 = vrot.slane %v882_v41, 2  ;;  %9470 = vst [vmem:[#allocation12_spill] sm:$0xff] %v7548_v38  ;;  %9471 = vst [vmem:[#allocation13_spill] sm:$0xff] %v7553_v39 }
 0x26c   :  { %v884_v2 = vmax.f32 %v882_v41, %v883_v58  ;;  %v7561_v58 = vsub.s32 3, %v7169_v17 }
 0x26e   :  { %v885_v1 = vrot.slane %v884_v2, 1  ;;  %9473 = vst [vmem:[#allocation15_spill] sm:$0xff] %v7561_v58 }
 0x270   :  { %v886_v53 = vmax.f32 %v884_v2, %v885_v1 }
 0x272   :  { %v887_v57 = vsub.f32 %v878_v33, %v886_v53  ;;  %v7564_v53 = vsub.s32 6, %v7169_v17 }
 0x274   :  { %v888_v56 = vmul.f32 1.442695, %v887_v57  ;;  %9474 = vst [vmem:[#allocation16_spill] sm:$0xff] %v7564_v53  ;;  %v7569_v57 = vld [vmem:[%s9475_s29 + $0x28] sm:$0xff] }
 0x275   :  { %6141 = vmatpush3.msra.mxu1 %v7569_v57 }
 0x276   :  { %6749 = vpow2.f32 %v888_v56 }
 0x283   :  { %v6750_v60 = vpop.eup %6749 }
 0x284   :  { %v890_v59 = vsel %vm879_vm11, %v6750_v60, 0.0 }
 0x285   :  { %v891_v6 = vrot.slane %v890_v59, 4 }
 0x287   :  { %v892_v55 = vadd.f32 %v891_v6, %v890_v59  ;;  %v7581_v59 = vld [vmem:[%s9475_s29 + $0x20] sm:$0xff]  ;;  %v7586_v6 = vld [vmem:[%s9383_s16 + $0x30] sm:$0xff] }
 0x288   :  { %9477 = vst [vmem:[#allocation18_spill] sm:$0xff] %v7586_v6 }
 0x289   :  { %v893_v15 = vrot.slane %v892_v55, 2 }
 0x28b   :  { %v894_v30 = vadd.f32 %v893_v15, %v892_v55  ;;  %v7556_v55 = vsub.s32 4, %v7169_v17  ;;  %v9478_v15 = vmov 0.0  }
 0x28c   :  { %6142 = vmatprep.subr.mxu1 %v9478_v15 }
 0x28d   :  { %v895_v25 = vrot.slane %v894_v30, 1  ;;  %9472 = vst [vmem:[#allocation14_spill] sm:$0xff] %v7556_v55  ;;  %6143 = vmatpush3.msra.mxu1 %v7581_v59 }
 0x28e   :  { %6144 = vmatprep.subr.mxu1 %v9478_v15 }
 0x28f   :  { %v896_v31 = vadd.f32 %v895_v25, %v894_v30 }
 0x291   :  { %6751 = vrcp.f32 %v896_v31 }
 0x29e   :  { %v6752_v2 = vpop.eup %6751 }
 0x29f   :  { %v898_v1 = vmul.f32 %v6752_v2, %v6750_v60  ;;  %v7574_v60 = vld [vmem:[%s9383_s16 + $0x38] sm:$0xff]  ;;  %v7593_v2 = vsub.s32 5, %v7169_v17 }
 0x2a0   :  { %9476 = vst [vmem:[#allocation17_spill] sm:$0xff] %v7574_v60  ;;  %6181 = vmatpush3.msra.mxu0 %v7574_v60 }
 0x2a1   :  { %v909_v56 = vrot.slane %v898_v1, %v7545_v47  ;;  %v902_v33 = vrot.slane %v898_v1, %v7548_v38  ;;  %v916_v25 = vrot.slane %v898_v1, %v7553_v39  ;;  %v930_v41 = vrot.slane %v898_v1, %v7556_v55  ;;  %6182 = vmatprep.subr.mxu0 %v9478_v15 }
 0x2a2   :  { %v923_v30 = vrot.slane %v898_v1, %v7561_v58  ;;  %v944_v31 = vrot.slane %v898_v1, %v7564_v53  ;;  %9479 = vst [vmem:[#allocation19_spill] sm:$0xff] %v7593_v2  ;;  %6183 = vmatpush3.msra.mxu0 %v7586_v6  ;;  %v937_v53 = vrot.slane %v898_v1, %v7593_v2  ;;  %v7623_v58 = vsub.s32 7, %v7169_v17 }
 0x2a3   :  { %911 = vbcast.lane.b32.xlu1 %v909_v56, 256  ;;  %904 = vbcast.lane.b32.xlu0 %v902_v33, 256  ;;  %v7600_v56 = vld [vmem:[%s9475_s29 + $0x18] sm:$0xff]  ;;  %v7605_v33 = vld [vmem:[%s9383_s16 + $0x28] sm:$0xff] }
 0x2a4   :  { %9480 = vst [vmem:[#allocation20_spill] sm:$0xff] %v7605_v33  ;;  %6184 = vmatprep.subr.mxu0 %v9478_v15  ;;  %6145 = vmatpush3.msra.mxu1 %v7600_v56  ;;  %9482 = vst [vmem:[#allocation22_spill] sm:$0xff] %v7623_v58 }
 0x2a5   :  { %6185 = vmatpush3.msra.mxu0 %v7605_v33  ;;  %6146 = vmatprep.subr.mxu1 %v9478_v15 }
 0x2a6   :  { %6186 = vmatprep.subr.mxu0 %v9478_v15 }
 0x2a7   :  { %918 = vbcast.lane.b32.xlu1 %v916_v25, 256  ;;  %932 = vbcast.lane.b32.xlu0 %v930_v41, 256  ;;  %v7612_v25 = vld [vmem:[%s9475_s29 + $0x10] sm:$0xff]  ;;  %v7617_v41 = vld [vmem:[%s9383_s16 + $0x20] sm:$0xff] }
 0x2a8   :  { %9481 = vst [vmem:[#allocation21_spill] sm:$0xff] %v7617_v41  ;;  %6147 = vmatpush3.msra.mxu1 %v7612_v25  ;;  %6187 = vmatpush3.msra.mxu0 %v7617_v41 }
 0x2a9   :  { %6151 = vmatprep.subr.mxu1 %v9478_v15  ;;  %6202 = vmatprep.subr.mxu0 %v9478_v15 }
 0x2ab   :  { %925 = vbcast.lane.b32.xlu1 %v923_v30, 256  ;;  %946 = vbcast.lane.b32.xlu0 %v944_v31, 256  ;;  %v951_v30 = vrot.slane %v898_v1, %v7623_v58  ;;  %v7632_v31 = vpop.f32.mrf.mxu0 }
 0x2ad   :  { %v6128_v17 = vpop.f32.mrf.mxu0 }
 0x2af   :  { %939 = vbcast.lane.b32.xlu1 %v937_v53, 256 }
 0x2b3   :  { %953 = vbcast.lane.b32.xlu1 %v951_v30, 256 }
 0x315   :  { %v912_v2 = vpop.permute.xlu1 %911  ;;  %v905_v55 = vpop.permute.xlu0 %904 }
 0x316   :  { %v956_v39 = vmul.f32 %v912_v2, %v7212_v28  ;;  %v955_v38 = vmul.f32 %v905_v55, %v7207_v27  ;;  %v979_v47 = vmul.f32 %v7179_v19, %v912_v2  ;;  %v978_v53 = vmul.f32 %v7174_v18, %v905_v55 }
 0x318   :  { %v964_v6 = vsel %vm795_vm2, %v956_v39, 0.0  ;;  %v963_v1 = vsel %vm795_vm2, %v955_v38, 0.0  ;;  %v987_v58 = vsel %vm795_vm2, %v979_v47, 0.0  ;;  %v986_v28 = vsel %vm795_vm2, %v978_v53, 0.0 }
 0x319   :  { %v919_v41 = vpop.permute.xlu1 %918  ;;  %v933_v33 = vpop.permute.xlu0 %932  ;;  %v965_v60 = vadd.f32 %v964_v6, %v963_v1  ;;  %v988_v2 = vadd.f32 %v987_v58, %v986_v28 }
 0x31a   :  { %v957_v30 = vmul.f32 %v919_v41, %v7224_v32  ;;  %v980_v17 = vmul.f32 %v7184_v20, %v919_v41  ;;  %v959_v55 = vmul.f32 %v933_v33, %v7268_v46  ;;  %v982_v1 = vmul.f32 %v7237_v36, %v933_v33 }
 0x31c   :  { %v966_v27 = vsel %vm795_vm2, %v957_v30, 0.0  ;;  %v989_v18 = vsel %vm795_vm2, %v980_v17, 0.0  ;;  %v970_v6 = vsel %vm795_vm2, %v959_v55, 0.0 }
 0x31d   :  { %v926_v19 = vpop.permute.xlu1 %925  ;;  %v967_v32 = vadd.f32 %v966_v27, %v965_v60  ;;  %v947_v49 = vpop.permute.xlu0 %946  ;;  %v990_v41 = vadd.f32 %v989_v18, %v988_v2 }
 0x31e   :  { %v958_v39 = vmul.f32 %v926_v19, %v7232_v35  ;;  %v981_v38 = vmul.f32 %v7195_v23, %v926_v19  ;;  %v961_v46 = vmul.f32 %v947_v49, %v7282_v51  ;;  %v993_v19 = vsel %vm795_vm2, %v982_v1, 0.0  ;;  %v7727_v1 = vld [vmem:[%s9475_s29 + $0x38] sm:$0xff] }
 0x31f   :  { %v984_v2 = vmul.f32 %v7256_v42, %v947_v49  ;;  %v7696_v49 = vld [vmem:[%s9475_s29 + $0x48] sm:$0xff] }
 0x320   :  { %v968_v20 = vsel %vm795_vm2, %v958_v39, 0.0  ;;  %v991_v47 = vsel %vm795_vm2, %v981_v38, 0.0  ;;  %v974_v18 = vsel %vm795_vm2, %v961_v46, 0.0  ;;  %v7665_v38 = vld [vmem:[%s9475_s29 + $0x8] sm:$0xff] }
 0x321   :  { %v969_v53 = vadd.f32 %v968_v20, %v967_v32  ;;  %v940_v30 = vpop.permute.xlu1 %939  ;;  %v992_v17 = vadd.f32 %v991_v47, %v990_v41  ;;  %v7678_v32 = vld [vmem:[%s9475_s29] sm:$0xff]  ;;  %v7683_v20 = vld [vmem:[%s9383_s16 + $0x50] sm:$0xff]  ;;  %v997_v42 = vsel %vm795_vm2, %v984_v2, 0.0 }
 0x322   :  { %v960_v35 = vmul.f32 %v940_v30, %v7277_v50  ;;  %v983_v60 = vmul.f32 %v7242_v37, %v940_v30  ;;  %v7670_v37 = vld [vmem:[%s9383_s16 + $0x58] sm:$0xff]  ;;  %v7713_v30 = vld [vmem:[%s9475_s29 + $0x40] sm:$0xff] }
 0x323   :  { %v971_v23 = vadd.f32 %v970_v6, %v969_v53  ;;  %v994_v39 = vadd.f32 %v993_v19, %v992_v17  ;;  %v7718_v6 = vld [vmem:[%s9383_s16 + $0x40] sm:$0xff]  ;;  %v7747_v17 = vld [vmem:[%s9380_s13 + $0x18] sm:$0xff] }
 0x324   :  { %v972_v58 = vsel %vm795_vm2, %v960_v35, 0.0  ;;  %v995_v51 = vsel %vm795_vm2, %v983_v60, 0.0  ;;  %v7737_v35 = vld [vmem:[%s9475_s29 + $0x30] sm:$0xff]  ;;  %v7774_v60 = vld [vmem:[%s9380_s13] sm:$0xff] }
 0x325   :  { %v973_v28 = vadd.f32 %v972_v58, %v971_v23  ;;  %v954_v27 = vpop.permute.xlu1 %953  ;;  %v7756_v23 = vld [vmem:[%s9380_s13 + $0x10] sm:$0xff]  ;;  %v7765_v58 = vld [vmem:[%s9380_s13 + $0x8] sm:$0xff] }
 0x326   :  { %v962_v55 = vmul.f32 %v954_v27, %v7287_v52  ;;  %v996_v52 = vadd.f32 %v995_v51, %v994_v39  ;;  %v985_v47 = vmul.f32 %v7263_v45, %v954_v27  ;;  %v7701_v45 = vld [vmem:[%s9383_s16 + $0x48] sm:$0xff] }
 0x327   :  { %v975_v36 = vadd.f32 %v974_v18, %v973_v28  ;;  %v7830_v28 = vld [vmem:[%s9381_s14] ss:$0 sm:$0xff] }
 0x328   :  { %v976_v50 = vsel %vm795_vm2, %v962_v55, 0.0  ;;  %v998_v41 = vadd.f32 %v997_v42, %v996_v52  ;;  %v999_v53 = vsel %vm795_vm2, %v985_v47, 0.0  ;;  %v7838_v52 = vld [vmem:[%s9383_s16 + $0x18] sm:$0xff]  ;;  %v7843_v47 = vld [vmem:[%s9383_s16 + $0x10] sm:$0xff]  ;;  %v7857_v42 = vld [vmem:[%s9383_s16] sm:$0xff] }
 0x329   :  { %v977_v33 = vadd.f32 %v976_v50, %v975_v36 }
 0x32a   :  { %v1000_v46 = vadd.f32 %v999_v53, %v998_v41 }
 0x32b   :  { %6149 = vmatmul.mubr.msk.f32.vlgmr.msra.gmra.mxu1 %vm93_vm0, %v977_v33  ;;  %6189 = vmatmul.mubr.msk.f32.vlgmr.msra.gmra.mxu0 %vm93_vm0, %v977_v33 }
 0x32c   :  { %6152 = vmatpush3.msra.mxu1 %v7665_v38  ;;  %6203 = vmatpush3.msra.mxu0 %v7670_v37 }
 0x32d   :  { %6153 = vmatprep.subr.mxu1 %v9478_v15  ;;  %6204 = vmatprep.subr.mxu0 %v9478_v15 }
 0x32e   :  { %6154 = vmatpush3.msra.mxu1 %v7678_v32  ;;  %6205 = vmatpush3.msra.mxu0 %v7683_v20 }
 0x32f   :  { %6155 = vmatprep.mubr.msk.f32.mxu1 %vm7015_vm1, %v9478_v15  ;;  %6158 = vmatprep.subr.mxu1 %v9478_v15 }
 0x330   :  { %6206 = vmatprep.subr.mxu0 %v9478_v15  ;;  %6156 = vmatmul.mubr.msk.f32.vlgmr.msra.gmra.mxu1 %vm9423_vm12, %v7632_v31 }
 0x331   :  { %6159 = vmatpush3.msra.mxu1 %v7696_v49  ;;  %6207 = vmatpush3.msra.mxu0 %v7701_v45 }
 0x332   :  { %6160 = vmatprep.subr.mxu1 %v9478_v15  ;;  %6208 = vmatprep.subr.mxu0 %v9478_v15 }
 0x333   :  { %6161 = vmatpush3.msra.mxu1 %v7713_v30  ;;  %6209 = vmatpush3.msra.mxu0 %v7718_v6 }
 0x334   :  { %6210 = vmatprep.mubr.msk.f32.mxu0 %vm7015_vm1, %v9478_v15  ;;  %6162 = vmatprep.subr.mxu1 %v9478_v15 }
 0x335   :  { %6211 = vmatmul.mubr.msk.f32.vlgmr.msra.gmra.mxu0 %vm93_vm0, %v1000_v46  ;;  %6163 = vmatpush3.msra.mxu1 %v7727_v1 }
 0x336   :  { %6164 = vmatprep.subr.mxu1 %v9478_v15  ;;  %6166 = vmatprep.mubr.msk.f32.mxu1 %vm7015_vm1, %v9478_v15 }
 0x337   :  { %6165 = vmatpush3.msra.mxu1 %v7737_v35  ;;  %6220 = vmatprep.subr.mxu0 %v9478_v15 }
 0x338   :  { %6167 = vmatmul.mubr.msk.f32.vlgmr.msra.gmra.mxu1 %vm93_vm0, %v1000_v46  ;;  %6169 = vmatprep.subr.mxu1 %v9478_v15 }
 0x339   :  { %6170 = vmatpush3.msra.mxu1 %v7747_v17  ;;  %6177 = vmatprep.mubr.msk.f32.mxu1 %vm7015_vm1, %v9478_v15 }
 0x33a   :  { %6171 = vmatprep.subr.mxu1 %v9478_v15  ;;  %6221 = vmatpush3.msra.mxu0 %v7346_v10 }
 0x33b   :  { %6172 = vmatpush3.msra.mxu1 %v7756_v23  ;;  %6222 = vmatprep.subr.mxu0 %v9478_v15 }
 0x33c   :  { %6173 = vmatprep.subr.mxu1 %v9478_v15  ;;  %6223 = vmatpush3.msra.mxu0 %v7351_v11 }
 0x33d   :  { %6174 = vmatpush3.msra.mxu1 %v7765_v58  ;;  %6224 = vmatprep.subr.mxu0 %v9478_v15 }
 0x33e   :  { %6175 = vmatprep.subr.mxu1 %v9478_v15  ;;  %6225 = vmatpush3.msra.mxu0 %v7358_v12 }
 0x33f   :  { %6176 = vmatpush3.msra.mxu1 %v7774_v60  ;;  %6226 = vmatprep.subr.mxu0 %v9478_v15 }
 0x340   :  { %6178 = vmatmul.mubr.msk.f32.vlgmr.msra.gmra.mxu1 %vm93_vm0, %v7337_v9  ;;  %6191 = vmatprep.subr.mxu1 %v9478_v15 }
 0x341   :  { %6199 = vmatprep.mubr.msk.f32.mxu1 %vm7015_vm1, %v9478_v15  ;;  %6227 = vmatpush3.msra.mxu0 %v7365_v13 }
 0x342   :  { %6228 = vmatprep.subr.mxu0 %v9478_v15  ;;  %6252 = vmatprep.mubr.msk.f32.mxu0 %vm7015_vm1, %v9478_v15 }
 0x343   :  { %6229 = vmatpush3.msra.mxu0 %v7425_v3  ;;  %6192 = vmatpush3.msra.mxu1 %v7838_v52 }
 0x344   :  { %6230 = vmatprep.subr.mxu0 %v9478_v15  ;;  %6193 = vmatprep.subr.mxu1 %v9478_v15 }
 0x345   :  { %6231 = vmatpush3.msra.mxu0 %v7430_v5  ;;  %6194 = vmatpush3.msra.mxu1 %v7843_v47 }
 0x346   :  { %6232 = vmatprep.subr.mxu0 %v9478_v15  ;;  %6195 = vmatprep.subr.mxu1 %v9478_v15 }
 0x347   :  { %6233 = vmatpush3.msra.mxu0 %v7440_v7 }
 0x348   :  { %6234 = vmatprep.subr.mxu0 %v9478_v15 }
 0x349   :  { %6235 = vmatpush3.msra.mxu0 %v7445_v14 }
 0x34a   :  { %6236 = vmatprep.subr.mxu0 %v9478_v15 }
 0x34b   :  { %6237 = vmatpush3.msra.mxu0 %v7453_v16 }
 0x34c   :  { %6238 = vmatprep.subr.mxu0 %v9478_v15 }
 0x34d   :  { %6239 = vmatpush3.msra.mxu0 %v7459_v21 }
 0x34e   :  { %6240 = vmatprep.subr.mxu0 %v9478_v15 }
 0x34f   :  { %6241 = vmatpush3.msra.mxu0 %v7468_v22 }
 0x350   :  { %6242 = vmatprep.subr.mxu0 %v9478_v15 }
 0x351   :  { %6243 = vmatpush3.msra.mxu0 %v7475_v24 }
 0x352   :  { %6244 = vmatprep.subr.mxu0 %v9478_v15 }
 0x353   :  { %6245 = vmatpush3.msra.mxu0 %v7482_v26  ;;  %v7823_v26 = vld [vmem:[%s9382_s15] ss:$0 sm:$0xff] }
 0x354   :  { %6246 = vmatprep.subr.mxu0 %v9478_v15 }
 0x355   :  { %6247 = vmatpush3.msra.mxu0 %v7489_v29 }
 0x356   :  { %6248 = vmatprep.subr.mxu0 %v9478_v15 }
 0x357   :  { %6249 = vmatpush3.msra.mxu0 %v7499_v34 }
 0x358   :  { %6250 = vmatprep.subr.mxu0 %v9478_v15 }
 0x359   :  { %6251 = vmatpush3.msra.mxu0 %v7506_v40 }
 0x35a   :  { %6306 = vmatprep.subr.mxu0 %v9478_v15 }
 0x3eb   :  { %v1070_v10 = vpop.f32.mrf.mxu1  ;;  %v7816_v11 = vpop.f32.mrf.mxu0 }
 0x3ed   :  { %v6150_v12 = vpop.f32.mrf.mxu1  ;;  %v6190_v13 = vpop.f32.mrf.mxu0 }
 0x3f0   :  { %v1144_v3 = vpop.f32.mrf.mxu1 }
 0x3f1   :  { %v1145_v5 = vadd.f32 %v1144_v3, %v1070_v10 }
 0x3f2   :  { %v6157_v7 = vpop.f32.mrf.mxu1 }
 0x3f5   :  { %v7818_v14 = vpop.f32.mrf.mxu0 }
 0x3f7   :  { %v6212_v16 = vpop.f32.mrf.mxu0 }
 0x3f8   :  { %v1217_v21 = vpop.f32.mrf.mxu1  ;;  %v7880_v16 = vld [vmem:[%s9383_s16 + $0x60] sm:$0xff] }
 0x3f9   :  { %v1221_v22 = vadd.f32 %v1217_v21, %v1145_v5  ;;  %v7871_v5 = vld [vmem:[%s9383_s16 + $0x68] sm:$0xff] }
 0x3fa   :  { %v6168_v24 = vpop.f32.mrf.mxu1 }
 0x3fb   :  { %v1228_v27 = vadd.f32 %v7830_v28, %v1221_v22 }
 0x400   :  { %v1301_v29 = vpop.f32.mrf.mxu1 }
 0x401   :  { %v1302_v34 = vadd.f32 %v7823_v26, %v1301_v29 }
 0x402   :  { %v6179_v40 = vpop.f32.mrf.mxu1 }
 0x403   :  { %1313 = vrot.lane.b32.xlu0 %v1302_v34, %s7017_s21  ;;  %v1305_v19 = vadd.f32 %v1302_v34, %v1228_v27 }
 0x405   :  { %v5676_v18 = vmul.f32 -1.442695, %v1305_v19 }
 0x407   :  { %6753 = vpow2.f32 %v5676_v18 }
 0x414   :  { %v6754_v55 = vpop.eup %6753 }
 0x415   :  { %v1309_v39 = vadd.f32 1.0, %v6754_v55 }
 0x417   :  { %6755 = vrcp.f32 %v1309_v39 }
 0x424   :  { %v6756_v36 = vpop.eup %6755 }
 0x425   :  { %v1323_v46 = vsub.f32 1.0, %v6756_v36 }
 0x475   :  { %v1314_v51 = vpop.permute.xlu0 %1313 }
 0x476   :  { %v1316_v50 = vmul.f32 %v6756_v36, %v1314_v51 }
 0x478   :  { %1318 = vrot.lane.b32.xlu1 %v1316_v50, %s7017_s21 }
 0x47c   :  { %1329 = vrot.lane.b32.xlu1 %v7337_v9, %s7018_s2  ;;  %v7850_v9 = vld [vmem:[%s9383_s16 + $0x8] sm:$0xff]  ;;  %s5683_s2 = sld [smem:[#allocation3 + $0x1]] }
 0x47d   :  { %6196 = vmatpush3.msra.mxu1 %v7850_v9 }
 0x47e   :  { %6197 = vmatprep.subr.mxu1 %v9478_v15 }
 0x47f   :  { %6198 = vmatpush3.msra.mxu1 %v7857_v42 }
 0x480   :  { %6213 = vmatprep.subr.mxu1 %v9478_v15 }
 0x482   :  { %p1657_p6 = scmp.gt.s32.totalorder %s5683_s2, 0 }
 0x483   :  { %s3662_s2 = scalar_select %p3661_p8, 1, 0 }
 0x484   :  { %s1658_s12 = scalar_select %p1657_p6, 1, 0 }
 0x486   :  { %s1659_s23 = scvt.s32.f32 %s1658_s12  ;;  %s3663_s12 = scvt.s32.f32 %s3662_s2 }
 0x488   :  { %s1664_s8 = ssub.f32 1.0, %s1659_s23 }
 0x4ea   :  { %v1319_v33 = vpop.permute.xlu1 %1318 }
 0x4eb   :  { %v1321_v2 = vadd.f32 %v1319_v33, %v1228_v27 }
 0x4ed   :  { %6757 = vtanh.f32 %v1321_v2 }
 0x4ee   :  { %v1330_v53 = vpop.permute.xlu1 %1329 }
 0x4ef   :  { %v1332_v12 = vmul.f32 %v6756_v36, %v1330_v53 }
 0x4fa   :  { %v6758_v41 = vpop.eup %6757 }
 0x4fb   :  { %1325 = vrot.lane.b32.xlu0 %v6758_v41, %s7019_s28 }
 0x56d   :  { %v1326_v10 = vpop.permute.xlu0 %1325 }
 0x56e   :  { %v1328_v13 = vmul.f32 %v1326_v10, %v1323_v46 }
 0x570   :  { %v7864_v3 = vadd.f32 %v1332_v12, %v1328_v13 }
 0x572   :  { %1405 = vrot.lane.b32.xlu0 %v7864_v3, %s7019_s28 }
 0x5e4   :  { %v7873_v7 = vpop.permute.xlu0 %1405 }
 0x5e5   :  { %6200 = vmatmul.mubr.msk.f32.vlgmr.msra.gmra.mxu1 %vm93_vm0, %v7873_v7 }
 0x5e6   :  { %6214 = vmatpush3.msra.mxu1 %v7871_v5  ;;  %6217 = vmatprep.mubr.msk.f32.mxu1 %vm7015_vm1, %v9478_v15 }
 0x5e7   :  { %6215 = vmatprep.subr.mxu1 %v9478_v15 }
 0x5e8   :  { %6216 = vmatpush3.msra.mxu1 %v7880_v16 }
 0x5e9   :  { %6255 = vmatprep.subr.mxu1 %v9478_v15  ;;  %6218 = vmatmul.mubr.msk.f32.vlgmr.msra.gmra.mxu1 %vm9423_vm12, %v7632_v31 }
 0x5ea   :  { %6256 = vmatpush3.msra.mxu1 %v7303_v61  ;;  %6263 = vmatprep.mubr.msk.f32.mxu1 %vm7015_vm1, %v9478_v15 }
 0x5eb   :  { %6257 = vmatprep.subr.mxu1 %v9478_v15 }
 0x5ec   :  { %6258 = vmatpush3.msra.mxu1 %v7310_v62 }
 0x5ed   :  { %6259 = vmatprep.subr.mxu1 %v9478_v15 }
 0x5ee   :  { %6260 = vmatpush3.msra.mxu1 %v7321_v63 }
 0x5ef   :  { %6261 = vmatprep.subr.mxu1 %v9478_v15 }
 0x5f0   :  { %6262 = vmatpush3.msra.mxu1 %v7328_v0 }
 0x5f1   :  { %6264 = vmatmul.mubr.msk.f32.vlgmr.msra.gmra.mxu1 %vm93_vm0, %v7873_v7  ;;  %6266 = vmatprep.subr.mxu1 %v9478_v15 }
 0x5f2   :  { %6267 = vmatpush3.msra.mxu1 %v7569_v57  ;;  %6274 = vmatprep.mubr.msk.f32.mxu1 %vm7015_vm1, %v9478_v15  ;;  %v7917_v57 = vld [vmem:[%s9384_s17] ss:$0 sm:$0xff] }
 0x5f3   :  { %6268 = vmatprep.subr.mxu1 %v9478_v15 }
 0x5f4   :  { %6269 = vmatpush3.msra.mxu1 %v7581_v59 }
 0x5f5   :  { %6270 = vmatprep.subr.mxu1 %v9478_v15 }
 0x5f6   :  { %6271 = vmatpush3.msra.mxu1 %v7600_v56 }
 0x5f7   :  { %6272 = vmatprep.subr.mxu1 %v9478_v15 }
 0x5f8   :  { %6273 = vmatpush3.msra.mxu1 %v7612_v25 }
 0x5f9   :  { %6277 = vmatprep.subr.mxu1 %v9478_v15 }
 0x6a5   :  { %v1475_v61 = vpop.f32.mrf.mxu1 }
 0x6a6   :  { %v1476_v62 = vadd.f32 %v1475_v61, %v7816_v11 }
 0x6a7   :  { %v6201_v63 = vpop.f32.mrf.mxu1 }
 0x6a8   :  { %v1549_v0 = vadd.f32 %v7818_v14, %v1476_v62  ;;  %v9483_v62 = vld [vmem:[#allocation6_spill] sm:$0xff] }
 0x6a9   :  { %v1616_v59 = vpop.f32.mrf.mxu1 }
 0x6aa   :  { %v1620_v31 = vadd.f32 %v1616_v59, %v1549_v0  ;;  %v9484_v0 = vld [vmem:[#allocation5_spill] sm:$0xff] }
 0x6ab   :  { %v6219_v56 = vpop.f32.mrf.mxu1 }
 0x6ac   :  { %v1627_v25 = vadd.f32 %v7917_v57, %v1620_v31  ;;  %v9485_v31 = vld [vmem:[#allocation7_spill] sm:$0xff] }
 0x6ae   :  { %1628 = vst [vmem:[%s9385_s18] sm:$0x3] %v1627_v25  ;;  %v1630_v11 = vsel %vm1629_vm13, %v1627_v25, -3e+38  ;;  %v9486_v25 = vld [vmem:[#allocation8_spill] sm:$0xff] }
 0x6af   :  { %v1632_v14 = vsel %vm1631_vm14, %v1630_v11, -inf }
 0x6b0   :  { %1633 = vmax.xlane.f32.xlu1 %v1632_v14 }
 0x6b1   :  { %v1804_v21 = vpop.f32.mrf.mxu1 }
 0x6b2   :  { %v1809_v22 = vadd.f32 %v1804_v21, %v7378_v44  ;;  %v1811_v24 = vadd.f32 %v1804_v21, %v7382_v48  ;;  %v1813_v34 = vadd.f32 %v1804_v21, %v7386_v54  ;;  %v1815_v40 = vadd.f32 %v1804_v21, %v7397_v4 }
 0x6b3   :  { %v6265_v29 = vpop.f32.mrf.mxu1  ;;  %v1808_v63 = vadd.f32 %v1804_v21, %v9483_v62  ;;  %v1810_v59 = vadd.f32 %v1804_v21, %v9484_v0  ;;  %v1812_v56 = vadd.f32 %v1804_v21, %v9485_v31 }
 0x6b4   :  { %6759 = vtanh.f32 %v1809_v22 }
 0x6b5   :  { %6761 = vtanh.f32 %v1811_v24 }
 0x6b6   :  { %6763 = vtanh.f32 %v1813_v34 }
 0x6b7   :  { %6765 = vtanh.f32 %v1815_v40 }
 0x6b8   :  { %6767 = vtanh.f32 %v1808_v63  ;;  %v1665_v63 = vstv %s1664_s8 }
 0x6b9   :  { %6769 = vtanh.f32 %v1810_v59 }
 0x6ba   :  { %6771 = vtanh.f32 %v1812_v56 }
 0x6c1   :  { %v6760_v27 = vpop.eup %6759 }
 0x6c2   :  { %v6762_v19 = vpop.eup %6761  ;;  %v1825_v18 = vmul.f32 %v6760_v27, %v7405_v8 }
 0x6c3   :  { %v1827_v39 = vmul.f32 %v6762_v19, %v7405_v8  ;;  %v6764_v36 = vpop.eup %6763 }
 0x6c4   :  { %v1835_v55 = vsel %vm795_vm2, %v1825_v18, 0.0  ;;  %v1829_v50 = vmul.f32 %v6764_v36, %v7405_v8  ;;  %v6766_v33 = vpop.eup %6765 }
 0x6c5   :  { %1836 = vadd.xlane.f32.xlu1 %v1835_v55  ;;  %v1841_v51 = vsel %vm795_vm2, %v1827_v39, 0.0  ;;  %v1831_v41 = vmul.f32 %v6766_v33, %v7405_v8  ;;  %v6768_v22 = vpop.eup %6767 }
 0x6c6   :  { %v1847_v2 = vsel %vm795_vm2, %v1829_v50, 0.0  ;;  %v1824_v40 = vmul.f32 %v6768_v22, %v7405_v8  ;;  %v6770_v27 = vpop.eup %6769 }
 0x6c7   :  { %v1853_v53 = vsel %vm795_vm2, %v1831_v41, 0.0  ;;  %v1826_v18 = vmul.f32 %v6770_v27, %v7405_v8  ;;  %v6772_v55 = vpop.eup %6771 }
 0x6c8   :  { %v1832_v19 = vsel %vm795_vm2, %v1824_v40, 0.0 }
 0x6c9   :  { %1842 = vadd.xlane.f32.xlu1 %v1841_v51  ;;  %v1838_v39 = vsel %vm795_vm2, %v1826_v18, 0.0 }
 0x6cd   :  { %1848 = vadd.xlane.f32.xlu1 %v1847_v2 }
 0x6d1   :  { %1854 = vadd.xlane.f32.xlu1 %v1853_v53 }
 0x739   :  { %v1634_v46 = vpop.xlane.xlu1 %1633 }
 0x73a   :  { %vm1635_vm15 = vcmp.eq.f32.partialorder %v1630_v11, %v1634_v46  ;;  %v1814_v11 = vadd.f32 %v1804_v21, %v9486_v25  ;;  %v1828_v21 = vmul.f32 %v6772_v55, %v7405_v8 }
 0x73b   :  { %vm1636_vm12 = vmand %vm1635_vm15, %vm1629_vm13 }
 0x73c   :  { %v1637_v10 = vsel %vm1636_vm12, %v7513_v43, 128  ;;  %6773 = vtanh.f32 %v1814_v11  ;;  %v1844_v51 = vsel %vm795_vm2, %v1828_v21, 0.0 }
 0x73d   :  { %v1638_v12 = vsel %vm1631_vm14, %v1637_v10, 2147483647 }
 0x73e   :  { %v1640_v13 = vshra.s32 %v1638_v12, 16  ;;  %v1639_v14 = vand.u32 65535, %v1638_v12  ;;  %v5684_v12 = vld [vmem:[%s9466_s3 + $0x2] sm:$0x3] }
 0x740   :  { %v1642_v61 = vcvt.s32.f32 %v1640_v13  ;;  %v1641_v29 = vcvt.s32.f32 %v1639_v14  ;;  %v1662_v13 = vstv %s1659_s23  ;;  %v9487_v14 = vld [vmem:[#allocation9_spill] sm:$0xff]  ;;  %s3668_s23 = ssub.f32 1.0, %s3663_s12 }
 0x741   :  { %v1663_v56 = vmul.f32 %v5684_v12, %v1662_v13 }
 0x742   :  { %1643 = vmin.xlane.f32.xlu0 %v1642_v61 }
 0x749   :  { %v6774_v36 = vpop.eup %6773 }
 0x74a   :  { %v1830_v50 = vmul.f32 %v6774_v36, %v7405_v8  ;;  %v9488_v36 = vld [vmem:[#allocation17_spill] sm:$0xff] }
 0x74c   :  { %v1850_v33 = vsel %vm795_vm2, %v1830_v50, 0.0 }
 0x74e   :  { %v1837_v2 = vpop.xlane.xlu1 %1836 }
 0x752   :  { %v1843_v8 = vpop.xlane.xlu1 %1842 }
 0x756   :  { %v1849_v40 = vpop.xlane.xlu1 %1848 }
 0x7cb   :  { %v1644_v24 = vpop.xlane.xlu0 %1643 }
 0x7cc   :  { %vm1645_vm12 = vcmp.eq.f32.partialorder %v1642_v61, %v1644_v24  ;;  %v1650_v41 = vcvt.f32.s32 %v1644_v24 }
 0x7cd   :  { %v1646_v34 = vsel %vm1645_vm12, %v1641_v29, inf  ;;  %v1871_v29 = vrot.slane %v1837_v2, %v9487_v14  ;;  %v1855_v2 = vpop.xlane.xlu1 %1854  ;;  %vm9510_vm12 = vcmask 130048  }
 0x7ce   :  { %1647 = vmin.xlane.f32.xlu0 %v1646_v34  ;;  %v1651_v46 = vshll.u32 %v1650_v41, 16  ;;  %v1895_v13 = vrot.slane %v1855_v2, %v9487_v14 }
 0x7d2   :  { %1833 = vadd.xlane.f32.xlu0 %v1832_v19 }
 0x7d6   :  { %1839 = vadd.xlane.f32.xlu0 %v1838_v39  ;;  %v1879_v39 = vrot.slane %v1843_v8, %v9487_v14 }
 0x7da   :  { %1845 = vadd.xlane.f32.xlu0 %v1844_v51 }
 0x7de   :  { %1851 = vadd.xlane.f32.xlu0 %v1850_v33  ;;  %v9489_v33 = vld [vmem:[#allocation18_spill] sm:$0xff] }
 0x857   :  { %v1648_v53 = vpop.xlane.xlu0 %1647 }
 0x858   :  { %v1649_v10 = vcvt.f32.s32 %v1648_v53  ;;  %v1887_v53 = vrot.slane %v1849_v40, %v9487_v14 }
 0x85a   :  { %v1652_v61 = vadd.s32 %v1651_v46, %v1649_v10  ;;  %v9490_v10 = vld [vmem:[#allocation20_spill] sm:$0xff] }
 0x85b   :  { %v1834_v59 = vpop.xlane.xlu0 %1833 }
 0x85c   :  { %vm1653_vm15 = vcmp.eq.s32.totalorder %v7513_v43, %v1652_v61  ;;  %v1867_v22 = vrot.slane %v1834_v59, %v9487_v14  ;;  %v9491_v61 = vld [vmem:[#allocation21_spill] sm:$0xff] }
 0x85d   :  { %v5682_v11 = vsel %vm1653_vm15, 1.0, %v9478_v15  ;;  %vm9511_vm15 = vmmov %vm9510_vm12 }
 0x85e   :  { %v1666_v24 = vmul.f32 %v5682_v11, %v1665_v63  ;;  %v1896_v18 = vsel %vm863_vm3, %v1871_v29, %v1867_v22 }
 0x85f   :  { %v1840_v34 = vpop.xlane.xlu0 %1839 }
 0x860   :  { %v1875_v27 = vrot.slane %v1840_v34, %v9487_v14  ;;  %v1667_v19 = vadd.f32 %v1666_v24, %v1663_v56 }
 0x862   :  { %v1897_v55 = vsel %vm865_vm4, %v1875_v27, %v1896_v18  ;;  %6253 = vmatmul.mubr.f32.vlgmr.msra.gmra.mxu0 %v1667_v19 }
 0x863   :  { %v1846_v21 = vpop.xlane.xlu0 %1845  ;;  %6307 = vmatpush3.msra.mxu0 %v9488_v36  ;;  %6314 = vmatprep.mubr.msk.f32.mxu0 %vm7015_vm1, %v9478_v15  ;;  %v1898_v50 = vsel %vm867_vm5, %v1879_v39, %v1897_v55 }
 0x864   :  { %v1883_v51 = vrot.slane %v1846_v21, %v9487_v14  ;;  %6308 = vmatprep.subr.mxu0 %v9478_v15 }
 0x865   :  { %6309 = vmatpush3.msra.mxu0 %v9489_v33 }
 0x866   :  { %v1899_v41 = vsel %vm869_vm6, %v1883_v51, %v1898_v50  ;;  %6310 = vmatprep.subr.mxu0 %v9478_v15 }
 0x867   :  { %v1852_v46 = vpop.xlane.xlu0 %1851  ;;  %6311 = vmatpush3.msra.mxu0 %v9490_v10  ;;  %v1900_v8 = vsel %vm871_vm7, %v1887_v53, %v1899_v41  ;;  %v9493_v10 = vld [vmem:[#allocation11_spill] sm:$0xff] }
 0x868   :  { %v1891_v12 = vrot.slane %v1852_v46, %v9487_v14  ;;  %6312 = vmatprep.subr.mxu0 %v9478_v15 }
 0x869   :  { %6313 = vmatpush3.msra.mxu0 %v9491_v61  ;;  %v9495_v61 = vld [vmem:[#allocation13_spill] sm:$0xff] }
 0x86a   :  { %v1901_v63 = vsel %vm873_vm8, %v1891_v12, %v1900_v8  ;;  %6328 = vmatprep.subr.mxu0 %v9478_v15 }
 0x86b   :  { %v1902_v59 = vsel %vm875_vm9, %v1895_v13, %v1901_v63  ;;  %v9494_v13 = vld [vmem:[#allocation12_spill] sm:$0xff] }
 0x86c   :  { %v1904_v11 = vsel %vm820_vm10, %v1902_v59, -1e+10  ;;  %v9496_v59 = vld [vmem:[#allocation14_spill] sm:$0xff] }
 0x86d   :  { %v1905_v22 = vsel %vm879_vm11, %v1904_v11, -inf }
 0x86e   :  { %v1906_v24 = vrot.slane %v1905_v22, 4 }
 0x870   :  { %v1907_v29 = vmax.f32 %v1905_v22, %v1906_v24  ;;  %v9497_v22 = vld [vmem:[#allocation15_spill] sm:$0xff] }
 0x872   :  { %v1908_v34 = vrot.slane %v1907_v29, 2 }
 0x874   :  { %v1909_v40 = vmax.f32 %v1907_v29, %v1908_v34  ;;  %v9498_v29 = vld [vmem:[#allocation16_spill] sm:$0xff] }
 0x876   :  { %v1910_v27 = vrot.slane %v1909_v40, 1 }
 0x878   :  { %v1911_v19 = vmax.f32 %v1909_v40, %v1910_v27  ;;  %v9499_v40 = vld [vmem:[#allocation19_spill] sm:$0xff] }
 0x87a   :  { %v1912_v18 = vsub.f32 %v1904_v11, %v1911_v19  ;;  %v9500_v19 = vld [vmem:[#allocation22_spill] sm:$0xff] }
 0x87c   :  { %v1913_v55 = vmul.f32 1.442695, %v1912_v18 }
 0x87e   :  { %6775 = vpow2.f32 %v1913_v55 }
 0x88b   :  { %v6776_v39 = vpop.eup %6775 }
 0x88c   :  { %v1915_v21 = vsel %vm879_vm11, %v6776_v39, 0.0 }
 0x88d   :  { %v1916_v36 = vrot.slane %v1915_v21, 4 }
 0x88f   :  { %v1917_v51 = vadd.f32 %v1916_v36, %v1915_v21  ;;  %v8000_v21 = vld [vmem:[%s9461_s24 + $0x2] sm:$0x3] }
 0x890   :  { %9501 = vst [vmem:[#allocation17_spill] sm:$0xff] %v8000_v21 }
 0x891   :  { %v1918_v50 = vrot.slane %v1917_v51, 2 }
 0x893   :  { %v1919_v33 = vadd.f32 %v1918_v50, %v1917_v51  ;;  %v8006_v51 = vld [vmem:[%s9461_s24] sm:$0x3] }
 0x894   :  { %9502 = vst [vmem:[#allocation18_spill] sm:$0xff] %v8006_v51 }
 0x895   :  { %v1920_v2 = vrot.slane %v1919_v33, 1 }
 0x897   :  { %v1921_v41 = vadd.f32 %v1920_v2, %v1919_v33  ;;  %v8012_v33 = vld [vmem:[%s9461_s24 + $0x12] sm:$0x3] }
 0x898   :  { %9503 = vst [vmem:[#allocation20_spill] sm:$0xff] %v8012_v33 }
 0x899   :  { %6777 = vrcp.f32 %v1921_v41  ;;  %v8018_v41 = vld [vmem:[%s9461_s24 + $0x10] sm:$0x3] }
 0x89a   :  { %9504 = vst [vmem:[#allocation21_spill] sm:$0xff] %v8018_v41 }
 0x8a6   :  { %v6778_v53 = vpop.eup %6777 }
 0x8a7   :  { %v1923_v46 = vmul.f32 %v6778_v53, %v6776_v39 }
 0x8a9   :  { %v1934_v12 = vrot.slane %v1923_v46, %v9493_v10  ;;  %v1927_v8 = vrot.slane %v1923_v46, %v9494_v13  ;;  %v1941_v63 = vrot.slane %v1923_v46, %v9495_v61  ;;  %v1955_v11 = vrot.slane %v1923_v46, %v9496_v59 }
 0x8aa   :  { %v1948_v24 = vrot.slane %v1923_v46, %v9497_v22  ;;  %v1969_v34 = vrot.slane %v1923_v46, %v9498_v29  ;;  %v1962_v27 = vrot.slane %v1923_v46, %v9499_v40  ;;  %v1976_v18 = vrot.slane %v1923_v46, %v9500_v19 }
 0x8ab   :  { %1936 = vbcast.lane.b32.xlu1 %v1934_v12, 256  ;;  %1929 = vbcast.lane.b32.xlu0 %v1927_v8, 256 }
 0x8af   :  { %1943 = vbcast.lane.b32.xlu1 %v1941_v63, 256  ;;  %1957 = vbcast.lane.b32.xlu0 %v1955_v11, 256  ;;  %v8026_v11 = vld [vmem:[%s9461_s24 + $0x4] sm:$0x3] }
 0x8b0   :  { %9505 = vst [vmem:[#allocation23_spill] sm:$0xff] %v8026_v11 }
 0x8b3   :  { %1950 = vbcast.lane.b32.xlu1 %v1948_v24, 256  ;;  %1971 = vbcast.lane.b32.xlu0 %v1969_v34, 256  ;;  %v8032_v34 = vld [vmem:[%s9461_s24 + $0x14] sm:$0x3] }
 0x8b4   :  { %9506 = vst [vmem:[#allocation24_spill] sm:$0xff] %v8032_v34 }
 0x8b7   :  { %1964 = vbcast.lane.b32.xlu1 %v1962_v27, 256 }
 0x8bb   :  { %1978 = vbcast.lane.b32.xlu1 %v1976_v18, 256 }
 0x91d   :  { %v1937_v55 = vpop.permute.xlu1 %1936  ;;  %v1930_v39 = vpop.permute.xlu0 %1929 }
 0x91e   :  { %v1981_v36 = vmul.f32 %v8000_v21, %v1937_v55  ;;  %v1980_v50 = vmul.f32 %v8006_v51, %v1930_v39  ;;  %v2004_v2 = vmul.f32 %v8012_v33, %v1937_v55  ;;  %v2003_v53 = vmul.f32 %v8018_v41, %v1930_v39  ;;  %v8044_v51 = vld [vmem:[%s9461_s24 + $0x8] sm:$0x3] }
 0x91f   :  { %9507 = vst [vmem:[#allocation25_spill] sm:$0xff] %v8044_v51 }
 0x920   :  { %v1989_v8 = vsel %vm795_vm2, %v1981_v36, 0.0  ;;  %v1988_v63 = vsel %vm795_vm2, %v1980_v50, 0.0  ;;  %v2012_v55 = vsel %vm795_vm2, %v2004_v2, 0.0  ;;  %v2011_v39 = vsel %vm795_vm2, %v2003_v53, 0.0  ;;  %v8050_v2 = vld [vmem:[%s9461_s24 + $0x6] sm:$0x3] }
 0x921   :  { %v1944_v46 = vpop.permute.xlu1 %1943  ;;  %v1958_v12 = vpop.permute.xlu0 %1957  ;;  %v1990_v41 = vadd.f32 %v1989_v8, %v1988_v63  ;;  %9508 = vst [vmem:[#allocation26_spill] sm:$0xff] %v8050_v2  ;;  %v8056_v8 = vld [vmem:[%s9461_s24 + $0x16] sm:$0x3] }
 0x922   :  { %v1982_v24 = vmul.f32 %v8026_v11, %v1944_v46  ;;  %v2005_v27 = vmul.f32 %v8032_v34, %v1944_v46  ;;  %v8035_v18 = vpop.f32.mrf.mxu0  ;;  %v1984_v46 = vmul.f32 %v8044_v51, %v1958_v12 }
 0x924   :  { %v1991_v36 = vsel %vm795_vm2, %v1982_v24, 0.0  ;;  %v6254_v50 = vpop.f32.mrf.mxu0  ;;  %v2014_v11 = vsel %vm795_vm2, %v2005_v27, 0.0  ;;  %v2013_v24 = vadd.f32 %v2012_v55, %v2011_v39  ;;  %v1995_v22 = vsel %vm795_vm2, %v1984_v46, 0.0 }
 0x925   :  { %v1951_v33 = vpop.permute.xlu1 %1950  ;;  %v1992_v27 = vadd.f32 %v1991_v36, %v1990_v41  ;;  %v1972_v50 = vpop.permute.xlu0 %1971 }
 0x926   :  { %v1983_v53 = vmul.f32 %v8050_v2, %v1951_v33  ;;  %v2006_v63 = vmul.f32 %v8056_v8, %v1951_v33  ;;  %v2015_v21 = vadd.f32 %v2014_v11, %v2013_v24  ;;  %v8065_v2 = vld [vmem:[%s9461_s24 + $0x18] sm:$0x3]  ;;  %v8071_v33 = vld [vmem:[%s9461_s24 + $0xc] sm:$0x3]  ;;  %v8077_v11 = vld [vmem:[%s9461_s24 + $0xa] sm:$0x3] }
 0x927   :  { %v2007_v19 = vmul.f32 %v8065_v2, %v1958_v12  ;;  %9509 = vst [vmem:[#allocation27_spill] sm:$0xff] %v8071_v33  ;;  %v1986_v41 = vmul.f32 %v8071_v33, %v1972_v50  ;;  %v8084_v12 = vld [vmem:[%s9461_s24 + $0x1a] sm:$0x3] }
 0x928   :  { %v1993_v34 = vsel %vm795_vm2, %v1983_v53, 0.0  ;;  %v2016_v51 = vsel %vm795_vm2, %v2006_v63, 0.0 }
 0x929   :  { %v1994_v29 = vadd.f32 %v1993_v34, %v1992_v27  ;;  %v1965_v59 = vpop.permute.xlu1 %1964  ;;  %v2017_v55 = vadd.f32 %v2016_v51, %v2015_v21  ;;  %v2018_v24 = vsel %vm795_vm2, %v2007_v19, 0.0  ;;  %v1999_v27 = vsel %vm795_vm2, %v1986_v41, 0.0  ;;  %v8092_v21 = vld [vmem:[%s9461_s24 + $0xe] sm:$0x3]  ;;  %v8100_v19 = vld [vmem:[%s9461_s24 + $0x1c] sm:$0x3] }
 0x92a   :  { %v1985_v34 = vmul.f32 %v8077_v11, %v1965_v59  ;;  %v2008_v46 = vmul.f32 %v8084_v12, %v1965_v59  ;;  %v2009_v41 = vmul.f32 %v8100_v19, %v1972_v50 }
 0x92b   :  { %v1996_v39 = vadd.f32 %v1995_v22, %v1994_v29  ;;  %v2019_v29 = vadd.f32 %v2018_v24, %v2017_v55  ;;  %v8108_v55 = vld [vmem:[%s9461_s24 + $0x1e] sm:$0x3] }
 0x92c   :  { %v1997_v36 = vsel %vm795_vm2, %v1985_v34, 0.0  ;;  %v2020_v34 = vsel %vm795_vm2, %v2008_v46, 0.0  ;;  %v2022_v50 = vsel %vm795_vm2, %v2009_v41, 0.0 }
 0x92d   :  { %v1998_v53 = vadd.f32 %v1997_v36, %v1996_v39  ;;  %v1979_v63 = vpop.permute.xlu1 %1978  ;;  %v2021_v39 = vadd.f32 %v2020_v34, %v2019_v29 }
 0x92e   :  { %v1987_v22 = vmul.f32 %v8092_v21, %v1979_v63  ;;  %v2010_v36 = vmul.f32 %v8108_v55, %v1979_v63 }
 0x92f   :  { %v2000_v51 = vadd.f32 %v1999_v27, %v1998_v53 }
 0x930   :  { %v2001_v33 = vsel %vm795_vm2, %v1987_v22, 0.0 }
 0x931   :  { %v2002_v59 = vadd.f32 %v2001_v33, %v2000_v51  ;;  %v2023_v33 = vadd.f32 %v2022_v50, %v2021_v39 }
 0x933   :  { %6275 = vmatmul.mubr.msk.f32.vlgmr.msra.gmra.mxu1 %vm93_vm0, %v2002_v59  ;;  %6315 = vmatmul.mubr.msk.f32.vlgmr.msra.gmra.mxu0 %vm93_vm0, %v2002_v59 }
 0x934   :  { %6278 = vmatpush3.msra.mxu1 %v7665_v38  ;;  %6329 = vmatpush3.msra.mxu0 %v7670_v37  ;;  %v2024_v38 = vsel %vm795_vm2, %v2010_v36, 0.0 }
 0x935   :  { %6279 = vmatprep.subr.mxu1 %v9478_v15  ;;  %6330 = vmatprep.subr.mxu0 %v9478_v15  ;;  %v2025_v37 = vadd.f32 %v2024_v38, %v2023_v33 }
 0x936   :  { %6280 = vmatpush3.msra.mxu1 %v7678_v32  ;;  %6331 = vmatpush3.msra.mxu0 %v7683_v20  ;;  %v8150_v32 = vld [vmem:[%s9378_s11 + $0x78] sm:$0xff]  ;;  %v8159_v20 = vld [vmem:[%s9378_s11 + $0x70] sm:$0xff] }
 0x937   :  { %6281 = vmatprep.mubr.msk.f32.mxu1 %vm7015_vm1, %v9478_v15  ;;  %6284 = vmatprep.subr.mxu1 %v9478_v15 }
 0x938   :  { %6332 = vmatprep.subr.mxu0 %v9478_v15  ;;  %6282 = vmatmul.mubr.msk.f32.vlgmr.msra.gmra.mxu1 %vm9510_vm12, %v8035_v18 }
 0x939   :  { %6285 = vmatpush3.msra.mxu1 %v7696_v49  ;;  %6333 = vmatpush3.msra.mxu0 %v7701_v45  ;;  %v8168_v49 = vld [vmem:[%s9378_s11 + $0x68] sm:$0xff]  ;;  %v8183_v45 = vld [vmem:[%s9378_s11 + $0x60] sm:$0xff] }
 0x93a   :  { %6286 = vmatprep.subr.mxu1 %v9478_v15  ;;  %6334 = vmatprep.subr.mxu0 %v9478_v15 }
 0x93b   :  { %6287 = vmatpush3.msra.mxu1 %v7713_v30  ;;  %6335 = vmatpush3.msra.mxu0 %v7718_v6  ;;  %v8192_v30 = vld [vmem:[%s9378_s11 + $0x58] sm:$0xff]  ;;  %v8201_v6 = vld [vmem:[%s9378_s11 + $0x50] sm:$0xff] }
 0x93c   :  { %6336 = vmatprep.mubr.msk.f32.mxu0 %vm7015_vm1, %v9478_v15  ;;  %6288 = vmatprep.subr.mxu1 %v9478_v15 }
 0x93d   :  { %6337 = vmatmul.mubr.msk.f32.vlgmr.msra.gmra.mxu0 %vm93_vm0, %v2025_v37  ;;  %6289 = vmatpush3.msra.mxu1 %v7727_v1  ;;  %v8210_v1 = vld [vmem:[%s9378_s11 + $0x48] sm:$0xff] }
 0x93e   :  { %6290 = vmatprep.subr.mxu1 %v9478_v15  ;;  %6292 = vmatprep.mubr.msk.f32.mxu1 %vm7015_vm1, %v9478_v15 }
 0x93f   :  { %6291 = vmatpush3.msra.mxu1 %v7737_v35  ;;  %6346 = vmatprep.subr.mxu0 %v9478_v15  ;;  %v8219_v35 = vld [vmem:[%s9378_s11 + $0x40] sm:$0xff] }
 0x940   :  { %6293 = vmatmul.mubr.msk.f32.vlgmr.msra.gmra.mxu1 %vm93_vm0, %v2025_v37  ;;  %6295 = vmatprep.subr.mxu1 %v9478_v15 }
 0x941   :  { %6296 = vmatpush3.msra.mxu1 %v7747_v17  ;;  %6303 = vmatprep.mubr.msk.f32.mxu1 %vm7015_vm1, %v9478_v15  ;;  %v8226_v17 = vld [vmem:[%s9378_s11 + $0x38] sm:$0xff] }
 0x942   :  { %6297 = vmatprep.subr.mxu1 %v9478_v15  ;;  %6347 = vmatpush3.msra.mxu0 %v8150_v32 }
 0x943   :  { %6298 = vmatpush3.msra.mxu1 %v7756_v23  ;;  %6348 = vmatprep.subr.mxu0 %v9478_v15  ;;  %v8233_v23 = vld [vmem:[%s9378_s11 + $0x30] sm:$0xff] }
 0x944   :  { %6299 = vmatprep.subr.mxu1 %v9478_v15  ;;  %6349 = vmatpush3.msra.mxu0 %v8159_v20 }
 0x945   :  { %6300 = vmatpush3.msra.mxu1 %v7765_v58  ;;  %6350 = vmatprep.subr.mxu0 %v9478_v15  ;;  %v8240_v58 = vld [vmem:[%s9378_s11 + $0x28] sm:$0xff] }
 0x946   :  { %6301 = vmatprep.subr.mxu1 %v9478_v15  ;;  %6351 = vmatpush3.msra.mxu0 %v8168_v49 }
 0x947   :  { %6302 = vmatpush3.msra.mxu1 %v7774_v60  ;;  %6352 = vmatprep.subr.mxu0 %v9478_v15  ;;  %v8247_v60 = vld [vmem:[%s9378_s11 + $0x20] sm:$0xff] }
 0x948   :  { %6304 = vmatmul.mubr.msk.f32.vlgmr.msra.gmra.mxu1 %vm93_vm0, %v7873_v7  ;;  %6317 = vmatprep.subr.mxu1 %v9478_v15 }
 0x949   :  { %6318 = vmatpush3.msra.mxu1 %v7838_v52  ;;  %6325 = vmatprep.mubr.msk.f32.mxu1 %vm7015_vm1, %v9478_v15  ;;  %v8254_v52 = vld [vmem:[%s9378_s11 + $0x18] sm:$0xff] }
 0x94a   :  { %6319 = vmatprep.subr.mxu1 %v9478_v15  ;;  %6353 = vmatpush3.msra.mxu0 %v8183_v45 }
 0x94b   :  { %6320 = vmatpush3.msra.mxu1 %v7843_v47  ;;  %6354 = vmatprep.subr.mxu0 %v9478_v15  ;;  %v8261_v47 = vld [vmem:[%s9378_s11 + $0x10] sm:$0xff] }
 0x94c   :  { %6321 = vmatprep.subr.mxu1 %v9478_v15  ;;  %6355 = vmatpush3.msra.mxu0 %v8192_v30 }
 0x94d   :  { %6322 = vmatpush3.msra.mxu1 %v7850_v9  ;;  %6356 = vmatprep.subr.mxu0 %v9478_v15  ;;  %v8268_v9 = vld [vmem:[%s9378_s11 + $0x8] sm:$0xff] }
 0x94e   :  { %6323 = vmatprep.subr.mxu1 %v9478_v15  ;;  %6357 = vmatpush3.msra.mxu0 %v8201_v6 }
 0x94f   :  { %6324 = vmatpush3.msra.mxu1 %v7857_v42  ;;  %6358 = vmatprep.subr.mxu0 %v9478_v15  ;;  %v8275_v42 = vld [vmem:[%s9378_s11] sm:$0xff] }
 0x950   :  { %6339 = vmatprep.subr.mxu1 %v9478_v15  ;;  %6359 = vmatpush3.msra.mxu0 %v8210_v1 }
 0x951   :  { %6360 = vmatprep.subr.mxu0 %v9478_v15  ;;  %6378 = vmatprep.mubr.msk.f32.mxu0 %vm7015_vm1, %v9478_v15 }
 0x952   :  { %6361 = vmatpush3.msra.mxu0 %v8219_v35 }
 0x953   :  { %6362 = vmatprep.subr.mxu0 %v9478_v15 }
 0x954   :  { %6363 = vmatpush3.msra.mxu0 %v8226_v17 }
 0x955   :  { %6364 = vmatprep.subr.mxu0 %v9478_v15 }
 0x956   :  { %6365 = vmatpush3.msra.mxu0 %v8233_v23 }
 0x957   :  { %6366 = vmatprep.subr.mxu0 %v9478_v15 }
 0x958   :  { %6367 = vmatpush3.msra.mxu0 %v8240_v58 }
 0x959   :  { %6368 = vmatprep.subr.mxu0 %v9478_v15 }
 0x95a   :  { %6369 = vmatpush3.msra.mxu0 %v8247_v60 }
 0x95b   :  { %6370 = vmatprep.subr.mxu0 %v9478_v15 }
 0x95c   :  { %6371 = vmatpush3.msra.mxu0 %v8254_v52 }
 0x95d   :  { %6372 = vmatprep.subr.mxu0 %v9478_v15 }
 0x95e   :  { %6373 = vmatpush3.msra.mxu0 %v8261_v47 }
 0x95f   :  { %6374 = vmatprep.subr.mxu0 %v9478_v15 }
 0x960   :  { %6375 = vmatpush3.msra.mxu0 %v8268_v9 }
 0x961   :  { %6376 = vmatprep.subr.mxu0 %v9478_v15 }
 0x962   :  { %6377 = vmatpush3.msra.mxu0 %v8275_v42 }
 0x963   :  { %6432 = vmatprep.subr.mxu0 %v9478_v15 }
 0x9f3   :  { %v2095_v7 = vpop.f32.mrf.mxu1  ;;  %v8279_v46 = vpop.f32.mrf.mxu0 }
 0x9f5   :  { %v6276_v53 = vpop.f32.mrf.mxu1  ;;  %v6316_v63 = vpop.f32.mrf.mxu0 }
 0x9f8   :  { %v2168_v24 = vpop.f32.mrf.mxu1 }
 0x9f9   :  { %v2169_v27 = vadd.f32 %v2168_v24, %v2095_v7 }
 0x9fa   :  { %v6283_v22 = vpop.f32.mrf.mxu1 }
 0x9fd   :  { %v8281_v29 = vpop.f32.mrf.mxu0 }
 0x9ff   :  { %v6338_v51 = vpop.f32.mrf.mxu0 }
 0xa00   :  { %v2241_v34 = vpop.f32.mrf.mxu1 }
 0xa01   :  { %v2245_v59 = vadd.f32 %v2241_v34, %v2169_v27 }
 0xa02   :  { %v6294_v41 = vpop.f32.mrf.mxu1 }
 0xa03   :  { %v2246_v33 = vadd.f32 %v7830_v28, %v2245_v59 }
 0xa08   :  { %v2313_v39 = vpop.f32.mrf.mxu1 }
 0xa09   :  { %v2314_v36 = vadd.f32 %v7823_v26, %v2313_v39 }
 0xa0a   :  { %v6305_v50 = vpop.f32.mrf.mxu1 }
 0xa0b   :  { %2325 = vrot.lane.b32.xlu0 %v2314_v36, %s7017_s21  ;;  %v2317_v38 = vadd.f32 %v2314_v36, %v2246_v33  ;;  %v8340_v50 = vld [vmem:[%s9475_s29 + $0x28] sm:$0xff] }
 0xa0d   :  { %v5690_v37 = vmul.f32 -1.442695, %v2317_v38  ;;  %v8356_v38 = vld [vmem:[%s9475_s29 + $0x18] sm:$0xff] }
 0xa0f   :  { %6779 = vpow2.f32 %v5690_v37  ;;  %v8363_v37 = vld [vmem:[%s9475_s29 + $0x10] sm:$0xff] }
 0xa1c   :  { %v6780_v53 = vpop.eup %6779 }
 0xa1d   :  { %v2321_v7 = vadd.f32 1.0, %v6780_v53 }
 0xa1f   :  { %6781 = vrcp.f32 %v2321_v7 }
 0xa2c   :  { %v6782_v63 = vpop.eup %6781 }
 0xa2d   :  { %v2335_v34 = vsub.f32 1.0, %v6782_v63  ;;  %v2341_v28 = vmul.f32 %v6782_v63, %v7864_v3  ;;  %v8308_v3 = vld [vmem:[%s9374_s7 + $0x18] sm:$0xff] }
 0xa7d   :  { %v2326_v24 = vpop.permute.xlu0 %2325 }
 0xa7e   :  { %v2328_v22 = vmul.f32 %v6782_v63, %v2326_v24 }
 0xa80   :  { %2330 = vrot.lane.b32.xlu1 %v2328_v22, %s7017_s21 }
 0xaf2   :  { %v2331_v27 = vpop.permute.xlu1 %2330 }
 0xaf3   :  { %v2333_v51 = vadd.f32 %v2331_v27, %v2246_v33  ;;  %v8349_v33 = vld [vmem:[%s9475_s29 + $0x20] sm:$0xff] }
 0xaf5   :  { %6783 = vtanh.f32 %v2333_v51 }
 0xb02   :  { %v6784_v26 = vpop.eup %6783 }
 0xb03   :  { %2337 = vrot.lane.b32.xlu0 %v6784_v26, %s7019_s28 }
 0xb75   :  { %v2338_v41 = vpop.permute.xlu0 %2337 }
 0xb76   :  { %v2340_v59 = vmul.f32 %v2338_v41, %v2335_v34 }
 0xb78   :  { %v8289_v39 = vadd.f32 %v2341_v28, %v2340_v59 }
 0xb7a   :  { %2414 = vrot.lane.b32.xlu1 %v8289_v39, %s7019_s28 }
 0xbec   :  { %v8293_v36 = vpop.permute.xlu1 %2414 }
 0xbed   :  { %6326 = vmatmul.mubr.msk.f32.vlgmr.msra.gmra.mxu1 %vm93_vm0, %v8293_v36 }
 0xbee   :  { %6340 = vmatpush3.msra.mxu1 %v7871_v5  ;;  %6343 = vmatprep.mubr.msk.f32.mxu1 %vm7015_vm1, %v9478_v15  ;;  %v8317_v5 = vld [vmem:[%s9374_s7 + $0x10] sm:$0xff] }
 0xbef   :  { %6341 = vmatprep.subr.mxu1 %v9478_v15 }
 0xbf0   :  { %6342 = vmatpush3.msra.mxu1 %v7880_v16  ;;  %v8324_v16 = vld [vmem:[%s9374_s7 + $0x8] sm:$0xff] }
 0xbf1   :  { %6381 = vmatprep.subr.mxu1 %v9478_v15  ;;  %6344 = vmatmul.mubr.msk.f32.vlgmr.msra.gmra.mxu1 %vm9511_vm15, %v8035_v18  ;;  %v8331_v18 = vld [vmem:[%s9374_s7] sm:$0xff] }
 0xbf2   :  { %6382 = vmatpush3.msra.mxu1 %v8308_v3  ;;  %6389 = vmatprep.mubr.msk.f32.mxu1 %vm7015_vm1, %v9478_v15 }
 0xbf3   :  { %6383 = vmatprep.subr.mxu1 %v9478_v15 }
 0xbf4   :  { %6384 = vmatpush3.msra.mxu1 %v8317_v5 }
 0xbf5   :  { %6385 = vmatprep.subr.mxu1 %v9478_v15 }
 0xbf6   :  { %6386 = vmatpush3.msra.mxu1 %v8324_v16 }
 0xbf7   :  { %6387 = vmatprep.subr.mxu1 %v9478_v15 }
 0xbf8   :  { %6388 = vmatpush3.msra.mxu1 %v8331_v18 }
 0xbf9   :  { %6390 = vmatmul.mubr.msk.f32.vlgmr.msra.gmra.mxu1 %vm93_vm0, %v8293_v36  ;;  %6392 = vmatprep.subr.mxu1 %v9478_v15 }
 0xbfa   :  { %6393 = vmatpush3.msra.mxu1 %v8340_v50  ;;  %6400 = vmatprep.mubr.msk.f32.mxu1 %vm7015_vm1, %v9478_v15 }
 0xbfb   :  { %6394 = vmatprep.subr.mxu1 %v9478_v15 }
 0xbfc   :  { %6395 = vmatpush3.msra.mxu1 %v8349_v33 }
 0xbfd   :  { %6396 = vmatprep.subr.mxu1 %v9478_v15 }
 0xbfe   :  { %6397 = vmatpush3.msra.mxu1 %v8356_v38 }
 0xbff   :  { %6398 = vmatprep.subr.mxu1 %v9478_v15 }
 0xc00   :  { %6399 = vmatpush3.msra.mxu1 %v8363_v37 }
 0xc01   :  { %6403 = vmatprep.subr.mxu1 %v9478_v15 }
 0xcad   :  { %v2484_v53 = vpop.f32.mrf.mxu1 }
 0xcae   :  { %v2485_v7 = vadd.f32 %v2484_v53, %v8279_v46 }
 0xcaf   :  { %v6327_v63 = vpop.f32.mrf.mxu1 }
 0xcb0   :  { %v2558_v24 = vadd.f32 %v8281_v29, %v2485_v7 }
 0xcb1   :  { %v2625_v22 = vpop.f32.mrf.mxu1 }
 0xcb2   :  { %v2629_v27 = vadd.f32 %v2625_v22, %v2558_v24 }
 0xcb3   :  { %v6345_v51 = vpop.f32.mrf.mxu1 }
 0xcb4   :  { %v2630_v26 = vadd.f32 %v7917_v57, %v2629_v27  ;;  %v8386_v51 = vld [vmem:[%s9377_s10] ss:$0 sm:$0xff] }
 0xcb6   :  { %5695 = vst [vmem:[%s9385_s18 + $0x2] sm:$0x3] %v2630_v26  ;;  %v2633_v34 = vsel %vm1629_vm13, %v2630_v26, -3e+38 }
 0xcb7   :  { %v2634_v41 = vsel %vm1631_vm14, %v2633_v34, -inf }
 0xcb8   :  { %2635 = vmax.xlane.f32.xlu0 %v2634_v41 }
 0xcb9   :  { %v2806_v28 = vpop.f32.mrf.mxu1 }
 0xcba   :  { %v2812_v59 = vadd.f32 %v2806_v28, %v9484_v0  ;;  %v2814_v29 = vadd.f32 %v2806_v28, %v9485_v31  ;;  %v2816_v57 = vadd.f32 %v2806_v28, %v9486_v25 }
 0xcbb   :  { %v6391_v46 = vpop.f32.mrf.mxu1 }
 0xcbc   :  { %6785 = vtanh.f32 %v2812_v59 }
 0xcbd   :  { %6787 = vtanh.f32 %v2814_v29 }
 0xcbe   :  { %6789 = vtanh.f32 %v2816_v57 }
 0xcc9   :  { %v6786_v24 = vpop.eup %6785 }
 0xcca   :  { %v2828_v26 = vmul.f32 %v8386_v51, %v6786_v24  ;;  %v6788_v41 = vpop.eup %6787  ;;  %v2811_v24 = vadd.f32 %v2806_v28, %v7378_v44 }
 0xccb   :  { %v2830_v46 = vmul.f32 %v8386_v51, %v6788_v41  ;;  %v6790_v59 = vpop.eup %6789 }
 0xccc   :  { %v2832_v57 = vmul.f32 %v8386_v51, %v6790_v59 }
 0xccd   :  { %v2846_v29 = vsel %vm795_vm2, %v2830_v46, 0.0 }
 0xd41   :  { %v2636_v53 = vpop.xlane.xlu0 %2635 }
 0xd42   :  { %vm2637_vm12 = vcmp.eq.f32.partialorder %v2633_v34, %v2636_v53  ;;  %v2840_v34 = vsel %vm795_vm2, %v2828_v26, 0.0  ;;  %v2852_v53 = vsel %vm795_vm2, %v2832_v57, 0.0  ;;  %v2815_v26 = vadd.f32 %v2806_v28, %v7386_v54 }
 0xd43   :  { %vm2638_vm15 = vmand %vm2637_vm12, %vm1629_vm13 }
 0xd44   :  { %v2639_v7 = vsel %vm2638_vm15, %v7513_v43, 128 }
 0xd45   :  { %v2640_v63 = vsel %vm1631_vm14, %v2639_v7, 2147483647  ;;  %v2810_v7 = vadd.f32 %v2806_v28, %v9483_v62 }
 0xd46   :  { %v2642_v22 = vshra.s32 %v2640_v63, 16  ;;  %v2641_v41 = vand.u32 65535, %v2640_v63 }
 0xd47   :  { %6791 = vtanh.f32 %v2810_v7 }
 0xd48   :  { %v2644_v27 = vcvt.s32.f32 %v2642_v22  ;;  %6793 = vtanh.f32 %v2811_v24  ;;  %v2813_v22 = vadd.f32 %v2806_v28, %v7382_v48 }
 0xd4a   :  { %2645 = vmin.xlane.f32.xlu1 %v2644_v27  ;;  %6795 = vtanh.f32 %v2813_v22 }
 0xd4b   :  { %6797 = vtanh.f32 %v2815_v26 }
 0xd4e   :  { %2841 = vadd.xlane.f32.xlu1 %v2840_v34  ;;  %v2817_v34 = vadd.f32 %v2806_v28, %v7397_v4 }
 0xd50   :  { %6799 = vtanh.f32 %v2817_v34 }
 0xd52   :  { %2847 = vadd.xlane.f32.xlu1 %v2846_v29  ;;  %v2643_v29 = vcvt.s32.f32 %v2641_v41 }
 0xd54   :  { %v6792_v46 = vpop.eup %6791 }
 0xd55   :  { %v6794_v7 = vpop.eup %6793 }
 0xd56   :  { %2853 = vadd.xlane.f32.xlu1 %v2852_v53  ;;  %v2826_v53 = vmul.f32 %v8386_v51, %v6792_v46  ;;  %v2827_v22 = vmul.f32 %v8386_v51, %v6794_v7 }
 0xd57   :  { %v6796_v25 = vpop.eup %6795 }
 0xd58   :  { %v2834_v24 = vsel %vm795_vm2, %v2826_v53, 0.0  ;;  %v2837_v63 = vsel %vm795_vm2, %v2827_v22, 0.0  ;;  %v2829_v28 = vmul.f32 %v8386_v51, %v6796_v25  ;;  %v6798_v26 = vpop.eup %6797  ;;  %v5698_v22 = vld [vmem:[%s9466_s3 + $0x4] sm:$0x3] }
 0xd59   :  { %v2831_v41 = vmul.f32 %v8386_v51, %v6798_v26  ;;  %v2667_v26 = vstv %s2666_s4 }
 0xd5b   :  { %v2849_v34 = vsel %vm795_vm2, %v2831_v41, 0.0 }
 0xd5d   :  { %v6800_v46 = vpop.eup %6799 }
 0xdd3   :  { %v2646_v59 = vpop.xlane.xlu1 %2645 }
 0xdd4   :  { %vm2647_vm12 = vcmp.eq.f32.partialorder %v2644_v27, %v2646_v59  ;;  %v2843_v27 = vsel %vm795_vm2, %v2829_v28, 0.0  ;;  %v2652_v25 = vcvt.f32.s32 %v2646_v59 }
 0xdd5   :  { %v2648_v57 = vsel %vm2647_vm12, %v2643_v29, inf  ;;  %v2833_v29 = vmul.f32 %v8386_v51, %v6800_v46  ;;  %vm9529_vm12 = vcmask 130048  }
 0xdd6   :  { %2649 = vmin.xlane.f32.xlu0 %v2648_v57  ;;  %v2653_v7 = vshll.u32 %v2652_v25, 16 }
 0xdd7   :  { %v2855_v57 = vsel %vm795_vm2, %v2833_v29, 0.0  ;;  %v2842_v41 = vpop.xlane.xlu1 %2841 }
 0xdda   :  { %2835 = vadd.xlane.f32.xlu0 %v2834_v24 }
 0xddb   :  { %v2848_v31 = vpop.xlane.xlu1 %2847 }
 0xdde   :  { %2838 = vadd.xlane.f32.xlu0 %v2837_v63  ;;  %v2664_v63 = vstv %s2661_s27 }
 0xddf   :  { %v2665_v46 = vmul.f32 %v5698_v22, %v2664_v63  ;;  %v8421_v22 = vld [vmem:[%s9383_s16 + $0x38] sm:$0xff] }
 0xde0   :  { %9512 = vst [vmem:[#allocation28_spill] sm:$0xff] %v8421_v22 }
 0xde2   :  { %2844 = vadd.xlane.f32.xlu0 %v2843_v27 }
 0xde6   :  { %2850 = vadd.xlane.f32.xlu0 %v2849_v34 }
 0xdea   :  { %2856 = vadd.xlane.f32.xlu0 %v2855_v57 }
 0xe5f   :  { %v2650_v53 = vpop.xlane.xlu0 %2649 }
 0xe60   :  { %v2651_v24 = vcvt.f32.s32 %v2650_v53 }
 0xe62   :  { %v2654_v28 = vadd.s32 %v2653_v7, %v2651_v24  ;;  %v2877_v7 = vrot.slane %v2842_v41, %v9487_v14  ;;  %v2885_v41 = vrot.slane %v2848_v31, %v9487_v14 }
 0xe63   :  { %v2836_v27 = vpop.xlane.xlu0 %2835 }
 0xe64   :  { %vm2655_vm15 = vcmp.eq.s32.totalorder %v7513_v43, %v2654_v28  ;;  %v2869_v57 = vrot.slane %v2836_v27, %v9487_v14 }
 0xe65   :  { %v5696_v34 = vsel %vm2655_vm15, 1.0, %v9478_v15  ;;  %vm9530_vm15 = vmmov %vm9529_vm12 }
 0xe66   :  { %v2668_v29 = vmul.f32 %v5696_v34, %v2667_v26  ;;  %v8432_v26 = vld [vmem:[%s9383_s16 + $0x30] sm:$0xff]  ;;  %v8441_v34 = vld [vmem:[%s9383_s16 + $0x28] sm:$0xff] }
 0xe67   :  { %v2839_v59 = vpop.xlane.xlu0 %2838  ;;  %9513 = vst [vmem:[#allocation29_spill] sm:$0xff] %v8432_v26  ;;  %9514 = vst [vmem:[#allocation30_spill] sm:$0xff] %v8441_v34 }
 0xe68   :  { %v2873_v25 = vrot.slane %v2839_v59, %v9487_v14  ;;  %v2669_v53 = vadd.f32 %v2668_v29, %v2665_v46 }
 0xe6a   :  { %v2898_v0 = vsel %vm863_vm3, %v2873_v25, %v2869_v57  ;;  %6379 = vmatmul.mubr.f32.vlgmr.msra.gmra.mxu0 %v2669_v53  ;;  %v8450_v57 = vld [vmem:[%s9383_s16 + $0x20] sm:$0xff] }
 0xe6b   :  { %v2845_v24 = vpop.xlane.xlu0 %2844  ;;  %6433 = vmatpush3.msra.mxu0 %v8421_v22  ;;  %6440 = vmatprep.mubr.msk.f32.mxu0 %vm7015_vm1, %v9478_v15  ;;  %v2899_v28 = vsel %vm865_vm4, %v2877_v7, %v2898_v0  ;;  %v2854_v0 = vpop.xlane.xlu1 %2853  ;;  %9515 = vst [vmem:[#allocation31_spill] sm:$0xff] %v8450_v57 }
 0xe6c   :  { %v2881_v63 = vrot.slane %v2845_v24, %v9487_v14  ;;  %6434 = vmatprep.subr.mxu0 %v9478_v15  ;;  %v2893_v25 = vrot.slane %v2854_v0, %v9487_v14 }
 0xe6d   :  { %6435 = vmatpush3.msra.mxu0 %v8432_v26 }
 0xe6e   :  { %v2900_v27 = vsel %vm867_vm5, %v2881_v63, %v2899_v28  ;;  %6436 = vmatprep.subr.mxu0 %v9478_v15 }
 0xe6f   :  { %v2851_v46 = vpop.xlane.xlu0 %2850  ;;  %6437 = vmatpush3.msra.mxu0 %v8441_v34  ;;  %v2901_v59 = vsel %vm869_vm6, %v2885_v41, %v2900_v27 }
 0xe70   :  { %v2889_v29 = vrot.slane %v2851_v46, %v9487_v14  ;;  %6438 = vmatprep.subr.mxu0 %v9478_v15 }
 0xe71   :  { %6439 = vmatpush3.msra.mxu0 %v8450_v57 }
 0xe72   :  { %v2902_v31 = vsel %vm871_vm7, %v2889_v29, %v2901_v59  ;;  %6454 = vmatprep.subr.mxu0 %v9478_v15 }
 0xe73   :  { %v2857_v53 = vpop.xlane.xlu0 %2856  ;;  %v2903_v24 = vsel %vm873_vm8, %v2893_v25, %v2902_v31 }
 0xe74   :  { %v2897_v7 = vrot.slane %v2857_v53, %v9487_v14 }
 0xe76   :  { %v2904_v63 = vsel %vm875_vm9, %v2897_v7, %v2903_v24 }
 0xe77   :  { %v2906_v28 = vsel %vm820_vm10, %v2904_v63, -1e+10 }
 0xe78   :  { %v2907_v27 = vsel %vm879_vm11, %v2906_v28, -inf }
 0xe79   :  { %v2908_v41 = vrot.slane %v2907_v27, 4 }
 0xe7b   :  { %v2909_v46 = vmax.f32 %v2907_v27, %v2908_v41 }
 0xe7d   :  { %v2910_v57 = vrot.slane %v2909_v46, 2 }
 0xe7f   :  { %v2911_v29 = vmax.f32 %v2909_v46, %v2910_v57  ;;  %v9517_v46 = vld [vmem:[#allocation15_spill] sm:$0xff] }
 0xe81   :  { %v2912_v59 = vrot.slane %v2911_v29, 1 }
 0xe83   :  { %v2913_v34 = vmax.f32 %v2911_v29, %v2912_v59 }
 0xe85   :  { %v2914_v26 = vsub.f32 %v2906_v28, %v2913_v34  ;;  %v9516_v28 = vld [vmem:[#allocation22_spill] sm:$0xff] }
 0xe87   :  { %v2915_v0 = vmul.f32 1.442695, %v2914_v26 }
 0xe89   :  { %6801 = vpow2.f32 %v2915_v0 }
 0xe96   :  { %v6802_v22 = vpop.eup %6801 }
 0xe97   :  { %v2917_v53 = vsel %vm879_vm11, %v6802_v22, 0.0 }
 0xe98   :  { %v2918_v31 = vrot.slane %v2917_v53, 4 }
 0xe9a   :  { %v2919_v25 = vadd.f32 %v2918_v31, %v2917_v53 }
 0xe9c   :  { %v2920_v7 = vrot.slane %v2919_v25, 2 }
 0xe9e   :  { %v2921_v24 = vadd.f32 %v2920_v7, %v2919_v25  ;;  %v9520_v25 = vld [vmem:[#allocation17_spill] sm:$0xff] }
 0xea0   :  { %v2922_v56 = vrot.slane %v2921_v24, 1 }
 0xea2   :  { %v2923_v63 = vadd.f32 %v2922_v56, %v2921_v24  ;;  %v9518_v56 = vld [vmem:[#allocation14_spill] sm:$0xff] }
 0xea3   :  { %v9521_v24 = vld [vmem:[#allocation18_spill] sm:$0xff] }
 0xea4   :  { %6803 = vrcp.f32 %v2923_v63 }
 0xeb1   :  { %v6804_v14 = vpop.eup %6803 }
 0xeb2   :  { %v2925_v62 = vmul.f32 %v6804_v14, %v6802_v22  ;;  %v9519_v22 = vld [vmem:[#allocation16_spill] sm:$0xff] }
 0xeb4   :  { %v2936_v27 = vrot.slane %v2925_v62, %v9493_v10  ;;  %v2929_v57 = vrot.slane %v2925_v62, %v9494_v13  ;;  %v2964_v26 = vrot.slane %v2925_v62, %v9499_v40  ;;  %v2943_v34 = vrot.slane %v2925_v62, %v9495_v61  ;;  %v9526_v61 = vld [vmem:[#allocation26_spill] sm:$0xff] }
 0xeb5   :  { %v2978_v41 = vrot.slane %v2925_v62, %v9516_v28  ;;  %v2950_v29 = vrot.slane %v2925_v62, %v9517_v46  ;;  %v2957_v14 = vrot.slane %v2925_v62, %v9518_v56  ;;  %v2971_v59 = vrot.slane %v2925_v62, %v9519_v22  ;;  %v9524_v62 = vld [vmem:[#allocation21_spill] sm:$0xff]  ;;  %v9525_v56 = vld [vmem:[#allocation24_spill] sm:$0xff] }
 0xeb6   :  { %2938 = vbcast.lane.b32.xlu0 %v2936_v27, 256  ;;  %2931 = vbcast.lane.b32.xlu1 %v2929_v57, 256 }
 0xeba   :  { %2966 = vbcast.lane.b32.xlu0 %v2964_v26, 256  ;;  %2945 = vbcast.lane.b32.xlu1 %v2943_v34, 256  ;;  %v9522_v26 = vld [vmem:[#allocation23_spill] sm:$0xff] }
 0xebe   :  { %2980 = vbcast.lane.b32.xlu0 %v2978_v41, 256  ;;  %2952 = vbcast.lane.b32.xlu1 %v2950_v29, 256  ;;  %v9523_v29 = vld [vmem:[#allocation20_spill] sm:$0xff] }
 0xec2   :  { %2959 = vbcast.lane.b32.xlu1 %v2957_v14, 256 }
 0xec6   :  { %2973 = vbcast.lane.b32.xlu1 %v2971_v59, 256 }
 0xf28   :  { %v2932_v0 = vpop.permute.xlu1 %2931  ;;  %v2939_v53 = vpop.permute.xlu0 %2938 }
 0xf29   :  { %v2983_v7 = vmul.f32 %v9520_v25, %v2939_v53  ;;  %v2982_v63 = vmul.f32 %v9521_v24, %v2932_v0  ;;  %v3006_v28 = vmul.f32 %v9523_v29, %v2939_v53  ;;  %v3005_v59 = vmul.f32 %v9524_v62, %v2932_v0 }
 0xf2a   :  { %v8471_v31 = vpop.f32.mrf.mxu0 }
 0xf2b   :  { %v2991_v41 = vsel %vm795_vm2, %v2983_v7, 0.0  ;;  %v2990_v14 = vsel %vm795_vm2, %v2982_v63, 0.0  ;;  %v3014_v13 = vsel %vm795_vm2, %v3006_v28, 0.0 }
 0xf2c   :  { %v6380_v27 = vpop.f32.mrf.mxu0  ;;  %v2946_v57 = vpop.permute.xlu1 %2945 }
 0xf2d   :  { %v2984_v34 = vmul.f32 %v9522_v26, %v2946_v57  ;;  %v2967_v40 = vpop.permute.xlu0 %2966  ;;  %v3007_v25 = vmul.f32 %v9525_v56, %v2946_v57  ;;  %v2992_v27 = vadd.f32 %v2991_v41, %v2990_v14  ;;  %v3013_v26 = vsel %vm795_vm2, %v3005_v59, 0.0 }
 0xf2e   :  { %v2987_v0 = vmul.f32 %v8077_v11, %v2967_v40 }
 0xf2f   :  { %v2993_v46 = vsel %vm795_vm2, %v2984_v34, 0.0  ;;  %v3016_v62 = vsel %vm795_vm2, %v3007_v25, 0.0  ;;  %v9527_v34 = vld [vmem:[#allocation25_spill] sm:$0xff]  ;;  %v9528_v25 = vld [vmem:[#allocation27_spill] sm:$0xff] }
 0xf30   :  { %v2953_v22 = vpop.permute.xlu1 %2952  ;;  %v2994_v63 = vadd.f32 %v2993_v46, %v2992_v27  ;;  %v2999_v46 = vsel %vm795_vm2, %v2987_v0, 0.0 }
 0xf31   :  { %v2985_v24 = vmul.f32 %v9526_v61, %v2953_v22  ;;  %v3008_v53 = vmul.f32 %v8056_v8, %v2953_v22  ;;  %v3015_v61 = vadd.f32 %v3014_v13, %v3013_v26  ;;  %v2981_v57 = vpop.permute.xlu0 %2980  ;;  %v3010_v13 = vmul.f32 %v8084_v12, %v2967_v40  ;;  %v8508_v40 = vld [vmem:[%s9475_s29 + $0x8] sm:$0xff]  ;;  %v8514_v12 = vld [vmem:[%s9383_s16 + $0x58] sm:$0xff] }
 0xf32   :  { %v2989_v11 = vmul.f32 %v8092_v21, %v2981_v57 }
 0xf33   :  { %v2995_v7 = vsel %vm795_vm2, %v2985_v24, 0.0  ;;  %v3018_v28 = vsel %vm795_vm2, %v3008_v53, 0.0  ;;  %v3017_v59 = vadd.f32 %v3016_v62, %v3015_v61  ;;  %v3022_v0 = vsel %vm795_vm2, %v3010_v13, 0.0  ;;  %v8529_v61 = vld [vmem:[%s9383_s16 + $0x50] sm:$0xff] }
 0xf34   :  { %v2960_v29 = vpop.permute.xlu1 %2959  ;;  %v2996_v41 = vadd.f32 %v2995_v7, %v2994_v63 }
 0xf35   :  { %v2986_v10 = vmul.f32 %v9527_v34, %v2960_v29  ;;  %v3009_v56 = vmul.f32 %v8065_v2, %v2960_v29  ;;  %v3019_v34 = vadd.f32 %v3018_v28, %v3017_v59  ;;  %v8556_v59 = vld [vmem:[%s9475_s29 + $0x40] sm:$0xff] }
 0xf37   :  { %v2997_v14 = vsel %vm795_vm2, %v2986_v10, 0.0  ;;  %v3020_v22 = vsel %vm795_vm2, %v3009_v56, 0.0  ;;  %v3003_v10 = vsel %vm795_vm2, %v2989_v11, 0.0  ;;  %v8523_v56 = vld [vmem:[%s9475_s29] sm:$0xff]  ;;  %v8590_v11 = vld [vmem:[%s9380_s13 + $0x18] sm:$0xff] }
 0xf38   :  { %v2998_v24 = vadd.f32 %v2997_v14, %v2996_v41  ;;  %v2974_v8 = vpop.permute.xlu1 %2973  ;;  %v3021_v7 = vadd.f32 %v3020_v22, %v3019_v34  ;;  %v8600_v22 = vld [vmem:[%s9380_s13 + $0x10] sm:$0xff] }
 0xf39   :  { %v2988_v27 = vmul.f32 %v9528_v25, %v2974_v8  ;;  %v3011_v63 = vmul.f32 %v8100_v19, %v2974_v8  ;;  %v3012_v19 = vmul.f32 %v8108_v55, %v2981_v57  ;;  %v8541_v55 = vld [vmem:[%s9475_s29 + $0x48] sm:$0xff]  ;;  %v8572_v8 = vld [vmem:[%s9475_s29 + $0x38] sm:$0xff] }
 0xf3a   :  { %v3000_v2 = vadd.f32 %v2999_v46, %v2998_v24  ;;  %v3023_v21 = vadd.f32 %v3022_v0, %v3021_v7  ;;  %v8547_v57 = vld [vmem:[%s9383_s16 + $0x48] sm:$0xff]  ;;  %v8562_v24 = vld [vmem:[%s9383_s16 + $0x40] sm:$0xff]  ;;  %v8581_v46 = vld [vmem:[%s9475_s29 + $0x30] sm:$0xff] }
 0xf3b   :  { %v3001_v26 = vsel %vm795_vm2, %v2988_v27, 0.0  ;;  %v3024_v62 = vsel %vm795_vm2, %v3011_v63, 0.0  ;;  %v3026_v28 = vsel %vm795_vm2, %v3012_v19, 0.0  ;;  %v8609_v25 = vld [vmem:[%s9380_s13 + $0x8] sm:$0xff] }
 0xf3c   :  { %v3002_v53 = vadd.f32 %v3001_v26, %v3000_v2  ;;  %v3025_v41 = vadd.f32 %v3024_v62, %v3023_v21  ;;  %v8697_v26 = vld [vmem:[%s9381_s14] ss:$0 sm:$0xff] }
 0xf3e   :  { %v3004_v29 = vadd.f32 %v3003_v10, %v3002_v53  ;;  %v3027_v14 = vadd.f32 %v3026_v28, %v3025_v41 }
 0xf40   :  { %6401 = vmatmul.mubr.msk.f32.vlgmr.msra.gmra.mxu1 %vm93_vm0, %v3004_v29  ;;  %6441 = vmatmul.mubr.msk.f32.vlgmr.msra.gmra.mxu0 %vm93_vm0, %v3004_v29 }
 0xf41   :  { %6404 = vmatpush3.msra.mxu1 %v8508_v40  ;;  %6455 = vmatpush3.msra.mxu0 %v8514_v12 }
 0xf42   :  { %6405 = vmatprep.subr.mxu1 %v9478_v15  ;;  %6456 = vmatprep.subr.mxu0 %v9478_v15 }
 0xf43   :  { %6406 = vmatpush3.msra.mxu1 %v8523_v56  ;;  %6457 = vmatpush3.msra.mxu0 %v8529_v61 }
 0xf44   :  { %6407 = vmatprep.mubr.msk.f32.mxu1 %vm7015_vm1, %v9478_v15  ;;  %6410 = vmatprep.subr.mxu1 %v9478_v15 }
 0xf45   :  { %6458 = vmatprep.subr.mxu0 %v9478_v15  ;;  %6408 = vmatmul.mubr.msk.f32.vlgmr.msra.gmra.mxu1 %vm9529_vm12, %v8471_v31 }
 0xf46   :  { %6411 = vmatpush3.msra.mxu1 %v8541_v55  ;;  %6459 = vmatpush3.msra.mxu0 %v8547_v57 }
 0xf47   :  { %6412 = vmatprep.subr.mxu1 %v9478_v15  ;;  %6460 = vmatprep.subr.mxu0 %v9478_v15 }
 0xf48   :  { %6413 = vmatpush3.msra.mxu1 %v8556_v59  ;;  %6461 = vmatpush3.msra.mxu0 %v8562_v24 }
 0xf49   :  { %6462 = vmatprep.mubr.msk.f32.mxu0 %vm7015_vm1, %v9478_v15  ;;  %6414 = vmatprep.subr.mxu1 %v9478_v15 }
 0xf4a   :  { %6463 = vmatmul.mubr.msk.f32.vlgmr.msra.gmra.mxu0 %vm93_vm0, %v3027_v14  ;;  %6415 = vmatpush3.msra.mxu1 %v8572_v8 }
 0xf4b   :  { %6416 = vmatprep.subr.mxu1 %v9478_v15  ;;  %6418 = vmatprep.mubr.msk.f32.mxu1 %vm7015_vm1, %v9478_v15 }
 0xf4c   :  { %6417 = vmatpush3.msra.mxu1 %v8581_v46  ;;  %6472 = vmatprep.subr.mxu0 %v9478_v15 }
 0xf4d   :  { %6419 = vmatmul.mubr.msk.f32.vlgmr.msra.gmra.mxu1 %vm93_vm0, %v3027_v14  ;;  %6421 = vmatprep.subr.mxu1 %v9478_v15 }
 0xf4e   :  { %6422 = vmatpush3.msra.mxu1 %v8590_v11  ;;  %6429 = vmatprep.mubr.msk.f32.mxu1 %vm7015_vm1, %v9478_v15 }
 0xf4f   :  { %6423 = vmatprep.subr.mxu1 %v9478_v15  ;;  %6473 = vmatpush3.msra.mxu0 %v8150_v32  ;;  %v8618_v32 = vld [vmem:[%s9380_s13] sm:$0xff] }
 0xf50   :  { %6424 = vmatpush3.msra.mxu1 %v8600_v22  ;;  %6474 = vmatprep.subr.mxu0 %v9478_v15 }
 0xf51   :  { %6425 = vmatprep.subr.mxu1 %v9478_v15  ;;  %6475 = vmatpush3.msra.mxu0 %v8159_v20  ;;  %v8628_v20 = vld [vmem:[%s9383_s16 + $0x18] sm:$0xff] }
 0xf52   :  { %6426 = vmatpush3.msra.mxu1 %v8609_v25  ;;  %6476 = vmatprep.subr.mxu0 %v9478_v15 }
 0xf53   :  { %6427 = vmatprep.subr.mxu1 %v9478_v15  ;;  %6477 = vmatpush3.msra.mxu0 %v8168_v49  ;;  %v8638_v49 = vld [vmem:[%s9383_s16 + $0x10] sm:$0xff] }
 0xf54   :  { %6428 = vmatpush3.msra.mxu1 %v8618_v32  ;;  %6478 = vmatprep.subr.mxu0 %v9478_v15 }
 0xf55   :  { %6430 = vmatmul.mubr.msk.f32.vlgmr.msra.gmra.mxu1 %vm93_vm0, %v8293_v36  ;;  %6443 = vmatprep.subr.mxu1 %v9478_v15  ;;  %v8647_v36 = vld [vmem:[%s9383_s16 + $0x8] sm:$0xff] }
 0xf56   :  { %6444 = vmatpush3.msra.mxu1 %v8628_v20  ;;  %6451 = vmatprep.mubr.msk.f32.mxu1 %vm7015_vm1, %v9478_v15 }
 0xf57   :  { %6445 = vmatprep.subr.mxu1 %v9478_v15  ;;  %6479 = vmatpush3.msra.mxu0 %v8183_v45  ;;  %v8656_v45 = vld [vmem:[%s9383_s16] sm:$0xff] }
 0xf58   :  { %6446 = vmatpush3.msra.mxu1 %v8638_v49  ;;  %6480 = vmatprep.subr.mxu0 %v9478_v15 }
 0xf59   :  { %6447 = vmatprep.subr.mxu1 %v9478_v15  ;;  %6481 = vmatpush3.msra.mxu0 %v8192_v30 }
 0xf5a   :  { %6448 = vmatpush3.msra.mxu1 %v8647_v36  ;;  %6482 = vmatprep.subr.mxu0 %v9478_v15 }
 0xf5b   :  { %6449 = vmatprep.subr.mxu1 %v9478_v15  ;;  %6483 = vmatpush3.msra.mxu0 %v8201_v6 }
 0xf5c   :  { %6450 = vmatpush3.msra.mxu1 %v8656_v45  ;;  %6484 = vmatprep.subr.mxu0 %v9478_v15 }
 0xf5d   :  { %6465 = vmatprep.subr.mxu1 %v9478_v15  ;;  %6485 = vmatpush3.msra.mxu0 %v8210_v1 }
 0xf5e   :  { %6486 = vmatprep.subr.mxu0 %v9478_v15  ;;  %6504 = vmatprep.mubr.msk.f32.mxu0 %vm7015_vm1, %v9478_v15 }
 0xf5f   :  { %6487 = vmatpush3.msra.mxu0 %v8219_v35 }
 0xf60   :  { %6488 = vmatprep.subr.mxu0 %v9478_v15 }
 0xf61   :  { %6489 = vmatpush3.msra.mxu0 %v8226_v17 }
 0xf62   :  { %6490 = vmatprep.subr.mxu0 %v9478_v15 }
 0xf63   :  { %6491 = vmatpush3.msra.mxu0 %v8233_v23 }
 0xf64   :  { %6492 = vmatprep.subr.mxu0 %v9478_v15 }
 0xf65   :  { %6493 = vmatpush3.msra.mxu0 %v8240_v58 }
 0xf66   :  { %6494 = vmatprep.subr.mxu0 %v9478_v15 }
 0xf67   :  { %6495 = vmatpush3.msra.mxu0 %v8247_v60 }
 0xf68   :  { %6496 = vmatprep.subr.mxu0 %v9478_v15 }
 0xf69   :  { %6497 = vmatpush3.msra.mxu0 %v8254_v52 }
 0xf6a   :  { %6498 = vmatprep.subr.mxu0 %v9478_v15 }
 0xf6b   :  { %6499 = vmatpush3.msra.mxu0 %v8261_v47 }
 0xf6c   :  { %6500 = vmatprep.subr.mxu0 %v9478_v15 }
 0xf6d   :  { %6501 = vmatpush3.msra.mxu0 %v8268_v9 }
 0xf6e   :  { %6502 = vmatprep.subr.mxu0 %v9478_v15 }
 0xf6f   :  { %6503 = vmatpush3.msra.mxu0 %v8275_v42  ;;  %v8690_v42 = vld [vmem:[%s9382_s15] ss:$0 sm:$0xff] }
 0xf70   :  { %6558 = vmatprep.subr.mxu0 %v9478_v15 }
0x1000   :  { %v3097_v30 = vpop.f32.mrf.mxu1  ;;  %v8683_v6 = vpop.f32.mrf.mxu0 }
0x1002   :  { %v6402_v1 = vpop.f32.mrf.mxu1  ;;  %v6442_v35 = vpop.f32.mrf.mxu0 }
0x1005   :  { %v3170_v17 = vpop.f32.mrf.mxu1 }
0x1006   :  { %v3171_v23 = vadd.f32 %v3170_v17, %v3097_v30 }
0x1007   :  { %v6409_v58 = vpop.f32.mrf.mxu1 }
0x1008   :  { %v8714_v58 = vld [vmem:[%s9383_s16 + $0x68] sm:$0xff] }
0x100a   :  { %v8685_v60 = vpop.f32.mrf.mxu0 }
0x100c   :  { %v6464_v52 = vpop.f32.mrf.mxu0 }
0x100d   :  { %v3243_v47 = vpop.f32.mrf.mxu1 }
0x100e   :  { %v3247_v27 = vadd.f32 %v3243_v47, %v3171_v23 }
0x100f   :  { %v6420_v9 = vpop.f32.mrf.mxu1 }
0x1010   :  { %v3248_v7 = vadd.f32 %v8697_v26, %v3247_v27 }
0x1015   :  { %v3315_v34 = vpop.f32.mrf.mxu1 }
0x1016   :  { %v3316_v2 = vadd.f32 %v8690_v42, %v3315_v34 }
0x1017   :  { %v6431_v13 = vpop.f32.mrf.mxu1 }
0x1018   :  { %3327 = vrot.lane.b32.xlu1 %v3316_v2, %s7017_s21  ;;  %v3319_v53 = vadd.f32 %v3316_v2, %v3248_v7 }
0x101a   :  { %v5704_v10 = vmul.f32 -1.442695, %v3319_v53 }
0x101c   :  { %6805 = vpow2.f32 %v5704_v10 }
0x1029   :  { %v6806_v63 = vpop.eup %6805 }
0x102a   :  { %v3323_v29 = vadd.f32 1.0, %v6806_v63 }
0x102c   :  { %6807 = vrcp.f32 %v3323_v29 }
0x1039   :  { %v6808_v0 = vpop.eup %6807 }
0x103a   :  { %v3337_v14 = vsub.f32 1.0, %v6808_v0  ;;  %v3343_v1 = vmul.f32 %v6808_v0, %v8289_v39  ;;  %v8723_v39 = vld [vmem:[%s9383_s16 + $0x60] sm:$0xff] }
0x108a   :  { %v3328_v21 = vpop.permute.xlu1 %3327 }
0x108b   :  { %v3330_v62 = vmul.f32 %v6808_v0, %v3328_v21 }
0x108d   :  { %3332 = vrot.lane.b32.xlu0 %v3330_v62, %s7017_s21 }
0x10ff   :  { %v3333_v19 = vpop.permute.xlu0 %3332 }
0x1100   :  { %v3335_v41 = vadd.f32 %v3333_v19, %v3248_v7 }
0x1102   :  { %6809 = vtanh.f32 %v3335_v41 }
0x110f   :  { %v6810_v28 = vpop.eup %6809 }
0x1110   :  { %3339 = vrot.lane.b32.xlu1 %v6810_v28, %s7019_s28 }
0x1182   :  { %v3340_v30 = vpop.permute.xlu1 %3339 }
0x1183   :  { %v3342_v35 = vmul.f32 %v3340_v30, %v3337_v14 }
0x1185   :  { %v8703_v17 = vadd.f32 %v3343_v1, %v3342_v35 }
0x1187   :  { %3416 = vrot.lane.b32.xlu0 %v8703_v17, %s7019_s28 }
0x11f9   :  { %v8707_v23 = vpop.permute.xlu0 %3416 }
0x11fa   :  { %6452 = vmatmul.mubr.msk.f32.vlgmr.msra.gmra.mxu1 %vm93_vm0, %v8707_v23 }
0x11fb   :  { %6466 = vmatpush3.msra.mxu1 %v8714_v58  ;;  %6469 = vmatprep.mubr.msk.f32.mxu1 %vm7015_vm1, %v9478_v15 }
0x11fc   :  { %6467 = vmatprep.subr.mxu1 %v9478_v15 }
0x11fd   :  { %6468 = vmatpush3.msra.mxu1 %v8723_v39 }
0x11fe   :  { %6507 = vmatprep.subr.mxu1 %v9478_v15  ;;  %6470 = vmatmul.mubr.msk.f32.vlgmr.msra.gmra.mxu1 %vm9530_vm15, %v8471_v31 }
0x11ff   :  { %6508 = vmatpush3.msra.mxu1 %v8308_v3  ;;  %6515 = vmatprep.mubr.msk.f32.mxu1 %vm7015_vm1, %v9478_v15 }
0x1200   :  { %6509 = vmatprep.subr.mxu1 %v9478_v15 }
0x1201   :  { %6510 = vmatpush3.msra.mxu1 %v8317_v5 }
0x1202   :  { %6511 = vmatprep.subr.mxu1 %v9478_v15 }
0x1203   :  { %6512 = vmatpush3.msra.mxu1 %v8324_v16 }
0x1204   :  { %6513 = vmatprep.subr.mxu1 %v9478_v15 }
0x1205   :  { %6514 = vmatpush3.msra.mxu1 %v8331_v18 }
0x1206   :  { %6516 = vmatmul.mubr.msk.f32.vlgmr.msra.gmra.mxu1 %vm93_vm0, %v8707_v23  ;;  %6518 = vmatprep.subr.mxu1 %v9478_v15 }
0x1207   :  { %6519 = vmatpush3.msra.mxu1 %v8340_v50  ;;  %6526 = vmatprep.mubr.msk.f32.mxu1 %vm7015_vm1, %v9478_v15 }
0x1208   :  { %6520 = vmatprep.subr.mxu1 %v9478_v15 }
0x1209   :  { %6521 = vmatpush3.msra.mxu1 %v8349_v33  ;;  %v8756_v33 = vld [vmem:[%s9384_s17] ss:$0 sm:$0xff] }
0x120a   :  { %6522 = vmatprep.subr.mxu1 %v9478_v15 }
0x120b   :  { %6523 = vmatpush3.msra.mxu1 %v8356_v38 }
0x120c   :  { %6524 = vmatprep.subr.mxu1 %v9478_v15 }
0x120d   :  { %6525 = vmatpush3.msra.mxu1 %v8363_v37 }
0x120e   :  { %6529 = vmatprep.subr.mxu1 %v9478_v15 }
0x12ba   :  { %v3486_v3 = vpop.f32.mrf.mxu1 }
0x12bb   :  { %v3487_v5 = vadd.f32 %v3486_v3, %v8683_v6 }
0x12bc   :  { %v6453_v16 = vpop.f32.mrf.mxu1 }
0x12bd   :  { %v3560_v18 = vadd.f32 %v8685_v60, %v3487_v5  ;;  %v9531_v5 = vld [vmem:[#allocation6_spill] sm:$0xff] }
0x12be   :  { %v3627_v50 = vpop.f32.mrf.mxu1 }
0x12bf   :  { %v3631_v31 = vadd.f32 %v3627_v50, %v3560_v18  ;;  %v9532_v18 = vld [vmem:[#allocation5_spill] sm:$0xff] }
0x12c0   :  { %v6471_v52 = vpop.f32.mrf.mxu1 }
0x12c1   :  { %v3632_v38 = vadd.f32 %v8756_v33, %v3631_v31  ;;  %v9533_v31 = vld [vmem:[#allocation7_spill] sm:$0xff] }
0x12c3   :  { %5709 = vst [vmem:[%s9385_s18 + $0x4] sm:$0x3] %v3632_v38  ;;  %v3635_v37 = vsel %vm1629_vm13, %v3632_v38, -3e+38  ;;  %v9534_v38 = vld [vmem:[#allocation8_spill] sm:$0xff] }
0x12c4   :  { %v3636_v6 = vsel %vm1631_vm14, %v3635_v37, -inf }
0x12c5   :  { %3637 = vmax.xlane.f32.xlu1 %v3636_v6 }
0x12c6   :  { %v3808_v60 = vpop.f32.mrf.mxu1 }
0x12c7   :  { %v3813_v47 = vadd.f32 %v3808_v60, %v7378_v44  ;;  %v3815_v27 = vadd.f32 %v3808_v60, %v7382_v48  ;;  %v3817_v34 = vadd.f32 %v3808_v60, %v7386_v54  ;;  %v3819_v2 = vadd.f32 %v3808_v60, %v7397_v4 }
0x12c8   :  { %v6517_v9 = vpop.f32.mrf.mxu1  ;;  %v3812_v16 = vadd.f32 %v3808_v60, %v9531_v5  ;;  %v3814_v50 = vadd.f32 %v3808_v60, %v9532_v18  ;;  %v3816_v52 = vadd.f32 %v3808_v60, %v9533_v31 }
0x12c9   :  { %6811 = vtanh.f32 %v3813_v47 }
0x12ca   :  { %6813 = vtanh.f32 %v3815_v27 }
0x12cb   :  { %6815 = vtanh.f32 %v3817_v34 }
0x12cc   :  { %6817 = vtanh.f32 %v3819_v2 }
0x12cd   :  { %6819 = vtanh.f32 %v3812_v16  ;;  %v3669_v16 = vstv %s3668_s23 }
0x12ce   :  { %6821 = vtanh.f32 %v3814_v50 }
0x12cf   :  { %6823 = vtanh.f32 %v3816_v52 }
0x12d6   :  { %v6812_v13 = vpop.eup %6811 }
0x12d7   :  { %v6814_v7 = vpop.eup %6813  ;;  %v3829_v53 = vmul.f32 %v8386_v51, %v6812_v13 }
0x12d8   :  { %v3831_v63 = vmul.f32 %v8386_v51, %v6814_v7  ;;  %v6816_v29 = vpop.eup %6815 }
0x12d9   :  { %v3839_v10 = vsel %vm795_vm2, %v3829_v53, 0.0  ;;  %v3833_v21 = vmul.f32 %v8386_v51, %v6816_v29  ;;  %v6818_v62 = vpop.eup %6817 }
0x12da   :  { %3840 = vadd.xlane.f32.xlu1 %v3839_v10  ;;  %v3845_v0 = vsel %vm795_vm2, %v3831_v63, 0.0  ;;  %v3835_v41 = vmul.f32 %v8386_v51, %v6818_v62  ;;  %v6820_v47 = vpop.eup %6819 }
0x12db   :  { %v3851_v19 = vsel %vm795_vm2, %v3833_v21, 0.0  ;;  %v3828_v2 = vmul.f32 %v8386_v51, %v6820_v47  ;;  %v6822_v13 = vpop.eup %6821 }
0x12dc   :  { %v3857_v28 = vsel %vm795_vm2, %v3835_v41, 0.0  ;;  %v3830_v53 = vmul.f32 %v8386_v51, %v6822_v13  ;;  %v6824_v10 = vpop.eup %6823 }
0x12dd   :  { %v3836_v7 = vsel %vm795_vm2, %v3828_v2, 0.0 }
0x12de   :  { %3846 = vadd.xlane.f32.xlu1 %v3845_v0  ;;  %v3842_v63 = vsel %vm795_vm2, %v3830_v53, 0.0 }
0x12e2   :  { %3852 = vadd.xlane.f32.xlu1 %v3851_v19 }
0x12e6   :  { %3858 = vadd.xlane.f32.xlu1 %v3857_v28 }
0x134e   :  { %v3638_v14 = vpop.xlane.xlu1 %3637 }
0x134f   :  { %vm3639_vm12 = vcmp.eq.f32.partialorder %v3635_v37, %v3638_v14  ;;  %v3818_v37 = vadd.f32 %v3808_v60, %v9534_v38  ;;  %v3832_v60 = vmul.f32 %v8386_v51, %v6824_v10 }
0x1350   :  { %vm3640_vm15 = vmand %vm3639_vm12, %vm1629_vm13 }
0x1351   :  { %v3641_v30 = vsel %vm3640_vm15, %v7513_v43, 128  ;;  %6825 = vtanh.f32 %v3818_v37  ;;  %v3848_v0 = vsel %vm795_vm2, %v3832_v60, 0.0 }
0x1352   :  { %v3642_v1 = vsel %vm1631_vm14, %v3641_v30, 2147483647 }
0x1353   :  { %v3644_v35 = vshra.s32 %v3642_v1, 16  ;;  %v3643_v6 = vand.u32 65535, %v3642_v1  ;;  %v5712_v1 = vld [vmem:[%s9466_s3 + $0x6] sm:$0x3] }
0x1355   :  { %v3646_v3 = vcvt.s32.f32 %v3644_v35  ;;  %v3645_v9 = vcvt.s32.f32 %v3643_v6  ;;  %v3666_v35 = vstv %s3663_s12  ;;  %v9535_v6 = vld [vmem:[#allocation9_spill] sm:$0xff] }
0x1356   :  { %v3667_v52 = vmul.f32 %v5712_v1, %v3666_v35 }
0x1357   :  { %3647 = vmin.xlane.f32.xlu0 %v3646_v3 }
0x135e   :  { %v6826_v29 = vpop.eup %6825 }
0x135f   :  { %v3834_v21 = vmul.f32 %v8386_v51, %v6826_v29  ;;  %v9536_v29 = vld [vmem:[#allocation28_spill] sm:$0xff] }
0x1361   :  { %v3854_v62 = vsel %vm795_vm2, %v3834_v21, 0.0 }
0x1363   :  { %v3841_v19 = vpop.xlane.xlu1 %3840 }
0x1367   :  { %v3847_v51 = vpop.xlane.xlu1 %3846 }
0x136b   :  { %v3853_v2 = vpop.xlane.xlu1 %3852 }
0x13e0   :  { %v3648_v27 = vpop.xlane.xlu0 %3647 }
0x13e1   :  { %vm3649_vm12 = vcmp.eq.f32.partialorder %v3646_v3, %v3648_v27  ;;  %v3654_v41 = vcvt.f32.s32 %v3648_v27 }
0x13e2   :  { %v3650_v34 = vsel %vm3649_vm12, %v3645_v9, inf  ;;  %v3875_v9 = vrot.slane %v3841_v19, %v9535_v6  ;;  %v3859_v19 = vpop.xlane.xlu1 %3858  ;;  %vm9558_vm12 = vcmask 130048  }
0x13e3   :  { %3651 = vmin.xlane.f32.xlu0 %v3650_v34  ;;  %v3655_v14 = vshll.u32 %v3654_v41, 16  ;;  %v3899_v35 = vrot.slane %v3859_v19, %v9535_v6 }
0x13e7   :  { %3837 = vadd.xlane.f32.xlu0 %v3836_v7 }
0x13eb   :  { %3843 = vadd.xlane.f32.xlu0 %v3842_v63  ;;  %v3883_v63 = vrot.slane %v3847_v51, %v9535_v6 }
0x13ef   :  { %3849 = vadd.xlane.f32.xlu0 %v3848_v0 }
0x13f3   :  { %3855 = vadd.xlane.f32.xlu0 %v3854_v62  ;;  %v9537_v62 = vld [vmem:[#allocation29_spill] sm:$0xff] }
0x146c   :  { %v3652_v28 = vpop.xlane.xlu0 %3651 }
0x146d   :  { %v3653_v30 = vcvt.f32.s32 %v3652_v28  ;;  %v3891_v28 = vrot.slane %v3853_v2, %v9535_v6 }
0x146f   :  { %v3656_v3 = vadd.s32 %v3655_v14, %v3653_v30  ;;  %v9538_v30 = vld [vmem:[#allocation30_spill] sm:$0xff] }
0x1470   :  { %v3838_v50 = vpop.xlane.xlu0 %3837 }
0x1471   :  { %vm3657_vm15 = vcmp.eq.s32.totalorder %v7513_v43, %v3656_v3  ;;  %v3871_v47 = vrot.slane %v3838_v50, %v9535_v6  ;;  %v9539_v3 = vld [vmem:[#allocation31_spill] sm:$0xff] }
0x1472   :  { %v5710_v37 = vsel %vm3657_vm15, 1.0, %v9478_v15  ;;  %vm9559_vm15 = vmmov %vm9558_vm12 }
0x1473   :  { %v3670_v27 = vmul.f32 %v5710_v37, %v3669_v16  ;;  %v3900_v53 = vsel %vm863_vm3, %v3875_v9, %v3871_v47 }
0x1474   :  { %v3844_v34 = vpop.xlane.xlu0 %3843 }
0x1475   :  { %v3879_v13 = vrot.slane %v3844_v34, %v9535_v6  ;;  %v3671_v7 = vadd.f32 %v3670_v27, %v3667_v52 }
0x1477   :  { %v3901_v10 = vsel %vm865_vm4, %v3879_v13, %v3900_v53  ;;  %6505 = vmatmul.mubr.f32.vlgmr.msra.gmra.mxu0 %v3671_v7 }
0x1478   :  { %v3850_v60 = vpop.xlane.xlu0 %3849  ;;  %6559 = vmatpush3.msra.mxu0 %v9536_v29  ;;  %6566 = vmatprep.mubr.msk.f32.mxu0 %vm7015_vm1, %v9478_v15  ;;  %v3902_v21 = vsel %vm867_vm5, %v3883_v63, %v3901_v10 }
0x1479   :  { %v3887_v0 = vrot.slane %v3850_v60, %v9535_v6  ;;  %6560 = vmatprep.subr.mxu0 %v9478_v15 }
0x147a   :  { %6561 = vmatpush3.msra.mxu0 %v9537_v62 }
0x147b   :  { %v3903_v41 = vsel %vm869_vm6, %v3887_v0, %v3902_v21  ;;  %6562 = vmatprep.subr.mxu0 %v9478_v15 }
0x147c   :  { %v3856_v14 = vpop.xlane.xlu0 %3855  ;;  %6563 = vmatpush3.msra.mxu0 %v9538_v30  ;;  %v3904_v51 = vsel %vm871_vm7, %v3891_v28, %v3903_v41  ;;  %v9541_v30 = vld [vmem:[#allocation11_spill] sm:$0xff] }
0x147d   :  { %v3895_v1 = vrot.slane %v3856_v14, %v9535_v6  ;;  %6564 = vmatprep.subr.mxu0 %v9478_v15 }
0x147e   :  { %6565 = vmatpush3.msra.mxu0 %v9539_v3  ;;  %v9543_v3 = vld [vmem:[#allocation13_spill] sm:$0xff] }
0x147f   :  { %v3905_v16 = vsel %vm873_vm8, %v3895_v1, %v3904_v51  ;;  %6580 = vmatprep.subr.mxu0 %v9478_v15 }
0x1480   :  { %v3906_v50 = vsel %vm875_vm9, %v3899_v35, %v3905_v16  ;;  %v9542_v35 = vld [vmem:[#allocation12_spill] sm:$0xff] }
0x1481   :  { %v3908_v37 = vsel %vm820_vm10, %v3906_v50, -1e+10  ;;  %v9544_v50 = vld [vmem:[#allocation14_spill] sm:$0xff] }
0x1482   :  { %v3909_v47 = vsel %vm879_vm11, %v3908_v37, -inf }
0x1483   :  { %v3910_v27 = vrot.slane %v3909_v47, 4 }
0x1485   :  { %v3911_v9 = vmax.f32 %v3909_v47, %v3910_v27  ;;  %v9545_v47 = vld [vmem:[#allocation15_spill] sm:$0xff] }
0x1487   :  { %v3912_v34 = vrot.slane %v3911_v9, 2 }
0x1489   :  { %v3913_v2 = vmax.f32 %v3911_v9, %v3912_v34  ;;  %v9546_v9 = vld [vmem:[#allocation16_spill] sm:$0xff] }
0x148b   :  { %v3914_v13 = vrot.slane %v3913_v2, 1 }
0x148d   :  { %v3915_v7 = vmax.f32 %v3913_v2, %v3914_v13  ;;  %v9547_v2 = vld [vmem:[#allocation19_spill] sm:$0xff] }
0x148f   :  { %v3916_v53 = vsub.f32 %v3908_v37, %v3915_v7  ;;  %v9548_v7 = vld [vmem:[#allocation22_spill] sm:$0xff] }
0x1491   :  { %v3917_v10 = vmul.f32 1.442695, %v3916_v53 }
0x1493   :  { %6827 = vpow2.f32 %v3917_v10 }
0x14a0   :  { %v6828_v63 = vpop.eup %6827 }
0x14a1   :  { %v3919_v60 = vsel %vm879_vm11, %v6828_v63, 0.0 }
0x14a2   :  { %v3920_v29 = vrot.slane %v3919_v60, 4 }
0x14a4   :  { %v3921_v0 = vadd.f32 %v3920_v29, %v3919_v60  ;;  %v8838_v60 = vld [vmem:[%s9461_s24 + $0x2] sm:$0x3] }
0x14a5   :  { %9549 = vst [vmem:[#allocation17_spill] sm:$0xff] %v8838_v60 }
0x14a6   :  { %v3922_v21 = vrot.slane %v3921_v0, 2 }
0x14a8   :  { %v3923_v62 = vadd.f32 %v3922_v21, %v3921_v0  ;;  %v8844_v0 = vld [vmem:[%s9461_s24] sm:$0x3] }
0x14a9   :  { %9550 = vst [vmem:[#allocation18_spill] sm:$0xff] %v8844_v0 }
0x14aa   :  { %v3924_v19 = vrot.slane %v3923_v62, 1 }
0x14ac   :  { %v3925_v41 = vadd.f32 %v3924_v19, %v3923_v62  ;;  %v8850_v62 = vld [vmem:[%s9461_s24 + $0x12] sm:$0x3] }
0x14ad   :  { %9551 = vst [vmem:[#allocation23_spill] sm:$0xff] %v8850_v62 }
0x14ae   :  { %6829 = vrcp.f32 %v3925_v41  ;;  %v8856_v41 = vld [vmem:[%s9461_s24 + $0x10] sm:$0x3] }
0x14af   :  { %9552 = vst [vmem:[#allocation20_spill] sm:$0xff] %v8856_v41 }
0x14bb   :  { %v6830_v28 = vpop.eup %6829 }
0x14bc   :  { %v3927_v14 = vmul.f32 %v6830_v28, %v6828_v63 }
0x14be   :  { %v3938_v1 = vrot.slane %v3927_v14, %v9541_v30  ;;  %v3931_v51 = vrot.slane %v3927_v14, %v9542_v35  ;;  %v3945_v16 = vrot.slane %v3927_v14, %v9543_v3  ;;  %v3959_v37 = vrot.slane %v3927_v14, %v9544_v50 }
0x14bf   :  { %v3952_v27 = vrot.slane %v3927_v14, %v9545_v47  ;;  %v3973_v34 = vrot.slane %v3927_v14, %v9546_v9  ;;  %v3966_v13 = vrot.slane %v3927_v14, %v9547_v2  ;;  %v3980_v53 = vrot.slane %v3927_v14, %v9548_v7 }
0x14c0   :  { %3940 = vbcast.lane.b32.xlu1 %v3938_v1, 256  ;;  %3933 = vbcast.lane.b32.xlu0 %v3931_v51, 256 }
0x14c4   :  { %3947 = vbcast.lane.b32.xlu1 %v3945_v16, 256  ;;  %3961 = vbcast.lane.b32.xlu0 %v3959_v37, 256  ;;  %v8864_v37 = vld [vmem:[%s9461_s24 + $0x4] sm:$0x3] }
0x14c5   :  { %9553 = vst [vmem:[#allocation21_spill] sm:$0xff] %v8864_v37 }
0x14c8   :  { %3954 = vbcast.lane.b32.xlu1 %v3952_v27, 256  ;;  %3975 = vbcast.lane.b32.xlu0 %v3973_v34, 256  ;;  %v8870_v34 = vld [vmem:[%s9461_s24 + $0x14] sm:$0x3] }
0x14c9   :  { %9554 = vst [vmem:[#allocation24_spill] sm:$0xff] %v8870_v34 }
0x14cc   :  { %3968 = vbcast.lane.b32.xlu1 %v3966_v13, 256 }
0x14d0   :  { %3982 = vbcast.lane.b32.xlu1 %v3980_v53, 256 }
0x1532   :  { %v3941_v10 = vpop.permute.xlu1 %3940  ;;  %v3934_v63 = vpop.permute.xlu0 %3933 }
0x1533   :  { %v3985_v29 = vmul.f32 %v8838_v60, %v3941_v10  ;;  %v3984_v21 = vmul.f32 %v8844_v0, %v3934_v63  ;;  %v4008_v19 = vmul.f32 %v8850_v62, %v3941_v10  ;;  %v4007_v28 = vmul.f32 %v8856_v41, %v3934_v63  ;;  %v8882_v0 = vld [vmem:[%s9461_s24 + $0x8] sm:$0x3] }
0x1534   :  { %9555 = vst [vmem:[#allocation26_spill] sm:$0xff] %v8882_v0 }
0x1535   :  { %v3993_v51 = vsel %vm795_vm2, %v3985_v29, 0.0  ;;  %v3992_v16 = vsel %vm795_vm2, %v3984_v21, 0.0  ;;  %v4016_v10 = vsel %vm795_vm2, %v4008_v19, 0.0  ;;  %v4015_v63 = vsel %vm795_vm2, %v4007_v28, 0.0  ;;  %v8888_v19 = vld [vmem:[%s9461_s24 + $0x6] sm:$0x3] }
0x1536   :  { %v3948_v14 = vpop.permute.xlu1 %3947  ;;  %v3962_v1 = vpop.permute.xlu0 %3961  ;;  %v3994_v41 = vadd.f32 %v3993_v51, %v3992_v16  ;;  %9556 = vst [vmem:[#allocation25_spill] sm:$0xff] %v8888_v19  ;;  %v8894_v51 = vld [vmem:[%s9461_s24 + $0x16] sm:$0x3] }
0x1537   :  { %v3986_v27 = vmul.f32 %v8864_v37, %v3948_v14  ;;  %v4009_v13 = vmul.f32 %v8870_v34, %v3948_v14  ;;  %v8873_v53 = vpop.f32.mrf.mxu0  ;;  %v3988_v14 = vmul.f32 %v8882_v0, %v3962_v1 }
0x1539   :  { %v3995_v29 = vsel %vm795_vm2, %v3986_v27, 0.0  ;;  %v6506_v21 = vpop.f32.mrf.mxu0  ;;  %v4018_v37 = vsel %vm795_vm2, %v4009_v13, 0.0  ;;  %v4017_v27 = vadd.f32 %v4016_v10, %v4015_v63  ;;  %v3999_v47 = vsel %vm795_vm2, %v3988_v14, 0.0 }
0x153a   :  { %v3955_v62 = vpop.permute.xlu1 %3954  ;;  %v3996_v13 = vadd.f32 %v3995_v29, %v3994_v41  ;;  %v3976_v21 = vpop.permute.xlu0 %3975 }
0x153b   :  { %v3987_v28 = vmul.f32 %v8888_v19, %v3955_v62  ;;  %v4010_v16 = vmul.f32 %v8894_v51, %v3955_v62  ;;  %v4019_v60 = vadd.f32 %v4018_v37, %v4017_v27  ;;  %v8903_v19 = vld [vmem:[%s9461_s24 + $0x18] sm:$0x3]  ;;  %v8909_v62 = vld [vmem:[%s9461_s24 + $0xc] sm:$0x3]  ;;  %v8915_v37 = vld [vmem:[%s9461_s24 + $0xa] sm:$0x3] }
0x153c   :  { %v4011_v7 = vmul.f32 %v8903_v19, %v3962_v1  ;;  %9557 = vst [vmem:[#allocation27_spill] sm:$0xff] %v8909_v62  ;;  %v3990_v41 = vmul.f32 %v8909_v62, %v3976_v21  ;;  %v8922_v1 = vld [vmem:[%s9461_s24 + $0x1a] sm:$0x3] }
0x153d   :  { %v3997_v34 = vsel %vm795_vm2, %v3987_v28, 0.0  ;;  %v4020_v0 = vsel %vm795_vm2, %v4010_v16, 0.0 }
0x153e   :  { %v3998_v9 = vadd.f32 %v3997_v34, %v3996_v13  ;;  %v3969_v50 = vpop.permute.xlu1 %3968  ;;  %v4021_v10 = vadd.f32 %v4020_v0, %v4019_v60  ;;  %v4022_v27 = vsel %vm795_vm2, %v4011_v7, 0.0  ;;  %v4003_v13 = vsel %vm795_vm2, %v3990_v41, 0.0  ;;  %v8930_v60 = vld [vmem:[%s9461_s24 + $0xe] sm:$0x3]  ;;  %v8938_v7 = vld [vmem:[%s9461_s24 + $0x1c] sm:$0x3] }
0x153f   :  { %v3989_v34 = vmul.f32 %v8915_v37, %v3969_v50  ;;  %v4012_v14 = vmul.f32 %v8922_v1, %v3969_v50  ;;  %v4013_v41 = vmul.f32 %v8938_v7, %v3976_v21 }
0x1540   :  { %v4000_v63 = vadd.f32 %v3999_v47, %v3998_v9  ;;  %v4023_v9 = vadd.f32 %v4022_v27, %v4021_v10  ;;  %v8946_v10 = vld [vmem:[%s9461_s24 + $0x1e] sm:$0x3] }
0x1541   :  { %v4001_v29 = vsel %vm795_vm2, %v3989_v34, 0.0  ;;  %v4024_v34 = vsel %vm795_vm2, %v4012_v14, 0.0  ;;  %v4026_v21 = vsel %vm795_vm2, %v4013_v41, 0.0 }
0x1542   :  { %v4002_v28 = vadd.f32 %v4001_v29, %v4000_v63  ;;  %v3983_v16 = vpop.permute.xlu1 %3982  ;;  %v4025_v63 = vadd.f32 %v4024_v34, %v4023_v9 }
0x1543   :  { %v3991_v47 = vmul.f32 %v8930_v60, %v3983_v16  ;;  %v4014_v29 = vmul.f32 %v8946_v10, %v3983_v16 }
0x1544   :  { %v4004_v0 = vadd.f32 %v4003_v13, %v4002_v28 }
0x1545   :  { %v4005_v62 = vsel %vm795_vm2, %v3991_v47, 0.0 }
0x1546   :  { %v4006_v50 = vadd.f32 %v4005_v62, %v4004_v0  ;;  %v4027_v62 = vadd.f32 %v4026_v21, %v4025_v63 }
0x1548   :  { %6527 = vmatmul.mubr.msk.f32.vlgmr.msra.gmra.mxu1 %vm93_vm0, %v4006_v50  ;;  %6567 = vmatmul.mubr.msk.f32.vlgmr.msra.gmra.mxu0 %vm93_vm0, %v4006_v50 }
0x1549   :  { %6530 = vmatpush3.msra.mxu1 %v8508_v40  ;;  %6581 = vmatpush3.msra.mxu0 %v8514_v12  ;;  %v4028_v40 = vsel %vm795_vm2, %v4014_v29, 0.0 }
0x154a   :  { %6531 = vmatprep.subr.mxu1 %v9478_v15  ;;  %6582 = vmatprep.subr.mxu0 %v9478_v15  ;;  %v4029_v12 = vadd.f32 %v4028_v40, %v4027_v62 }
0x154b   :  { %6532 = vmatpush3.msra.mxu1 %v8523_v56  ;;  %6583 = vmatpush3.msra.mxu0 %v8529_v61  ;;  %v6947_v56 = vld [vmem:[%s9378_s11 + $0x78] sm:$0xff]  ;;  %v6948_v61 = vld [vmem:[%s9378_s11 + $0x70] sm:$0xff] }
0x154c   :  { %6533 = vmatprep.mubr.msk.f32.mxu1 %vm7015_vm1, %v9478_v15  ;;  %6536 = vmatprep.subr.mxu1 %v9478_v15 }
0x154d   :  { %6584 = vmatprep.subr.mxu0 %v9478_v15  ;;  %6534 = vmatmul.mubr.msk.f32.vlgmr.msra.gmra.mxu1 %vm9558_vm12, %v8873_v53 }
0x154e   :  { %6537 = vmatpush3.msra.mxu1 %v8541_v55  ;;  %6585 = vmatpush3.msra.mxu0 %v8547_v57  ;;  %v6949_v55 = vld [vmem:[%s9378_s11 + $0x68] sm:$0xff]  ;;  %v6950_v57 = vld [vmem:[%s9378_s11 + $0x60] sm:$0xff] }
0x154f   :  { %6538 = vmatprep.subr.mxu1 %v9478_v15  ;;  %6586 = vmatprep.subr.mxu0 %v9478_v15 }
0x1550   :  { %6539 = vmatpush3.msra.mxu1 %v8556_v59  ;;  %6587 = vmatpush3.msra.mxu0 %v8562_v24  ;;  %v6951_v59 = vld [vmem:[%s9378_s11 + $0x58] sm:$0xff]  ;;  %v6952_v24 = vld [vmem:[%s9378_s11 + $0x50] sm:$0xff] }
0x1551   :  { %6588 = vmatprep.mubr.msk.f32.mxu0 %vm7015_vm1, %v9478_v15  ;;  %6540 = vmatprep.subr.mxu1 %v9478_v15 }
0x1552   :  { %6589 = vmatmul.mubr.msk.f32.vlgmr.msra.gmra.mxu0 %vm93_vm0, %v4029_v12  ;;  %6541 = vmatpush3.msra.mxu1 %v8572_v8  ;;  %v6953_v8 = vld [vmem:[%s9378_s11 + $0x48] sm:$0xff] }
0x1553   :  { %6542 = vmatprep.subr.mxu1 %v9478_v15  ;;  %6544 = vmatprep.mubr.msk.f32.mxu1 %vm7015_vm1, %v9478_v15 }
0x1554   :  { %6543 = vmatpush3.msra.mxu1 %v8581_v46  ;;  %6598 = vmatprep.subr.mxu0 %v9478_v15  ;;  %v6954_v46 = vld [vmem:[%s9378_s11 + $0x40] sm:$0xff] }
0x1555   :  { %6545 = vmatmul.mubr.msk.f32.vlgmr.msra.gmra.mxu1 %vm93_vm0, %v4029_v12  ;;  %6547 = vmatprep.subr.mxu1 %v9478_v15 }
0x1556   :  { %6548 = vmatpush3.msra.mxu1 %v8590_v11  ;;  %6555 = vmatprep.mubr.msk.f32.mxu1 %vm7015_vm1, %v9478_v15  ;;  %v6955_v11 = vld [vmem:[%s9378_s11 + $0x38] sm:$0xff] }
0x1557   :  { %6549 = vmatprep.subr.mxu1 %v9478_v15  ;;  %6599 = vmatpush3.msra.mxu0 %v6947_v56 }
0x1558   :  { %6550 = vmatpush3.msra.mxu1 %v8600_v22  ;;  %6600 = vmatprep.subr.mxu0 %v9478_v15  ;;  %v6956_v22 = vld [vmem:[%s9378_s11 + $0x30] sm:$0xff] }
0x1559   :  { %6551 = vmatprep.subr.mxu1 %v9478_v15  ;;  %6601 = vmatpush3.msra.mxu0 %v6948_v61 }
0x155a   :  { %6552 = vmatpush3.msra.mxu1 %v8609_v25  ;;  %6602 = vmatprep.subr.mxu0 %v9478_v15  ;;  %v6957_v25 = vld [vmem:[%s9378_s11 + $0x28] sm:$0xff] }
0x155b   :  { %6553 = vmatprep.subr.mxu1 %v9478_v15  ;;  %6603 = vmatpush3.msra.mxu0 %v6949_v55 }
0x155c   :  { %6554 = vmatpush3.msra.mxu1 %v8618_v32  ;;  %6604 = vmatprep.subr.mxu0 %v9478_v15  ;;  %v6958_v32 = vld [vmem:[%s9378_s11 + $0x20] sm:$0xff] }
0x155d   :  { %6556 = vmatmul.mubr.msk.f32.vlgmr.msra.gmra.mxu1 %vm93_vm0, %v8707_v23  ;;  %6569 = vmatprep.subr.mxu1 %v9478_v15 }
0x155e   :  { %6570 = vmatpush3.msra.mxu1 %v8628_v20  ;;  %6577 = vmatprep.mubr.msk.f32.mxu1 %vm7015_vm1, %v9478_v15  ;;  %v6959_v20 = vld [vmem:[%s9378_s11 + $0x18] sm:$0xff] }
0x155f   :  { %6571 = vmatprep.subr.mxu1 %v9478_v15  ;;  %6605 = vmatpush3.msra.mxu0 %v6950_v57 }
0x1560   :  { %6572 = vmatpush3.msra.mxu1 %v8638_v49  ;;  %6606 = vmatprep.subr.mxu0 %v9478_v15  ;;  %v6960_v49 = vld [vmem:[%s9378_s11 + $0x10] sm:$0xff] }
0x1561   :  { %6573 = vmatprep.subr.mxu1 %v9478_v15  ;;  %6607 = vmatpush3.msra.mxu0 %v6951_v59 }
0x1562   :  { %6574 = vmatpush3.msra.mxu1 %v8647_v36  ;;  %6608 = vmatprep.subr.mxu0 %v9478_v15  ;;  %v6961_v36 = vld [vmem:[%s9378_s11 + $0x8] sm:$0xff] }
0x1563   :  { %6575 = vmatprep.subr.mxu1 %v9478_v15  ;;  %6609 = vmatpush3.msra.mxu0 %v6952_v24 }
0x1564   :  { %6576 = vmatpush3.msra.mxu1 %v8656_v45  ;;  %6610 = vmatprep.subr.mxu0 %v9478_v15  ;;  %v6962_v45 = vld [vmem:[%s9378_s11] sm:$0xff] }
0x1565   :  { %6591 = vmatprep.subr.mxu1 %v9478_v15  ;;  %6611 = vmatpush3.msra.mxu0 %v6953_v8 }
0x1566   :  { %6612 = vmatprep.subr.mxu0 %v9478_v15  ;;  %6630 = vmatprep.mubr.msk.f32.mxu0 %vm7015_vm1, %v9478_v15 }
0x1567   :  { %6613 = vmatpush3.msra.mxu0 %v6954_v46 }
0x1568   :  { %6614 = vmatprep.subr.mxu0 %v9478_v15 }
0x1569   :  { %6615 = vmatpush3.msra.mxu0 %v6955_v11 }
0x156a   :  { %6616 = vmatprep.subr.mxu0 %v9478_v15 }
0x156b   :  { %6617 = vmatpush3.msra.mxu0 %v6956_v22 }
0x156c   :  { %6618 = vmatprep.subr.mxu0 %v9478_v15 }
0x156d   :  { %6619 = vmatpush3.msra.mxu0 %v6957_v25 }
0x156e   :  { %6620 = vmatprep.subr.mxu0 %v9478_v15 }
0x156f   :  { %6621 = vmatpush3.msra.mxu0 %v6958_v32 }
0x1570   :  { %6622 = vmatprep.subr.mxu0 %v9478_v15 }
0x1571   :  { %6623 = vmatpush3.msra.mxu0 %v6959_v20  ;;  %v6967_v20 = vld [vmem:[%s9475_s29 + $0x28] sm:$0xff] }
0x1572   :  { %6624 = vmatprep.subr.mxu0 %v9478_v15 }
0x1573   :  { %6625 = vmatpush3.msra.mxu0 %v6960_v49  ;;  %v6968_v49 = vld [vmem:[%s9475_s29 + $0x20] sm:$0xff] }
0x1574   :  { %6626 = vmatprep.subr.mxu0 %v9478_v15 }
0x1575   :  { %6627 = vmatpush3.msra.mxu0 %v6961_v36  ;;  %v6969_v36 = vld [vmem:[%s9475_s29 + $0x18] sm:$0xff] }
0x1576   :  { %6628 = vmatprep.subr.mxu0 %v9478_v15 }
0x1577   :  { %6629 = vmatpush3.msra.mxu0 %v6962_v45  ;;  %v6970_v45 = vld [vmem:[%s9475_s29 + $0x10] sm:$0xff] }
0x1578   :  { %6684 = vmatprep.subr.mxu0 %v9478_v15 }
0x1608   :  { %v4099_v23 = vpop.f32.mrf.mxu1  ;;  %v9069_v14 = vpop.f32.mrf.mxu0 }
0x160a   :  { %v6528_v28 = vpop.f32.mrf.mxu1  ;;  %v6568_v16 = vpop.f32.mrf.mxu0 }
0x160d   :  { %v4172_v27 = vpop.f32.mrf.mxu1 }
0x160e   :  { %v4173_v13 = vadd.f32 %v4172_v27, %v4099_v23 }
0x160f   :  { %v6535_v47 = vpop.f32.mrf.mxu1 }
0x1612   :  { %v9071_v9 = vpop.f32.mrf.mxu0 }
0x1614   :  { %v6590_v0 = vpop.f32.mrf.mxu0 }
0x1615   :  { %v4245_v34 = vpop.f32.mrf.mxu1 }
0x1616   :  { %v4249_v50 = vadd.f32 %v4245_v34, %v4173_v13 }
0x1617   :  { %v6546_v41 = vpop.f32.mrf.mxu1 }
0x1618   :  { %v4250_v62 = vadd.f32 %v8697_v26, %v4249_v50 }
0x161d   :  { %v4317_v63 = vpop.f32.mrf.mxu1 }
0x161e   :  { %v4318_v29 = vadd.f32 %v8690_v42, %v4317_v63 }
0x161f   :  { %v6557_v21 = vpop.f32.mrf.mxu1 }
0x1620   :  { %4329 = vrot.lane.b32.xlu0 %v4318_v29, %s7017_s21  ;;  %v4321_v40 = vadd.f32 %v4318_v29, %v4250_v62 }
0x1622   :  { %v5718_v12 = vmul.f32 -1.442695, %v4321_v40 }
0x1624   :  { %6831 = vpow2.f32 %v5718_v12 }
0x1631   :  { %v6832_v56 = vpop.eup %6831 }
0x1632   :  { %v4325_v61 = vadd.f32 1.0, %v6832_v56 }
0x1634   :  { %6833 = vrcp.f32 %v4325_v61 }
0x1641   :  { %v6834_v55 = vpop.eup %6833 }
0x1642   :  { %v4339_v46 = vsub.f32 1.0, %v6834_v55  ;;  %v4345_v26 = vmul.f32 %v6834_v55, %v8703_v17  ;;  %v6963_v17 = vld [vmem:[%s9374_s7 + $0x18] sm:$0xff] }
0x1692   :  { %v4330_v57 = vpop.permute.xlu0 %4329 }
0x1693   :  { %v4332_v59 = vmul.f32 %v6834_v55, %v4330_v57 }
0x1695   :  { %4334 = vrot.lane.b32.xlu1 %v4332_v59, %s7017_s21 }
0x1707   :  { %v4335_v24 = vpop.permute.xlu1 %4334 }
0x1708   :  { %v4337_v8 = vadd.f32 %v4335_v24, %v4250_v62 }
0x170a   :  { %6835 = vtanh.f32 %v4337_v8 }
0x1717   :  { %v6836_v42 = vpop.eup %6835 }
0x1718   :  { %4341 = vrot.lane.b32.xlu0 %v6836_v42, %s7019_s28 }
0x178a   :  { %v4342_v11 = vpop.permute.xlu0 %4341 }
0x178b   :  { %v4344_v22 = vmul.f32 %v4342_v11, %v4339_v46 }
0x178d   :  { %v9079_v25 = vadd.f32 %v4345_v26, %v4344_v22 }
0x178f   :  { %4418 = vrot.lane.b32.xlu1 %v9079_v25, %s7019_s28 }
0x1801   :  { %v9083_v32 = vpop.permute.xlu1 %4418 }
0x1802   :  { %6578 = vmatmul.mubr.msk.f32.vlgmr.msra.gmra.mxu1 %vm93_vm0, %v9083_v32 }
0x1803   :  { %6592 = vmatpush3.msra.mxu1 %v8714_v58  ;;  %6595 = vmatprep.mubr.msk.f32.mxu1 %vm7015_vm1, %v9478_v15  ;;  %v6964_v58 = vld [vmem:[%s9374_s7 + $0x10] sm:$0xff] }
0x1804   :  { %6593 = vmatprep.subr.mxu1 %v9478_v15 }
0x1805   :  { %6594 = vmatpush3.msra.mxu1 %v8723_v39  ;;  %v6965_v39 = vld [vmem:[%s9374_s7 + $0x8] sm:$0xff] }
0x1806   :  { %6633 = vmatprep.subr.mxu1 %v9478_v15  ;;  %6596 = vmatmul.mubr.msk.f32.vlgmr.msra.gmra.mxu1 %vm9559_vm15, %v8873_v53  ;;  %v6966_v53 = vld [vmem:[%s9374_s7] sm:$0xff] }
0x1807   :  { %6634 = vmatpush3.msra.mxu1 %v6963_v17  ;;  %6641 = vmatprep.mubr.msk.f32.mxu1 %vm7015_vm1, %v9478_v15 }
0x1808   :  { %6635 = vmatprep.subr.mxu1 %v9478_v15 }
0x1809   :  { %6636 = vmatpush3.msra.mxu1 %v6964_v58 }
0x180a   :  { %6637 = vmatprep.subr.mxu1 %v9478_v15 }
0x180b   :  { %6638 = vmatpush3.msra.mxu1 %v6965_v39 }
0x180c   :  { %6639 = vmatprep.subr.mxu1 %v9478_v15 }
0x180d   :  { %6640 = vmatpush3.msra.mxu1 %v6966_v53 }
0x180e   :  { %6642 = vmatmul.mubr.msk.f32.vlgmr.msra.gmra.mxu1 %vm93_vm0, %v9083_v32  ;;  %6644 = vmatprep.subr.mxu1 %v9478_v15 }
0x180f   :  { %6645 = vmatpush3.msra.mxu1 %v6967_v20  ;;  %6652 = vmatprep.mubr.msk.f32.mxu1 %vm7015_vm1, %v9478_v15 }
0x1810   :  { %6646 = vmatprep.subr.mxu1 %v9478_v15 }
0x1811   :  { %6647 = vmatpush3.msra.mxu1 %v6968_v49 }
0x1812   :  { %6648 = vmatprep.subr.mxu1 %v9478_v15 }
0x1813   :  { %6649 = vmatpush3.msra.mxu1 %v6969_v36 }
0x1814   :  { %6650 = vmatprep.subr.mxu1 %v9478_v15 }
0x1815   :  { %6651 = vmatpush3.msra.mxu1 %v6970_v45 }
0x1816   :  { %6655 = vmatprep.subr.mxu1 %v9478_v15 }
0x18c2   :  { %v4488_v23 = vpop.f32.mrf.mxu1 }
0x18c3   :  { %v4489_v28 = vadd.f32 %v4488_v23, %v9069_v14 }
0x18c4   :  { %v6579_v16 = vpop.f32.mrf.mxu1 }
0x18c5   :  { %v4562_v27 = vadd.f32 %v9071_v9, %v4489_v28 }
0x18c6   :  { %v4629_v13 = vpop.f32.mrf.mxu1 }
0x18c7   :  { %v4633_v47 = vadd.f32 %v4629_v13, %v4562_v27 }
0x18c8   :  { %v6597_v0 = vpop.f32.mrf.mxu1 }
0x18c9   :  { %v4634_v34 = vadd.f32 %v8756_v33, %v4633_v47 }
0x18cb   :  { %5723 = vst [vmem:[%s9385_s18 + $0x6] sm:$0x3] %v4634_v34  ;;  %v4637_v50 = vsel %vm1629_vm13, %v4634_v34, -3e+38 }
0x18cc   :  { %v4638_v41 = vsel %vm1631_vm14, %v4637_v50, -inf }
0x18cd   :  { %4639 = vmax.xlane.f32.xlu0 %v4638_v41 }
0x18ce   :  { %v4810_v63 = vpop.f32.mrf.mxu1 }
0x18cf   :  { %v4816_v29 = vadd.f32 %v4810_v63, %v9532_v18  ;;  %v4818_v9 = vadd.f32 %v4810_v63, %v9533_v31  ;;  %v4820_v33 = vadd.f32 %v4810_v63, %v9534_v38  ;;  %v6971_v18 = vld [vmem:[%s9377_s10] ss:$0 sm:$0xff]  ;;  %v4814_v46 = vadd.f32 %v4810_v63, %v9531_v5  ;;  %s5725_s10 = sld [smem:[#allocation3 + $0x4]] }
0x18d0   :  { %v6643_v14 = vpop.f32.mrf.mxu1  ;;  %v4815_v11 = vadd.f32 %v4810_v63, %v7378_v44  ;;  %v4817_v26 = vadd.f32 %v4810_v63, %v7382_v48  ;;  %v4819_v22 = vadd.f32 %v4810_v63, %v7386_v54  ;;  %v4821_v58 = vadd.f32 %v4810_v63, %v7397_v4 }
0x18d1   :  { %6837 = vtanh.f32 %v4816_v29  ;;  %v5726_v14 = vld [vmem:[%s9466_s3 + $0x8] sm:$0x3] }
0x18d2   :  { %6839 = vtanh.f32 %v4818_v9 }
0x18d3   :  { %6841 = vtanh.f32 %v4820_v33 }
0x18d4   :  { %6843 = vtanh.f32 %v4814_v46  ;;  %v6973_v46 = vld [vmem:[%s9383_s16 + $0x30] sm:$0xff] }
0x18d5   :  { %6845 = vtanh.f32 %v4815_v11  ;;  %p4663_p9 = scmp.gt.s32.totalorder %s5725_s10, 0 }
0x18d6   :  { %6847 = vtanh.f32 %v4817_v26 }
0x18d7   :  { %6849 = vtanh.f32 %v4819_v22  ;;  %s4664_s11 = scalar_select %p4663_p9, 1, 0 }
0x18d8   :  { %6851 = vtanh.f32 %v4821_v58 }
0x18d9   :  { %s4665_s5 = scvt.s32.f32 %s4664_s11 }
0x18db   :  { %s4670_s2 = ssub.f32 1.0, %s4665_s5  ;;  %v4668_v29 = vstv %s4665_s5 }
0x18dd   :  { %v4671_v33 = vstv %s4670_s2 }
0x18de   :  { %v6838_v12 = vpop.eup %6837 }
0x18df   :  { %v4832_v31 = vmul.f32 %v6971_v18, %v6838_v12  ;;  %v6840_v55 = vpop.eup %6839 }
0x18e0   :  { %v4834_v57 = vmul.f32 %v6971_v18, %v6840_v55  ;;  %v6842_v59 = vpop.eup %6841 }
0x18e1   :  { %v4844_v38 = vsel %vm795_vm2, %v4832_v31, 0.0  ;;  %v4836_v8 = vmul.f32 %v6971_v18, %v6842_v59  ;;  %v6844_v39 = vpop.eup %6843 }
0x18e2   :  { %v4850_v24 = vsel %vm795_vm2, %v4834_v57, 0.0  ;;  %v4830_v36 = vmul.f32 %v6971_v18, %v6844_v39  ;;  %v6846_v5 = vpop.eup %6845 }
0x18e3   :  { %v4856_v42 = vsel %vm795_vm2, %v4836_v8, 0.0  ;;  %v4831_v45 = vmul.f32 %v6971_v18, %v6846_v5  ;;  %v6848_v48 = vpop.eup %6847 }
0x18e4   :  { %v4838_v44 = vsel %vm795_vm2, %v4830_v36, 0.0  ;;  %v4833_v23 = vmul.f32 %v6971_v18, %v6848_v48  ;;  %v6850_v28 = vpop.eup %6849 }
0x18e5   :  { %v4841_v54 = vsel %vm795_vm2, %v4831_v45, 0.0  ;;  %v4835_v16 = vmul.f32 %v6971_v18, %v6850_v28  ;;  %v6852_v27 = vpop.eup %6851 }
0x18e6   :  { %v4847_v4 = vsel %vm795_vm2, %v4833_v23, 0.0  ;;  %v4837_v47 = vmul.f32 %v6971_v18, %v6852_v27 }
0x18e7   :  { %v4853_v13 = vsel %vm795_vm2, %v4835_v16, 0.0 }
0x18e8   :  { %v4859_v0 = vsel %vm795_vm2, %v4837_v47, 0.0 }
0x1956   :  { %v4640_v21 = vpop.xlane.xlu0 %4639 }
0x1957   :  { %vm4641_vm12 = vcmp.eq.f32.partialorder %v4637_v50, %v4640_v21 }
0x1958   :  { %vm4642_vm15 = vmand %vm4641_vm12, %vm1629_vm13 }
0x1959   :  { %v4643_v62 = vsel %vm4642_vm15, %v7513_v43, 128 }
0x195a   :  { %v4644_v40 = vsel %vm1631_vm14, %v4643_v62, 2147483647 }
0x195b   :  { %v4646_v56 = vshra.s32 %v4644_v40, 16  ;;  %v4645_v17 = vand.u32 65535, %v4644_v40  ;;  %v4669_v40 = vmul.f32 %v5726_v14, %v4668_v29 }
0x195d   :  { %v4648_v61 = vcvt.s32.f32 %v4646_v56  ;;  %v4647_v20 = vcvt.s32.f32 %v4645_v17  ;;  %v6974_v17 = vld [vmem:[%s9383_s16 + $0x28] sm:$0xff] }
0x195f   :  { %4649 = vmin.xlane.f32.xlu1 %v4648_v61 }
0x1963   :  { %4845 = vadd.xlane.f32.xlu1 %v4844_v38 }
0x1967   :  { %4851 = vadd.xlane.f32.xlu1 %v4850_v24 }
0x196b   :  { %4857 = vadd.xlane.f32.xlu1 %v4856_v42 }
0x19e8   :  { %v4650_v53 = vpop.xlane.xlu1 %4649 }
0x19e9   :  { %vm4651_vm13 = vcmp.eq.f32.partialorder %v4648_v61, %v4650_v53  ;;  %v4656_v34 = vcvt.f32.s32 %v4650_v53 }
0x19ea   :  { %v4652_v49 = vsel %vm4651_vm13, %v4647_v20, inf  ;;  %v6975_v20 = vld [vmem:[%s9383_s16 + $0x20] sm:$0xff] }
0x19eb   :  { %4653 = vmin.xlane.f32.xlu0 %v4652_v49  ;;  %v4657_v41 = vshll.u32 %v4656_v34, 16 }
0x19ec   :  { %v4846_v62 = vpop.xlane.xlu1 %4845 }
0x19ed   :  { %v4881_v59 = vrot.slane %v4846_v62, %v9535_v6 }
0x19ef   :  { %4839 = vadd.xlane.f32.xlu0 %v4838_v44 }
0x19f0   :  { %v4852_v38 = vpop.xlane.xlu1 %4851 }
0x19f1   :  { %v4889_v26 = vrot.slane %v4852_v38, %v9535_v6  ;;  %v9562_v38 = vld [vmem:[#allocation14_spill] sm:$0xff] }
0x19f3   :  { %4842 = vadd.xlane.f32.xlu0 %v4841_v54 }
0x19f4   :  { %v4858_v58 = vpop.xlane.xlu1 %4857 }
0x19f5   :  { %v4897_v36 = vrot.slane %v4858_v58, %v9535_v6  ;;  %v9567_v58 = vld [vmem:[#allocation23_spill] sm:$0xff] }
0x19f7   :  { %4848 = vadd.xlane.f32.xlu0 %v4847_v4 }
0x19fb   :  { %4854 = vadd.xlane.f32.xlu0 %v4853_v13 }
0x19ff   :  { %4860 = vadd.xlane.f32.xlu0 %v4859_v0 }
0x1a74   :  { %v4654_v50 = vpop.xlane.xlu0 %4653 }
0x1a75   :  { %v4655_v63 = vcvt.f32.s32 %v4654_v50 }
0x1a77   :  { %v4658_v9 = vadd.s32 %v4657_v41, %v4655_v63 }
0x1a78   :  { %v4840_v21 = vpop.xlane.xlu0 %4839 }
0x1a79   :  { %vm4659_vm14 = vcmp.eq.s32.totalorder %v7513_v43, %v4658_v9  ;;  %v4873_v18 = vrot.slane %v4840_v21, %v9535_v6  ;;  %v6972_v43 = vld [vmem:[%s9383_s16 + $0x38] sm:$0xff] }
0x1a7a   :  { %v5724_v12 = vsel %vm4659_vm14, 1.0, %v9478_v15 }
0x1a7b   :  { %v4672_v56 = vmul.f32 %v5724_v12, %v4671_v33 }
0x1a7c   :  { %v4843_v61 = vpop.xlane.xlu0 %4842 }
0x1a7d   :  { %v4877_v31 = vrot.slane %v4843_v61, %v9535_v6  ;;  %v4673_v55 = vadd.f32 %v4672_v56, %v4669_v40  ;;  %v9560_v61 = vld [vmem:[#allocation22_spill] sm:$0xff] }
0x1a7f   :  { %v4902_v57 = vsel %vm863_vm3, %v4877_v31, %v4873_v18  ;;  %6631 = vmatmul.mubr.f32.vlgmr.msra.gmra.mxu0 %v4673_v55  ;;  %v9561_v31 = vld [vmem:[#allocation15_spill] sm:$0xff]  ;;  %vm9573_vm3 = vcmask 130048  }
0x1a80   :  { %v4849_v24 = vpop.xlane.xlu0 %4848  ;;  %6685 = vmatpush3.msra.mxu0 %v6972_v43  ;;  %6692 = vmatprep.mubr.msk.f32.mxu0 %vm7015_vm1, %v9478_v15  ;;  %v4903_v42 = vsel %vm865_vm4, %v4881_v59, %v4902_v57 }
0x1a81   :  { %v4885_v8 = vrot.slane %v4849_v24, %v9535_v6  ;;  %6686 = vmatprep.subr.mxu0 %v9478_v15 }
0x1a82   :  { %6687 = vmatpush3.msra.mxu0 %v6973_v46 }
0x1a83   :  { %v4904_v11 = vsel %vm867_vm5, %v4885_v8, %v4903_v42  ;;  %6688 = vmatprep.subr.mxu0 %v9478_v15  ;;  %v9565_v8 = vld [vmem:[#allocation18_spill] sm:$0xff] }
0x1a84   :  { %v4855_v22 = vpop.xlane.xlu0 %4854  ;;  %6689 = vmatpush3.msra.mxu0 %v6974_v17  ;;  %v4905_v53 = vsel %vm869_vm6, %v4889_v26, %v4904_v11  ;;  %v9566_v26 = vld [vmem:[#allocation21_spill] sm:$0xff] }
0x1a85   :  { %v4893_v39 = vrot.slane %v4855_v22, %v9535_v6  ;;  %6690 = vmatprep.subr.mxu0 %v9478_v15 }
0x1a86   :  { %6691 = vmatpush3.msra.mxu0 %v6975_v20  ;;  %v9568_v20 = vld [vmem:[#allocation20_spill] sm:$0xff] }
0x1a87   :  { %v4906_v49 = vsel %vm871_vm7, %v4893_v39, %v4905_v53  ;;  %6706 = vmatprep.subr.mxu0 %v9478_v15 }
0x1a88   :  { %v4861_v5 = vpop.xlane.xlu0 %4860  ;;  %v4907_v45 = vsel %vm873_vm8, %v4897_v36, %v4906_v49 }
0x1a89   :  { %v4901_v44 = vrot.slane %v4861_v5, %v9535_v6 }
0x1a8b   :  { %v4908_v48 = vsel %vm875_vm9, %v4901_v44, %v4907_v45  ;;  %v9569_v45 = vld [vmem:[#allocation24_spill] sm:$0xff] }
0x1a8c   :  { %v4910_v54 = vsel %vm820_vm10, %v4908_v48, -1e+10 }
0x1a8d   :  { %v4911_v23 = vsel %vm879_vm11, %v4910_v54, -inf }
0x1a8e   :  { %v4912_v28 = vrot.slane %v4911_v23, 4 }
0x1a90   :  { %v4913_v4 = vmax.f32 %v4911_v23, %v4912_v28 }
0x1a92   :  { %v4914_v16 = vrot.slane %v4913_v4, 2 }
0x1a94   :  { %v4915_v27 = vmax.f32 %v4913_v4, %v4914_v16 }
0x1a96   :  { %v4916_v13 = vrot.slane %v4915_v27, 1 }
0x1a98   :  { %v4917_v47 = vmax.f32 %v4915_v27, %v4916_v13 }
0x1a9a   :  { %v4918_v0 = vsub.f32 %v4910_v54, %v4917_v47  ;;  %v9570_v54 = vld [vmem:[#allocation25_spill] sm:$0xff] }
0x1a9c   :  { %v4919_v34 = vmul.f32 1.442695, %v4918_v0 }
0x1a9e   :  { %6853 = vpow2.f32 %v4919_v34 }
0x1aab   :  { %v6854_v50 = vpop.eup %6853 }
0x1aac   :  { %v4921_v6 = vsel %vm879_vm11, %v6854_v50, 0.0 }
0x1aad   :  { %v4922_v41 = vrot.slane %v4921_v6, 4 }
0x1aaf   :  { %v4923_v63 = vadd.f32 %v4922_v41, %v4921_v6  ;;  %v9571_v6 = vld [vmem:[#allocation26_spill] sm:$0xff] }
0x1ab1   :  { %v4924_v14 = vrot.slane %v4923_v63, 2 }
0x1ab3   :  { %v4925_v29 = vadd.f32 %v4924_v14, %v4923_v63 }
0x1ab5   :  { %v4926_v52 = vrot.slane %v4925_v29, 1 }
0x1ab7   :  { %v4927_v9 = vadd.f32 %v4926_v52, %v4925_v29 }
0x1ab9   :  { %6855 = vrcp.f32 %v4927_v9 }
0x1ac6   :  { %v6856_v33 = vpop.eup %6855 }
0x1ac7   :  { %v4929_v21 = vmul.f32 %v6856_v33, %v6854_v50 }
0x1ac9   :  { %v4940_v62 = vrot.slane %v4929_v21, %v9541_v30  ;;  %v4933_v40 = vrot.slane %v4929_v21, %v9542_v35  ;;  %v4968_v12 = vrot.slane %v4929_v21, %v9547_v2  ;;  %v4947_v56 = vrot.slane %v4929_v21, %v9543_v3  ;;  %v9563_v30 = vld [vmem:[#allocation16_spill] sm:$0xff]  ;;  %v9564_v2 = vld [vmem:[#allocation17_spill] sm:$0xff] }
0x1aca   :  { %v4982_v18 = vrot.slane %v4929_v21, %v9560_v61  ;;  %v4954_v55 = vrot.slane %v4929_v21, %v9561_v31  ;;  %v4961_v57 = vrot.slane %v4929_v21, %v9562_v38  ;;  %v4975_v59 = vrot.slane %v4929_v21, %v9563_v30 }
0x1acb   :  { %4942 = vbcast.lane.b32.xlu0 %v4940_v62, 256  ;;  %4935 = vbcast.lane.b32.xlu1 %v4933_v40, 256 }
0x1acf   :  { %4970 = vbcast.lane.b32.xlu0 %v4968_v12, 256  ;;  %4949 = vbcast.lane.b32.xlu1 %v4947_v56, 256  ;;  %v9572_v56 = vld [vmem:[#allocation27_spill] sm:$0xff] }
0x1ad3   :  { %4984 = vbcast.lane.b32.xlu0 %v4982_v18, 256  ;;  %4956 = vbcast.lane.b32.xlu1 %v4954_v55, 256 }
0x1ad7   :  { %4963 = vbcast.lane.b32.xlu1 %v4961_v57, 256 }
0x1adb   :  { %4977 = vbcast.lane.b32.xlu1 %v4975_v59, 256 }
0x1b3d   :  { %v4936_v35 = vpop.permute.xlu1 %4935  ;;  %v4943_v24 = vpop.permute.xlu0 %4942 }
0x1b3e   :  { %v4987_v3 = vmul.f32 %v9564_v2, %v4943_v24  ;;  %v4986_v42 = vmul.f32 %v9565_v8, %v4936_v35  ;;  %v5010_v39 = vmul.f32 %v9567_v58, %v4943_v24  ;;  %v5009_v49 = vmul.f32 %v9568_v20, %v4936_v35  ;;  %v6978_v8 = vld [vmem:[%s9475_s29] sm:$0xff]  ;;  %v6986_v20 = vld [vmem:[%s9380_s13 + $0x18] sm:$0xff] }
0x1b3f   :  { %v9215_v43 = vpop.f32.mrf.mxu0  ;;  %v6983_v58 = vld [vmem:[%s9383_s16 + $0x40] sm:$0xff] }
0x1b40   :  { %v4995_v17 = vsel %vm795_vm2, %v4987_v3, 0.0  ;;  %v4994_v53 = vsel %vm795_vm2, %v4986_v42, 0.0  ;;  %v5018_v4 = vsel %vm795_vm2, %v5010_v39, 0.0  ;;  %v5017_v16 = vsel %vm795_vm2, %v5009_v49, 0.0  ;;  %v6977_v3 = vld [vmem:[%s9383_s16 + $0x58] sm:$0xff]  ;;  %v6979_v42 = vld [vmem:[%s9383_s16 + $0x50] sm:$0xff] }
0x1b41   :  { %v6632_v46 = vpop.f32.mrf.mxu0  ;;  %v4950_v11 = vpop.permute.xlu1 %4949  ;;  %v4996_v28 = vadd.f32 %v4995_v17, %v4994_v53  ;;  %v5019_v14 = vadd.f32 %v5018_v4, %v5017_v16  ;;  %v6982_v17 = vld [vmem:[%s9475_s29 + $0x40] sm:$0xff]  ;;  %v6984_v39 = vld [vmem:[%s9475_s29 + $0x38] sm:$0xff]  ;;  %v6985_v53 = vld [vmem:[%s9475_s29 + $0x30] sm:$0xff] }
0x1b42   :  { %v4988_v22 = vmul.f32 %v9566_v26, %v4950_v11  ;;  %v4971_v36 = vpop.permute.xlu0 %4970  ;;  %v5011_v48 = vmul.f32 %v9569_v45, %v4950_v11  ;;  %v6981_v11 = vld [vmem:[%s9383_s16 + $0x48] sm:$0xff]  ;;  %v6987_v49 = vld [vmem:[%s9380_s13 + $0x10] sm:$0xff] }
0x1b43   :  { %v4991_v34 = vmul.f32 %v8915_v37, %v4971_v36  ;;  %v5014_v31 = vmul.f32 %v8922_v1, %v4971_v36  ;;  %v6976_v1 = vld [vmem:[%s9475_s29 + $0x8] sm:$0xff]  ;;  %v6991_v45 = vld [vmem:[%s9383_s16 + $0x10] sm:$0xff] }
0x1b44   :  { %v4997_v44 = vsel %vm795_vm2, %v4988_v22, 0.0  ;;  %v5020_v50 = vsel %vm795_vm2, %v5011_v48, 0.0  ;;  %v6988_v36 = vld [vmem:[%s9380_s13 + $0x8] sm:$0xff]  ;;  %v6993_v48 = vld [vmem:[%s9383_s16] sm:$0xff] }
0x1b45   :  { %v4957_v5 = vpop.permute.xlu1 %4956  ;;  %v4998_v47 = vadd.f32 %v4997_v44, %v4996_v28  ;;  %v5021_v21 = vadd.f32 %v5020_v50, %v5019_v14  ;;  %v5003_v40 = vsel %vm795_vm2, %v4991_v34, 0.0  ;;  %v5026_v24 = vsel %vm795_vm2, %v5014_v31, 0.0  ;;  %v6990_v44 = vld [vmem:[%s9383_s16 + $0x18] sm:$0xff] }
0x1b46   :  { %v4989_v23 = vmul.f32 %v9570_v54, %v4957_v5  ;;  %v5012_v13 = vmul.f32 %v8894_v51, %v4957_v5  ;;  %v4985_v29 = vpop.permute.xlu0 %4984  ;;  %v6989_v5 = vld [vmem:[%s9380_s13] sm:$0xff] }
0x1b47   :  { %v4993_v37 = vmul.f32 %v8930_v60, %v4985_v29 }
0x1b48   :  { %v4999_v27 = vsel %vm795_vm2, %v4989_v23, 0.0  ;;  %v5022_v9 = vsel %vm795_vm2, %v5012_v13, 0.0 }
0x1b49   :  { %v4964_v0 = vpop.permute.xlu1 %4963  ;;  %v5000_v52 = vadd.f32 %v4999_v27, %v4998_v47  ;;  %v5023_v18 = vadd.f32 %v5022_v9, %v5021_v21  ;;  %v5007_v30 = vsel %vm795_vm2, %v4993_v37, 0.0 }
0x1b4a   :  { %v4990_v41 = vmul.f32 %v9571_v6, %v4964_v0  ;;  %v5013_v63 = vmul.f32 %v8903_v19, %v4964_v0 }
0x1b4c   :  { %v5001_v33 = vsel %vm795_vm2, %v4990_v41, 0.0  ;;  %v5024_v12 = vsel %vm795_vm2, %v5013_v63, 0.0  ;;  %v6994_v63 = vld [vmem:[%s9382_s15] ss:$0 sm:$0xff] }
0x1b4d   :  { %v5002_v62 = vadd.f32 %v5001_v33, %v5000_v52  ;;  %v4978_v51 = vpop.permute.xlu1 %4977  ;;  %v5025_v38 = vadd.f32 %v5024_v12, %v5023_v18  ;;  %v6995_v52 = vld [vmem:[%s9381_s14] ss:$0 sm:$0xff] }
0x1b4e   :  { %v4992_v61 = vmul.f32 %v9572_v56, %v4978_v51  ;;  %v5015_v59 = vmul.f32 %v8938_v7, %v4978_v51  ;;  %v5016_v7 = vmul.f32 %v8946_v10, %v4985_v29  ;;  %v6980_v10 = vld [vmem:[%s9475_s29 + $0x48] sm:$0xff] }
0x1b4f   :  { %v5004_v19 = vadd.f32 %v5003_v40, %v5002_v62  ;;  %v5027_v60 = vadd.f32 %v5026_v24, %v5025_v38 }
0x1b50   :  { %v5005_v55 = vsel %vm795_vm2, %v4992_v61, 0.0  ;;  %v5028_v2 = vsel %vm795_vm2, %v5015_v59, 0.0  ;;  %v5030_v26 = vsel %vm795_vm2, %v5016_v7, 0.0  ;;  %v6996_v59 = vld [vmem:[%s9383_s16 + $0x68] sm:$0xff]  ;;  %vm9574_vm2 = vmmov %vm9573_vm3 }
0x1b51   :  { %v5006_v57 = vadd.f32 %v5005_v55, %v5004_v19  ;;  %v5029_v46 = vadd.f32 %v5028_v2, %v5027_v60 }
0x1b53   :  { %v5008_v35 = vadd.f32 %v5007_v30, %v5006_v57  ;;  %v5031_v22 = vadd.f32 %v5030_v26, %v5029_v46 }
0x1b55   :  { %6653 = vmatmul.mubr.msk.f32.vlgmr.msra.gmra.mxu1 %vm93_vm0, %v5008_v35  ;;  %6693 = vmatmul.mubr.msk.f32.vlgmr.msra.gmra.mxu0 %vm93_vm0, %v5008_v35 }
0x1b56   :  { %6656 = vmatpush3.msra.mxu1 %v6976_v1  ;;  %6707 = vmatpush3.msra.mxu0 %v6977_v3 }
0x1b57   :  { %6657 = vmatprep.subr.mxu1 %v9478_v15  ;;  %6708 = vmatprep.subr.mxu0 %v9478_v15 }
0x1b58   :  { %6658 = vmatpush3.msra.mxu1 %v6978_v8  ;;  %6709 = vmatpush3.msra.mxu0 %v6979_v42  ;;  %v6998_v8 = vld [vmem:[%s9384_s17] ss:$0 sm:$0xff] }
0x1b59   :  { %6659 = vmatprep.mubr.msk.f32.mxu1 %vm7015_vm1, %v9478_v15  ;;  %6662 = vmatprep.subr.mxu1 %v9478_v15 }
0x1b5a   :  { %6710 = vmatprep.subr.mxu0 %v9478_v15  ;;  %6660 = vmatmul.mubr.msk.f32.vlgmr.msra.gmra.mxu1 %vm9573_vm3, %v9215_v43 }
0x1b5b   :  { %6663 = vmatpush3.msra.mxu1 %v6980_v10  ;;  %6711 = vmatpush3.msra.mxu0 %v6981_v11 }
0x1b5c   :  { %6664 = vmatprep.subr.mxu1 %v9478_v15  ;;  %6712 = vmatprep.subr.mxu0 %v9478_v15 }
0x1b5d   :  { %6665 = vmatpush3.msra.mxu1 %v6982_v17  ;;  %6713 = vmatpush3.msra.mxu0 %v6983_v58 }
0x1b5e   :  { %6714 = vmatprep.mubr.msk.f32.mxu0 %vm7015_vm1, %v9478_v15  ;;  %6666 = vmatprep.subr.mxu1 %v9478_v15 }
0x1b5f   :  { %6715 = vmatmul.mubr.msk.f32.vlgmr.msra.gmra.mxu0 %vm93_vm0, %v5031_v22  ;;  %6667 = vmatpush3.msra.mxu1 %v6984_v39 }
0x1b60   :  { %6668 = vmatprep.subr.mxu1 %v9478_v15  ;;  %6670 = vmatprep.mubr.msk.f32.mxu1 %vm7015_vm1, %v9478_v15 }
0x1b61   :  { %6669 = vmatpush3.msra.mxu1 %v6985_v53 }
0x1b62   :  { %6671 = vmatmul.mubr.msk.f32.vlgmr.msra.gmra.mxu1 %vm93_vm0, %v5031_v22  ;;  %6673 = vmatprep.subr.mxu1 %v9478_v15 }
0x1b63   :  { %6674 = vmatpush3.msra.mxu1 %v6986_v20  ;;  %6681 = vmatprep.mubr.msk.f32.mxu1 %vm7015_vm1, %v9478_v15 }
0x1b64   :  { %6675 = vmatprep.subr.mxu1 %v9478_v15 }
0x1b65   :  { %6676 = vmatpush3.msra.mxu1 %v6987_v49 }
0x1b66   :  { %6677 = vmatprep.subr.mxu1 %v9478_v15 }
0x1b67   :  { %6678 = vmatpush3.msra.mxu1 %v6988_v36 }
0x1b68   :  { %6679 = vmatprep.subr.mxu1 %v9478_v15 }
0x1b69   :  { %6680 = vmatpush3.msra.mxu1 %v6989_v5 }
0x1b6a   :  { %6682 = vmatmul.mubr.msk.f32.vlgmr.msra.gmra.mxu1 %vm93_vm0, %v9083_v32  ;;  %6695 = vmatprep.subr.mxu1 %v9478_v15  ;;  %v6992_v32 = vld [vmem:[%s9383_s16 + $0x8] sm:$0xff] }
0x1b6b   :  { %6696 = vmatpush3.msra.mxu1 %v6990_v44  ;;  %6703 = vmatprep.mubr.msk.f32.mxu1 %vm7015_vm1, %v9478_v15 }
0x1b6c   :  { %6697 = vmatprep.subr.mxu1 %v9478_v15 }
0x1b6d   :  { %6698 = vmatpush3.msra.mxu1 %v6991_v45 }
0x1b6e   :  { %6699 = vmatprep.subr.mxu1 %v9478_v15 }
0x1b6f   :  { %6700 = vmatpush3.msra.mxu1 %v6992_v32 }
0x1b70   :  { %6701 = vmatprep.subr.mxu1 %v9478_v15 }
0x1b71   :  { %6702 = vmatpush3.msra.mxu1 %v6993_v48 }
0x1b72   :  { %6717 = vmatprep.subr.mxu1 %v9478_v15 }
0x1c15   :  { %v5101_v54 = vpop.f32.mrf.mxu1  ;;  %v5415_v23 = vpop.f32.mrf.mxu0 }
0x1c17   :  { %v6654_v28 = vpop.f32.mrf.mxu1  ;;  %v6694_v4 = vpop.f32.mrf.mxu0 }
0x1c1a   :  { %v5174_v16 = vpop.f32.mrf.mxu1 }
0x1c1b   :  { %v5175_v27 = vadd.f32 %v5174_v16, %v5101_v54 }
0x1c1c   :  { %v6661_v13 = vpop.f32.mrf.mxu1 }
0x1c1f   :  { %v5560_v47 = vpop.f32.mrf.mxu0 }
0x1c21   :  { %v6716_v0 = vpop.f32.mrf.mxu0 }
0x1c22   :  { %v5247_v34 = vpop.f32.mrf.mxu1 }
0x1c23   :  { %v5251_v50 = vadd.f32 %v5247_v34, %v5175_v27 }
0x1c24   :  { %v6672_v6 = vpop.f32.mrf.mxu1 }
0x1c25   :  { %v5252_v9 = vadd.f32 %v6995_v52, %v5251_v50 }
0x1c2a   :  { %v5319_v41 = vpop.f32.mrf.mxu1 }
0x1c2b   :  { %v5320_v14 = vadd.f32 %v6994_v63, %v5319_v41 }
0x1c2c   :  { %v6683_v29 = vpop.f32.mrf.mxu1 }
0x1c2d   :  { %5331 = vrot.lane.b32.xlu1 %v5320_v14, %s7017_s21  ;;  %v5323_v33 = vadd.f32 %v5320_v14, %v5252_v9 }
0x1c2f   :  { %v5732_v21 = vmul.f32 -1.442695, %v5323_v33 }
0x1c31   :  { %6857 = vpow2.f32 %v5732_v21 }
0x1c3e   :  { %v6858_v62 = vpop.eup %6857 }
0x1c3f   :  { %v5327_v51 = vadd.f32 1.0, %v6858_v62 }
0x1c41   :  { %6859 = vrcp.f32 %v5327_v51 }
0x1c4e   :  { %v6860_v40 = vpop.eup %6859 }
0x1c4f   :  { %v5341_v19 = vsub.f32 1.0, %v6860_v40  ;;  %v5347_v55 = vmul.f32 %v6860_v40, %v9079_v25  ;;  %v6997_v25 = vld [vmem:[%s9383_s16 + $0x60] sm:$0xff] }
0x1c9f   :  { %v5332_v37 = vpop.permute.xlu1 %5331 }
0x1ca0   :  { %v5334_v12 = vmul.f32 %v6860_v40, %v5332_v37 }
0x1ca2   :  { %5336 = vrot.lane.b32.xlu0 %v5334_v12, %s7017_s21 }
0x1d14   :  { %v5337_v56 = vpop.permute.xlu0 %5336 }
0x1d15   :  { %v5339_v61 = vadd.f32 %v5337_v56, %v5252_v9 }
0x1d17   :  { %6861 = vtanh.f32 %v5339_v61 }
0x1d24   :  { %v6862_v18 = vpop.eup %6861 }
0x1d25   :  { %5343 = vrot.lane.b32.xlu1 %v6862_v18, %s7019_s28 }
0x1d97   :  { %v5344_v31 = vpop.permute.xlu1 %5343 }
0x1d98   :  { %v5346_v38 = vmul.f32 %v5344_v31, %v5341_v19 }
0x1d9a   :  { %v5348_v57 = vadd.f32 %v5347_v55, %v5346_v38 }
0x1d9c   :  { %5420 = vrot.lane.b32.xlu0 %v5348_v57, %s7019_s28 }
0x1e0e   :  { %v5421_v30 = vpop.permute.xlu0 %5420 }
0x1e0f   :  { %6704 = vmatmul.mubr.msk.f32.vlgmr.msra.gmra.mxu1 %vm93_vm0, %v5421_v30 }
0x1e10   :  { %6718 = vmatpush3.msra.mxu1 %v6996_v59  ;;  %6721 = vmatprep.mubr.msk.f32.mxu1 %vm7015_vm1, %v9478_v15 }
0x1e11   :  { %6719 = vmatprep.subr.mxu1 %v9478_v15 }
0x1e12   :  { %6720 = vmatpush3.msra.mxu1 %v6997_v25 }
0x1e13   :  { %6722 = vmatmul.mubr.msk.f32.vlgmr.msra.gmra.mxu1 %vm9574_vm2, %v9215_v43 }
0x1ecf   :  { %v5490_v35 = vpop.f32.mrf.mxu1 }
0x1ed0   :  { %v5491_v24 = vadd.f32 %v5490_v35, %v5415_v23 }
0x1ed1   :  { %v6705_v60 = vpop.f32.mrf.mxu1 }
0x1ed2   :  { %v5564_v2 = vadd.f32 %v5560_v47, %v5491_v24 }
0x1ed3   :  { %v5631_v1 = vpop.f32.mrf.mxu1 }
0x1ed4   :  { %v5635_v3 = vadd.f32 %v5631_v1, %v5564_v2 }
0x1ed5   :  { %v6723_v7 = vpop.f32.mrf.mxu1 }
0x1ed6   :  { %v5636_v15 = vadd.f32 %v6998_v8, %v5635_v3 }
0x1ed8   :  { %5737 = vst [vmem:[%s9385_s18 + $0x8] sm:$0x3] %v5636_v15 }

</bundles_post_ra>
